<compile_context>
chip_gen: v6e
topology: v6e:2x2x1
jax: 0.10.0
libtpu: 0.0.40
codegen_flags: <defaults>
</compile_context>

<pallas_src>
import functools

import jax
import jax.numpy as jnp
from jax import lax
from jax.experimental import pallas as pl
from jax.experimental.pallas import tpu as pltpu


# ----------------------------- helpers -------------------------------------


def _round_up(x, m):
    return ((x + m - 1) // m) * m


def _choose_tm(M, tm):
    """Largest 8-aligned row tile <= requested (no forced multi-step split)."""
    return max(8, min(_round_up(tm, 8), _round_up(M, 8)))


def _choose_q_tile(N, tq_req):
    """Largest 8-aligned q-row tile that divides N (softmax rows independent)."""
    if N % 8 != 0:
        return N
    tq = min(_round_up(tq_req, 8), N)
    while tq > 8 and N % tq != 0:
        tq -= 8
    return tq if (tq > 0 and N % tq == 0) else N


def _vmem_cap_bytes():
    """Per-generation scoped-VMEM ceiling: physical minus 8 MiB headroom
    (64 MiB/TC on v7x, 128 MiB on v5e/v6e), conservative 64 MiB fallback."""
    try:
        cap = int(pltpu.get_tpu_info().vmem_capacity_bytes)
    except Exception:
        cap = 64 << 20
    return min(max(cap - (8 << 20), 16 << 20), 112 << 20)


def _vmem_limit(need_bytes):
    return int(min(max(2 * need_bytes + (4 << 20), 16 << 20), _vmem_cap_bytes()))


# ----------------------------- kernels -------------------------------------


def _qkv_kernel(x_ref, w_ref, b_ref, o_ref):
    # x_ref: (tm, C), w_ref: (C, 3C), b_ref: (1, 3C), o_ref: (tm, 3C)
    y = jnp.dot(x_ref[...], w_ref[...], preferred_element_type=jnp.float32)
    o_ref[...] = (y + b_ref[...]).astype(o_ref.dtype)


def _attn_proj_kernel(q_ref, k_ref, v_ref, wp_ref, bp_ref,
                      attn_ref, mu_ref, ls_ref, *,
                      scale, num_heads, approx_recip):
    # q_ref: (1, tq, C)   -- q columns of qkv, rows of the current q tile
    # k_ref/v_ref: (1, N, C) -- k / v columns of qkv, all rows of this batch
    # wp_ref: (C, 2C) block-diagonal packed [Wmu | Wls]; bp_ref: (1, 2C)
    # attn_ref: (1, H, tq, N); mu_ref / ls_ref: (1, tq, C)
    H = num_heads
    tq, C = q_ref.shape[1], q_ref.shape[2]
    hd = C // H

    qf = q_ref[0] * scale          # fold scale into the small q tile (VPU-cheap)
    kf = k_ref[0]
    vf = v_ref[0]

    ctx_parts = []
    for h in range(H):             # static unroll over heads; all VMEM-resident
        sl = slice(h * hd, (h + 1) * hd)
        q_h = qf[:, sl]            # (tq, hd)
        k_h = kf[:, sl]            # (N,  hd)
        v_h = vf[:, sl]            # (N,  hd)
        # scores with f32 accumulation on the MXU (contract the hd axis)
        s = lax.dot_general(q_h, k_h, (((1,), (1,)), ((), ())),
                            preferred_element_type=jnp.float32)   # (tq, N)
        m = jnp.max(s, axis=-1, keepdims=True)
        p = jnp.exp(s - m)
        l = jnp.sum(p, axis=-1, keepdims=True)
        inv = pl.reciprocal(l, approx=approx_recip)               # (tq, 1)
        attn_h = p * inv
        attn_ref[0, h, :, :] = attn_h.astype(attn_ref.dtype)
        ctx_parts.append(jnp.dot(attn_h.astype(v_h.dtype), v_h,
                                 preferred_element_type=jnp.float32))  # (tq, hd)

    # head-major channel concat == torch (attn @ v).transpose(1,2).reshape(B,N,C)
    ctx = jnp.concatenate(ctx_parts, axis=-1)                     # (tq, C)
    proj = jnp.dot(ctx.astype(wp_ref.dtype), wp_ref[...],
                   preferred_element_type=jnp.float32) + bp_ref[...]  # (tq, 2C)
    mu_ref[0] = proj[:, :C].astype(mu_ref.dtype)
    ls_ref[0] = proj[:, C:].astype(ls_ref.dtype)


# --------------------------- pallas_call wrappers ---------------------------


def _qkv_projection(x2, wqkv, bqkv, tm):
    M, C = x2.shape
    C3 = wqkv.shape[1]
    tm = _choose_tm(M, tm)
    Mp = _round_up(M, tm)
    xp = jnp.pad(x2, ((0, Mp - M), (0, 0))) if Mp != M else x2
    b2 = bqkv.reshape(1, C3)

    esz = x2.dtype.itemsize
    need = (2 * tm * C + 2 * tm * C3 + 2 * (C * C3 + C3)) * esz

    out = pl.pallas_call(
        _qkv_kernel,
        out_shape=jax.ShapeDtypeStruct((Mp, C3), x2.dtype),
        grid_spec=pltpu.PrefetchScalarGridSpec(
            num_scalar_prefetch=0,
            grid=(Mp // tm,),
            in_specs=[
                pl.BlockSpec((tm, C), lambda i: (i, 0)),
                pl.BlockSpec((C, C3), lambda i: (0, 0)),   # weight: VMEM-resident
                pl.BlockSpec((1, C3), lambda i: (0, 0)),
            ],
            out_specs=pl.BlockSpec((tm, C3), lambda i: (i, 0)),
        ),
        compiler_params=pltpu.CompilerParams(
            dimension_semantics=("parallel",),
            vmem_limit_bytes=_vmem_limit(need)),
    )(xp, wqkv, b2)
    return out[:M] if Mp != M else out


def _attention_dual_proj(qkv, wp, bp, *, scale, num_heads, tq_req, approx_recip):
    B, N, C3 = qkv.shape
    C = C3 // 3
    H = num_heads
    tq = _choose_q_tile(N, tq_req)
    n_q = N // tq

    esz = qkv.dtype.itemsize
    need = (esz * 2 * (tq * C + 2 * N * C + 2 * C * C + 2 * C
                       + H * tq * N + 2 * tq * C)
            + 4 * (3 * tq * N + 3 * tq * C))

    kernel = functools.partial(_attn_proj_kernel, scale=scale,
                               num_heads=H, approx_recip=approx_recip)
    attn, mu, ls = pl.pallas_call(
        kernel,
        out_shape=(jax.ShapeDtypeStruct((B, H, N, N), qkv.dtype),
                   jax.ShapeDtypeStruct((B, N, C), qkv.dtype),
                   jax.ShapeDtypeStruct((B, N, C), qkv.dtype)),
        grid_spec=pltpu.PrefetchScalarGridSpec(
            num_scalar_prefetch=0,
            grid=(B, n_q),
            in_specs=[
                # q / k / v are C-wide column blocks of the same (B, N, 3C) qkv
                # array -> the head-split/transpose never touches HBM.
                pl.BlockSpec((1, tq, C), lambda b, qi: (b, qi, 0)),
                pl.BlockSpec((1, N, C), lambda b, qi: (b, 0, 1)),
                pl.BlockSpec((1, N, C), lambda b, qi: (b, 0, 2)),
                # grid-invariant packed projection weight / bias
                pl.BlockSpec((C, 2 * C), lambda b, qi: (0, 0)),
                pl.BlockSpec((1, 2 * C), lambda b, qi: (0, 0)),
            ],
            out_specs=(
                pl.BlockSpec((1, H, tq, N), lambda b, qi: (b, 0, qi, 0)),
                pl.BlockSpec((1, tq, C), lambda b, qi: (b, qi, 0)),
                pl.BlockSpec((1, tq, C), lambda b, qi: (b, qi, 0)),
            ),
        ),
        compiler_params=pltpu.CompilerParams(
            dimension_semantics=("parallel", "parallel"),
            vmem_limit_bytes=_vmem_limit(need)),
    )(qkv, qkv, qkv, wp, bp)
    return attn, mu, ls


# ------------------------------- forward ------------------------------------


@functools.partial(
    jax.jit,
    static_argnames=("num_heads", "qk_scale", "tm", "tq", "approx_reciprocal"))
def dis_attention_forward(x, wqkv, bqkv, wmu, bmu, wls, bls, mask=None, *,
                          num_heads=8, qk_scale=None, tm=256, tq=256,
                          approx_reciprocal=False):
    """DisAttention forward (inference). Returns (mu, logsigma, attn).

    x: (B, N, C); wqkv: (C, 3C); bqkv: (3C,); wmu/wls: (C//2, C); bmu/bls: (C,)
    Weights are stored transposed relative to torch.nn.Linear (y = x @ W + b).
    """
    if mask is not None:
        # TODO(synk): additive attention mask not implemented (inference path
        # uses mask=None); train-mode dropout is identity at p=0.0.
        raise NotImplementedError("DisAttention Pallas kernel: mask must be None")

    B, N, C = x.shape
    H = num_heads
    hd = C // H
    scale = qk_scale if qk_scale is not None else float(hd) ** -0.5
    M = B * N

    qkv = _qkv_projection(x.reshape(M, C), wqkv, bqkv, tm)
    qkv = qkv.reshape(B, N, 3 * C)                     # free (row-major metadata)

    # Pack the two half-channel projections into one block-diagonal weight so
    # the fused kernel emits mu/logsigma with a single full-fill MXU pass.
    Ch = C // 2
    wp = jnp.zeros((C, 2 * C), dtype=wmu.dtype)
    wp = wp.at[:Ch, :C].set(wmu)
    wp = wp.at[Ch:, C:].set(wls)
    bp = jnp.concatenate([bmu, bls]).reshape(1, 2 * C)

    attn, mu, logsigma = _attention_dual_proj(
        qkv, wp, bp, scale=scale, num_heads=H, tq_req=tq,
        approx_recip=approx_reciprocal)
    return mu, logsigma, attn


# ------------------------------- reference ----------------------------------


def reference_forward(x, wqkv, bqkv, wmu, bmu, wls, bls, *, num_heads=8,
                      qk_scale=None):
    B, N, C = x.shape
    hd = C // num_heads
    scale = qk_scale if qk_scale is not None else float(hd) ** -0.5
    hi = lax.Precision.HIGHEST
    qkv = jnp.einsum("bnc,ck->bnk", x, wqkv, precision=hi) + bqkv
    qkv = qkv.reshape(B, N, 3, num_heads, hd).transpose(2, 0, 3, 1, 4)
    q, k, v = qkv[0], qkv[1], qkv[2]
    attn = jnp.einsum("bhqd,bhkd->bhqk", q, k, precision=hi) * scale
    attn = jax.nn.softmax(attn, axis=-1)
    ctx = jnp.einsum("bhqk,bhkd->bhqd", attn, v, precision=hi)
    ctx = ctx.transpose(0, 2, 1, 3).reshape(B, N, C)
    mu_in, ls_in = ctx[..., :C // 2], ctx[..., C // 2:]
    mu = jnp.einsum("bnc,ck->bnk", mu_in, wmu, precision=hi) + bmu
    ls = jnp.einsum("bnc,ck->bnk", ls_in, wls, precision=hi) + bls
    return mu, ls, attn


# --------------------------------- main --------------------------------------


if __name__ == "__main__":
    # Small but lane-dense shapes: B=2, seq N=128, dim C=128, 8 heads (hd=16).
    B, N, C, H = 2, 128, 128, 8

    key = jax.random.PRNGKey(0)
    kx, kw, kmw, kmb, klw, klb = jax.random.split(key, 6)

    x = jax.random.normal(kx, (B, N, C), dtype=jnp.float32)

    lim_qkv = 1.0 / (C ** 0.5)
    lim_p = 1.0 / ((C // 2) ** 0.5)
    wqkv = jax.random.uniform(kw, (C, 3 * C), jnp.float32, -lim_qkv, lim_qkv)
    bqkv = jnp.zeros((3 * C,), jnp.float32)        # qkv_bias=False (module default)
    wmu = jax.random.uniform(kmw, (C // 2, C), jnp.float32, -lim_p, lim_p)
    bmu = jax.random.uniform(kmb, (C,), jnp.float32, -lim_p, lim_p)
    wls = jax.random.uniform(klw, (C // 2, C), jnp.float32, -lim_p, lim_p)
    bls = jax.random.uniform(klb, (C,), jnp.float32, -lim_p, lim_p)

    args = (x, wqkv, bqkv, wmu, bmu, wls, bls)
    mu, logsigma, attn = jax.block_until_ready(
        dis_attention_forward(*args, num_heads=H))

    ref_mu, ref_ls, ref_attn = reference_forward(*args, num_heads=H)

    assert mu.shape == (B, N, C), mu.shape
    assert logsigma.shape == (B, N, C), logsigma.shape
    assert attn.shape == (B, H, N, N), attn.shape
    assert jnp.allclose(attn, ref_attn, atol=2e-4, rtol=2e-4), "attn mismatch"
    assert jnp.allclose(mu, ref_mu, atol=2e-4, rtol=2e-4), "mu mismatch"
    assert jnp.allclose(logsigma, ref_ls, atol=2e-4, rtol=2e-4), "logsigma mismatch"

    print("KERNEL_OK")
</pallas_src>

<mosaic_0001>
module attributes {stable_mosaic.version = 11 : i64} {
  func.func @_qkv_kernel(%arg0: i32, %arg1: memref<256x128xf32, #tpu.memory_space<vmem>>, %arg2: memref<128x384xf32, #tpu.memory_space<vmem>>, %arg3: memref<1x384xf32, #tpu.memory_space<vmem>>, %arg4: memref<256x384xf32, #tpu.memory_space<vmem>>) attributes {dimension_semantics = [#tpu.dimension_semantics<parallel>], iteration_bounds = array<i64: 1>, scalar_prefetch = 0 : i64, scratch_operands = 0 : i64, tpu.core_type = #tpu.core_type<tc>, window_params = [{transform_indices = @transform_0, window_bounds = array<i64: 256, 128>}, {pipeline_mode = #tpu.pipeline_mode<synchronous>, transform_indices = @transform_1, window_bounds = array<i64: 128, 384>}, {pipeline_mode = #tpu.pipeline_mode<synchronous>, transform_indices = @transform_2, window_bounds = array<i64: 1, 384>}, {transform_indices = @transform_3, window_bounds = array<i64: 256, 384>}]} {
    %c0 = arith.constant 0 : index
    %c0_0 = arith.constant 0 : index
    %0 = vector.load %arg1[%c0, %c0_0] : memref<256x128xf32, #tpu.memory_space<vmem>>, vector<256x128xf32>
    %c0_1 = arith.constant 0 : index
    %c0_2 = arith.constant 0 : index
    %1 = vector.load %arg2[%c0_1, %c0_2] : memref<128x384xf32, #tpu.memory_space<vmem>>, vector<128x384xf32>
    %cst = arith.constant dense<0.000000e+00> : vector<256x384xf32>
    %2 = tpu.matmul %0, %1, %cst {dimension_numbers = #tpu.dot_dimension_numbers<[1], [0], [0], [1], [0, 0, 1, 1], [], []>} : vector<256x128xf32>, vector<128x384xf32>, vector<256x384xf32> -> vector<256x384xf32>
    %c0_3 = arith.constant 0 : index
    %c0_4 = arith.constant 0 : index
    %3 = vector.load %arg3[%c0_3, %c0_4] : memref<1x384xf32, #tpu.memory_space<vmem>>, vector<1x384xf32>
    %4 = vector.broadcast %3 : vector<1x384xf32> to vector<256x384xf32>
    %5 = arith.addf %2, %4 : vector<256x384xf32>
    %c0_5 = arith.constant 0 : index
    %c0_6 = arith.constant 0 : index
    %6 = vector.load %arg4[%c0_5, %c0_6] : memref<256x384xf32, #tpu.memory_space<vmem>>, vector<256x384xf32>
    tpu.vector_store %arg4[%c0_5, %c0_6], %5 {strides = array<i32>} : memref<256x384xf32, #tpu.memory_space<vmem>>, vector<256x384xf32>,
    return
  }
  func.func @transform_0(%arg0: i32) -> (i32, i32) {
    %c0_i32 = arith.constant 0 : i32
    %c0_i32_0 = arith.constant 0 : i32
    return %arg0, %c0_i32 : i32, i32
  }
  func.func @transform_1(%arg0: i32) -> (i32, i32) {
    %c0_i32 = arith.constant 0 : i32
    %c0_i32_0 = arith.constant 0 : i32
    %c0_i32_1 = arith.constant 0 : i32
    return %c0_i32, %c0_i32_0 : i32, i32
  }
  func.func @transform_2(%arg0: i32) -> (i32, i32) {
    %c0_i32 = arith.constant 0 : i32
    %c0_i32_0 = arith.constant 0 : i32
    %c0_i32_1 = arith.constant 0 : i32
    return %c0_i32, %c0_i32_0 : i32, i32
  }
  func.func @transform_3(%arg0: i32) -> (i32, i32) {
    %c0_i32 = arith.constant 0 : i32
    %c0_i32_0 = arith.constant 0 : i32
    return %arg0, %c0_i32 : i32, i32
  }
}

module attributes {stable_mosaic.version = 11 : i64} {
  func.func @_attn_proj_kernel(%arg0: i32, %arg1: i32, %arg2: memref<1x128x128xf32, #tpu.memory_space<vmem>>, %arg3: memref<1x128x128xf32, #tpu.memory_space<vmem>>, %arg4: memref<1x128x128xf32, #tpu.memory_space<vmem>>, %arg5: memref<128x256xf32, #tpu.memory_space<vmem>>, %arg6: memref<1x256xf32, #tpu.memory_space<vmem>>, %arg7: memref<1x8x128x128xf32, #tpu.memory_space<vmem>>, %arg8: memref<1x128x128xf32, #tpu.memory_space<vmem>>, %arg9: memref<1x128x128xf32, #tpu.memory_space<vmem>>) attributes {dimension_semantics = [#tpu.dimension_semantics<parallel>, #tpu.dimension_semantics<parallel>], iteration_bounds = array<i64: 2, 1>, scalar_prefetch = 0 : i64, scratch_operands = 0 : i64, tpu.core_type = #tpu.core_type<tc>, window_params = [{transform_indices = @transform_0, window_bounds = array<i64: 1, 128, 128>}, {transform_indices = @transform_1, window_bounds = array<i64: 1, 128, 128>}, {transform_indices = @transform_2, window_bounds = array<i64: 1, 128, 128>}, {pipeline_mode = #tpu.pipeline_mode<synchronous>, transform_indices = @transform_3, window_bounds = array<i64: 128, 256>}, {pipeline_mode = #tpu.pipeline_mode<synchronous>, transform_indices = @transform_4, window_bounds = array<i64: 1, 256>}, {transform_indices = @transform_5, window_bounds = array<i64: 1, 8, 128, 128>}, {transform_indices = @transform_6, window_bounds = array<i64: 1, 128, 128>}, {transform_indices = @transform_7, window_bounds = array<i64: 1, 128, 128>}]} {
    %c0 = arith.constant 0 : index
    %c0_0 = arith.constant 0 : index
    %c0_1 = arith.constant 0 : index
    %0 = vector.load %arg2[%c0, %c0_0, %c0_1] : memref<1x128x128xf32, #tpu.memory_space<vmem>>, vector<1x128x128xf32>
    %1 = vector.shape_cast %0 : vector<1x128x128xf32> to vector<128x128xf32>
    %cst = arith.constant 2.500000e-01 : f32
    %2 = vector.broadcast %cst : f32 to vector<128x128xf32>
    %3 = arith.mulf %1, %2 : vector<128x128xf32>
    %c0_2 = arith.constant 0 : index
    %c0_3 = arith.constant 0 : index
    %c0_4 = arith.constant 0 : index
    %4 = vector.load %arg3[%c0_2, %c0_3, %c0_4] : memref<1x128x128xf32, #tpu.memory_space<vmem>>, vector<1x128x128xf32>
    %5 = vector.shape_cast %4 : vector<1x128x128xf32> to vector<128x128xf32>
    %c0_5 = arith.constant 0 : index
    %c0_6 = arith.constant 0 : index
    %c0_7 = arith.constant 0 : index
    %6 = vector.load %arg4[%c0_5, %c0_6, %c0_7] : memref<1x128x128xf32, #tpu.memory_space<vmem>>, vector<1x128x128xf32>
    %7 = vector.shape_cast %6 : vector<1x128x128xf32> to vector<128x128xf32>
    %8 = vector.extract_strided_slice %3 {offsets = [0, 0], sizes = [128, 16], strides = [1, 1]} : vector<128x128xf32> to vector<128x16xf32>
    %9 = vector.extract_strided_slice %5 {offsets = [0, 0], sizes = [128, 16], strides = [1, 1]} : vector<128x128xf32> to vector<128x16xf32>
    %10 = vector.extract_strided_slice %7 {offsets = [0, 0], sizes = [128, 16], strides = [1, 1]} : vector<128x128xf32> to vector<128x16xf32>
    %cst_8 = arith.constant dense<0.000000e+00> : vector<128x128xf32>
    %11 = tpu.matmul %8, %9, %cst_8 {dimension_numbers = #tpu.dot_dimension_numbers<[1], [1], [0], [0], [0, 0, 1, 0], [], []>} : vector<128x16xf32>, vector<128x16xf32>, vector<128x128xf32> -> vector<128x128xf32>
    %cst_9 = arith.constant dense<0xFF800000> : vector<128xf32>
    %12 = vector.multi_reduction <maximumf>, %11, %cst_9 [1] : vector<128x128xf32> to vector<128xf32>
    %13 = vector.shape_cast %12 : vector<128xf32> to vector<128x1xf32>
    %14 = vector.broadcast %13 : vector<128x1xf32> to vector<128x128xf32>
    %15 = arith.subf %11, %14 : vector<128x128xf32>
    %16 = math.exp %15 : vector<128x128xf32>
    %cst_10 = arith.constant dense<0.000000e+00> : vector<128xf32>
    %17 = vector.multi_reduction <add>, %16, %cst_10 [1] : vector<128x128xf32> to vector<128xf32>
    %18 = vector.shape_cast %17 : vector<128xf32> to vector<128x1xf32>
    %19 = tpu.reciprocal %18 : vector<128x1xf32> -> vector<128x1xf32>
    %20 = vector.broadcast %19 : vector<128x1xf32> to vector<128x128xf32>
    %21 = arith.mulf %16, %20 : vector<128x128xf32>
    %c0_11 = arith.constant 0 : index
    %c0_12 = arith.constant 0 : index
    %c0_13 = arith.constant 0 : index
    %c0_14 = arith.constant 0 : index
    %22 = vector.load %arg7[%c0_11, %c0_12, %c0_13, %c0_14] : memref<1x8x128x128xf32, #tpu.memory_space<vmem>>, vector<1x1x128x128xf32>
    %23 = vector.shape_cast %22 : vector<1x1x128x128xf32> to vector<128x128xf32>
    %24 = vector.shape_cast %21 : vector<128x128xf32> to vector<1x1x128x128xf32>
    tpu.vector_store %arg7[%c0_11, %c0_12, %c0_13, %c0_14], %24 {strides = array<i32>} : memref<1x8x128x128xf32, #tpu.memory_space<vmem>>, vector<1x1x128x128xf32>,
    %cst_15 = arith.constant dense<0.000000e+00> : vector<128x16xf32>
    %25 = tpu.matmul %21, %10, %cst_15 {dimension_numbers = #tpu.dot_dimension_numbers<[1], [0], [0], [1], [0, 0, 1, 1], [], []>} : vector<128x128xf32>, vector<128x16xf32>, vector<128x16xf32> -> vector<128x16xf32>
    %26 = vector.extract_strided_slice %3 {offsets = [0, 16], sizes = [128, 16], strides = [1, 1]} : vector<128x128xf32> to vector<128x16xf32>
    %27 = vector.extract_strided_slice %5 {offsets = [0, 16], sizes = [128, 16], strides = [1, 1]} : vector<128x128xf32> to vector<128x16xf32>
    %28 = vector.extract_strided_slice %7 {offsets = [0, 16], sizes = [128, 16], strides = [1, 1]} : vector<128x128xf32> to vector<128x16xf32>
    %cst_16 = arith.constant dense<0.000000e+00> : vector<128x128xf32>
    %29 = tpu.matmul %26, %27, %cst_16 {dimension_numbers = #tpu.dot_dimension_numbers<[1], [1], [0], [0], [0, 0, 1, 0], [], []>} : vector<128x16xf32>, vector<128x16xf32>, vector<128x128xf32> -> vector<128x128xf32>
    %cst_17 = arith.constant dense<0xFF800000> : vector<128xf32>
    %30 = vector.multi_reduction <maximumf>, %29, %cst_17 [1] : vector<128x128xf32> to vector<128xf32>
    %31 = vector.shape_cast %30 : vector<128xf32> to vector<128x1xf32>
    %32 = vector.broadcast %31 : vector<128x1xf32> to vector<128x128xf32>
    %33 = arith.subf %29, %32 : vector<128x128xf32>
    %34 = math.exp %33 : vector<128x128xf32>
    %cst_18 = arith.constant dense<0.000000e+00> : vector<128xf32>
    %35 = vector.multi_reduction <add>, %34, %cst_18 [1] : vector<128x128xf32> to vector<128xf32>
    %36 = vector.shape_cast %35 : vector<128xf32> to vector<128x1xf32>
    %37 = tpu.reciprocal %36 : vector<128x1xf32> -> vector<128x1xf32>
    %38 = vector.broadcast %37 : vector<128x1xf32> to vector<128x128xf32>
    %39 = arith.mulf %34, %38 : vector<128x128xf32>
    %c0_19 = arith.constant 0 : index
    %c1 = arith.constant 1 : index
    %c0_20 = arith.constant 0 : index
    %c0_21 = arith.constant 0 : index
    %40 = vector.load %arg7[%c0_19, %c1, %c0_20, %c0_21] : memref<1x8x128x128xf32, #tpu.memory_space<vmem>>, vector<1x1x128x128xf32>
    %41 = vector.shape_cast %40 : vector<1x1x128x128xf32> to vector<128x128xf32>
    %42 = vector.shape_cast %39 : vector<128x128xf32> to vector<1x1x128x128xf32>
    tpu.vector_store %arg7[%c0_19, %c1, %c0_20, %c0_21], %42 {strides = array<i32>} : memref<1x8x128x128xf32, #tpu.memory_space<vmem>>, vector<1x1x128x128xf32>,
    %cst_22 = arith.constant dense<0.000000e+00> : vector<128x16xf32>
    %43 = tpu.matmul %39, %28, %cst_22 {dimension_numbers = #tpu.dot_dimension_numbers<[1], [0], [0], [1], [0, 0, 1, 1], [], []>} : vector<128x128xf32>, vector<128x16xf32>, vector<128x16xf32> -> vector<128x16xf32>
    %44 = vector.extract_strided_slice %3 {offsets = [0, 32], sizes = [128, 16], strides = [1, 1]} : vector<128x128xf32> to vector<128x16xf32>
    %45 = vector.extract_strided_slice %5 {offsets = [0, 32], sizes = [128, 16], strides = [1, 1]} : vector<128x128xf32> to vector<128x16xf32>
    %46 = vector.extract_strided_slice %7 {offsets = [0, 32], sizes = [128, 16], strides = [1, 1]} : vector<128x128xf32> to vector<128x16xf32>
    %cst_23 = arith.constant dense<0.000000e+00> : vector<128x128xf32>
    %47 = tpu.matmul %44, %45, %cst_23 {dimension_numbers = #tpu.dot_dimension_numbers<[1], [1], [0], [0], [0, 0, 1, 0], [], []>} : vector<128x16xf32>, vector<128x16xf32>, vector<128x128xf32> -> vector<128x128xf32>
    %cst_24 = arith.constant dense<0xFF800000> : vector<128xf32>
    %48 = vector.multi_reduction <maximumf>, %47, %cst_24 [1] : vector<128x128xf32> to vector<128xf32>
    %49 = vector.shape_cast %48 : vector<128xf32> to vector<128x1xf32>
    %50 = vector.broadcast %49 : vector<128x1xf32> to vector<128x128xf32>
    %51 = arith.subf %47, %50 : vector<128x128xf32>
    %52 = math.exp %51 : vector<128x128xf32>
    %cst_25 = arith.constant dense<0.000000e+00> : vector<128xf32>
    %53 = vector.multi_reduction <add>, %52, %cst_25 [1] : vector<128x128xf32> to vector<128xf32>
    %54 = vector.shape_cast %53 : vector<128xf32> to vector<128x1xf32>
    %55 = tpu.reciprocal %54 : vector<128x1xf32> -> vector<128x1xf32>
    %56 = vector.broadcast %55 : vector<128x1xf32> to vector<128x128xf32>
    %57 = arith.mulf %52, %56 : vector<128x128xf32>
    %c0_26 = arith.constant 0 : index
    %c2 = arith.constant 2 : index
    %c0_27 = arith.constant 0 : index
    %c0_28 = arith.constant 0 : index
    %58 = vector.load %arg7[%c0_26, %c2, %c0_27, %c0_28] : memref<1x8x128x128xf32, #tpu.memory_space<vmem>>, vector<1x1x128x128xf32>
    %59 = vector.shape_cast %58 : vector<1x1x128x128xf32> to vector<128x128xf32>
    %60 = vector.shape_cast %57 : vector<128x128xf32> to vector<1x1x128x128xf32>
    tpu.vector_store %arg7[%c0_26, %c2, %c0_27, %c0_28], %60 {strides = array<i32>} : memref<1x8x128x128xf32, #tpu.memory_space<vmem>>, vector<1x1x128x128xf32>,
    %cst_29 = arith.constant dense<0.000000e+00> : vector<128x16xf32>
    %61 = tpu.matmul %57, %46, %cst_29 {dimension_numbers = #tpu.dot_dimension_numbers<[1], [0], [0], [1], [0, 0, 1, 1], [], []>} : vector<128x128xf32>, vector<128x16xf32>, vector<128x16xf32> -> vector<128x16xf32>
    %62 = vector.extract_strided_slice %3 {offsets = [0, 48], sizes = [128, 16], strides = [1, 1]} : vector<128x128xf32> to vector<128x16xf32>
    %63 = vector.extract_strided_slice %5 {offsets = [0, 48], sizes = [128, 16], strides = [1, 1]} : vector<128x128xf32> to vector<128x16xf32>
    %64 = vector.extract_strided_slice %7 {offsets = [0, 48], sizes = [128, 16], strides = [1, 1]} : vector<128x128xf32> to vector<128x16xf32>
    %cst_30 = arith.constant dense<0.000000e+00> : vector<128x128xf32>
    %65 = tpu.matmul %62, %63, %cst_30 {dimension_numbers = #tpu.dot_dimension_numbers<[1], [1], [0], [0], [0, 0, 1, 0], [], []>} : vector<128x16xf32>, vector<128x16xf32>, vector<128x128xf32> -> vector<128x128xf32>
    %cst_31 = arith.constant dense<0xFF800000> : vector<128xf32>
    %66 = vector.multi_reduction <maximumf>, %65, %cst_31 [1] : vector<128x128xf32> to vector<128xf32>
    %67 = vector.shape_cast %66 : vector<128xf32> to vector<128x1xf32>
    %68 = vector.broadcast %67 : vector<128x1xf32> to vector<128x128xf32>
    %69 = arith.subf %65, %68 : vector<128x128xf32>
    %70 = math.exp %69 : vector<128x128xf32>
    %cst_32 = arith.constant dense<0.000000e+00> : vector<128xf32>
    %71 = vector.multi_reduction <add>, %70, %cst_32 [1] : vector<128x128xf32> to vector<128xf32>
    %72 = vector.shape_cast %71 : vector<128xf32> to vector<128x1xf32>
    %73 = tpu.reciprocal %72 : vector<128x1xf32> -> vector<128x1xf32>
    %74 = vector.broadcast %73 : vector<128x1xf32> to vector<128x128xf32>
    %75 = arith.mulf %70, %74 : vector<128x128xf32>
    %c0_33 = arith.constant 0 : index
    %c3 = arith.constant 3 : index
    %c0_34 = arith.constant 0 : index
    %c0_35 = arith.constant 0 : index
    %76 = vector.load %arg7[%c0_33, %c3, %c0_34, %c0_35] : memref<1x8x128x128xf32, #tpu.memory_space<vmem>>, vector<1x1x128x128xf32>
    %77 = vector.shape_cast %76 : vector<1x1x128x128xf32> to vector<128x128xf32>
    %78 = vector.shape_cast %75 : vector<128x128xf32> to vector<1x1x128x128xf32>
    tpu.vector_store %arg7[%c0_33, %c3, %c0_34, %c0_35], %78 {strides = array<i32>} : memref<1x8x128x128xf32, #tpu.memory_space<vmem>>, vector<1x1x128x128xf32>,
    %cst_36 = arith.constant dense<0.000000e+00> : vector<128x16xf32>
    %79 = tpu.matmul %75, %64, %cst_36 {dimension_numbers = #tpu.dot_dimension_numbers<[1], [0], [0], [1], [0, 0, 1, 1], [], []>} : vector<128x128xf32>, vector<128x16xf32>, vector<128x16xf32> -> vector<128x16xf32>
    %80 = vector.extract_strided_slice %3 {offsets = [0, 64], sizes = [128, 16], strides = [1, 1]} : vector<128x128xf32> to vector<128x16xf32>
    %81 = vector.extract_strided_slice %5 {offsets = [0, 64], sizes = [128, 16], strides = [1, 1]} : vector<128x128xf32> to vector<128x16xf32>
    %82 = vector.extract_strided_slice %7 {offsets = [0, 64], sizes = [128, 16], strides = [1, 1]} : vector<128x128xf32> to vector<128x16xf32>
    %cst_37 = arith.constant dense<0.000000e+00> : vector<128x128xf32>
    %83 = tpu.matmul %80, %81, %cst_37 {dimension_numbers = #tpu.dot_dimension_numbers<[1], [1], [0], [0], [0, 0, 1, 0], [], []>} : vector<128x16xf32>, vector<128x16xf32>, vector<128x128xf32> -> vector<128x128xf32>
    %cst_38 = arith.constant dense<0xFF800000> : vector<128xf32>
    %84 = vector.multi_reduction <maximumf>, %83, %cst_38 [1] : vector<128x128xf32> to vector<128xf32>
    %85 = vector.shape_cast %84 : vector<128xf32> to vector<128x1xf32>
    %86 = vector.broadcast %85 : vector<128x1xf32> to vector<128x128xf32>
    %87 = arith.subf %83, %86 : vector<128x128xf32>
    %88 = math.exp %87 : vector<128x128xf32>
    %cst_39 = arith.constant dense<0.000000e+00> : vector<128xf32>
    %89 = vector.multi_reduction <add>, %88, %cst_39 [1] : vector<128x128xf32> to vector<128xf32>
    %90 = vector.shape_cast %89 : vector<128xf32> to vector<128x1xf32>
    %91 = tpu.reciprocal %90 : vector<128x1xf32> -> vector<128x1xf32>
    %92 = vector.broadcast %91 : vector<128x1xf32> to vector<128x128xf32>
    %93 = arith.mulf %88, %92 : vector<128x128xf32>
    %c0_40 = arith.constant 0 : index
    %c4 = arith.constant 4 : index
    %c0_41 = arith.constant 0 : index
    %c0_42 = arith.constant 0 : index
    %94 = vector.load %arg7[%c0_40, %c4, %c0_41, %c0_42] : memref<1x8x128x128xf32, #tpu.memory_space<vmem>>, vector<1x1x128x128xf32>
    %95 = vector.shape_cast %94 : vector<1x1x128x128xf32> to vector<128x128xf32>
    %96 = vector.shape_cast %93 : vector<128x128xf32> to vector<1x1x128x128xf32>
    tpu.vector_store %arg7[%c0_40, %c4, %c0_41, %c0_42], %96 {strides = array<i32>} : memref<1x8x128x128xf32, #tpu.memory_space<vmem>>, vector<1x1x128x128xf32>,
    %cst_43 = arith.constant dense<0.000000e+00> : vector<128x16xf32>
    %97 = tpu.matmul %93, %82, %cst_43 {dimension_numbers = #tpu.dot_dimension_numbers<[1], [0], [0], [1], [0, 0, 1, 1], [], []>} : vector<128x128xf32>, vector<128x16xf32>, vector<128x16xf32> -> vector<128x16xf32>
    %98 = vector.extract_strided_slice %3 {offsets = [0, 80], sizes = [128, 16], strides = [1, 1]} : vector<128x128xf32> to vector<128x16xf32>
    %99 = vector.extract_strided_slice %5 {offsets = [0, 80], sizes = [128, 16], strides = [1, 1]} : vector<128x128xf32> to vector<128x16xf32>
    %100 = vector.extract_strided_slice %7 {offsets = [0, 80], sizes = [128, 16], strides = [1, 1]} : vector<128x128xf32> to vector<128x16xf32>
    %cst_44 = arith.constant dense<0.000000e+00> : vector<128x128xf32>
    %101 = tpu.matmul %98, %99, %cst_44 {dimension_numbers = #tpu.dot_dimension_numbers<[1], [1], [0], [0], [0, 0, 1, 0], [], []>} : vector<128x16xf32>, vector<128x16xf32>, vector<128x128xf32> -> vector<128x128xf32>
    %cst_45 = arith.constant dense<0xFF800000> : vector<128xf32>
    %102 = vector.multi_reduction <maximumf>, %101, %cst_45 [1] : vector<128x128xf32> to vector<128xf32>
    %103 = vector.shape_cast %102 : vector<128xf32> to vector<128x1xf32>
    %104 = vector.broadcast %103 : vector<128x1xf32> to vector<128x128xf32>
    %105 = arith.subf %101, %104 : vector<128x128xf32>
    %106 = math.exp %105 : vector<128x128xf32>
    %cst_46 = arith.constant dense<0.000000e+00> : vector<128xf32>
    %107 = vector.multi_reduction <add>, %106, %cst_46 [1] : vector<128x128xf32> to vector<128xf32>
    %108 = vector.shape_cast %107 : vector<128xf32> to vector<128x1xf32>
    %109 = tpu.reciprocal %108 : vector<128x1xf32> -> vector<128x1xf32>
    %110 = vector.broadcast %109 : vector<128x1xf32> to vector<128x128xf32>
    %111 = arith.mulf %106, %110 : vector<128x128xf32>
    %c0_47 = arith.constant 0 : index
    %c5 = arith.constant 5 : index
    %c0_48 = arith.constant 0 : index
    %c0_49 = arith.constant 0 : index
    %112 = vector.load %arg7[%c0_47, %c5, %c0_48, %c0_49] : memref<1x8x128x128xf32, #tpu.memory_space<vmem>>, vector<1x1x128x128xf32>
    %113 = vector.shape_cast %112 : vector<1x1x128x128xf32> to vector<128x128xf32>
    %114 = vector.shape_cast %111 : vector<128x128xf32> to vector<1x1x128x128xf32>
    tpu.vector_store %arg7[%c0_47, %c5, %c0_48, %c0_49], %114 {strides = array<i32>} : memref<1x8x128x128xf32, #tpu.memory_space<vmem>>, vector<1x1x128x128xf32>,
    %cst_50 = arith.constant dense<0.000000e+00> : vector<128x16xf32>
    %115 = tpu.matmul %111, %100, %cst_50 {dimension_numbers = #tpu.dot_dimension_numbers<[1], [0], [0], [1], [0, 0, 1, 1], [], []>} : vector<128x128xf32>, vector<128x16xf32>, vector<128x16xf32> -> vector<128x16xf32>
    %116 = vector.extract_strided_slice %3 {offsets = [0, 96], sizes = [128, 16], strides = [1, 1]} : vector<128x128xf32> to vector<128x16xf32>
    %117 = vector.extract_strided_slice %5 {offsets = [0, 96], sizes = [128, 16], strides = [1, 1]} : vector<128x128xf32> to vector<128x16xf32>
    %118 = vector.extract_strided_slice %7 {offsets = [0, 96], sizes = [128, 16], strides = [1, 1]} : vector<128x128xf32> to vector<128x16xf32>
    %cst_51 = arith.constant dense<0.000000e+00> : vector<128x128xf32>
    %119 = tpu.matmul %116, %117, %cst_51 {dimension_numbers = #tpu.dot_dimension_numbers<[1], [1], [0], [0], [0, 0, 1, 0], [], []>} : vector<128x16xf32>, vector<128x16xf32>, vector<128x128xf32> -> vector<128x128xf32>
    %cst_52 = arith.constant dense<0xFF800000> : vector<128xf32>
    %120 = vector.multi_reduction <maximumf>, %119, %cst_52 [1] : vector<128x128xf32> to vector<128xf32>
    %121 = vector.shape_cast %120 : vector<128xf32> to vector<128x1xf32>
    %122 = vector.broadcast %121 : vector<128x1xf32> to vector<128x128xf32>
    %123 = arith.subf %119, %122 : vector<128x128xf32>
    %124 = math.exp %123 : vector<128x128xf32>
    %cst_53 = arith.constant dense<0.000000e+00> : vector<128xf32>
    %125 = vector.multi_reduction <add>, %124, %cst_53 [1] : vector<128x128xf32> to vector<128xf32>
    %126 = vector.shape_cast %125 : vector<128xf32> to vector<128x1xf32>
    %127 = tpu.reciprocal %126 : vector<128x1xf32> -> vector<128x1xf32>
    %128 = vector.broadcast %127 : vector<128x1xf32> to vector<128x128xf32>
    %129 = arith.mulf %124, %128 : vector<128x128xf32>
    %c0_54 = arith.constant 0 : index
    %c6 = arith.constant 6 : index
    %c0_55 = arith.constant 0 : index
    %c0_56 = arith.constant 0 : index
    %130 = vector.load %arg7[%c0_54, %c6, %c0_55, %c0_56] : memref<1x8x128x128xf32, #tpu.memory_space<vmem>>, vector<1x1x128x128xf32>
    %131 = vector.shape_cast %130 : vector<1x1x128x128xf32> to vector<128x128xf32>
    %132 = vector.shape_cast %129 : vector<128x128xf32> to vector<1x1x128x128xf32>
    tpu.vector_store %arg7[%c0_54, %c6, %c0_55, %c0_56], %132 {strides = array<i32>} : memref<1x8x128x128xf32, #tpu.memory_space<vmem>>, vector<1x1x128x128xf32>,
    %cst_57 = arith.constant dense<0.000000e+00> : vector<128x16xf32>
    %133 = tpu.matmul %129, %118, %cst_57 {dimension_numbers = #tpu.dot_dimension_numbers<[1], [0], [0], [1], [0, 0, 1, 1], [], []>} : vector<128x128xf32>, vector<128x16xf32>, vector<128x16xf32> -> vector<128x16xf32>
    %134 = vector.extract_strided_slice %3 {offsets = [0, 112], sizes = [128, 16], strides = [1, 1]} : vector<128x128xf32> to vector<128x16xf32>
    %135 = vector.extract_strided_slice %5 {offsets = [0, 112], sizes = [128, 16], strides = [1, 1]} : vector<128x128xf32> to vector<128x16xf32>
    %136 = vector.extract_strided_slice %7 {offsets = [0, 112], sizes = [128, 16], strides = [1, 1]} : vector<128x128xf32> to vector<128x16xf32>
    %cst_58 = arith.constant dense<0.000000e+00> : vector<128x128xf32>
    %137 = tpu.matmul %134, %135, %cst_58 {dimension_numbers = #tpu.dot_dimension_numbers<[1], [1], [0], [0], [0, 0, 1, 0], [], []>} : vector<128x16xf32>, vector<128x16xf32>, vector<128x128xf32> -> vector<128x128xf32>
    %cst_59 = arith.constant dense<0xFF800000> : vector<128xf32>
    %138 = vector.multi_reduction <maximumf>, %137, %cst_59 [1] : vector<128x128xf32> to vector<128xf32>
    %139 = vector.shape_cast %138 : vector<128xf32> to vector<128x1xf32>
    %140 = vector.broadcast %139 : vector<128x1xf32> to vector<128x128xf32>
    %141 = arith.subf %137, %140 : vector<128x128xf32>
    %142 = math.exp %141 : vector<128x128xf32>
    %cst_60 = arith.constant dense<0.000000e+00> : vector<128xf32>
    %143 = vector.multi_reduction <add>, %142, %cst_60 [1] : vector<128x128xf32> to vector<128xf32>
    %144 = vector.shape_cast %143 : vector<128xf32> to vector<128x1xf32>
    %145 = tpu.reciprocal %144 : vector<128x1xf32> -> vector<128x1xf32>
    %146 = vector.broadcast %145 : vector<128x1xf32> to vector<128x128xf32>
    %147 = arith.mulf %142, %146 : vector<128x128xf32>
    %c0_61 = arith.constant 0 : index
    %c7 = arith.constant 7 : index
    %c0_62 = arith.constant 0 : index
    %c0_63 = arith.constant 0 : index
    %148 = vector.load %arg7[%c0_61, %c7, %c0_62, %c0_63] : memref<1x8x128x128xf32, #tpu.memory_space<vmem>>, vector<1x1x128x128xf32>
    %149 = vector.shape_cast %148 : vector<1x1x128x128xf32> to vector<128x128xf32>
    %150 = vector.shape_cast %147 : vector<128x128xf32> to vector<1x1x128x128xf32>
    tpu.vector_store %arg7[%c0_61, %c7, %c0_62, %c0_63], %150 {strides = array<i32>} : memref<1x8x128x128xf32, #tpu.memory_space<vmem>>, vector<1x1x128x128xf32>,
    %cst_64 = arith.constant dense<0.000000e+00> : vector<128x16xf32>
    %151 = tpu.matmul %147, %136, %cst_64 {dimension_numbers = #tpu.dot_dimension_numbers<[1], [0], [0], [1], [0, 0, 1, 1], [], []>} : vector<128x128xf32>, vector<128x16xf32>, vector<128x16xf32> -> vector<128x16xf32>
    %152 = tpu.concatenate %25, %43, %61, %79, %97, %115, %133, %151 in 1 : vector<128x16xf32>, vector<128x16xf32>, vector<128x16xf32>, vector<128x16xf32>, vector<128x16xf32>, vector<128x16xf32>, vector<128x16xf32>, vector<128x16xf32> -> vector<128x128xf32>
    %c0_65 = arith.constant 0 : index
    %c0_66 = arith.constant 0 : index
    %153 = vector.load %arg5[%c0_65, %c0_66] : memref<128x256xf32, #tpu.memory_space<vmem>>, vector<128x256xf32>
    %cst_67 = arith.constant dense<0.000000e+00> : vector<128x256xf32>
    %154 = tpu.matmul %152, %153, %cst_67 {dimension_numbers = #tpu.dot_dimension_numbers<[1], [0], [0], [1], [0, 0, 1, 1], [], []>} : vector<128x128xf32>, vector<128x256xf32>, vector<128x256xf32> -> vector<128x256xf32>
    %c0_68 = arith.constant 0 : index
    %c0_69 = arith.constant 0 : index
    %155 = vector.load %arg6[%c0_68, %c0_69] : memref<1x256xf32, #tpu.memory_space<vmem>>, vector<1x256xf32>
    %156 = vector.broadcast %155 : vector<1x256xf32> to vector<128x256xf32>
    %157 = arith.addf %154, %156 : vector<128x256xf32>
    %158 = vector.extract_strided_slice %157 {offsets = [0, 0], sizes = [128, 128], strides = [1, 1]} : vector<128x256xf32> to vector<128x128xf32>
    %c0_70 = arith.constant 0 : index
    %c0_71 = arith.constant 0 : index
    %c0_72 = arith.constant 0 : index
    %159 = vector.load %arg8[%c0_70, %c0_71, %c0_72] : memref<1x128x128xf32, #tpu.memory_space<vmem>>, vector<1x128x128xf32>
    %160 = vector.shape_cast %159 : vector<1x128x128xf32> to vector<128x128xf32>
    %161 = vector.shape_cast %158 : vector<128x128xf32> to vector<1x128x128xf32>
    tpu.vector_store %arg8[%c0_70, %c0_71, %c0_72], %161 {strides = array<i32>} : memref<1x128x128xf32, #tpu.memory_space<vmem>>, vector<1x128x128xf32>,
    %162 = vector.extract_strided_slice %157 {offsets = [0, 128], sizes = [128, 128], strides = [1, 1]} : vector<128x256xf32> to vector<128x128xf32>
    %c0_73 = arith.constant 0 : index
    %c0_74 = arith.constant 0 : index
    %c0_75 = arith.constant 0 : index
    %163 = vector.load %arg9[%c0_73, %c0_74, %c0_75] : memref<1x128x128xf32, #tpu.memory_space<vmem>>, vector<1x128x128xf32>
    %164 = vector.shape_cast %163 : vector<1x128x128xf32> to vector<128x128xf32>
    %165 = vector.shape_cast %162 : vector<128x128xf32> to vector<1x128x128xf32>
    tpu.vector_store %arg9[%c0_73, %c0_74, %c0_75], %165 {strides = array<i32>} : memref<1x128x128xf32, #tpu.memory_space<vmem>>, vector<1x128x128xf32>,
    return
  }
  func.func @transform_0(%arg0: i32, %arg1: i32) -> (i32, i32, i32) {
    %c0_i32 = arith.constant 0 : i32
    %c0_i32_0 = arith.constant 0 : i32
    return %arg0, %arg1, %c0_i32 : i32, i32, i32
  }
  func.func @transform_1(%arg0: i32, %arg1: i32) -> (i32, i32, i32) {
    %c0_i32 = arith.constant 0 : i32
    %c1_i32 = arith.constant 1 : i32
    %c0_i32_0 = arith.constant 0 : i32
    return %arg0, %c0_i32, %c1_i32 : i32, i32, i32
  }
  func.func @transform_2(%arg0: i32, %arg1: i32) -> (i32, i32, i32) {
    %c0_i32 = arith.constant 0 : i32
    %c2_i32 = arith.constant 2 : i32
    %c0_i32_0 = arith.constant 0 : i32
    return %arg0, %c0_i32, %c2_i32 : i32, i32, i32
  }
  func.func @transform_3(%arg0: i32, %arg1: i32) -> (i32, i32) {
    %c0_i32 = arith.constant 0 : i32
    %c0_i32_0 = arith.constant 0 : i32
    %c0_i32_1 = arith.constant 0 : i32
    return %c0_i32, %c0_i32_0 : i32, i32
  }
  func.func @transform_4(%arg0: i32, %arg1: i32) -> (i32, i32) {
    %c0_i32 = arith.constant 0 : i32
    %c0_i32_0 = arith.constant 0 : i32
    %c0_i32_1 = arith.constant 0 : i32
    return %c0_i32, %c0_i32_0 : i32, i32
  }
  func.func @transform_5(%arg0: i32, %arg1: i32) -> (i32, i32, i32, i32) {
    %c0_i32 = arith.constant 0 : i32
    %c0_i32_0 = arith.constant 0 : i32
    %c0_i32_1 = arith.constant 0 : i32
    return %arg0, %c0_i32, %arg1, %c0_i32_0 : i32, i32, i32, i32
  }
  func.func @transform_6(%arg0: i32, %arg1: i32) -> (i32, i32, i32) {
    %c0_i32 = arith.constant 0 : i32
    %c0_i32_0 = arith.constant 0 : i32
    return %arg0, %arg1, %c0_i32 : i32, i32, i32
  }
  func.func @transform_7(%arg0: i32, %arg1: i32) -> (i32, i32, i32) {
    %c0_i32 = arith.constant 0 : i32
    %c0_i32_0 = arith.constant 0 : i32
    return %arg0, %arg1, %c0_i32 : i32, i32, i32
  }
}

</mosaic_0001>

<bundles_post_ra>
// kernel: dis_attention_forward.2
= control target key start
LH: loop header
LB: loop body
LE: loop exit
PB: predicated region body
PF: predicated region fallthrough
CT: control target
= control target key end

     0   :  { %8 = vsyncpa [#allocation3], 0  ;;  %s894_s12 = smov [#allocation2]   ;;  %s1548_s0 = inlined_call_operand.hbm [shape: f32[256,128], index: 0, kind: input, shape index: {}]   ;;  %s1549_s1 = inlined_call_operand.vmem [shape: f32[128,384], index: 1, kind: input, shape index: {}]   ;;  %s1550_s2 = inlined_call_operand.vmem [shape: f32[1,384], index: 2, kind: input, shape index: {}]   ;;  %s1551_s3 = inlined_call_operand.vmem [shape: f32[256,384], index: 3, kind: output, shape index: {}]  }
   0x1   :  { %s14_s13 = sshll.u32 %s894_s12, 4  ;;  %s15_s13 = int_to_ptr.vmem [resolvable:$true] %s14_s13 }
   0x2   :  { %s880_s14 = scalar_lea.vmem %s15_s13, 4096  ;;  %p885_p1 = scmp.lt.s32.totalorder %s15_s13, %s15_s13 }
   0x3   :  { %p881_p0 = scmp.ne.s32.totalorder %s15_s13, %s880_s14  ;;  %p886_p2 = scmp.lt.s32.totalorder %s880_s14, %s880_s14 }
   0x5   :  { %p887_p3 = por %p886_p2, %p885_p1 }
   0x7   :  { %p888_p4 = pnand %p887_p3, %p881_p0 }
   0x9   :  { %891 = shalt.err (!%p888_p4)
}
   0xa   :  { %s895_s15 = smov 128   ;;  %s896_s16 = smov 8  }
   0xb   :  { %20 = dma.hbm_to_vmem [thread:$0]  %s1548_s0, 4096, %s15_s13, [#allocation3], %s895_s15, %s895_s15, %s896_s16  }
   0xc   :  { %892 = dma.done.wait [#allocation3], 4096  }
   0xd   :  { %893 = vsyncadd [#allocation3], 4294963200  ;;  %v897_v0 = vmov 0.0   ;;  %v106_v1 = vld [vmem:[%s1549_s1 + $0x170] sm:$0xff]  ;;  %v105_v2 = vld [vmem:[%s1549_s1 + $0x168] sm:$0xff] }
   0xe   :  { %189 = vmatprep.mubr.f32.mxu0 %v897_v0  ;;  %333 = vmatprep.mubr.f32.mxu1 %v897_v0  ;;  %v103_v3 = vld [vmem:[%s1549_s1 + $0x158] sm:$0xff]  ;;  %v102_v4 = vld [vmem:[%s1549_s1 + $0x150] sm:$0xff]  ;;  %v100_v5 = vld [vmem:[%s1549_s1 + $0x140] sm:$0xff] }
   0xf   :  { %125 = vmatprep.subr.mxu0 %v106_v1  ;;  %836 = vmatprep.subr.mxu1 %v106_v1  ;;  %v99_v6 = vld [vmem:[%s1549_s1 + $0x138] sm:$0xff]  ;;  %v97_v7 = vld [vmem:[%s1549_s1 + $0x128] sm:$0xff]  ;;  %v96_v8 = vld [vmem:[%s1549_s1 + $0x120] sm:$0xff] }
  0x10   :  { %126 = vmatpush1.msra.mxu0 %v105_v2  ;;  %852 = vmatpush1.msra.mxu1 %v105_v2  ;;  %v94_v9 = vld [vmem:[%s1549_s1 + $0x110] sm:$0xff]  ;;  %v93_v10 = vld [vmem:[%s1549_s1 + $0x108] sm:$0xff]  ;;  %v91_v11 = vld [vmem:[%s1549_s1 + $0xf8] sm:$0xff] }
  0x11   :  { %127 = vmatprep.subr.mxu0 %v103_v3  ;;  %837 = vmatprep.subr.mxu1 %v103_v3  ;;  %v90_v12 = vld [vmem:[%s1549_s1 + $0xf0] sm:$0xff]  ;;  %v88_v13 = vld [vmem:[%s1549_s1 + $0xe0] sm:$0xff]  ;;  %v87_v14 = vld [vmem:[%s1549_s1 + $0xd8] sm:$0xff] }
  0x12   :  { %128 = vmatpush1.msra.mxu0 %v102_v4  ;;  %853 = vmatpush1.msra.mxu1 %v102_v4  ;;  %v85_v15 = vld [vmem:[%s1549_s1 + $0xc8] sm:$0xff]  ;;  %v84_v16 = vld [vmem:[%s1549_s1 + $0xc0] sm:$0xff]  ;;  %v82_v17 = vld [vmem:[%s1549_s1 + $0xb0] sm:$0xff] }
  0x13   :  { %129 = vmatprep.subr.mxu0 %v100_v5  ;;  %838 = vmatprep.subr.mxu1 %v100_v5  ;;  %v81_v18 = vld [vmem:[%s1549_s1 + $0xa8] sm:$0xff]  ;;  %v79_v19 = vld [vmem:[%s1549_s1 + $0x98] sm:$0xff]  ;;  %v78_v20 = vld [vmem:[%s1549_s1 + $0x90] sm:$0xff] }
  0x14   :  { %130 = vmatpush1.msra.mxu0 %v99_v6  ;;  %854 = vmatpush1.msra.mxu1 %v99_v6  ;;  %v76_v21 = vld [vmem:[%s1549_s1 + $0x80] sm:$0xff]  ;;  %v75_v22 = vld [vmem:[%s1549_s1 + $0x78] sm:$0xff]  ;;  %v73_v23 = vld [vmem:[%s1549_s1 + $0x68] sm:$0xff] }
  0x15   :  { %131 = vmatprep.subr.mxu0 %v97_v7  ;;  %839 = vmatprep.subr.mxu1 %v97_v7  ;;  %v72_v24 = vld [vmem:[%s1549_s1 + $0x60] sm:$0xff]  ;;  %v70_v25 = vld [vmem:[%s1549_s1 + $0x50] sm:$0xff]  ;;  %v69_v26 = vld [vmem:[%s1549_s1 + $0x48] sm:$0xff] }
  0x16   :  { %132 = vmatpush1.msra.mxu0 %v96_v8  ;;  %855 = vmatpush1.msra.mxu1 %v96_v8  ;;  %v67_v27 = vld [vmem:[%s1549_s1 + $0x38] sm:$0xff]  ;;  %v66_v28 = vld [vmem:[%s1549_s1 + $0x30] sm:$0xff]  ;;  %v64_v29 = vld [vmem:[%s1549_s1 + $0x20] sm:$0xff] }
  0x17   :  { %133 = vmatprep.subr.mxu0 %v94_v9  ;;  %840 = vmatprep.subr.mxu1 %v94_v9  ;;  %v63_v30 = vld [vmem:[%s1549_s1 + $0x18] sm:$0xff]  ;;  %v61_v31 = vld [vmem:[%s1549_s1 + $0x8] sm:$0xff]  ;;  %v60_v32 = vld [vmem:[%s1549_s1] sm:$0xff] }
  0x18   :  { %134 = vmatpush1.msra.mxu0 %v93_v10  ;;  %856 = vmatpush1.msra.mxu1 %v93_v10  ;;  %v1019_v33 = vld [vmem:[#allocation2] sm:$0xff]  ;;  %v107_v35 = vld [vmem:[%s1549_s1 + $0x178] sm:$0xff]  ;;  %v1032_v37 = vld [vmem:[#allocation2 + $0x8] sm:$0xff] }
  0x19   :  { %135 = vmatprep.subr.mxu0 %v91_v11  ;;  %841 = vmatprep.subr.mxu1 %v91_v11  ;;  %v1021_v34 = vld [vmem:[#allocation2 + $0xc0] sm:$0xff]  ;;  %v1035_v38 = vld [vmem:[#allocation2 + $0xc8] sm:$0xff]  ;;  %v98_v40 = vld [vmem:[%s1549_s1 + $0x130] sm:$0xff] }
  0x1a   :  { %136 = vmatpush1.msra.mxu0 %v90_v12  ;;  %857 = vmatpush1.msra.mxu1 %v90_v12  ;;  %v104_v36 = vld [vmem:[%s1549_s1 + $0x160] sm:$0xff]  ;;  %v101_v39 = vld [vmem:[%s1549_s1 + $0x148] sm:$0xff]  ;;  %v1045_v41 = vld [vmem:[#allocation2 + $0x10] sm:$0xff] }
  0x1b   :  { %137 = vmatprep.subr.mxu0 %v88_v13  ;;  %842 = vmatprep.subr.mxu1 %v88_v13  ;;  %v1048_v42 = vld [vmem:[#allocation2 + $0xd0] sm:$0xff]  ;;  %v95_v43 = vld [vmem:[%s1549_s1 + $0x118] sm:$0xff]  ;;  %v92_v44 = vld [vmem:[%s1549_s1 + $0x100] sm:$0xff] }
  0x1c   :  { %138 = vmatpush1.msra.mxu0 %v87_v14  ;;  %858 = vmatpush1.msra.mxu1 %v87_v14  ;;  %v1059_v45 = vld [vmem:[#allocation2 + $0x18] sm:$0xff]  ;;  %v89_v47 = vld [vmem:[%s1549_s1 + $0xe8] sm:$0xff]  ;;  %v86_v48 = vld [vmem:[%s1549_s1 + $0xd0] sm:$0xff] }
  0x1d   :  { %139 = vmatprep.subr.mxu0 %v85_v15  ;;  %843 = vmatprep.subr.mxu1 %v85_v15  ;;  %v1062_v46 = vld [vmem:[#allocation2 + $0xd8] sm:$0xff]  ;;  %v32_v49 = vld [vmem:[#allocation2 + $0x20] sm:$0xff]  ;;  %v33_v53 = vld [vmem:[#allocation2 + $0x28] sm:$0xff] }
  0x1e   :  { %140 = vmatpush1.msra.mxu0 %v84_v16  ;;  %859 = vmatpush1.msra.mxu1 %v84_v16  ;;  %v1074_v50 = vld [vmem:[#allocation2 + $0xe0] sm:$0xff]  ;;  %v83_v51 = vld [vmem:[%s1549_s1 + $0xb8] sm:$0xff]  ;;  %v1085_v54 = vld [vmem:[#allocation2 + $0xe8] sm:$0xff] }
  0x1f   :  { %141 = vmatprep.subr.mxu0 %v82_v17  ;;  %844 = vmatprep.subr.mxu1 %v82_v17  ;;  %v80_v52 = vld [vmem:[%s1549_s1 + $0xa0] sm:$0xff]  ;;  %v77_v55 = vld [vmem:[%s1549_s1 + $0x88] sm:$0xff]  ;;  %v74_v56 = vld [vmem:[%s1549_s1 + $0x70] sm:$0xff] }
  0x20   :  { %142 = vmatpush1.msra.mxu0 %v81_v18  ;;  %860 = vmatpush1.msra.mxu1 %v81_v18  ;;  %v34_v57 = vld [vmem:[#allocation2 + $0x30] sm:$0xff]  ;;  %v71_v59 = vld [vmem:[%s1549_s1 + $0x58] sm:$0xff]  ;;  %v68_v60 = vld [vmem:[%s1549_s1 + $0x40] sm:$0xff]  ;;  %v110_v18 = vlaneseq }
  0x21   :  { %143 = vmatprep.subr.mxu0 %v79_v19  ;;  %845 = vmatprep.subr.mxu1 %v79_v19  ;;  %v1096_v58 = vld [vmem:[#allocation2 + $0xf0] sm:$0xff]  ;;  %v35_v61 = vld [vmem:[#allocation2 + $0x38] sm:$0xff]  ;;  %v65_v63 = vld [vmem:[%s1549_s1 + $0x28] sm:$0xff] }
  0x22   :  { %144 = vmatpush1.msra.mxu0 %v78_v20  ;;  %861 = vmatpush1.msra.mxu1 %v78_v20  ;;  %v1107_v62 = vld [vmem:[#allocation2 + $0xf8] sm:$0xff]  ;;  %v62_v1 = vld [vmem:[%s1549_s1 + $0x10] sm:$0xff]  ;;  %v36_v2 = vld [vmem:[#allocation2 + $0x40] sm:$0xff]  ;;  %v1145_v19 = vshrl.u32 %v110_v18, 7 }
  0x23   :  { %145 = vmatprep.subr.mxu0 %v76_v21  ;;  %846 = vmatprep.subr.mxu1 %v76_v21  ;;  %v37_v3 = vld [vmem:[#allocation2 + $0x48] sm:$0xff]  ;;  %v38_v4 = vld [vmem:[#allocation2 + $0x50] sm:$0xff]  ;;  %v39_v5 = vld [vmem:[#allocation2 + $0x58] sm:$0xff] }
  0x24   :  { %146 = vmatpush1.msra.mxu0 %v75_v22  ;;  %862 = vmatpush1.msra.mxu1 %v75_v22  ;;  %v40_v6 = vld [vmem:[#allocation2 + $0x60] sm:$0xff]  ;;  %v41_v7 = vld [vmem:[#allocation2 + $0x68] sm:$0xff]  ;;  %v42_v8 = vld [vmem:[#allocation2 + $0x70] sm:$0xff]  ;;  %v112_v20 = vsub.s32 0, %v1145_v19  ;;  %v116_v22 = vsub.s32 1, %v1145_v19 }
  0x25   :  { %147 = vmatprep.subr.mxu0 %v73_v23  ;;  %847 = vmatprep.subr.mxu1 %v73_v23  ;;  %v43_v9 = vld [vmem:[#allocation2 + $0x78] sm:$0xff]  ;;  %v44_v10 = vld [vmem:[#allocation2 + $0x80] sm:$0xff]  ;;  %v45_v11 = vld [vmem:[#allocation2 + $0x88] sm:$0xff] }
  0x26   :  { %148 = vmatpush1.msra.mxu0 %v72_v24  ;;  %863 = vmatpush1.msra.mxu1 %v72_v24  ;;  %v46_v12 = vld [vmem:[#allocation2 + $0x90] sm:$0xff]  ;;  %v47_v13 = vld [vmem:[#allocation2 + $0x98] sm:$0xff]  ;;  %v48_v14 = vld [vmem:[#allocation2 + $0xa0] sm:$0xff] }
  0x27   :  { %149 = vmatprep.subr.mxu0 %v70_v25  ;;  %848 = vmatprep.subr.mxu1 %v70_v25  ;;  %v49_v15 = vld [vmem:[#allocation2 + $0xa8] sm:$0xff]  ;;  %v50_v16 = vld [vmem:[#allocation2 + $0xb0] sm:$0xff]  ;;  %v51_v17 = vld [vmem:[#allocation2 + $0xb8] sm:$0xff] }
  0x28   :  { %150 = vmatpush1.msra.mxu0 %v69_v26  ;;  %864 = vmatpush1.msra.mxu1 %v69_v26  ;;  %v1151_v21 = vld [vmem:[%s1550_s2] sm:$0x7] }
  0x29   :  { %151 = vmatprep.subr.mxu0 %v67_v27  ;;  %849 = vmatprep.subr.mxu1 %v67_v27  ;;  %v1155_v23 = vrot.slane %v1151_v21, %v112_v20 }
  0x2a   :  { %152 = vmatpush1.msra.mxu0 %v66_v28  ;;  %865 = vmatpush1.msra.mxu1 %v66_v28 }
  0x2b   :  { %153 = vmatprep.subr.mxu0 %v64_v29  ;;  %850 = vmatprep.subr.mxu1 %v64_v29 }
  0x2c   :  { %154 = vmatpush1.msra.mxu0 %v63_v30  ;;  %866 = vmatpush1.msra.mxu1 %v63_v30 }
  0x2d   :  { %155 = vmatprep.subr.mxu0 %v61_v31  ;;  %851 = vmatprep.subr.mxu1 %v61_v31 }
  0x2e   :  { %156 = vmatpush1.msra.mxu0 %v60_v32  ;;  %867 = vmatpush1.msra.mxu1 %v60_v32 }
  0x2f   :  { %190 = vmatmul.mubr.f32.vlgmr.msra.gmra.mxu0 %v1019_v33  ;;  %334 = vmatmul.mubr.f32.vlgmr.msra.gmra.mxu1 %v1021_v34 }
  0x30   :  { %756 = vmatprep.subr.mxu1 %v107_v35  ;;  %195 = vmatprep.mubr.f32.mxu0 %v897_v0 }
  0x31   :  { %757 = vmatpush3.msra.mxu1 %v107_v35  ;;  %339 = vmatprep.mubr.f32.mxu1 %v897_v0 }
  0x32   :  { %758 = vmatprep.subr.mxu1 %v104_v36 }
  0x33   :  { %759 = vmatpush3.msra.mxu1 %v104_v36  ;;  %196 = vmatmul.mubr.f32.gmra.mxu0 %v1032_v37 }
  0x34   :  { %340 = vmatmul.mubr.f32.gmra.mxu1 %v1035_v38  ;;  %760 = vmatprep.subr.mxu1 %v101_v39 }
  0x35   :  { %761 = vmatpush3.msra.mxu1 %v101_v39  ;;  %201 = vmatprep.mubr.f32.mxu0 %v897_v0 }
  0x36   :  { %762 = vmatprep.subr.mxu1 %v98_v40  ;;  %345 = vmatprep.mubr.f32.mxu1 %v897_v0 }
  0x37   :  { %763 = vmatpush3.msra.mxu1 %v98_v40  ;;  %202 = vmatmul.mubr.f32.gmra.mxu0 %v1045_v41 }
  0x38   :  { %346 = vmatmul.mubr.f32.gmra.mxu1 %v1048_v42  ;;  %764 = vmatprep.subr.mxu1 %v95_v43 }
  0x39   :  { %765 = vmatpush3.msra.mxu1 %v95_v43  ;;  %207 = vmatprep.mubr.f32.mxu0 %v897_v0 }
  0x3a   :  { %766 = vmatprep.subr.mxu1 %v92_v44  ;;  %351 = vmatprep.mubr.f32.mxu1 %v897_v0 }
  0x3b   :  { %767 = vmatpush3.msra.mxu1 %v92_v44  ;;  %208 = vmatmul.mubr.f32.gmra.mxu0 %v1059_v45 }
  0x3c   :  { %352 = vmatmul.mubr.f32.gmra.mxu1 %v1062_v46  ;;  %768 = vmatprep.subr.mxu1 %v89_v47 }
  0x3d   :  { %769 = vmatpush3.msra.mxu1 %v89_v47  ;;  %213 = vmatprep.mubr.f32.mxu0 %v897_v0 }
  0x3e   :  { %770 = vmatprep.subr.mxu1 %v86_v48  ;;  %357 = vmatprep.mubr.f32.mxu1 %v897_v0 }
  0x3f   :  { %771 = vmatpush3.msra.mxu1 %v86_v48  ;;  %214 = vmatmul.mubr.f32.gmra.mxu0 %v32_v49 }
  0x40   :  { %358 = vmatmul.mubr.f32.gmra.mxu1 %v1074_v50  ;;  %772 = vmatprep.subr.mxu1 %v83_v51 }
  0x41   :  { %773 = vmatpush3.msra.mxu1 %v83_v51  ;;  %219 = vmatprep.mubr.f32.mxu0 %v897_v0 }
  0x42   :  { %774 = vmatprep.subr.mxu1 %v80_v52  ;;  %363 = vmatprep.mubr.f32.mxu1 %v897_v0 }
  0x43   :  { %775 = vmatpush3.msra.mxu1 %v80_v52  ;;  %220 = vmatmul.mubr.f32.gmra.mxu0 %v33_v53 }
  0x44   :  { %364 = vmatmul.mubr.f32.gmra.mxu1 %v1085_v54  ;;  %776 = vmatprep.subr.mxu1 %v77_v55 }
  0x45   :  { %777 = vmatpush3.msra.mxu1 %v77_v55  ;;  %225 = vmatprep.mubr.f32.mxu0 %v897_v0 }
  0x46   :  { %778 = vmatprep.subr.mxu1 %v74_v56  ;;  %369 = vmatprep.mubr.f32.mxu1 %v897_v0 }
  0x47   :  { %779 = vmatpush3.msra.mxu1 %v74_v56  ;;  %226 = vmatmul.mubr.f32.gmra.mxu0 %v34_v57 }
  0x48   :  { %370 = vmatmul.mubr.f32.gmra.mxu1 %v1096_v58  ;;  %780 = vmatprep.subr.mxu1 %v71_v59 }
  0x49   :  { %781 = vmatpush3.msra.mxu1 %v71_v59  ;;  %231 = vmatprep.mubr.f32.mxu0 %v897_v0 }
  0x4a   :  { %782 = vmatprep.subr.mxu1 %v68_v60  ;;  %375 = vmatprep.mubr.f32.mxu1 %v897_v0 }
  0x4b   :  { %783 = vmatpush3.msra.mxu1 %v68_v60  ;;  %232 = vmatmul.mubr.f32.gmra.mxu0 %v35_v61 }
  0x4c   :  { %376 = vmatmul.mubr.f32.gmra.mxu1 %v1107_v62  ;;  %784 = vmatprep.subr.mxu1 %v65_v63 }
  0x4d   :  { %785 = vmatpush3.msra.mxu1 %v65_v63  ;;  %237 = vmatprep.mubr.f32.mxu0 %v897_v0 }
  0x4e   :  { %786 = vmatprep.subr.mxu1 %v62_v1  ;;  %788 = vmatprep.mubr.f32.mxu1 %v1019_v33 }
  0x4f   :  { %787 = vmatpush3.msra.mxu1 %v62_v1  ;;  %238 = vmatmul.mubr.f32.gmra.mxu0 %v36_v2 }
  0x50   :  { %789 = vmatmul.mubr.f32.vlgmr.msra.gmra.mxu1 %v1032_v37  ;;  %243 = vmatprep.mubr.f32.mxu0 %v897_v0 }
  0x51   :  { %791 = vmatprep.mubr.f32.mxu1 %v1045_v41 }
  0x53   :  { %244 = vmatmul.mubr.f32.gmra.mxu0 %v37_v3 }
  0x54   :  { %792 = vmatmul.mubr.f32.gmra.mxu1 %v1059_v45  ;;  %249 = vmatprep.mubr.f32.mxu0 %v897_v0 }
  0x55   :  { %794 = vmatprep.mubr.f32.mxu1 %v32_v49 }
  0x57   :  { %250 = vmatmul.mubr.f32.gmra.mxu0 %v38_v4 }
  0x58   :  { %795 = vmatmul.mubr.f32.gmra.mxu1 %v33_v53  ;;  %255 = vmatprep.mubr.f32.mxu0 %v897_v0 }
  0x59   :  { %797 = vmatprep.mubr.f32.mxu1 %v34_v57 }
  0x5b   :  { %256 = vmatmul.mubr.f32.gmra.mxu0 %v39_v5 }
  0x5c   :  { %798 = vmatmul.mubr.f32.gmra.mxu1 %v35_v61  ;;  %261 = vmatprep.mubr.f32.mxu0 %v897_v0 }
  0x5d   :  { %800 = vmatprep.mubr.f32.mxu1 %v36_v2 }
  0x5f   :  { %262 = vmatmul.mubr.f32.gmra.mxu0 %v40_v6 }
  0x60   :  { %801 = vmatmul.mubr.f32.gmra.mxu1 %v37_v3  ;;  %267 = vmatprep.mubr.f32.mxu0 %v897_v0 }
  0x61   :  { %803 = vmatprep.mubr.f32.mxu1 %v38_v4 }
  0x63   :  { %268 = vmatmul.mubr.f32.gmra.mxu0 %v41_v7 }
  0x64   :  { %804 = vmatmul.mubr.f32.gmra.mxu1 %v39_v5  ;;  %273 = vmatprep.mubr.f32.mxu0 %v897_v0 }
  0x65   :  { %806 = vmatprep.mubr.f32.mxu1 %v40_v6 }
  0x67   :  { %274 = vmatmul.mubr.f32.gmra.mxu0 %v42_v8 }
  0x68   :  { %807 = vmatmul.mubr.f32.gmra.mxu1 %v41_v7  ;;  %279 = vmatprep.mubr.f32.mxu0 %v897_v0 }
  0x69   :  { %809 = vmatprep.mubr.f32.mxu1 %v42_v8 }
  0x6b   :  { %280 = vmatmul.mubr.f32.gmra.mxu0 %v43_v9 }
  0x6c   :  { %810 = vmatmul.mubr.f32.gmra.mxu1 %v43_v9  ;;  %285 = vmatprep.mubr.f32.mxu0 %v897_v0 }
  0x6d   :  { %812 = vmatprep.mubr.f32.mxu1 %v44_v10 }
  0x6f   :  { %286 = vmatmul.mubr.f32.gmra.mxu0 %v44_v10 }
  0x70   :  { %813 = vmatmul.mubr.f32.gmra.mxu1 %v45_v11  ;;  %291 = vmatprep.mubr.f32.mxu0 %v897_v0 }
  0x71   :  { %815 = vmatprep.mubr.f32.mxu1 %v46_v12 }
  0x73   :  { %292 = vmatmul.mubr.f32.gmra.mxu0 %v45_v11 }
  0x74   :  { %816 = vmatmul.mubr.f32.gmra.mxu1 %v47_v13  ;;  %297 = vmatprep.mubr.f32.mxu0 %v897_v0 }
  0x75   :  { %818 = vmatprep.mubr.f32.mxu1 %v48_v14 }
  0x77   :  { %298 = vmatmul.mubr.f32.gmra.mxu0 %v46_v12 }
  0x78   :  { %819 = vmatmul.mubr.f32.gmra.mxu1 %v49_v15  ;;  %303 = vmatprep.mubr.f32.mxu0 %v897_v0 }
  0x79   :  { %821 = vmatprep.mubr.f32.mxu1 %v50_v16 }
  0x7b   :  { %304 = vmatmul.mubr.f32.gmra.mxu0 %v47_v13 }
  0x7c   :  { %822 = vmatmul.mubr.f32.gmra.mxu1 %v51_v17  ;;  %309 = vmatprep.mubr.f32.mxu0 %v897_v0 }
  0x7d   :  { %824 = vmatprep.mubr.f32.mxu1 %v1021_v34 }
  0x7f   :  { %310 = vmatmul.mubr.f32.gmra.mxu0 %v48_v14  ;;  %v120_v14 = vsub.s32 2, %v1145_v19 }
  0x80   :  { %825 = vmatmul.mubr.f32.gmra.mxu1 %v1035_v38  ;;  %315 = vmatprep.mubr.f32.mxu0 %v897_v0 }
  0x81   :  { %827 = vmatprep.mubr.f32.mxu1 %v1048_v42 }
  0x83   :  { %316 = vmatmul.mubr.f32.gmra.mxu0 %v49_v15 }
  0x84   :  { %828 = vmatmul.mubr.f32.gmra.mxu1 %v1062_v46  ;;  %321 = vmatprep.mubr.f32.mxu0 %v897_v0 }
  0x85   :  { %830 = vmatprep.mubr.f32.mxu1 %v1074_v50 }
  0x87   :  { %322 = vmatmul.mubr.f32.gmra.mxu0 %v50_v16 }
  0x88   :  { %831 = vmatmul.mubr.f32.gmra.mxu1 %v1085_v54  ;;  %327 = vmatprep.mubr.f32.mxu0 %v897_v0  ;;  %v1158_v0 = vrot.slane %v1151_v21, %v116_v22 }
  0x89   :  { %833 = vmatprep.mubr.f32.mxu1 %v1096_v58 }
  0x8b   :  { %328 = vmatmul.mubr.f32.gmra.mxu0 %v51_v17 }
  0x8c   :  { %834 = vmatmul.mubr.f32.gmra.mxu1 %v1107_v62 }
  0xef   :  { %v191_v24 = vpop.f32.mrf.mxu0  ;;  %v335_v25 = vpop.f32.mrf.mxu1 }
  0xf0   :  { %v192_v26 = vadd.f32 %v191_v24, %v1155_v23  ;;  %v336_v27 = vadd.f32 %v335_v25, %v1155_v23  ;;  %v1276_v25 = vrot.slane %v1151_v21, %v120_v14 }
  0xf1   :  { %v193_v28 = vpop.f32.mrf.mxu0  ;;  %v337_v29 = vpop.f32.mrf.mxu1 }
  0xf2   :  { %607 = vst [vmem:[%s1551_s3] sm:$0xff] %v192_v26  ;;  %679 = vst [vmem:[%s1551_s3 + $0x240] sm:$0xff] %v336_v27  ;;  %v194_v30 = vadd.f32 %v193_v28, %v1158_v0  ;;  %v338_v31 = vadd.f32 %v337_v29, %v1158_v0 }
  0xf3   :  { %v197_v32 = vpop.f32.mrf.mxu0 }
  0xf4   :  { %608 = vst [vmem:[%s1551_s3 + $0x8] sm:$0xff] %v194_v30  ;;  %680 = vst [vmem:[%s1551_s3 + $0x248] sm:$0xff] %v338_v31  ;;  %v198_v33 = vadd.f32 %v197_v32, %v1155_v23  ;;  %v341_v34 = vpop.f32.mrf.mxu1 }
  0xf5   :  { %v342_v35 = vadd.f32 %v341_v34, %v1155_v23  ;;  %v199_v36 = vpop.f32.mrf.mxu0 }
  0xf6   :  { %610 = vst [vmem:[%s1551_s3 + $0x18] sm:$0xff] %v198_v33  ;;  %v200_v37 = vadd.f32 %v199_v36, %v1158_v0  ;;  %v343_v38 = vpop.f32.mrf.mxu1 }
  0xf7   :  { %682 = vst [vmem:[%s1551_s3 + $0x258] sm:$0xff] %v342_v35  ;;  %v344_v39 = vadd.f32 %v343_v38, %v1158_v0  ;;  %v203_v40 = vpop.f32.mrf.mxu0 }
  0xf8   :  { %611 = vst [vmem:[%s1551_s3 + $0x20] sm:$0xff] %v200_v37  ;;  %v204_v41 = vadd.f32 %v203_v40, %v1155_v23  ;;  %v347_v42 = vpop.f32.mrf.mxu1 }
  0xf9   :  { %683 = vst [vmem:[%s1551_s3 + $0x260] sm:$0xff] %v344_v39  ;;  %v348_v43 = vadd.f32 %v347_v42, %v1155_v23  ;;  %v205_v44 = vpop.f32.mrf.mxu0 }
  0xfa   :  { %613 = vst [vmem:[%s1551_s3 + $0x30] sm:$0xff] %v204_v41  ;;  %v206_v45 = vadd.f32 %v205_v44, %v1158_v0  ;;  %v349_v46 = vpop.f32.mrf.mxu1 }
  0xfb   :  { %685 = vst [vmem:[%s1551_s3 + $0x270] sm:$0xff] %v348_v43  ;;  %v350_v47 = vadd.f32 %v349_v46, %v1158_v0  ;;  %v209_v48 = vpop.f32.mrf.mxu0 }
  0xfc   :  { %614 = vst [vmem:[%s1551_s3 + $0x38] sm:$0xff] %v206_v45  ;;  %v210_v49 = vadd.f32 %v209_v48, %v1155_v23  ;;  %v353_v50 = vpop.f32.mrf.mxu1 }
  0xfd   :  { %686 = vst [vmem:[%s1551_s3 + $0x278] sm:$0xff] %v350_v47  ;;  %v354_v51 = vadd.f32 %v353_v50, %v1155_v23  ;;  %v211_v52 = vpop.f32.mrf.mxu0 }
  0xfe   :  { %616 = vst [vmem:[%s1551_s3 + $0x48] sm:$0xff] %v210_v49  ;;  %v212_v53 = vadd.f32 %v211_v52, %v1158_v0  ;;  %v355_v54 = vpop.f32.mrf.mxu1 }
  0xff   :  { %688 = vst [vmem:[%s1551_s3 + $0x288] sm:$0xff] %v354_v51  ;;  %v356_v55 = vadd.f32 %v355_v54, %v1158_v0  ;;  %v215_v56 = vpop.f32.mrf.mxu0 }
 0x100   :  { %617 = vst [vmem:[%s1551_s3 + $0x50] sm:$0xff] %v212_v53  ;;  %v216_v57 = vadd.f32 %v215_v56, %v1155_v23  ;;  %v359_v58 = vpop.f32.mrf.mxu1 }
 0x101   :  { %689 = vst [vmem:[%s1551_s3 + $0x290] sm:$0xff] %v356_v55  ;;  %v360_v59 = vadd.f32 %v359_v58, %v1155_v23  ;;  %v217_v60 = vpop.f32.mrf.mxu0 }
 0x102   :  { %619 = vst [vmem:[%s1551_s3 + $0x60] sm:$0xff] %v216_v57  ;;  %v218_v61 = vadd.f32 %v217_v60, %v1158_v0  ;;  %v361_v62 = vpop.f32.mrf.mxu1 }
 0x103   :  { %691 = vst [vmem:[%s1551_s3 + $0x2a0] sm:$0xff] %v360_v59  ;;  %v362_v63 = vadd.f32 %v361_v62, %v1158_v0  ;;  %v221_v1 = vpop.f32.mrf.mxu0 }
 0x104   :  { %620 = vst [vmem:[%s1551_s3 + $0x68] sm:$0xff] %v218_v61  ;;  %v222_v2 = vadd.f32 %v221_v1, %v1155_v23  ;;  %v365_v3 = vpop.f32.mrf.mxu1 }
 0x105   :  { %692 = vst [vmem:[%s1551_s3 + $0x2a8] sm:$0xff] %v362_v63  ;;  %v366_v4 = vadd.f32 %v365_v3, %v1155_v23  ;;  %v223_v5 = vpop.f32.mrf.mxu0 }
 0x106   :  { %622 = vst [vmem:[%s1551_s3 + $0x78] sm:$0xff] %v222_v2  ;;  %v224_v6 = vadd.f32 %v223_v5, %v1158_v0  ;;  %v367_v7 = vpop.f32.mrf.mxu1 }
 0x107   :  { %694 = vst [vmem:[%s1551_s3 + $0x2b8] sm:$0xff] %v366_v4  ;;  %v368_v8 = vadd.f32 %v367_v7, %v1158_v0  ;;  %v227_v9 = vpop.f32.mrf.mxu0 }
 0x108   :  { %623 = vst [vmem:[%s1551_s3 + $0x80] sm:$0xff] %v224_v6  ;;  %v228_v10 = vadd.f32 %v227_v9, %v1155_v23  ;;  %v371_v11 = vpop.f32.mrf.mxu1 }
 0x109   :  { %695 = vst [vmem:[%s1551_s3 + $0x2c0] sm:$0xff] %v368_v8  ;;  %v372_v12 = vadd.f32 %v371_v11, %v1155_v23  ;;  %v229_v13 = vpop.f32.mrf.mxu0 }
 0x10a   :  { %625 = vst [vmem:[%s1551_s3 + $0x90] sm:$0xff] %v228_v10  ;;  %v230_v15 = vadd.f32 %v229_v13, %v1158_v0  ;;  %v373_v16 = vpop.f32.mrf.mxu1 }
 0x10b   :  { %697 = vst [vmem:[%s1551_s3 + $0x2d0] sm:$0xff] %v372_v12  ;;  %v374_v17 = vadd.f32 %v373_v16, %v1158_v0  ;;  %v233_v18 = vpop.f32.mrf.mxu0 }
 0x10c   :  { %626 = vst [vmem:[%s1551_s3 + $0x98] sm:$0xff] %v230_v15  ;;  %v234_v19 = vadd.f32 %v233_v18, %v1155_v23  ;;  %v377_v20 = vpop.f32.mrf.mxu1 }
 0x10d   :  { %698 = vst [vmem:[%s1551_s3 + $0x2d8] sm:$0xff] %v374_v17  ;;  %v378_v22 = vadd.f32 %v377_v20, %v1155_v23  ;;  %v235_v24 = vpop.f32.mrf.mxu0 }
 0x10e   :  { %628 = vst [vmem:[%s1551_s3 + $0xa8] sm:$0xff] %v234_v19  ;;  %v236_v26 = vadd.f32 %v235_v24, %v1158_v0  ;;  %v379_v27 = vpop.f32.mrf.mxu1 }
 0x10f   :  { %700 = vst [vmem:[%s1551_s3 + $0x2e8] sm:$0xff] %v378_v22  ;;  %v380_v28 = vadd.f32 %v379_v27, %v1158_v0  ;;  %v239_v29 = vpop.f32.mrf.mxu0 }
 0x110   :  { %629 = vst [vmem:[%s1551_s3 + $0xb0] sm:$0xff] %v236_v26  ;;  %v240_v21 = vadd.f32 %v239_v29, %v1155_v23  ;;  %v790_v30 = vpop.f32.mrf.mxu1 }
 0x111   :  { %701 = vst [vmem:[%s1551_s3 + $0x2f0] sm:$0xff] %v380_v28  ;;  %v454_v31 = vadd.f32 %v790_v30, %v1276_v25  ;;  %v241_v32 = vpop.f32.mrf.mxu0 }
 0x112   :  { %631 = vst [vmem:[%s1551_s3 + $0xc0] sm:$0xff] %v240_v21  ;;  %v242_v33 = vadd.f32 %v241_v32, %v1158_v0  ;;  %v448_v34 = vpop.f32.mrf.mxu1 }
 0x113   :  { %612 = vst [vmem:[%s1551_s3 + $0x28] sm:$0xff] %v454_v31  ;;  %v449_v35 = vadd.f32 %v448_v34, %v1276_v25  ;;  %v245_v36 = vpop.f32.mrf.mxu0 }
 0x114   :  { %632 = vst [vmem:[%s1551_s3 + $0xc8] sm:$0xff] %v242_v33  ;;  %v246_v37 = vadd.f32 %v245_v36, %v1155_v23  ;;  %v793_v38 = vpop.f32.mrf.mxu1 }
 0x115   :  { %609 = vst [vmem:[%s1551_s3 + $0x10] sm:$0xff] %v449_v35  ;;  %v464_v39 = vadd.f32 %v793_v38, %v1276_v25  ;;  %v247_v40 = vpop.f32.mrf.mxu0 }
 0x116   :  { %634 = vst [vmem:[%s1551_s3 + $0xd8] sm:$0xff] %v246_v37  ;;  %v248_v41 = vadd.f32 %v247_v40, %v1158_v0  ;;  %v458_v42 = vpop.f32.mrf.mxu1 }
 0x117   :  { %618 = vst [vmem:[%s1551_s3 + $0x58] sm:$0xff] %v464_v39  ;;  %v459_v43 = vadd.f32 %v458_v42, %v1276_v25  ;;  %v251_v44 = vpop.f32.mrf.mxu0 }
 0x118   :  { %635 = vst [vmem:[%s1551_s3 + $0xe0] sm:$0xff] %v248_v41  ;;  %v252_v45 = vadd.f32 %v251_v44, %v1155_v23  ;;  %v796_v46 = vpop.f32.mrf.mxu1 }
 0x119   :  { %615 = vst [vmem:[%s1551_s3 + $0x40] sm:$0xff] %v459_v43  ;;  %v474_v47 = vadd.f32 %v796_v46, %v1276_v25  ;;  %v253_v48 = vpop.f32.mrf.mxu0 }
 0x11a   :  { %637 = vst [vmem:[%s1551_s3 + $0xf0] sm:$0xff] %v252_v45  ;;  %v254_v49 = vadd.f32 %v253_v48, %v1158_v0  ;;  %v468_v50 = vpop.f32.mrf.mxu1 }
 0x11b   :  { %624 = vst [vmem:[%s1551_s3 + $0x88] sm:$0xff] %v474_v47  ;;  %v469_v51 = vadd.f32 %v468_v50, %v1276_v25  ;;  %v257_v52 = vpop.f32.mrf.mxu0 }
 0x11c   :  { %638 = vst [vmem:[%s1551_s3 + $0xf8] sm:$0xff] %v254_v49  ;;  %v258_v53 = vadd.f32 %v257_v52, %v1155_v23  ;;  %v799_v54 = vpop.f32.mrf.mxu1 }
 0x11d   :  { %621 = vst [vmem:[%s1551_s3 + $0x70] sm:$0xff] %v469_v51  ;;  %v484_v55 = vadd.f32 %v799_v54, %v1276_v25  ;;  %v259_v56 = vpop.f32.mrf.mxu0 }
 0x11e   :  { %640 = vst [vmem:[%s1551_s3 + $0x108] sm:$0xff] %v258_v53  ;;  %v260_v57 = vadd.f32 %v259_v56, %v1158_v0  ;;  %v478_v58 = vpop.f32.mrf.mxu1 }
 0x11f   :  { %630 = vst [vmem:[%s1551_s3 + $0xb8] sm:$0xff] %v484_v55  ;;  %v479_v59 = vadd.f32 %v478_v58, %v1276_v25  ;;  %v263_v60 = vpop.f32.mrf.mxu0 }
 0x120   :  { %641 = vst [vmem:[%s1551_s3 + $0x110] sm:$0xff] %v260_v57  ;;  %v264_v61 = vadd.f32 %v263_v60, %v1155_v23  ;;  %v802_v62 = vpop.f32.mrf.mxu1 }
 0x121   :  { %627 = vst [vmem:[%s1551_s3 + $0xa0] sm:$0xff] %v479_v59  ;;  %v494_v63 = vadd.f32 %v802_v62, %v1276_v25  ;;  %v265_v1 = vpop.f32.mrf.mxu0 }
 0x122   :  { %643 = vst [vmem:[%s1551_s3 + $0x120] sm:$0xff] %v264_v61  ;;  %v266_v2 = vadd.f32 %v265_v1, %v1158_v0  ;;  %v488_v3 = vpop.f32.mrf.mxu1 }
 0x123   :  { %636 = vst [vmem:[%s1551_s3 + $0xe8] sm:$0xff] %v494_v63  ;;  %v489_v4 = vadd.f32 %v488_v3, %v1276_v25  ;;  %v269_v5 = vpop.f32.mrf.mxu0 }
 0x124   :  { %644 = vst [vmem:[%s1551_s3 + $0x128] sm:$0xff] %v266_v2  ;;  %v270_v6 = vadd.f32 %v269_v5, %v1155_v23  ;;  %v805_v7 = vpop.f32.mrf.mxu1 }
 0x125   :  { %633 = vst [vmem:[%s1551_s3 + $0xd0] sm:$0xff] %v489_v4  ;;  %v504_v8 = vadd.f32 %v805_v7, %v1276_v25  ;;  %v271_v9 = vpop.f32.mrf.mxu0 }
 0x126   :  { %646 = vst [vmem:[%s1551_s3 + $0x138] sm:$0xff] %v270_v6  ;;  %v272_v10 = vadd.f32 %v271_v9, %v1158_v0  ;;  %v498_v11 = vpop.f32.mrf.mxu1 }
 0x127   :  { %642 = vst [vmem:[%s1551_s3 + $0x118] sm:$0xff] %v504_v8  ;;  %v499_v12 = vadd.f32 %v498_v11, %v1276_v25  ;;  %v275_v13 = vpop.f32.mrf.mxu0 }
 0x128   :  { %647 = vst [vmem:[%s1551_s3 + $0x140] sm:$0xff] %v272_v10  ;;  %v276_v14 = vadd.f32 %v275_v13, %v1155_v23  ;;  %v808_v15 = vpop.f32.mrf.mxu1 }
 0x129   :  { %639 = vst [vmem:[%s1551_s3 + $0x100] sm:$0xff] %v499_v12  ;;  %v514_v16 = vadd.f32 %v808_v15, %v1276_v25  ;;  %v277_v17 = vpop.f32.mrf.mxu0 }
 0x12a   :  { %649 = vst [vmem:[%s1551_s3 + $0x150] sm:$0xff] %v276_v14  ;;  %v278_v18 = vadd.f32 %v277_v17, %v1158_v0  ;;  %v508_v19 = vpop.f32.mrf.mxu1 }
 0x12b   :  { %648 = vst [vmem:[%s1551_s3 + $0x148] sm:$0xff] %v514_v16  ;;  %v509_v20 = vadd.f32 %v508_v19, %v1276_v25  ;;  %v281_v22 = vpop.f32.mrf.mxu0 }
 0x12c   :  { %650 = vst [vmem:[%s1551_s3 + $0x158] sm:$0xff] %v278_v18  ;;  %v282_v24 = vadd.f32 %v281_v22, %v1155_v23  ;;  %v811_v26 = vpop.f32.mrf.mxu1 }
 0x12d   :  { %645 = vst [vmem:[%s1551_s3 + $0x130] sm:$0xff] %v509_v20  ;;  %v524_v27 = vadd.f32 %v811_v26, %v1276_v25  ;;  %v283_v28 = vpop.f32.mrf.mxu0 }
 0x12e   :  { %652 = vst [vmem:[%s1551_s3 + $0x168] sm:$0xff] %v282_v24  ;;  %v284_v29 = vadd.f32 %v283_v28, %v1158_v0  ;;  %v518_v21 = vpop.f32.mrf.mxu1 }
 0x12f   :  { %654 = vst [vmem:[%s1551_s3 + $0x178] sm:$0xff] %v524_v27  ;;  %v519_v30 = vadd.f32 %v518_v21, %v1276_v25  ;;  %v287_v31 = vpop.f32.mrf.mxu0 }
 0x130   :  { %653 = vst [vmem:[%s1551_s3 + $0x170] sm:$0xff] %v284_v29  ;;  %v288_v32 = vadd.f32 %v287_v31, %v1155_v23  ;;  %v814_v33 = vpop.f32.mrf.mxu1 }
 0x131   :  { %651 = vst [vmem:[%s1551_s3 + $0x160] sm:$0xff] %v519_v30  ;;  %v534_v34 = vadd.f32 %v814_v33, %v1276_v25  ;;  %v289_v35 = vpop.f32.mrf.mxu0 }
 0x132   :  { %655 = vst [vmem:[%s1551_s3 + $0x180] sm:$0xff] %v288_v32  ;;  %v290_v36 = vadd.f32 %v289_v35, %v1158_v0  ;;  %v528_v37 = vpop.f32.mrf.mxu1 }
 0x133   :  { %660 = vst [vmem:[%s1551_s3 + $0x1a8] sm:$0xff] %v534_v34  ;;  %v529_v38 = vadd.f32 %v528_v37, %v1276_v25  ;;  %v293_v39 = vpop.f32.mrf.mxu0 }
 0x134   :  { %656 = vst [vmem:[%s1551_s3 + $0x188] sm:$0xff] %v290_v36  ;;  %v294_v40 = vadd.f32 %v293_v39, %v1155_v23  ;;  %v817_v41 = vpop.f32.mrf.mxu1 }
 0x135   :  { %657 = vst [vmem:[%s1551_s3 + $0x190] sm:$0xff] %v529_v38  ;;  %v544_v42 = vadd.f32 %v817_v41, %v1276_v25  ;;  %v295_v43 = vpop.f32.mrf.mxu0 }
 0x136   :  { %658 = vst [vmem:[%s1551_s3 + $0x198] sm:$0xff] %v294_v40  ;;  %v296_v44 = vadd.f32 %v295_v43, %v1158_v0  ;;  %v538_v45 = vpop.f32.mrf.mxu1 }
 0x137   :  { %666 = vst [vmem:[%s1551_s3 + $0x1d8] sm:$0xff] %v544_v42  ;;  %v539_v46 = vadd.f32 %v538_v45, %v1276_v25  ;;  %v299_v47 = vpop.f32.mrf.mxu0 }
 0x138   :  { %659 = vst [vmem:[%s1551_s3 + $0x1a0] sm:$0xff] %v296_v44  ;;  %v300_v48 = vadd.f32 %v299_v47, %v1155_v23  ;;  %v820_v49 = vpop.f32.mrf.mxu1 }
 0x139   :  { %663 = vst [vmem:[%s1551_s3 + $0x1c0] sm:$0xff] %v539_v46  ;;  %v554_v50 = vadd.f32 %v820_v49, %v1276_v25  ;;  %v301_v51 = vpop.f32.mrf.mxu0 }
 0x13a   :  { %661 = vst [vmem:[%s1551_s3 + $0x1b0] sm:$0xff] %v300_v48  ;;  %v302_v52 = vadd.f32 %v301_v51, %v1158_v0  ;;  %v548_v53 = vpop.f32.mrf.mxu1 }
 0x13b   :  { %672 = vst [vmem:[%s1551_s3 + $0x208] sm:$0xff] %v554_v50  ;;  %v549_v54 = vadd.f32 %v548_v53, %v1276_v25  ;;  %v305_v55 = vpop.f32.mrf.mxu0 }
 0x13c   :  { %662 = vst [vmem:[%s1551_s3 + $0x1b8] sm:$0xff] %v302_v52  ;;  %v306_v56 = vadd.f32 %v305_v55, %v1155_v23  ;;  %v823_v57 = vpop.f32.mrf.mxu1 }
 0x13d   :  { %669 = vst [vmem:[%s1551_s3 + $0x1f0] sm:$0xff] %v549_v54  ;;  %v564_v58 = vadd.f32 %v823_v57, %v1276_v25  ;;  %v307_v59 = vpop.f32.mrf.mxu0 }
 0x13e   :  { %664 = vst [vmem:[%s1551_s3 + $0x1c8] sm:$0xff] %v306_v56  ;;  %v308_v60 = vadd.f32 %v307_v59, %v1158_v0  ;;  %v558_v61 = vpop.f32.mrf.mxu1 }
 0x13f   :  { %678 = vst [vmem:[%s1551_s3 + $0x238] sm:$0xff] %v564_v58  ;;  %v559_v62 = vadd.f32 %v558_v61, %v1276_v25  ;;  %v311_v63 = vpop.f32.mrf.mxu0 }
 0x140   :  { %665 = vst [vmem:[%s1551_s3 + $0x1d0] sm:$0xff] %v308_v60  ;;  %v312_v1 = vadd.f32 %v311_v63, %v1155_v23  ;;  %v826_v2 = vpop.f32.mrf.mxu1 }
 0x141   :  { %675 = vst [vmem:[%s1551_s3 + $0x220] sm:$0xff] %v559_v62  ;;  %v574_v3 = vadd.f32 %v826_v2, %v1276_v25  ;;  %v313_v4 = vpop.f32.mrf.mxu0 }
 0x142   :  { %667 = vst [vmem:[%s1551_s3 + $0x1e0] sm:$0xff] %v312_v1  ;;  %v314_v5 = vadd.f32 %v313_v4, %v1158_v0  ;;  %v568_v6 = vpop.f32.mrf.mxu1 }
 0x143   :  { %684 = vst [vmem:[%s1551_s3 + $0x268] sm:$0xff] %v574_v3  ;;  %v569_v7 = vadd.f32 %v568_v6, %v1276_v25  ;;  %v317_v8 = vpop.f32.mrf.mxu0 }
 0x144   :  { %668 = vst [vmem:[%s1551_s3 + $0x1e8] sm:$0xff] %v314_v5  ;;  %v318_v9 = vadd.f32 %v317_v8, %v1155_v23  ;;  %v829_v10 = vpop.f32.mrf.mxu1 }
 0x145   :  { %681 = vst [vmem:[%s1551_s3 + $0x250] sm:$0xff] %v569_v7  ;;  %v584_v11 = vadd.f32 %v829_v10, %v1276_v25  ;;  %v319_v12 = vpop.f32.mrf.mxu0 }
 0x146   :  { %670 = vst [vmem:[%s1551_s3 + $0x1f8] sm:$0xff] %v318_v9  ;;  %v320_v13 = vadd.f32 %v319_v12, %v1158_v0  ;;  %v578_v14 = vpop.f32.mrf.mxu1 }
 0x147   :  { %690 = vst [vmem:[%s1551_s3 + $0x298] sm:$0xff] %v584_v11  ;;  %v579_v15 = vadd.f32 %v578_v14, %v1276_v25  ;;  %v323_v16 = vpop.f32.mrf.mxu0 }
 0x148   :  { %671 = vst [vmem:[%s1551_s3 + $0x200] sm:$0xff] %v320_v13  ;;  %v324_v17 = vadd.f32 %v323_v16, %v1155_v23  ;;  %v832_v18 = vpop.f32.mrf.mxu1 }
 0x149   :  { %687 = vst [vmem:[%s1551_s3 + $0x280] sm:$0xff] %v579_v15  ;;  %v594_v19 = vadd.f32 %v832_v18, %v1276_v25  ;;  %v325_v20 = vpop.f32.mrf.mxu0 }
 0x14a   :  { %673 = vst [vmem:[%s1551_s3 + $0x210] sm:$0xff] %v324_v17  ;;  %v326_v22 = vadd.f32 %v325_v20, %v1158_v0  ;;  %v588_v24 = vpop.f32.mrf.mxu1 }
 0x14b   :  { %696 = vst [vmem:[%s1551_s3 + $0x2c8] sm:$0xff] %v594_v19  ;;  %v589_v26 = vadd.f32 %v588_v24, %v1276_v25  ;;  %v329_v27 = vpop.f32.mrf.mxu0 }
 0x14c   :  { %674 = vst [vmem:[%s1551_s3 + $0x218] sm:$0xff] %v326_v22  ;;  %v330_v28 = vadd.f32 %v329_v27, %v1155_v23  ;;  %v835_v29 = vpop.f32.mrf.mxu1 }
 0x14d   :  { %693 = vst [vmem:[%s1551_s3 + $0x2b0] sm:$0xff] %v589_v26  ;;  %v604_v21 = vadd.f32 %v835_v29, %v1276_v25  ;;  %v331_v30 = vpop.f32.mrf.mxu0 }
 0x14e   :  { %676 = vst [vmem:[%s1551_s3 + $0x228] sm:$0xff] %v330_v28  ;;  %v332_v31 = vadd.f32 %v331_v30, %v1158_v0  ;;  %v598_v32 = vpop.f32.mrf.mxu1 }
 0x14f   :  { %702 = vst [vmem:[%s1551_s3 + $0x2f8] sm:$0xff] %v604_v21  ;;  %v599_v23 = vadd.f32 %v598_v32, %v1276_v25 }
 0x150   :  { %677 = vst [vmem:[%s1551_s3 + $0x230] sm:$0xff] %v332_v31 }
 0x151   :  { %699 = vst [vmem:[%s1551_s3 + $0x2e0] sm:$0xff] %v599_v23 }
 0x152   :  { %707 = vsyncpa [#allocation3], 1 }

// kernel: dis_attention_forward.3
= control target key start
LH: loop header
LB: loop body
LE: loop exit
PB: predicated region body
PF: predicated region fallthrough
CT: control target
= control target key end

     0   :  { %s13971_s0 = inlined_call_operand.vmem [shape: f32[2,128,384], index: 0, kind: input, shape index: {}, may-alias: {0,1,2}]   ;;  %s13972_s1 = inlined_call_operand.vmem [shape: f32[2,128,384], index: 1, kind: input, shape index: {}, may-alias: {0,1,2}]   ;;  %s13973_s2 = inlined_call_operand.vmem [shape: f32[2,128,384], index: 2, kind: input, shape index: {}, may-alias: {0,1,2}]   ;;  %s13974_s3 = inlined_call_operand.vmem [shape: f32[128,256], index: 3, kind: input, shape index: {}]   ;;  %s13975_s4 = inlined_call_operand.vmem [shape: f32[1,256], index: 4, kind: input, shape index: {}]   ;;  %s13976_s5 = inlined_call_operand.hbm [shape: f32[2,8,128,128], index: 5, kind: output, shape index: {0}]   ;;  %s13977_s6 = inlined_call_operand.hbm [shape: f32[2,128,128], index: 6, kind: output, shape index: {1}]   ;;  %s13978_s7 = inlined_call_operand.hbm [shape: f32[2,128,128], index: 7, kind: output, shape index: {2}]  }
   0x1   :  { %14194 = sst [smem:[#allocation116_spill]] %s13971_s0 }
   0x2   :  { %13 = vsyncpa [#allocation6], 0 }
   0x3   :  { %15 = vsyncpa [#allocation6 + $0x1], 0 }
   0x4   :  { %16 = vsyncpa [#allocation8], 0 }
   0x5   :  { %18 = vsyncpa [#allocation8 + $0x1], 0  ;;  %s9699_s24 = smov 0   ;;  %s9701_s25 = smov 0  }
   0x6   :  { %s9703_s26 = smov 0   ;;  %s9705_s27 = smov 0  }
   0x7   :  { %s9707_s28 = smov 0   ;;  %s9709_s29 = smov 0  }
   0x8 LB: > { %s14175_s30 = sadd.s32 4294967295, %s9644_s29   ;;  %s14153_s8 = sadd.s32 4294967294, %s9644_s29   ;;  %s9644_s29 = sphi %s9709_s29, %s24_s29   ;;  %s9640_s28 = sphi %s9707_s28, %s14658_s28   ;;  %s9636_s27 = sphi %s9705_s27, %s14657_s27   ;;  %s9632_s26 = sphi %s9703_s26, %s14656_s26   ;;  %s9628_s25 = sphi %s9701_s25, %s14655_s25   ;;  %s9624_s24 = sphi %s9699_s24, %s14654_s24  }
   0x9   : > { %s36_s9 = sadd.s32 1, %s9640_s28  ;;  %s45_s10 = sadd.s32 1, %s9632_s26 }
   0xa   : > { %p38_p0 = scmp.ge.s32.totalorder %s36_s9, 2  ;;  %p52_p1 = scmp.ne.s32.totalorder %s9632_s26, %s9628_s25 }
   0xb   : > { %p53_p2 = scmp.eq.s32.totalorder %s9644_s29, 0  ;;  %p178_p3 = scmp.eq.s32.totalorder %s14175_s30, 1 }
   0xc   : > { %s14660_s9 = smov (%p38_p0, %s36_s9), 0  ;;  %p183_p6 = scmp.ne.s32.totalorder %s9628_s25, %s9624_s24 }
   0xd   : > { %p9740_p4 = por %p53_p2, %p52_p1  ;;  %p9744_p5 = por %p178_p3, %p52_p1 }
   0xe   : > { %s40_s13 = ssub.s32 %s9640_s28, %s14660_s9  ;;  %p184_p8 = scmp.eq.s32.totalorder %s14153_s8, 1 }
   0xf   : > { %p43_p7 = scmp.eq.s32.totalorder %s40_s13, 0  ;;  %p6725_p10 = scmp.ge.s32.totalorder %s9644_s29, 2 }
  0x10   : > { %p9757_p9 = por %p184_p8, %p183_p6 }
  0x11   : > { %s9755_s14 = scalar_select %p43_p7, %s9632_s26, %s45_s10  }
  0x12   : > { %262 = sbr.rel (%p6725_p10) target bundleno = 67 (0x43), region = 24 }
  0x17   : > { %265 = sbr.rel (!%p9740_p4) target bundleno = 41 (0x29), region = 28  ;;  %s267_s16 = sand.u32 (%p9740_p4), 1, %s9632_s26  }
  0x18   : > { %s8561_s17 = smul.u32 (%p9740_p4), 384, %s9640_s28  ;;  %s6726_s18 = sshll.u32 (%p9740_p4), %s267_s16, 7 }
  0x19   : > { %s14198_s0 = sld [smem:[#allocation116_spill]] (%p9740_p4)  ;;  %s269_s22 = scalar_lea.vmem (%p9740_p4), [#allocation2], %s6726_s18 }
  0x1f   : > { %s9771_s21 = scalar_lea.vmem %s14198_s0, %s8561_s17 }
  0x20   : > { %v334_v0 = vld [vmem:[%s9771_s21] sm:$0xff]  ;;  %v336_v1 = vld [vmem:[%s9771_s21 + $0x18] sm:$0xff]  ;;  %v338_v2 = vld [vmem:[%s9771_s21 + $0x30] sm:$0xff] }
  0x21   : > { %335 = vst [vmem:[%s269_s22] sm:$0xff] %v334_v0  ;;  %337 = vst [vmem:[%s269_s22 + $0x8] sm:$0xff] %v336_v1  ;;  %v340_v3 = vld [vmem:[%s9771_s21 + $0x48] sm:$0xff]  ;;  %v342_v4 = vld [vmem:[%s9771_s21 + $0x60] sm:$0xff] }
  0x22   : > { %339 = vst [vmem:[%s269_s22 + $0x10] sm:$0xff] %v338_v2  ;;  %v344_v5 = vld [vmem:[%s9771_s21 + $0x78] sm:$0xff]  ;;  %341 = vst [vmem:[%s269_s22 + $0x18] sm:$0xff] %v340_v3  ;;  %v346_v6 = vld [vmem:[%s9771_s21 + $0x90] sm:$0xff] }
  0x23   : > { %343 = vst [vmem:[%s269_s22 + $0x20] sm:$0xff] %v342_v4  ;;  %345 = vst [vmem:[%s269_s22 + $0x28] sm:$0xff] %v344_v5  ;;  %v348_v7 = vld [vmem:[%s9771_s21 + $0xa8] sm:$0xff]  ;;  %v350_v8 = vld [vmem:[%s9771_s21 + $0xc0] sm:$0xff] }
  0x24   : > { %347 = vst [vmem:[%s269_s22 + $0x30] sm:$0xff] %v346_v6  ;;  %349 = vst [vmem:[%s269_s22 + $0x38] sm:$0xff] %v348_v7  ;;  %v352_v9 = vld [vmem:[%s9771_s21 + $0xd8] sm:$0xff]  ;;  %v354_v10 = vld [vmem:[%s9771_s21 + $0xf0] sm:$0xff] }
  0x25   : > { %351 = vst [vmem:[%s269_s22 + $0x40] sm:$0xff] %v350_v8  ;;  %v356_v11 = vld [vmem:[%s9771_s21 + $0x108] sm:$0xff]  ;;  %353 = vst [vmem:[%s269_s22 + $0x48] sm:$0xff] %v352_v9  ;;  %v358_v12 = vld [vmem:[%s9771_s21 + $0x120] sm:$0xff] }
  0x26   : > { %355 = vst [vmem:[%s269_s22 + $0x50] sm:$0xff] %v354_v10  ;;  %357 = vst [vmem:[%s269_s22 + $0x58] sm:$0xff] %v356_v11  ;;  %v360_v13 = vld [vmem:[%s9771_s21 + $0x138] sm:$0xff]  ;;  %v362_v14 = vld [vmem:[%s9771_s21 + $0x150] sm:$0xff] }
  0x27   : > { %359 = vst [vmem:[%s269_s22 + $0x60] sm:$0xff] %v358_v12  ;;  %361 = vst [vmem:[%s269_s22 + $0x68] sm:$0xff] %v360_v13  ;;  %v364_v15 = vld [vmem:[%s9771_s21 + $0x168] sm:$0xff] }
  0x28   : > { %363 = vst [vmem:[%s269_s22 + $0x70] sm:$0xff] %v362_v14  ;;  %365 = vst [vmem:[%s269_s22 + $0x78] sm:$0xff] %v364_v15 }
  0x29 PF: > { %371 = sbr.rel (!%p9740_p4) target bundleno = 54 (0x36), region = 66  ;;  %s373_s23 = sand.u32 (%p9740_p4), 1, %s9632_s26  }
  0x2a   : > { %s6729_s10 = smul.u32 (%p9740_p4), 384, %s9640_s28  ;;  %s6728_s13 = sshll.u32 (%p9740_p4), %s373_s23, 7 }
  0x2b   : > { %s375_s19 = scalar_lea.vmem (%p9740_p4), [#allocation3], %s6728_s13 }
  0x2c   : > { %s9796_s18 = scalar_lea.vmem (%p9740_p4), %s13972_s1, %s6729_s10 }
  0x2d   : > { %v6730_v16 = vld [vmem:[%s9796_s18 + $0x8] sm:$0xff] (%p9740_p4)  ;;  %v6731_v17 = vld [vmem:[%s9796_s18 + $0x20] sm:$0xff] (%p9740_p4)  ;;  %v6732_v18 = vld [vmem:[%s9796_s18 + $0x38] sm:$0xff] (%p9740_p4) }
  0x2e   : > { %439 = vst [vmem:[%s375_s19] sm:$0xff] %v6730_v16  ;;  %441 = vst [vmem:[%s375_s19 + $0x8] sm:$0xff] %v6731_v17  ;;  %v6733_v19 = vld [vmem:[%s9796_s18 + $0x50] sm:$0xff]  ;;  %v6734_v20 = vld [vmem:[%s9796_s18 + $0x68] sm:$0xff] }
  0x2f   : > { %443 = vst [vmem:[%s375_s19 + $0x10] sm:$0xff] %v6732_v18  ;;  %v6735_v21 = vld [vmem:[%s9796_s18 + $0x80] sm:$0xff]  ;;  %445 = vst [vmem:[%s375_s19 + $0x18] sm:$0xff] %v6733_v19  ;;  %v6736_v22 = vld [vmem:[%s9796_s18 + $0x98] sm:$0xff] }
  0x30   : > { %447 = vst [vmem:[%s375_s19 + $0x20] sm:$0xff] %v6734_v20  ;;  %449 = vst [vmem:[%s375_s19 + $0x28] sm:$0xff] %v6735_v21  ;;  %v6737_v23 = vld [vmem:[%s9796_s18 + $0xb0] sm:$0xff]  ;;  %v6738_v24 = vld [vmem:[%s9796_s18 + $0xc8] sm:$0xff] }
  0x31   : > { %451 = vst [vmem:[%s375_s19 + $0x30] sm:$0xff] %v6736_v22  ;;  %453 = vst [vmem:[%s375_s19 + $0x38] sm:$0xff] %v6737_v23  ;;  %v6739_v25 = vld [vmem:[%s9796_s18 + $0xe0] sm:$0xff]  ;;  %v6740_v26 = vld [vmem:[%s9796_s18 + $0xf8] sm:$0xff] }
  0x32   : > { %455 = vst [vmem:[%s375_s19 + $0x40] sm:$0xff] %v6738_v24  ;;  %v6741_v27 = vld [vmem:[%s9796_s18 + $0x110] sm:$0xff]  ;;  %457 = vst [vmem:[%s375_s19 + $0x48] sm:$0xff] %v6739_v25  ;;  %v6742_v28 = vld [vmem:[%s9796_s18 + $0x128] sm:$0xff] }
  0x33   : > { %459 = vst [vmem:[%s375_s19 + $0x50] sm:$0xff] %v6740_v26  ;;  %461 = vst [vmem:[%s375_s19 + $0x58] sm:$0xff] %v6741_v27  ;;  %v6743_v29 = vld [vmem:[%s9796_s18 + $0x140] sm:$0xff]  ;;  %v6744_v30 = vld [vmem:[%s9796_s18 + $0x158] sm:$0xff] }
  0x34   : > { %463 = vst [vmem:[%s375_s19 + $0x60] sm:$0xff] %v6742_v28  ;;  %465 = vst [vmem:[%s375_s19 + $0x68] sm:$0xff] %v6743_v29  ;;  %v6745_v31 = vld [vmem:[%s9796_s18 + $0x170] sm:$0xff] }
  0x35   : > { %467 = vst [vmem:[%s375_s19 + $0x70] sm:$0xff] %v6744_v30  ;;  %469 = vst [vmem:[%s375_s19 + $0x78] sm:$0xff] %v6745_v31 }
  0x36 PF: > { %475 = sbr.rel (!%p9740_p4) target bundleno = 67 (0x43), region = 104  ;;  %s477_s20 = sand.u32 (%p9740_p4), 1, %s9632_s26  }
  0x37   : > { %s6747_s21 = smul.u32 (%p9740_p4), 384, %s9640_s28  ;;  %s6746_s22 = sshll.u32 (%p9740_p4), %s477_s20, 7 }
  0x38   : > { %s479_s11 = scalar_lea.vmem (%p9740_p4), [#allocation4], %s6746_s22 }
  0x39   : > { %s9821_s13 = scalar_lea.vmem (%p9740_p4), %s13973_s2, %s6747_s21 }
  0x3a   : > { %v6748_v32 = vld [vmem:[%s9821_s13 + $0x10] sm:$0xff] (%p9740_p4)  ;;  %v6749_v33 = vld [vmem:[%s9821_s13 + $0x28] sm:$0xff] (%p9740_p4)  ;;  %v6750_v34 = vld [vmem:[%s9821_s13 + $0x40] sm:$0xff] (%p9740_p4) }
  0x3b   : > { %543 = vst [vmem:[%s479_s11] sm:$0xff] %v6748_v32  ;;  %545 = vst [vmem:[%s479_s11 + $0x8] sm:$0xff] %v6749_v33  ;;  %v6751_v35 = vld [vmem:[%s9821_s13 + $0x58] sm:$0xff]  ;;  %v6752_v36 = vld [vmem:[%s9821_s13 + $0x70] sm:$0xff] }
  0x3c   : > { %547 = vst [vmem:[%s479_s11 + $0x10] sm:$0xff] %v6750_v34  ;;  %v6753_v37 = vld [vmem:[%s9821_s13 + $0x88] sm:$0xff]  ;;  %549 = vst [vmem:[%s479_s11 + $0x18] sm:$0xff] %v6751_v35  ;;  %v6754_v38 = vld [vmem:[%s9821_s13 + $0xa0] sm:$0xff] }
  0x3d   : > { %551 = vst [vmem:[%s479_s11 + $0x20] sm:$0xff] %v6752_v36  ;;  %553 = vst [vmem:[%s479_s11 + $0x28] sm:$0xff] %v6753_v37  ;;  %v6755_v39 = vld [vmem:[%s9821_s13 + $0xb8] sm:$0xff]  ;;  %v6756_v40 = vld [vmem:[%s9821_s13 + $0xd0] sm:$0xff] }
  0x3e   : > { %555 = vst [vmem:[%s479_s11 + $0x30] sm:$0xff] %v6754_v38  ;;  %557 = vst [vmem:[%s479_s11 + $0x38] sm:$0xff] %v6755_v39  ;;  %v6757_v41 = vld [vmem:[%s9821_s13 + $0xe8] sm:$0xff]  ;;  %v6758_v42 = vld [vmem:[%s9821_s13 + $0x100] sm:$0xff] }
  0x3f   : > { %559 = vst [vmem:[%s479_s11 + $0x40] sm:$0xff] %v6756_v40  ;;  %v6759_v43 = vld [vmem:[%s9821_s13 + $0x118] sm:$0xff]  ;;  %561 = vst [vmem:[%s479_s11 + $0x48] sm:$0xff] %v6757_v41  ;;  %v6760_v44 = vld [vmem:[%s9821_s13 + $0x130] sm:$0xff] }
  0x40   : > { %563 = vst [vmem:[%s479_s11 + $0x50] sm:$0xff] %v6758_v42  ;;  %565 = vst [vmem:[%s479_s11 + $0x58] sm:$0xff] %v6759_v43  ;;  %v6761_v45 = vld [vmem:[%s9821_s13 + $0x148] sm:$0xff]  ;;  %v6762_v46 = vld [vmem:[%s9821_s13 + $0x160] sm:$0xff] }
  0x41   : > { %567 = vst [vmem:[%s479_s11 + $0x60] sm:$0xff] %v6760_v44  ;;  %569 = vst [vmem:[%s479_s11 + $0x68] sm:$0xff] %v6761_v45  ;;  %v6763_v47 = vld [vmem:[%s9821_s13 + $0x178] sm:$0xff] }
  0x42   : > { %571 = vst [vmem:[%s479_s11 + $0x70] sm:$0xff] %v6762_v46  ;;  %573 = vst [vmem:[%s479_s11 + $0x78] sm:$0xff] %v6763_v47 }
  0x43 PF: > { %p6764_p11 = scmp.ge.s32.totalorder %s9644_s29, 1  ;;  %p578_p12 = scmp.lt.s32.totalorder %s9644_s29, 3 }
  0x45   : > { %p579_p13 = pnand %p6764_p11, %p578_p12 }
  0x47   : > { %582 = sbr.rel (%p579_p13) target bundleno = 5221 (0x1465), region = 142 }
  0x4c   : > { %s9842_s16 = sand.u32 1, %s9628_s25   ;;  %vm716_vm0 = vcmask 130048   ;;  %s14188_s19 = smov 112   ;;  %vm6132_vm1 = vcmask 261120   ;;  %vm6149_vm2 = vcmask 392192   ;;  %vm6166_vm3 = vcmask 523264  }
  0x4d   : > { %s9845_s17 = sshll.u32 %s9842_s16, 7  ;;  %s14176_s21 = smov 96   ;;  %vm6183_vm4 = vcmask 654336   ;;  %vm6200_vm5 = vcmask 785408   ;;  %vm6217_vm6 = vcmask 916480  }
  0x4e   : > { %s9848_s18 = scalar_lea.vmem [#allocation3], %s9845_s17  ;;  %s9861_s20 = scalar_lea.vmem [#allocation2], %s9845_s17 }
  0x4f   : > { %v699_v48 = vld [vmem:[%s9848_s18 + $0x78] sm:$0xff]  ;;  %v698_v49 = vld [vmem:[%s9848_s18 + $0x70] sm:$0xff]  ;;  %v696_v50 = vld [vmem:[%s9848_s18 + $0x60] sm:$0xff]  ;;  %s10024_s22 = scalar_lea.vmem [#allocation4], %s9845_s17  ;;  %s6768_s23 = sshll.u32 %s9842_s16, 10 }
  0x50   : > { %7665 = vmatprep.subr.msk.mxu0 %vm716_vm0, %v699_v48  ;;  %1323 = vrot.lane.b32.xlu1 %v698_v49, %s14188_s19  ;;  %v697_v51 = vld [vmem:[%s9848_s18 + $0x68] sm:$0xff]  ;;  %v652_v52 = vld [vmem:[%s9861_s20] sm:$0xff]  ;;  %v694_v53 = vld [vmem:[%s9848_s18 + $0x50] sm:$0xff]  ;;  %s10447_s10 = scalar_lea.vmem [#allocation5], %s6768_s23  ;;  %s14186_s13 = smov 80  }
  0x51   : > { %7666 = vmatpush3.xpose.msk.msra.mxu0 %vm716_vm0, %v699_v48  ;;  %1325 = vrot.lane.b32.xlu0 %v699_v48, %s14188_s19  ;;  %v9867_v54 = vmul.f32 0.25, %v652_v52  ;;  %v695_v55 = vld [vmem:[%s9848_s18 + $0x58] sm:$0xff]  ;;  %v693_v57 = vld [vmem:[%s9848_s18 + $0x48] sm:$0xff]  ;;  %v692_v58 = vld [vmem:[%s9848_s18 + $0x40] sm:$0xff]  ;;  %s14180_s11 = smov 64   ;;  %s14184_s23 = smov 32  }
  0x52   : > { %7667 = vmatprep.subr.msk.mxu0 %vm716_vm0, %v698_v49  ;;  %v9876_v56 = vld [vmem:[%s9848_s18 + $0x38] sm:$0xff]  ;;  %v690_v59 = vld [vmem:[%s9848_s18 + $0x30] sm:$0xff]  ;;  %v9894_v60 = vld [vmem:[%s9848_s18 + $0x28] sm:$0xff]  ;;  %s14182_s8 = smov 16  }
  0x53   : > { %14199 = vst [vmem:[#allocation12_spill] sm:$0xff] %v9867_v54  ;;  %7697 = vmatprep.mubr.msk.f32.mxu0 %vm716_vm0, %v9867_v54  ;;  %v688_v61 = vld [vmem:[%s9848_s18 + $0x20] sm:$0xff]  ;;  %v653_v62 = vld [vmem:[%s9861_s20 + $0x8] sm:$0xff]  ;;  %v654_v0 = vld [vmem:[%s9861_s20 + $0x10] sm:$0xff] }
  0x54   : > { %1319 = vrot.lane.b32.xlu1 %v696_v50, %s14188_s19  ;;  %v9915_v63 = vmul.f32 0.25, %v653_v62  ;;  %v9922_v1 = vld [vmem:[%s9848_s18 + $0x18] sm:$0xff]  ;;  %v9926_v2 = vmul.f32 0.25, %v654_v0  ;;  %v657_v3 = vld [vmem:[%s9861_s20 + $0x28] sm:$0xff]  ;;  %v686_v4 = vld [vmem:[%s9848_s18 + $0x10] sm:$0xff] }
  0x55   : > { %7668 = vmatpush3.xpose.msk.msra.mxu0 %vm716_vm0, %v698_v49  ;;  %1321 = vrot.lane.b32.xlu0 %v697_v51, %s14188_s19  ;;  %v9942_v5 = vmul.f32 0.25, %v657_v3  ;;  %v658_v6 = vld [vmem:[%s9861_s20 + $0x30] sm:$0xff]  ;;  %v9951_v7 = vld [vmem:[%s9848_s18 + $0x8] sm:$0xff]  ;;  %v684_v9 = vld [vmem:[%s9848_s18] sm:$0xff] }
  0x56   : > { %7669 = vmatprep.subr.msk.mxu0 %vm716_vm0, %v697_v51  ;;  %14200 = vst [vmem:[#allocation13_spill] sm:$0xff] %v9915_v63  ;;  %14201 = vst [vmem:[#allocation14_spill] sm:$0xff] %v9926_v2  ;;  %v9955_v8 = vmul.f32 0.25, %v658_v6  ;;  %v661_v10 = vld [vmem:[%s9861_s20 + $0x48] sm:$0xff]  ;;  %v662_v12 = vld [vmem:[%s9861_s20 + $0x50] sm:$0xff] }
  0x57   : > { %14202 = vst [vmem:[#allocation15_spill] sm:$0xff] %v9942_v5  ;;  %v9971_v11 = vmul.f32 0.25, %v661_v10  ;;  %v655_v13 = vld [vmem:[%s9861_s20 + $0x18] sm:$0xff]  ;;  %v9981_v14 = vmul.f32 0.25, %v662_v12  ;;  %v656_v16 = vld [vmem:[%s9861_s20 + $0x20] sm:$0xff]  ;;  %v665_v18 = vld [vmem:[%s9861_s20 + $0x68] sm:$0xff] }
  0x58   : > { %1315 = vrot.lane.b32.xlu1 %v694_v53, %s14188_s19  ;;  %14203 = vst [vmem:[#allocation16_spill] sm:$0xff] %v9955_v8  ;;  %v9987_v15 = vmul.f32 0.25, %v655_v13  ;;  %v9994_v17 = vmul.f32 0.25, %v656_v16  ;;  %v659_v19 = vld [vmem:[%s9861_s20 + $0x38] sm:$0xff]  ;;  %v660_v20 = vld [vmem:[%s9861_s20 + $0x40] sm:$0xff]  ;;  %v10006_v21 = vmul.f32 0.25, %v665_v18 }
  0x59   : > { %7670 = vmatpush3.xpose.msk.msra.mxu0 %vm716_vm0, %v697_v51  ;;  %1317 = vrot.lane.b32.xlu0 %v695_v55, %s14188_s19  ;;  %14204 = vst [vmem:[#allocation17_spill] sm:$0xff] %v9971_v11  ;;  %14205 = vst [vmem:[#allocation18_spill] sm:$0xff] %v9981_v14  ;;  %v10012_v22 = vmul.f32 0.25, %v659_v19  ;;  %v666_v23 = vld [vmem:[%s9861_s20 + $0x70] sm:$0xff]  ;;  %v10017_v24 = vmul.f32 0.25, %v660_v20  ;;  %v10027_v26 = vld [vmem:[%s10024_s22 + $0x78] sm:$0xff] }
  0x5a   : > { %7671 = vmatprep.subr.msk.mxu0 %vm716_vm0, %v696_v50  ;;  %14206 = vst [vmem:[#allocation19_spill] sm:$0xff] %v9987_v15  ;;  %14207 = vst [vmem:[#allocation20_spill] sm:$0xff] %v9994_v17  ;;  %v10021_v25 = vmul.f32 0.25, %v666_v23  ;;  %v663_v27 = vld [vmem:[%s9861_s20 + $0x58] sm:$0xff]  ;;  %v664_v28 = vld [vmem:[%s9861_s20 + $0x60] sm:$0xff]  ;;  %7721 = vmatprep.subr.mxu1 %v10027_v26 }
  0x5b   : > { %14208 = vst [vmem:[#allocation21_spill] sm:$0xff] %v10006_v21  ;;  %14209 = vst [vmem:[#allocation22_spill] sm:$0xff] %v10012_v22  ;;  %7722 = vmatpush3.msra.mxu1 %v10027_v26  ;;  %v10042_v29 = vld [vmem:[%s10024_s22 + $0x70] sm:$0xff]  ;;  %v10048_v30 = vmul.f32 0.25, %v663_v27  ;;  %v10052_v31 = vmul.f32 0.25, %v664_v28  ;;  %v10058_v32 = vld [vmem:[%s10024_s22 + $0x68] sm:$0xff] }
  0x5c   : > { %1309 = vrot.lane.b32.xlu1 %v9876_v56, %s14188_s19  ;;  %14210 = vst [vmem:[#allocation23_spill] sm:$0xff] %v10017_v24  ;;  %14211 = vst [vmem:[#allocation24_spill] sm:$0xff] %v10021_v25  ;;  %7723 = vmatprep.subr.mxu1 %v10042_v29  ;;  %v667_v33 = vld [vmem:[%s9861_s20 + $0x78] sm:$0xff]  ;;  %v10072_v34 = vld [vmem:[%s10024_s22 + $0x60] sm:$0xff]  ;;  %s14178_s20 = smov 48  }
  0x5d   : > { %7672 = vmatpush3.xpose.msk.msra.mxu0 %vm716_vm0, %v696_v50  ;;  %1313 = vrot.lane.b32.xlu0 %v693_v57, %s14188_s19  ;;  %14212 = vst [vmem:[#allocation25_spill] sm:$0xff] %v10048_v30  ;;  %14213 = vst [vmem:[#allocation26_spill] sm:$0xff] %v10052_v31  ;;  %v10078_v35 = vmul.f32 0.25, %v667_v33  ;;  %v10086_v36 = vld [vmem:[%s10024_s22 + $0x58] sm:$0xff]  ;;  %v10094_v37 = vld [vmem:[%s10024_s22 + $0x50] sm:$0xff] }
  0x5e   : > { %7673 = vmatprep.subr.msk.mxu0 %vm716_vm0, %v695_v55  ;;  %7724 = vmatpush3.msra.mxu1 %v10042_v29  ;;  %14215 = vst [vmem:[#allocation28_spill] sm:$0xff] %v10086_v36  ;;  %14216 = vst [vmem:[#allocation29_spill] sm:$0xff] %v10094_v37  ;;  %v10101_v38 = vld [vmem:[%s10024_s22 + $0x48] sm:$0xff]  ;;  %v10108_v39 = vld [vmem:[%s10024_s22 + $0x40] sm:$0xff] }
  0x5f   : > { %7725 = vmatprep.subr.mxu1 %v10058_v32  ;;  %14214 = vst [vmem:[#allocation27_spill] sm:$0xff] %v10078_v35  ;;  %14217 = vst [vmem:[#allocation30_spill] sm:$0xff] %v10101_v38  ;;  %v10115_v40 = vld [vmem:[%s10024_s22 + $0x38] sm:$0xff]  ;;  %v10122_v41 = vld [vmem:[%s10024_s22 + $0x30] sm:$0xff] }
  0x60   : > { %1968 = vrot.lane.b32.xlu1 %v699_v48, %s14176_s21  ;;  %7726 = vmatpush3.msra.mxu1 %v10058_v32  ;;  %14218 = vst [vmem:[#allocation31_spill] sm:$0xff] %v10108_v39  ;;  %14219 = vst [vmem:[#allocation32_spill] sm:$0xff] %v10115_v40  ;;  %v10129_v42 = vld [vmem:[%s10024_s22 + $0x28] sm:$0xff]  ;;  %v10136_v43 = vld [vmem:[%s10024_s22 + $0x20] sm:$0xff] }
  0x61   : > { %7674 = vmatpush3.xpose.msk.msra.mxu0 %vm716_vm0, %v695_v55  ;;  %1311 = vrot.lane.b32.xlu0 %v692_v58, %s14188_s19  ;;  %14220 = vst [vmem:[#allocation33_spill] sm:$0xff] %v10122_v41  ;;  %14221 = vst [vmem:[#allocation34_spill] sm:$0xff] %v10129_v42  ;;  %v10143_v44 = vld [vmem:[%s10024_s22 + $0x18] sm:$0xff]  ;;  %v10150_v45 = vld [vmem:[%s10024_s22 + $0x10] sm:$0xff] }
  0x62   : > { %7675 = vmatprep.subr.msk.mxu0 %vm716_vm0, %v694_v53  ;;  %7727 = vmatprep.subr.mxu1 %v10072_v34  ;;  %14222 = vst [vmem:[#allocation35_spill] sm:$0xff] %v10136_v43  ;;  %14223 = vst [vmem:[#allocation36_spill] sm:$0xff] %v10143_v44  ;;  %v10155_v46 = vld [vmem:[%s10024_s22 + $0x8] sm:$0xff]  ;;  %v10162_v47 = vld [vmem:[%s10024_s22] sm:$0xff] }
  0x63   : > { %7728 = vmatpush3.msra.mxu1 %v10072_v34  ;;  %14224 = vst [vmem:[#allocation37_spill] sm:$0xff] %v10150_v45  ;;  %14225 = vst [vmem:[#allocation38_spill] sm:$0xff] %v10155_v46 }
  0x64   : > { %1307 = vrot.lane.b32.xlu1 %v690_v59, %s14188_s19  ;;  %7729 = vmatprep.subr.mxu1 %v10086_v36  ;;  %14226 = vst [vmem:[#allocation39_spill] sm:$0xff] %v10162_v47 }
  0x65   : > { %7676 = vmatpush3.xpose.msk.msra.mxu0 %vm716_vm0, %v694_v53  ;;  %1305 = vrot.lane.b32.xlu0 %v9894_v60, %s14188_s19 }
  0x66   : > { %7677 = vmatprep.subr.msk.mxu0 %vm716_vm0, %v693_v57  ;;  %7730 = vmatpush3.msra.mxu1 %v10086_v36 }
  0x67   : > { %7731 = vmatprep.subr.mxu1 %v10094_v37 }
  0x68   : > { %1966 = vrot.lane.b32.xlu1 %v698_v49, %s14176_s21  ;;  %7732 = vmatpush3.msra.mxu1 %v10094_v37 }
  0x69   : > { %7678 = vmatpush3.xpose.msk.msra.mxu0 %vm716_vm0, %v693_v57  ;;  %1958 = vrot.lane.b32.xlu0 %v694_v53, %s14176_s21 }
  0x6a   : > { %7679 = vmatprep.subr.msk.mxu0 %vm716_vm0, %v692_v58  ;;  %7733 = vmatprep.subr.mxu1 %v10101_v38 }
  0x6b   : > { %7734 = vmatpush3.msra.mxu1 %v10101_v38 }
  0x6c   : > { %1964 = vrot.lane.b32.xlu1 %v697_v51, %s14176_s21  ;;  %7735 = vmatprep.subr.mxu1 %v10108_v39 }
  0x6d   : > { %7680 = vmatpush3.xpose.msk.msra.mxu0 %vm716_vm0, %v692_v58  ;;  %1956 = vrot.lane.b32.xlu0 %v693_v57, %s14176_s21 }
  0x6e   : > { %7681 = vmatprep.subr.msk.mxu0 %vm716_vm0, %v9876_v56  ;;  %7736 = vmatpush3.msra.mxu1 %v10108_v39 }
  0x6f   : > { %7737 = vmatprep.subr.mxu1 %v10115_v40 }
  0x70   : > { %1303 = vrot.lane.b32.xlu1 %v688_v61, %s14188_s19  ;;  %7738 = vmatpush3.msra.mxu1 %v10115_v40 }
  0x71   : > { %7682 = vmatpush3.xpose.msk.msra.mxu0 %vm716_vm0, %v9876_v56  ;;  %1954 = vrot.lane.b32.xlu0 %v692_v58, %s14176_s21 }
  0x72   : > { %7683 = vmatprep.subr.msk.mxu0 %vm716_vm0, %v690_v59  ;;  %7739 = vmatprep.subr.mxu1 %v10122_v41 }
  0x73   : > { %7740 = vmatpush3.msra.mxu1 %v10122_v41 }
  0x74   : > { %1962 = vrot.lane.b32.xlu1 %v696_v50, %s14176_s21  ;;  %7741 = vmatprep.subr.mxu1 %v10129_v42 }
  0x75   : > { %7684 = vmatpush3.xpose.msk.msra.mxu0 %vm716_vm0, %v690_v59  ;;  %1265 = vrot.lane.b32.xlu0 %v9915_v63, %s14188_s19 }
  0x76   : > { %7685 = vmatprep.subr.msk.mxu0 %vm716_vm0, %v9894_v60  ;;  %7742 = vmatpush3.msra.mxu1 %v10129_v42 }
  0x77   : > { %7743 = vmatprep.subr.mxu1 %v10136_v43 }
  0x78   : > { %1301 = vrot.lane.b32.xlu1 %v9922_v1, %s14188_s19  ;;  %7744 = vmatpush3.msra.mxu1 %v10136_v43 }
  0x79   : > { %7686 = vmatpush3.xpose.msk.msra.mxu0 %vm716_vm0, %v9894_v60  ;;  %1267 = vrot.lane.b32.xlu0 %v9926_v2, %s14188_s19 }
  0x7a   : > { %7687 = vmatprep.subr.msk.mxu0 %vm716_vm0, %v688_v61  ;;  %7745 = vmatprep.subr.mxu1 %v10143_v44 }
  0x7b   : > { %7746 = vmatpush3.msra.mxu1 %v10143_v44 }
  0x7c   : > { %1960 = vrot.lane.b32.xlu1 %v695_v55, %s14176_s21  ;;  %7747 = vmatprep.subr.mxu1 %v10150_v45 }
  0x7d   : > { %7688 = vmatpush3.xpose.msk.msra.mxu0 %vm716_vm0, %v688_v61  ;;  %1950 = vrot.lane.b32.xlu0 %v690_v59, %s14176_s21 }
  0x7e   : > { %7689 = vmatprep.subr.msk.mxu0 %vm716_vm0, %v9922_v1  ;;  %7748 = vmatpush3.msra.mxu1 %v10150_v45 }
  0x7f   : > { %7749 = vmatprep.subr.mxu1 %v10155_v46 }
  0x80   : > { %1299 = vrot.lane.b32.xlu1 %v686_v4, %s14188_s19  ;;  %7750 = vmatpush3.msra.mxu1 %v10155_v46 }
  0x81   : > { %7690 = vmatpush3.xpose.msk.msra.mxu0 %vm716_vm0, %v9922_v1  ;;  %1273 = vrot.lane.b32.xlu0 %v9942_v5, %s14188_s19 }
  0x82   : > { %7691 = vmatprep.subr.msk.mxu0 %vm716_vm0, %v686_v4  ;;  %7751 = vmatprep.subr.mxu1 %v10162_v47 }
  0x83   : > { %7752 = vmatpush3.msra.mxu1 %v10162_v47 }
  0x84   : > { %1297 = vrot.lane.b32.xlu1 %v9951_v7, %s14188_s19 }
  0x85   : > { %7692 = vmatpush3.xpose.msk.msra.mxu0 %vm716_vm0, %v686_v4  ;;  %1275 = vrot.lane.b32.xlu0 %v9955_v8, %s14188_s19 }
  0x86   : > { %7693 = vmatprep.subr.msk.mxu0 %vm716_vm0, %v9951_v7 }
  0x88   : > { %1295 = vrot.lane.b32.xlu1 %v684_v9, %s14188_s19 }
  0x89   : > { %7694 = vmatpush3.xpose.msk.msra.mxu0 %vm716_vm0, %v9951_v7  ;;  %1946 = vrot.lane.b32.xlu0 %v688_v61, %s14176_s21 }
  0x8a   : > { %7695 = vmatprep.subr.msk.mxu0 %vm716_vm0, %v684_v9 }
  0x8c   : > { %1263 = vrot.lane.b32.xlu1 %v9867_v54, %s14188_s19 }
  0x8d   : > { %7696 = vmatpush3.xpose.msk.msra.mxu0 %vm716_vm0, %v684_v9  ;;  %1281 = vrot.lane.b32.xlu0 %v9971_v11, %s14188_s19 }
  0x90   : > { %1952 = vrot.lane.b32.xlu1 %v9876_v56, %s14176_s21  ;;  %7698 = vmatmul.mubr.msk.f32.vlgmr.msra.gmra.mxu0 %vm716_vm0, %v9915_v63 }
  0x91   : > { %7700 = vmatprep.mubr.msk.f32.mxu0 %vm716_vm0, %v9926_v2  ;;  %1283 = vrot.lane.b32.xlu0 %v9981_v14, %s14188_s19 }
  0x94   : > { %1269 = vrot.lane.b32.xlu1 %v9987_v15, %s14188_s19  ;;  %7701 = vmatmul.mubr.msk.f32.gmra.mxu0 %vm716_vm0, %v9987_v15 }
  0x95   : > { %7703 = vmatprep.mubr.msk.f32.mxu0 %vm716_vm0, %v9994_v17  ;;  %1942 = vrot.lane.b32.xlu0 %v686_v4, %s14176_s21 }
  0x98   : > { %1271 = vrot.lane.b32.xlu1 %v9994_v17, %s14188_s19  ;;  %7704 = vmatmul.mubr.msk.f32.gmra.mxu0 %vm716_vm0, %v9942_v5 }
  0x99   : > { %7706 = vmatprep.mubr.msk.f32.mxu0 %vm716_vm0, %v9955_v8  ;;  %1289 = vrot.lane.b32.xlu0 %v10006_v21, %s14188_s19 }
  0x9c   : > { %1948 = vrot.lane.b32.xlu1 %v9894_v60, %s14176_s21  ;;  %7707 = vmatmul.mubr.msk.f32.gmra.mxu0 %vm716_vm0, %v10012_v22 }
  0x9d   : > { %7709 = vmatprep.mubr.msk.f32.mxu0 %vm716_vm0, %v10017_v24  ;;  %1291 = vrot.lane.b32.xlu0 %v10021_v25, %s14188_s19 }
  0xa0   : > { %1277 = vrot.lane.b32.xlu1 %v10012_v22, %s14188_s19  ;;  %7710 = vmatmul.mubr.msk.f32.gmra.mxu0 %vm716_vm0, %v9971_v11 }
  0xa1   : > { %7712 = vmatprep.mubr.msk.f32.mxu0 %vm716_vm0, %v9981_v14  ;;  %1938 = vrot.lane.b32.xlu0 %v684_v9, %s14176_s21 }
  0xa4   : > { %1279 = vrot.lane.b32.xlu1 %v10017_v24, %s14188_s19  ;;  %7713 = vmatmul.mubr.msk.f32.gmra.mxu0 %vm716_vm0, %v10048_v30 }
  0xa5   : > { %7715 = vmatprep.mubr.msk.f32.mxu0 %vm716_vm0, %v10052_v31  ;;  %1908 = vrot.lane.b32.xlu0 %v9915_v63, %s14176_s21 }
  0xa8   : > { %1944 = vrot.lane.b32.xlu1 %v9922_v1, %s14176_s21  ;;  %7716 = vmatmul.mubr.msk.f32.gmra.mxu0 %vm716_vm0, %v10006_v21 }
  0xa9   : > { %7718 = vmatprep.mubr.msk.f32.mxu0 %vm716_vm0, %v10021_v25  ;;  %1912 = vrot.lane.b32.xlu0 %v9987_v15, %s14176_s21 }
  0xac   : > { %1285 = vrot.lane.b32.xlu1 %v10048_v30, %s14188_s19  ;;  %7719 = vmatmul.mubr.msk.f32.gmra.mxu0 %vm716_vm0, %v10078_v35 }
  0xad   : > { %1916 = vrot.lane.b32.xlu0 %v9942_v5, %s14176_s21 }
  0xb0   : > { %1287 = vrot.lane.b32.xlu1 %v10052_v31, %s14188_s19 }
  0xb1   : > { %1920 = vrot.lane.b32.xlu0 %v10012_v22, %s14176_s21 }
  0xb4   : > { %1940 = vrot.lane.b32.xlu1 %v9951_v7, %s14176_s21 }
  0xb5   : > { %1924 = vrot.lane.b32.xlu0 %v9971_v11, %s14176_s21 }
  0xb8   : > { %1293 = vrot.lane.b32.xlu1 %v10078_v35, %s14188_s19 }
  0xb9   : > { %1928 = vrot.lane.b32.xlu0 %v10048_v30, %s14176_s21 }
  0xbc   : > { %1906 = vrot.lane.b32.xlu1 %v9867_v54, %s14176_s21 }
  0xc0   : > { %1910 = vrot.lane.b32.xlu1 %v9926_v2, %s14176_s21 }
  0xc2   : > { %v10165_v48 = vpop.permute.xlu1 %1323 }
  0xc3   : > { %v10168_v49 = vpop.permute.xlu0 %1325 }
  0xc4   : > { %1914 = vrot.lane.b32.xlu1 %v9994_v17, %s14176_s21  ;;  %7777 = vmatprep.subr.msk.mxu1 %vm716_vm0, %v10168_v49 }
  0xc6   : > { %v10176_v50 = vpop.permute.xlu1 %1319 }
  0xc7   : > { %v10178_v51 = vpop.permute.xlu0 %1321 }
  0xc8   : > { %1918 = vrot.lane.b32.xlu1 %v9955_v8, %s14176_s21 }
  0xca   : > { %v10182_v52 = vpop.permute.xlu1 %1315 }
  0xcb   : > { %v10184_v53 = vpop.permute.xlu0 %1317 }
  0xcc   : > { %1922 = vrot.lane.b32.xlu1 %v10017_v24, %s14176_s21 }
  0xce   : > { %v10188_v55 = vpop.permute.xlu1 %1309 }
  0xcf   : > { %v10190_v56 = vpop.permute.xlu0 %1313 }
  0xd0   : > { %1926 = vrot.lane.b32.xlu1 %v9981_v14, %s14176_s21 }
  0xd2   : > { %v1969_v57 = vpop.permute.xlu1 %1968 }
  0xd3   : > { %v10194_v58 = vpop.permute.xlu0 %1311  ;;  %7889 = vmatprep.subr.msk.mxu0 %vm716_vm0, %v1969_v57 }
  0xd4   : > { %7890 = vmatpush3.xpose.msk.msra.mxu0 %vm716_vm0, %v1969_v57  ;;  %1930 = vrot.lane.b32.xlu1 %v10052_v31, %s14176_s21 }
  0xd6   : > { %v10200_v59 = vpop.permute.xlu1 %1307 }
  0xd7   : > { %v10202_v60 = vpop.permute.xlu0 %1305 }
  0xd8   : > { %1934 = vrot.lane.b32.xlu1 %v10021_v25, %s14176_s21 }
  0xda   : > { %v1967_v61 = vpop.permute.xlu1 %1966 }
  0xdb   : > { %v1959_v62 = vpop.permute.xlu0 %1958  ;;  %7891 = vmatprep.subr.msk.mxu0 %vm716_vm0, %v1967_v61 }
  0xdc   : > { %7892 = vmatpush3.xpose.msk.msra.mxu0 %vm716_vm0, %v1967_v61 }
  0xde   : > { %v1965_v0 = vpop.permute.xlu1 %1964 }
  0xdf   : > { %v1957_v1 = vpop.permute.xlu0 %1956  ;;  %7893 = vmatprep.subr.msk.mxu0 %vm716_vm0, %v1965_v0 }
  0xe0   : > { %7894 = vmatpush3.xpose.msk.msra.mxu0 %vm716_vm0, %v1965_v0 }
  0xe2   : > { %v10210_v3 = vpop.permute.xlu1 %1303 }
  0xe3   : > { %v1955_v4 = vpop.permute.xlu0 %1954 }
  0xe6   : > { %v1963_v6 = vpop.permute.xlu1 %1962 }
  0xe7   : > { %7895 = vmatprep.subr.msk.mxu0 %vm716_vm0, %v1963_v6  ;;  %v10213_v7 = vpop.permute.xlu0 %1265 }
  0xe8   : > { %7896 = vmatpush3.xpose.msk.msra.mxu0 %vm716_vm0, %v1963_v6 }
  0xea   : > { %v10216_v9 = vpop.permute.xlu1 %1301 }
  0xeb   : > { %v10218_v10 = vpop.permute.xlu0 %1267 }
  0xee   : > { %v1961_v12 = vpop.permute.xlu1 %1960 }
  0xef   : > { %7897 = vmatprep.subr.msk.mxu0 %vm716_vm0, %v1961_v12  ;;  %v1951_v13 = vpop.permute.xlu0 %1950 }
  0xf0   : > { %7898 = vmatpush3.xpose.msk.msra.mxu0 %vm716_vm0, %v1961_v12 }
  0xf1   : > { %7899 = vmatprep.subr.msk.mxu0 %vm716_vm0, %v1959_v62 }
  0xf2   : > { %v10223_v16 = vpop.permute.xlu1 %1299 }
  0xf3   : > { %v10225_v18 = vpop.permute.xlu0 %1273 }
  0xf4   : > { %7900 = vmatpush3.xpose.msk.msra.mxu0 %vm716_vm0, %v1959_v62 }
  0xf5   : > { %7901 = vmatprep.subr.msk.mxu0 %vm716_vm0, %v1957_v1 }
  0xf6   : > { %v10229_v19 = vpop.permute.xlu1 %1297 }
  0xf7   : > { %v10231_v20 = vpop.permute.xlu0 %1275 }
  0xf8   : > { %7902 = vmatpush3.xpose.msk.msra.mxu0 %vm716_vm0, %v1957_v1 }
  0xf9   : > { %7903 = vmatprep.subr.msk.mxu0 %vm716_vm0, %v1955_v4 }
  0xfa   : > { %v10235_v23 = vpop.permute.xlu1 %1295 }
  0xfb   : > { %v1947_v27 = vpop.permute.xlu0 %1946 }
  0xfc   : > { %7904 = vmatpush3.xpose.msk.msra.mxu0 %vm716_vm0, %v1955_v4 }
  0xfe   : > { %v10238_v28 = vpop.permute.xlu1 %1263 }
  0xff   : > { %v10240_v33 = vpop.permute.xlu0 %1281 }
 0x100   : > { %14227 = vst [vmem:[#allocation40_spill] sm:$0xff] %v10240_v33 }
 0x102   : > { %v1953_v57 = vpop.permute.xlu1 %1952 }
 0x103   : > { %7905 = vmatprep.subr.msk.mxu0 %vm716_vm0, %v1953_v57  ;;  %v10247_v62 = vpop.permute.xlu0 %1283 }
 0x104   : > { %7906 = vmatpush3.xpose.msk.msra.mxu0 %vm716_vm0, %v1953_v57  ;;  %14228 = vst [vmem:[#allocation41_spill] sm:$0xff] %v10247_v62 }
 0x105   : > { %7907 = vmatprep.subr.msk.mxu0 %vm716_vm0, %v1951_v13 }
 0x106   : > { %v10245_v61 = vpop.permute.xlu1 %1269 }
 0x107   : > { %v1943_v1 = vpop.permute.xlu0 %1942 }
 0x108   : > { %7908 = vmatpush3.xpose.msk.msra.mxu0 %vm716_vm0, %v1951_v13 }
 0x10a   : > { %v10250_v0 = vpop.permute.xlu1 %1271 }
 0x10b   : > { %v10257_v12 = vpop.permute.xlu0 %1289 }
 0x10c   : > { %14229 = vst [vmem:[#allocation42_spill] sm:$0xff] %v10257_v12 }
 0x10e   : > { %v1949_v4 = vpop.permute.xlu1 %1948 }
 0x10f   : > { %7909 = vmatprep.subr.msk.mxu0 %vm716_vm0, %v1949_v4  ;;  %v10262_v30 = vpop.permute.xlu0 %1291 }
 0x110   : > { %7910 = vmatpush3.xpose.msk.msra.mxu0 %vm716_vm0, %v1949_v4  ;;  %14231 = vst [vmem:[#allocation44_spill] sm:$0xff] %v10262_v30 }
 0x111   : > { %7911 = vmatprep.subr.msk.mxu0 %vm716_vm0, %v1947_v27 }
 0x112   : > { %v10255_v6 = vpop.permute.xlu1 %1277 }
 0x113   : > { %v1939_v11 = vpop.permute.xlu0 %1938 }
 0x114   : > { %7912 = vmatpush3.xpose.msk.msra.mxu0 %vm716_vm0, %v1947_v27 }
 0x116   : > { %v10260_v57 = vpop.permute.xlu1 %1279 }
 0x117   : > { %14230 = vst [vmem:[#allocation43_spill] sm:$0xff] %v10260_v57  ;;  %v1909_v5 = vpop.permute.xlu0 %1908 }
 0x11a   : > { %v1945_v13 = vpop.permute.xlu1 %1944 }
 0x11b   : > { %7913 = vmatprep.subr.msk.mxu0 %vm716_vm0, %v1945_v13 }
 0x11c   : > { %7914 = vmatpush3.xpose.msk.msra.mxu0 %vm716_vm0, %v1945_v13  ;;  %v1913_v13 = vpop.permute.xlu0 %1912 }
 0x11d   : > { %7915 = vmatprep.subr.msk.mxu0 %vm716_vm0, %v1943_v1 }
 0x11e   : > { %v10267_v4 = vpop.permute.xlu1 %1285 }
 0x11f   : > { %14232 = vst [vmem:[#allocation45_spill] sm:$0xff] %v10267_v4 }
 0x120   : > { %7916 = vmatpush3.xpose.msk.msra.mxu0 %vm716_vm0, %v1943_v1  ;;  %v1917_v1 = vpop.permute.xlu0 %1916 }
 0x122   : > { %v10270_v22 = vpop.permute.xlu1 %1287 }
 0x123   : > { %14233 = vst [vmem:[#allocation46_spill] sm:$0xff] %v10270_v22 }
 0x126   : > { %v1941_v27 = vpop.permute.xlu1 %1940 }
 0x127   : > { %7917 = vmatprep.subr.msk.mxu0 %vm716_vm0, %v1941_v27 }
 0x128   : > { %7918 = vmatpush3.xpose.msk.msra.mxu0 %vm716_vm0, %v1941_v27  ;;  %v1921_v27 = vpop.permute.xlu0 %1920 }
 0x129   : > { %7919 = vmatprep.subr.msk.mxu0 %vm716_vm0, %v1939_v11 }
 0x12a   : > { %v10275_v15 = vpop.permute.xlu1 %1293 }
 0x12b   : > { %14234 = vst [vmem:[#allocation47_spill] sm:$0xff] %v10275_v15 }
 0x12c   : > { %7920 = vmatpush3.xpose.msk.msra.mxu0 %vm716_vm0, %v1939_v11 }
 0x12e   : > { %v1907_v63 = vpop.permute.xlu1 %1906 }
 0x12f   : > { %7921 = vmatprep.mubr.msk.f32.mxu0 %vm716_vm0, %v1907_v63  ;;  %v1925_v63 = vpop.permute.xlu0 %1924 }
 0x130   : > { %7922 = vmatmul.mubr.msk.f32.vlgmr.msra.gmra.mxu0 %vm716_vm0, %v1909_v5 }
 0x132   : > { %v1911_v25 = vpop.permute.xlu1 %1910 }
 0x133   : > { %7924 = vmatprep.mubr.msk.f32.mxu0 %vm716_vm0, %v1911_v25  ;;  %v1929_v5 = vpop.permute.xlu0 %1928 }
 0x134   : > { %7925 = vmatmul.mubr.msk.f32.gmra.mxu0 %vm716_vm0, %v1913_v13 }
 0x136   : > { %v1915_v31 = vpop.permute.xlu1 %1914 }
 0x137   : > { %7927 = vmatprep.mubr.msk.f32.mxu0 %vm716_vm0, %v1915_v31 }
 0x138   : > { %7928 = vmatmul.mubr.msk.f32.gmra.mxu0 %vm716_vm0, %v1917_v1 }
 0x13a   : > { %v1919_v14 = vpop.permute.xlu1 %1918 }
 0x13b   : > { %7930 = vmatprep.mubr.msk.f32.mxu0 %vm716_vm0, %v1919_v14 }
 0x13c   : > { %7931 = vmatmul.mubr.msk.f32.gmra.mxu0 %vm716_vm0, %v1921_v27 }
 0x13e   : > { %v1923_v11 = vpop.permute.xlu1 %1922 }
 0x13f   : > { %7933 = vmatprep.mubr.msk.f32.mxu0 %vm716_vm0, %v1923_v11 }
 0x140   : > { %7934 = vmatmul.mubr.msk.f32.gmra.mxu0 %vm716_vm0, %v1925_v63 }
 0x142   : > { %v1927_v25 = vpop.permute.xlu1 %1926 }
 0x143   : > { %7936 = vmatprep.mubr.msk.f32.mxu0 %vm716_vm0, %v1927_v25 }
 0x144   : > { %7937 = vmatmul.mubr.msk.f32.gmra.mxu0 %vm716_vm0, %v1929_v5 }
 0x146   : > { %v1931_v31 = vpop.permute.xlu1 %1930 }
 0x147   : > { %7939 = vmatprep.mubr.msk.f32.mxu0 %vm716_vm0, %v1931_v31 }
 0x14a   : > { %v1935_v40 = vpop.permute.xlu1 %1934 }
 0x150   : > { %v7699_v13 = vpop.f32.mrf.mxu0 }
 0x151   : > { %960 = vmax.xlane.f32.xlu0 %v7699_v13 }
 0x152   : > { %v879_v14 = vpop.f32.mrf.mxu0 }
 0x154   : > { %v10291_v1 = vpop.f32.mrf.mxu0 }
 0x155   : > { %958 = vmax.xlane.f32.xlu0 %v879_v14  ;;  %964 = vmax.xlane.f32.xlu1 %v10291_v1 }
 0x156   : > { %v889_v27 = vpop.f32.mrf.mxu0 }
 0x158   : > { %v7705_v11 = vpop.f32.mrf.mxu0 }
 0x159   : > { %962 = vmax.xlane.f32.xlu1 %v889_v27 }
 0x15a   : > { %v10294_v63 = vpop.f32.mrf.mxu0 }
 0x15c   : > { %v10296_v24 = vpop.f32.mrf.mxu0 }
 0x15d   : > { %968 = vmax.xlane.f32.xlu1 %v7705_v11 }
 0x15e   : > { %v10298_v5 = vpop.f32.mrf.mxu0 }
 0x160   : > { %v10300_v25 = vpop.f32.mrf.mxu0 }
 0x161   : > { %972 = vmax.xlane.f32.xlu1 %v10296_v24 }
 0x162   : > { %v10303_v31 = vpop.f32.mrf.mxu0 }
 0x164   : > { %v10305_v8 = vpop.f32.mrf.mxu0 }
 0x165   : > { %976 = vmax.xlane.f32.xlu1 %v10300_v25 }
 0x166   : > { %v10308_v17 = vpop.f32.mrf.mxu0 }
 0x168   : > { %v10310_v2 = vpop.f32.mrf.mxu0 }
 0x169   : > { %980 = vmax.xlane.f32.xlu1 %v10305_v8 }
 0x16a   : > { %v10313_v54 = vpop.f32.mrf.mxu0 }
 0x16b   : > { %1932 = vrot.lane.b32.xlu0 %v10006_v21, %s14176_s21 }
 0x16c   : > { %v10318_v46 = vpop.f32.mrf.mxu0 }
 0x16d   : > { %984 = vmax.xlane.f32.xlu1 %v10310_v2 }
 0x16e   : > { %v10326_v44 = vpop.f32.mrf.mxu0 }
 0x171   : > { %988 = vmax.xlane.f32.xlu1 %v10318_v46 }
 0x18a   : > { %966 = vmax.xlane.f32.xlu0 %v10294_v63 }
 0x18e   : > { %970 = vmax.xlane.f32.xlu0 %v10298_v5 }
 0x192   : > { %974 = vmax.xlane.f32.xlu0 %v10303_v31 }
 0x196   : > { %978 = vmax.xlane.f32.xlu0 %v10308_v17 }
 0x19a   : > { %982 = vmax.xlane.f32.xlu0 %v10313_v54 }
 0x19e   : > { %986 = vmax.xlane.f32.xlu0 %v10326_v44 }
 0x1da   : > { %v961_v21 = vpop.xlane.xlu0 %960 }
 0x1db   : > { %v991_v42 = vsub.f32 %v7699_v13, %v961_v21 }
 0x1dd   : > { %v1008_v41 = vmul.f32 1.442695, %v991_v42 }
 0x1de   : > { %v959_v47 = vpop.xlane.xlu0 %958  ;;  %v10330_v43 = vpop.xlane.xlu1 %964 }
 0x1df   : > { %8902 = vpow2.f32 %v1008_v41  ;;  %v990_v39 = vsub.f32 %v879_v14, %v959_v47 }
 0x1e1   : > { %v1006_v45 = vmul.f32 1.442695, %v990_v39 }
 0x1e2   : > { %v1933_v38 = vpop.permute.xlu0 %1932  ;;  %v963_v37 = vpop.xlane.xlu1 %962 }
 0x1e3   : > { %8904 = vpow2.f32 %v1006_v45  ;;  %7940 = vmatmul.mubr.msk.f32.gmra.mxu0 %vm716_vm0, %v1933_v38  ;;  %v992_v21 = vsub.f32 %v889_v27, %v963_v37 }
 0x1e4   : > { %7942 = vmatprep.mubr.msk.f32.mxu0 %vm716_vm0, %v1935_v40 }
 0x1e5   : > { %v1010_v39 = vmul.f32 1.442695, %v992_v21 }
 0x1e6   : > { %v969_v13 = vpop.xlane.xlu1 %968 }
 0x1e7   : > { %v995_v45 = vsub.f32 %v7705_v11, %v969_v13  ;;  %8906 = vpow2.f32 %v1010_v39 }
 0x1e9   : > { %v1016_v37 = vmul.f32 1.442695, %v995_v45 }
 0x1ea   : > { %v973_v45 = vpop.xlane.xlu1 %972 }
 0x1eb   : > { %8908 = vpow2.f32 %v1016_v37 }
 0x1ec   : > { %v10333_v36 = vpop.eup %8902 }
 0x1ed   : > { %1040 = vadd.xlane.f32.xlu1 %v10333_v36 }
 0x1f0   : > { %v10336_v42 = vpop.eup %8904  ;;  %v10338_v41 = vpop.f32.mrf.mxu0 }
 0x1f1   : > { %14235 = vst [vmem:[#allocation48_spill] sm:$0xff] %v10338_v41  ;;  %1038 = vadd.xlane.f32.xlu0 %v10336_v42  ;;  %2181 = vmax.xlane.f32.xlu1 %v10338_v41 }
 0x1f2   : > { %v10342_v38 = vpop.f32.mrf.mxu0 }
 0x1f4   : > { %v10344_v40 = vpop.f32.mrf.mxu0  ;;  %v10362_v13 = vpop.eup %8906 }
 0x1f5   : > { %14236 = vst [vmem:[#allocation49_spill] sm:$0xff] %v10344_v40  ;;  %2185 = vmax.xlane.f32.xlu1 %v10344_v40  ;;  %v977_v40 = vpop.xlane.xlu1 %976 }
 0x1f6   : > { %v10347_v47 = vpop.f32.mrf.mxu0  ;;  %v999_v12 = vsub.f32 %v10300_v25, %v977_v40 }
 0x1f8   : > { %v10349_v14 = vpop.f32.mrf.mxu0  ;;  %v10367_v39 = vpop.eup %8908 }
 0x1f9   : > { %14237 = vst [vmem:[#allocation50_spill] sm:$0xff] %v10349_v14  ;;  %2189 = vmax.xlane.f32.xlu1 %v10349_v14  ;;  %v981_v22 = vpop.xlane.xlu1 %980 }
 0x1fa   : > { %v10352_v27 = vpop.f32.mrf.mxu0  ;;  %v1001_v57 = vsub.f32 %v10305_v8, %v981_v22 }
 0x1fc   : > { %v10354_v41 = vpop.f32.mrf.mxu0 }
 0x1fd   : > { %14238 = vst [vmem:[#allocation51_spill] sm:$0xff] %v10354_v41  ;;  %2193 = vmax.xlane.f32.xlu1 %v10354_v41  ;;  %v997_v41 = vsub.f32 %v10296_v24, %v973_v45  ;;  %v985_v45 = vpop.xlane.xlu1 %984 }
 0x1fe   : > { %v10357_v11 = vpop.f32.mrf.mxu0 }
 0x1ff   : > { %v1020_v30 = vmul.f32 1.442695, %v997_v41 }
 0x200   : > { %v10359_v21 = vpop.f32.mrf.mxu0 }
 0x201   : > { %14239 = vst [vmem:[#allocation52_spill] sm:$0xff] %v10359_v21  ;;  %2197 = vmax.xlane.f32.xlu1 %v10359_v21 }
 0x205   : > { %1042 = vadd.xlane.f32.xlu1 %v10362_v13 }
 0x207   : > { %1936 = vrot.lane.b32.xlu0 %v10078_v35, %s14176_s21  ;;  %v1024_v35 = vmul.f32 1.442695, %v999_v12 }
 0x209   : > { %1048 = vadd.xlane.f32.xlu1 %v10367_v39 }
 0x213   : > { %v967_v37 = vpop.xlane.xlu0 %966 }
 0x214   : > { %v994_v14 = vsub.f32 %v10294_v63, %v967_v37  ;;  %v1028_v37 = vmul.f32 1.442695, %v1001_v57 }
 0x216   : > { %v1014_v15 = vmul.f32 1.442695, %v994_v14  ;;  %v1003_v14 = vsub.f32 %v10310_v2, %v985_v45 }
 0x217   : > { %v971_v21 = vpop.xlane.xlu0 %970 }
 0x218   : > { %8910 = vpow2.f32 %v1014_v15  ;;  %v993_v15 = vsub.f32 %v10291_v1, %v10330_v43  ;;  %v10393_v43 = vpop.f32.mrf.mxu0 }
 0x219   : > { %8912 = vpow2.f32 %v1020_v30  ;;  %v1032_v30 = vmul.f32 1.442695, %v1003_v14 }
 0x21a   : > { %8914 = vpow2.f32 %v1024_v35  ;;  %v1012_v2 = vmul.f32 1.442695, %v993_v15 }
 0x21b   : > { %v975_v4 = vpop.xlane.xlu0 %974 }
 0x21c   : > { %v998_v62 = vsub.f32 %v10303_v31, %v975_v4 }
 0x21e   : > { %v1022_v24 = vmul.f32 1.442695, %v998_v62  ;;  %v996_v62 = vsub.f32 %v10298_v5, %v971_v21  ;;  %v989_v5 = vpop.xlane.xlu1 %988 }
 0x21f   : > { %v979_v33 = vpop.xlane.xlu0 %978  ;;  %v1005_v40 = vsub.f32 %v10318_v46, %v989_v5 }
 0x220   : > { %8916 = vpow2.f32 %v1022_v24  ;;  %v1000_v1 = vsub.f32 %v10308_v17, %v979_v33 }
 0x221   : > { %8918 = vpow2.f32 %v1028_v37  ;;  %v1036_v33 = vmul.f32 1.442695, %v1005_v40 }
 0x222   : > { %8920 = vpow2.f32 %v1032_v30  ;;  %v1026_v21 = vmul.f32 1.442695, %v1000_v1 }
 0x223   : > { %v983_v63 = vpop.xlane.xlu0 %982  ;;  %8922 = vpow2.f32 %v1012_v2 }
 0x224   : > { %v1002_v8 = vsub.f32 %v10313_v54, %v983_v63  ;;  %v1018_v54 = vmul.f32 1.442695, %v996_v62 }
 0x225   : > { %v10376_v41 = vpop.eup %8910 }
 0x226   : > { %2179 = vmax.xlane.f32.xlu0 %v10342_v38  ;;  %1046 = vadd.xlane.f32.xlu1 %v10376_v41  ;;  %v10383_v22 = vpop.eup %8912  ;;  %v1030_v12 = vmul.f32 1.442695, %v1002_v8 }
 0x227   : > { %v987_v35 = vpop.xlane.xlu0 %986  ;;  %v10389_v4 = vpop.eup %8914 }
 0x228   : > { %v1004_v57 = vsub.f32 %v10326_v44, %v987_v35  ;;  %8924 = vpow2.f32 %v1030_v12  ;;  %v10400_v44 = vpop.f32.mrf.mxu0 }
 0x229   : > { %8926 = vpow2.f32 %v1018_v54 }
 0x22a   : > { %2183 = vmax.xlane.f32.xlu0 %v10347_v47  ;;  %1052 = vadd.xlane.f32.xlu1 %v10383_v22  ;;  %v1034_v25 = vmul.f32 1.442695, %v1004_v57  ;;  %v10407_v17 = vpop.f32.mrf.mxu0 }
 0x22c   : > { %8928 = vpow2.f32 %v1034_v25 }
 0x22d   : > { %v10396_v31 = vpop.eup %8916  ;;  %8930 = vpow2.f32 %v1026_v21 }
 0x22e   : > { %2187 = vmax.xlane.f32.xlu0 %v10352_v27  ;;  %1056 = vadd.xlane.f32.xlu1 %v10389_v4  ;;  %v10403_v24 = vpop.eup %8918  ;;  %8932 = vpow2.f32 %v1036_v33 }
 0x22f   : > { %v10409_v45 = vpop.eup %8920 }
 0x230   : > { %v10413_v63 = vpop.eup %8922 }
 0x232   : > { %2191 = vmax.xlane.f32.xlu0 %v10357_v11  ;;  %1054 = vadd.xlane.f32.xlu1 %v10396_v31 }
 0x235   : > { %v10415_v46 = vpop.eup %8924 }
 0x236   : > { %1060 = vadd.xlane.f32.xlu1 %v10403_v24  ;;  %2195 = vmax.xlane.f32.xlu0 %v10393_v43  ;;  %v10419_v37 = vpop.eup %8926 }
 0x239   : > { %v10421_v14 = vpop.eup %8928 }
 0x23a   : > { %1064 = vadd.xlane.f32.xlu1 %v10409_v45  ;;  %2199 = vmax.xlane.f32.xlu0 %v10407_v17  ;;  %v10425_v15 = vpop.eup %8930 }
 0x23b   : > { %v10428_v30 = vpop.eup %8932 }
 0x23e   : > { %1062 = vadd.xlane.f32.xlu1 %v10415_v46  ;;  %1044 = vadd.xlane.f32.xlu0 %v10413_v63 }
 0x242   : > { %1066 = vadd.xlane.f32.xlu1 %v10421_v14  ;;  %1050 = vadd.xlane.f32.xlu0 %v10419_v37 }
 0x246   : > { %1058 = vadd.xlane.f32.xlu0 %v10425_v15 }
 0x24a   : > { %1068 = vadd.xlane.f32.xlu0 %v10428_v30 }
 0x24e   : > { %2201 = vmax.xlane.f32.xlu0 %v10400_v44 }
 0x253   : > { %1743 = vrot.lane.b32.xlu1 %v10027_v26, %s14188_s19 }
 0x264   : > { %1741 = vrot.lane.b32.xlu0 %v10042_v29, %s14188_s19 }
 0x276   : > { %v1041_v8 = vpop.xlane.xlu1 %1040 }
 0x277   : > { %8934 = vrcp.f32 %v1041_v8 }
 0x27a   : > { %v1039_v35 = vpop.xlane.xlu0 %1038  ;;  %v10436_v2 = vpop.xlane.xlu1 %2181 }
 0x27b   : > { %8936 = vrcp.f32 %v1039_v35 }
 0x27e   : > { %v1937_v62 = vpop.permute.xlu0 %1936  ;;  %v10438_v12 = vpop.xlane.xlu1 %2185 }
 0x27f   : > { %7943 = vmatmul.mubr.msk.f32.gmra.mxu0 %vm716_vm0, %v1937_v62 }
 0x282   : > { %v10442_v57 = vpop.xlane.xlu1 %2189 }
 0x284   : > { %v8935_v54 = vpop.eup %8934 }
 0x285   : > { %v1087_v26 = vmul.f32 %v8935_v54, %v10333_v36 }
 0x286   : > { %v10445_v1 = vpop.xlane.xlu1 %2193 }
 0x287   : > { %1103 = vst [vmem:[%s10447_s10 + $0x8] sm:$0xff] %v1087_v26 }
 0x288   : > { %v8937_v29 = vpop.eup %8936 }
 0x289   : > { %v1086_v25 = vmul.f32 %v8937_v29, %v10336_v42 }
 0x28a   : > { %v10451_v5 = vpop.xlane.xlu1 %2197 }
 0x28b   : > { %1102 = vst [vmem:[%s10447_s10] sm:$0xff] %v1086_v25  ;;  %7753 = vmatprep.mubr.f32.mxu1 %v1086_v25 }
 0x28c   : > { %7754 = vmatmul.mubr.f32.vlgmr.msra.gmra.mxu1 %v1087_v26 }
 0x28d   : > { %7778 = vmatpush3.xpose.msk.msra.mxu1 %vm716_vm0, %v10168_v49 }
 0x28e   : > { %7779 = vmatprep.subr.msk.mxu1 %vm716_vm0, %v10165_v48  ;;  %v1043_v36 = vpop.xlane.xlu1 %1042 }
 0x28f   : > { %8938 = vrcp.f32 %v1043_v36 }
 0x291   : > { %7780 = vmatpush3.xpose.msk.msra.mxu1 %vm716_vm0, %v10165_v48 }
 0x292   : > { %7781 = vmatprep.subr.msk.mxu1 %vm716_vm0, %v10178_v51  ;;  %v1049_v42 = vpop.xlane.xlu1 %1048 }
 0x293   : > { %8940 = vrcp.f32 %v1049_v42 }
 0x295   : > { %7782 = vmatpush3.xpose.msk.msra.mxu1 %vm716_vm0, %v10178_v51 }
 0x296   : > { %7783 = vmatprep.subr.msk.mxu1 %vm716_vm0, %v10176_v50 }
 0x299   : > { %7784 = vmatpush3.xpose.msk.msra.mxu1 %vm716_vm0, %v10176_v50 }
 0x29a   : > { %7785 = vmatprep.subr.msk.mxu1 %vm716_vm0, %v10184_v53 }
 0x29c   : > { %v8939_v49 = vpop.eup %8938 }
 0x29d   : > { %7786 = vmatpush3.xpose.msk.msra.mxu1 %vm716_vm0, %v10184_v53  ;;  %v1088_v48 = vmul.f32 %v8939_v49, %v10362_v13 }
 0x29e   : > { %7787 = vmatprep.subr.msk.mxu1 %vm716_vm0, %v10182_v52 }
 0x29f   : > { %1104 = vst [vmem:[%s10447_s10 + $0x10] sm:$0xff] %v1088_v48  ;;  %7756 = vmatprep.mubr.f32.mxu1 %v1088_v48 }
 0x2a0   : > { %v8941_v40 = vpop.eup %8940 }
 0x2a1   : > { %7788 = vmatpush3.xpose.msk.msra.mxu1 %vm716_vm0, %v10182_v52  ;;  %v10479_v50 = vmul.f32 %v8941_v40, %v10367_v39 }
 0x2a2   : > { %7789 = vmatprep.subr.msk.mxu1 %vm716_vm0, %v10190_v56 }
 0x2a3   : > { %v10483_v51 = vpop.f32.mrf.mxu0  ;;  %1107 = vst [vmem:[%s10447_s10 + $0x28] sm:$0xff] %v10479_v50 }
 0x2a4   : > { %2205 = vmax.xlane.f32.xlu0 %v10483_v51 }
 0x2a5   : > { %7790 = vmatpush3.xpose.msk.msra.mxu1 %vm716_vm0, %v10190_v56  ;;  %v10490_v53 = vpop.f32.mrf.mxu0 }
 0x2a6   : > { %7791 = vmatprep.subr.msk.mxu1 %vm716_vm0, %v10194_v58  ;;  %2203 = vmax.xlane.f32.xlu1 %v10490_v53 }
 0x2a9   : > { %7792 = vmatpush3.xpose.msk.msra.mxu1 %vm716_vm0, %v10194_v58 }
 0x2aa   : > { %7793 = vmatprep.subr.msk.mxu1 %vm716_vm0, %v10188_v55 }
 0x2ad   : > { %7794 = vmatpush3.xpose.msk.msra.mxu1 %vm716_vm0, %v10188_v55 }
 0x2ae   : > { %7795 = vmatprep.subr.msk.mxu1 %vm716_vm0, %v10200_v59 }
 0x2af   : > { %v10503_v52 = vpop.xlane.xlu0 %2179  ;;  %v1047_v56 = vpop.xlane.xlu1 %1046 }
 0x2b0   : > { %8942 = vrcp.f32 %v1047_v56 }
 0x2b1   : > { %7796 = vmatpush3.xpose.msk.msra.mxu1 %vm716_vm0, %v10200_v59 }
 0x2b2   : > { %7797 = vmatprep.subr.msk.mxu1 %vm716_vm0, %v10202_v60 }
 0x2b3   : > { %v10509_v58 = vpop.xlane.xlu0 %2183  ;;  %v1053_v13 = vpop.xlane.xlu1 %1052 }
 0x2b4   : > { %8944 = vrcp.f32 %v1053_v13 }
 0x2b5   : > { %7798 = vmatpush3.xpose.msk.msra.mxu1 %vm716_vm0, %v10202_v60 }
 0x2b6   : > { %7799 = vmatprep.subr.msk.mxu1 %vm716_vm0, %v10210_v3 }
 0x2b7   : > { %v10515_v55 = vpop.xlane.xlu0 %2187  ;;  %v1057_v39 = vpop.xlane.xlu1 %1056  ;;  %1739 = vrot.lane.b32.xlu1 %v10058_v32, %s14188_s19 }
 0x2b8   : > { %8946 = vrcp.f32 %v1057_v39 }
 0x2b9   : > { %7800 = vmatpush3.xpose.msk.msra.mxu1 %vm716_vm0, %v10210_v3 }
 0x2ba   : > { %7801 = vmatprep.subr.msk.mxu1 %vm716_vm0, %v10216_v9  ;;  %1737 = vrot.lane.b32.xlu0 %v10072_v34, %s14188_s19 }
 0x2bb   : > { %v10525_v59 = vpop.xlane.xlu0 %2191  ;;  %v1055_v60 = vpop.xlane.xlu1 %1054 }
 0x2bc   : > { %8948 = vrcp.f32 %v1055_v60 }
 0x2bd   : > { %v8943_v21 = vpop.eup %8942  ;;  %7802 = vmatpush3.xpose.msk.msra.mxu1 %vm716_vm0, %v10216_v9 }
 0x2be   : > { %7803 = vmatprep.subr.msk.mxu1 %vm716_vm0, %v10223_v16  ;;  %v1090_v32 = vmul.f32 %v8943_v21, %v10376_v41 }
 0x2bf   : > { %v1061_v3 = vpop.xlane.xlu1 %1060  ;;  %v10532_v33 = vpop.xlane.xlu0 %2195 }
 0x2c0   : > { %1106 = vst [vmem:[%s10447_s10 + $0x20] sm:$0xff] %v1090_v32  ;;  %8950 = vrcp.f32 %v1061_v3 }
 0x2c1   : > { %7804 = vmatpush3.xpose.msk.msra.mxu1 %vm716_vm0, %v10223_v16  ;;  %v8945_v34 = vpop.eup %8944 }
 0x2c2   : > { %7805 = vmatprep.subr.msk.mxu1 %vm716_vm0, %v10229_v19  ;;  %v1093_v35 = vmul.f32 %v8945_v34, %v10383_v22 }
 0x2c3   : > { %v1065_v8 = vpop.xlane.xlu1 %1064  ;;  %v10539_v9 = vpop.xlane.xlu0 %2199 }
 0x2c4   : > { %8952 = vrcp.f32 %v1065_v8  ;;  %1109 = vst [vmem:[%s10447_s10 + $0x38] sm:$0xff] %v1093_v35 }
 0x2c5   : > { %7806 = vmatpush3.xpose.msk.msra.mxu1 %vm716_vm0, %v10229_v19  ;;  %v8947_v41 = vpop.eup %8946 }
 0x2c6   : > { %7807 = vmatprep.subr.msk.mxu1 %vm716_vm0, %v10235_v23  ;;  %v1095_v54 = vmul.f32 %v8947_v41, %v10389_v4  ;;  %v14249_v41 = vld [vmem:[#allocation29_spill] sm:$0xff] }
 0x2c7   : > { %v1063_v16 = vpop.xlane.xlu1 %1062  ;;  %v1045_v62 = vpop.xlane.xlu0 %1044 }
 0x2c8   : > { %8954 = vrcp.f32 %v1063_v16  ;;  %1111 = vst [vmem:[%s10447_s10 + $0x48] sm:$0xff] %v1095_v54  ;;  %v14250_v16 = vld [vmem:[#allocation35_spill] sm:$0xff] }
 0x2c9   : > { %7808 = vmatpush3.xpose.msk.msra.mxu1 %vm716_vm0, %v10235_v23  ;;  %v8949_v22 = vpop.eup %8948  ;;  %8956 = vrcp.f32 %v1045_v62  ;;  %v14251_v62 = vld [vmem:[#allocation30_spill] sm:$0xff] }
 0x2ca   : > { %v1094_v29 = vmul.f32 %v8949_v22, %v10396_v31  ;;  %v14253_v22 = vld [vmem:[#allocation31_spill] sm:$0xff] }
 0x2cb   : > { %v1067_v26 = vpop.xlane.xlu1 %1066  ;;  %v1051_v19 = vpop.xlane.xlu0 %1050 }
 0x2cc   : > { %8958 = vrcp.f32 %v1067_v26  ;;  %1110 = vst [vmem:[%s10447_s10 + $0x40] sm:$0xff] %v1094_v29  ;;  %v14254_v26 = vld [vmem:[#allocation39_spill] sm:$0xff] }
 0x2cd   : > { %8960 = vrcp.f32 %v1051_v19  ;;  %v8951_v25 = vpop.eup %8950  ;;  %v14255_v19 = vld [vmem:[#allocation32_spill] sm:$0xff] }
 0x2ce   : > { %v1097_v4 = vmul.f32 %v8951_v25, %v10403_v24  ;;  %v14256_v25 = vld [vmem:[#allocation33_spill] sm:$0xff] }
 0x2cf   : > { %v1059_v36 = vpop.xlane.xlu0 %1058  ;;  %v1744_v42 = vpop.permute.xlu1 %1743 }
 0x2d0   : > { %8962 = vrcp.f32 %v1059_v36  ;;  %7833 = vmatprep.subr.mxu1 %v1744_v42  ;;  %1113 = vst [vmem:[%s10447_s10 + $0x58] sm:$0xff] %v1097_v4  ;;  %v14257_v36 = vld [vmem:[#allocation34_spill] sm:$0xff] }
 0x2d1   : > { %v8953_v23 = vpop.eup %8952 }
 0x2d2   : > { %v1099_v48 = vmul.f32 %v8953_v23, %v10409_v45 }
 0x2d3   : > { %v1069_v49 = vpop.xlane.xlu0 %1068 }
 0x2d4   : > { %8964 = vrcp.f32 %v1069_v49  ;;  %1115 = vst [vmem:[%s10447_s10 + $0x68] sm:$0xff] %v1099_v48  ;;  %v2211_v49 = vsub.f32 %v10342_v38, %v10503_v52  ;;  %v10655_v38 = vld [vmem:[%s10024_s22 + $0x78] sm:$0xff]  ;;  %v10663_v52 = vld [vmem:[%s10024_s22 + $0x70] sm:$0xff] }
 0x2d5   : > { %v8955_v31 = vpop.eup %8954 }
 0x2d6   : > { %v8957_v40 = vpop.eup %8956  ;;  %v1098_v56 = vmul.f32 %v8955_v31, %v10415_v46  ;;  %v14260_v31 = vld [vmem:[#allocation49_spill] sm:$0xff] }
 0x2d7   : > { %v1089_v24 = vmul.f32 %v8957_v40, %v10413_v63  ;;  %v2214_v40 = vsub.f32 %v14260_v31, %v10438_v12 }
 0x2d8   : > { %1114 = vst [vmem:[%s10447_s10 + $0x60] sm:$0xff] %v1098_v56 }
 0x2d9   : > { %v8959_v13 = vpop.eup %8958  ;;  %1105 = vst [vmem:[%s10447_s10 + $0x18] sm:$0xff] %v1089_v24  ;;  %7757 = vmatmul.mubr.f32.gmra.mxu1 %v1089_v24  ;;  %v14261_v24 = vld [vmem:[#allocation38_spill] sm:$0xff] }
 0x2da   : > { %v8961_v39 = vpop.eup %8960  ;;  %v1100_v60 = vmul.f32 %v8959_v13, %v10421_v14  ;;  %7759 = vmatprep.mubr.f32.mxu1 %v1090_v32 }
 0x2db   : > { %v1092_v45 = vmul.f32 %v8961_v39, %v10419_v37  ;;  %v10570_v37 = vpop.xlane.xlu0 %2201  ;;  %v10671_v39 = vld [vmem:[%s10024_s22 + $0x68] sm:$0xff] }
 0x2dc   : > { %1116 = vst [vmem:[%s10447_s10 + $0x70] sm:$0xff] %v1100_v60 }
 0x2dd   : > { %v8963_v21 = vpop.eup %8962  ;;  %1108 = vst [vmem:[%s10447_s10 + $0x30] sm:$0xff] %v1092_v45  ;;  %7760 = vmatmul.mubr.f32.gmra.mxu1 %v10479_v50 }
 0x2de   : > { %v1096_v46 = vmul.f32 %v8963_v21, %v10425_v15  ;;  %7762 = vmatprep.mubr.f32.mxu1 %v1092_v45  ;;  %v10679_v45 = vld [vmem:[%s10024_s22 + $0x60] sm:$0xff]  ;;  %v10684_v21 = vld [vmem:[%s10024_s22 + $0x50] sm:$0xff] }
 0x2df   : > { %v1742_v14 = vpop.permute.xlu0 %1741 }
 0x2e0   : > { %1112 = vst [vmem:[%s10447_s10 + $0x50] sm:$0xff] %v1096_v46 }
 0x2e1   : > { %v8965_v63 = vpop.eup %8964  ;;  %7763 = vmatmul.mubr.f32.gmra.mxu1 %v1093_v35  ;;  %v14248_v35 = vld [vmem:[#allocation28_spill] sm:$0xff] }
 0x2e2   : > { %v1101_v3 = vmul.f32 %v8965_v63, %v10428_v30  ;;  %7765 = vmatprep.mubr.f32.mxu1 %v1094_v29  ;;  %v9414_v29 = vld [vmem:[%s9848_s18 + $0x70] sm:$0xff]  ;;  %v10691_v63 = vld [vmem:[%s10024_s22 + $0x48] sm:$0xff] }
 0x2e4   : > { %1117 = vst [vmem:[%s10447_s10 + $0x78] sm:$0xff] %v1101_v3 }
 0x2e5   : > { %7766 = vmatmul.mubr.f32.gmra.mxu1 %v1095_v54  ;;  %v14252_v54 = vld [vmem:[#allocation37_spill] sm:$0xff] }
 0x2e6   : > { %7768 = vmatprep.mubr.f32.mxu1 %v1096_v46 }
 0x2e9   : > { %7769 = vmatmul.mubr.f32.gmra.mxu1 %v1097_v4  ;;  %v14258_v4 = vld [vmem:[#allocation48_spill] sm:$0xff] }
 0x2ea   : > { %7771 = vmatprep.mubr.f32.mxu1 %v1098_v56  ;;  %v2227_v56 = vmul.f32 1.442695, %v2211_v49 }
 0x2ed   : > { %7772 = vmatmul.mubr.f32.gmra.mxu1 %v1099_v48  ;;  %v14259_v48 = vld [vmem:[#allocation36_spill] sm:$0xff] }
 0x2ee   : > { %7774 = vmatprep.mubr.f32.mxu1 %v1100_v60 }
 0x2f1   : > { %7775 = vmatmul.mubr.f32.gmra.mxu1 %v1101_v3 }
 0x2f2   : > { %7809 = vmatprep.mubr.msk.f32.mxu1 %vm716_vm0, %v10238_v28  ;;  %v14242_v28 = vld [vmem:[#allocation41_spill] sm:$0xff] }
 0x2f5   : > { %7810 = vmatmul.mubr.msk.f32.vlgmr.msra.gmra.mxu1 %vm716_vm0, %v10213_v7  ;;  %v14240_v7 = vld [vmem:[#allocation43_spill] sm:$0xff] }
 0x2f6   : > { %7812 = vmatprep.mubr.msk.f32.mxu1 %vm716_vm0, %v10218_v10  ;;  %7834 = vmatpush3.msra.mxu1 %v1744_v42  ;;  %v14241_v10 = vld [vmem:[#allocation40_spill] sm:$0xff]  ;;  %v2212_v42 = vsub.f32 %v14258_v4, %v10436_v2  ;;  %v2233_v2 = vmul.f32 1.442695, %v2214_v40  ;;  %14262 = vst [vmem:[#allocation43_spill] sm:$0xff] %v10655_v38  ;;  %v9428_v4 = vld [vmem:[%s9848_s18 + $0x78] sm:$0xff] }
 0x2f7   : > { %7835 = vmatprep.subr.mxu1 %v1742_v14  ;;  %14263 = vst [vmem:[#allocation40_spill] sm:$0xff] %v10671_v39 }
 0x2f8   : > { %7836 = vmatpush3.msra.mxu1 %v1742_v14  ;;  %v2229_v23 = vmul.f32 1.442695, %v2212_v42 }
 0x2f9   : > { %7813 = vmatmul.mubr.msk.f32.gmra.mxu1 %vm716_vm0, %v10245_v61  ;;  %v14243_v61 = vld [vmem:[#allocation45_spill] sm:$0xff] }
 0x2fa   : > { %7815 = vmatprep.mubr.msk.f32.mxu1 %vm716_vm0, %v10250_v0  ;;  %v14244_v0 = vld [vmem:[#allocation46_spill] sm:$0xff]  ;;  %8966 = vpow2.f32 %v2229_v23 }
 0x2fb   : > { %8968 = vpow2.f32 %v2227_v56  ;;  %v2213_v56 = vsub.f32 %v10347_v47, %v10509_v58 }
 0x2fc   : > { %8970 = vpow2.f32 %v2233_v2 }
 0x2fd   : > { %7816 = vmatmul.mubr.msk.f32.gmra.mxu1 %vm716_vm0, %v10225_v18  ;;  %v14245_v18 = vld [vmem:[#allocation42_spill] sm:$0xff] }
 0x2fe   : > { %7818 = vmatprep.mubr.msk.f32.mxu1 %vm716_vm0, %v10231_v20  ;;  %v14246_v20 = vld [vmem:[#allocation44_spill] sm:$0xff] }
 0x301   : > { %7819 = vmatmul.mubr.msk.f32.gmra.mxu1 %vm716_vm0, %v10255_v6  ;;  %v14247_v6 = vld [vmem:[#allocation47_spill] sm:$0xff] }
 0x302   : > { %7821 = vmatprep.mubr.msk.f32.mxu1 %vm716_vm0, %v14240_v7  ;;  %v10700_v7 = vld [vmem:[%s10024_s22 + $0x40] sm:$0xff] }
 0x303   : > { %14267 = vst [vmem:[#allocation42_spill] sm:$0xff] %v10700_v7 }
 0x305   : > { %7822 = vmatmul.mubr.msk.f32.gmra.mxu1 %vm716_vm0, %v14241_v10 }
 0x306   : > { %7824 = vmatprep.mubr.msk.f32.mxu1 %vm716_vm0, %v14242_v28 }
 0x307   : > { %v10659_v12 = vpop.eup %8966 }
 0x308   : > { %v10667_v13 = vpop.eup %8968 }
 0x309   : > { %7825 = vmatmul.mubr.msk.f32.gmra.mxu1 %vm716_vm0, %v14243_v61  ;;  %v10675_v60 = vpop.eup %8970  ;;  %v10709_v61 = vld [vmem:[%s10024_s22 + $0x38] sm:$0xff] }
 0x30a   : > { %7827 = vmatprep.mubr.msk.f32.mxu1 %vm716_vm0, %v14244_v0 }
 0x30d   : > { %7828 = vmatmul.mubr.msk.f32.gmra.mxu1 %vm716_vm0, %v14245_v18 }
 0x30e   : > { %7830 = vmatprep.mubr.msk.f32.mxu1 %vm716_vm0, %v14246_v20  ;;  %v9423_v20 = vld [vmem:[%s9848_s18 + $0x68] sm:$0xff] }
 0x311   : > { %7831 = vmatmul.mubr.msk.f32.gmra.mxu1 %vm716_vm0, %v14247_v6  ;;  %v10720_v6 = vld [vmem:[%s10024_s22 + $0x30] sm:$0xff] }
 0x312   : > { %14272 = vst [vmem:[#allocation35_spill] sm:$0xff] %v10720_v6 }
 0x32d   : > { %v10611_v34 = vpop.xlane.xlu0 %2205 }
 0x32f   : > { %v10604_v15 = vpop.xlane.xlu1 %2203 }
 0x331   : > { %v1738_v8 = vpop.permute.xlu0 %1737 }
 0x333   : > { %v1740_v30 = vpop.permute.xlu1 %1739 }
 0x334   : > { %7837 = vmatprep.subr.mxu1 %v1740_v30 }
 0x335   : > { %7838 = vmatpush3.msra.mxu1 %v1740_v30 }
 0x336   : > { %7839 = vmatprep.subr.mxu1 %v1738_v8 }
 0x337   : > { %7840 = vmatpush3.msra.mxu1 %v1738_v8 }
 0x33f   : > { %v10606_v50 = vpop.f32.mrf.mxu0 }
 0x340   : > { %2209 = vmax.xlane.f32.xlu0 %v10606_v50 }
 0x341   : > { %v10609_v32 = vpop.f32.mrf.mxu0 }
 0x342   : > { %2207 = vmax.xlane.f32.xlu1 %v10609_v32 }
 0x34c   : > { %v10688_v46 = vpop.f32.mrf.mxu1 }
 0x34d   : > { %14264 = vst [vmem:[#allocation41_spill] sm:$0xff] %v10688_v46 }
 0x34e   : > { %v10695_v3 = vpop.f32.mrf.mxu1 }
 0x34f   : > { %14265 = vst [vmem:[#allocation45_spill] sm:$0xff] %v10695_v3 }
 0x353   : > { %1735 = vrot.lane.b32.xlu1 %v14248_v35, %s14188_s19 }
 0x356   : > { %2362 = vrot.lane.b32.xlu0 %v14248_v35, %s14176_s21  ;;  %v10729_v35 = vld [vmem:[%s10024_s22 + $0x28] sm:$0xff] }
 0x357   : > { %1733 = vrot.lane.b32.xlu1 %v14249_v41, %s14188_s19 }
 0x35a   : > { %2348 = vrot.lane.b32.xlu0 %v14250_v16, %s14176_s21 }
 0x35b   : > { %1731 = vrot.lane.b32.xlu1 %v14251_v62, %s14188_s19  ;;  %v10738_v62 = vld [vmem:[%s10024_s22 + $0x18] sm:$0xff] }
 0x35e   : > { %2344 = vrot.lane.b32.xlu0 %v14252_v54, %s14176_s21 }
 0x35f   : > { %1729 = vrot.lane.b32.xlu1 %v14253_v22, %s14188_s19 }
 0x362   : > { %2340 = vrot.lane.b32.xlu0 %v14254_v26, %s14176_s21 }
 0x363   : > { %1727 = vrot.lane.b32.xlu1 %v14255_v19, %s14188_s19  ;;  %v10749_v19 = vld [vmem:[%s10024_s22 + $0x8] sm:$0xff] }
 0x366   : > { %2593 = vrot.lane.b32.xlu0 %v9414_v29, %s14186_s13 }
 0x367   : > { %1725 = vrot.lane.b32.xlu1 %v14256_v25, %s14188_s19 }
 0x36b   : > { %1723 = vrot.lane.b32.xlu1 %v14257_v36, %s14188_s19 }
 0x36f   : > { %1721 = vrot.lane.b32.xlu1 %v14250_v16, %s14188_s19 }
 0x373   : > { %1719 = vrot.lane.b32.xlu1 %v14259_v48, %s14188_s19 }
 0x377   : > { %1717 = vrot.lane.b32.xlu1 %v14252_v54, %s14188_s19  ;;  %v2217_v54 = vsub.f32 %v10357_v11, %v10525_v59 }
 0x379   : > { %v2239_v29 = vmul.f32 1.442695, %v2217_v54 }
 0x37b   : > { %1715 = vrot.lane.b32.xlu1 %v14261_v24, %s14188_s19  ;;  %8972 = vpow2.f32 %v2239_v29  ;;  %v2231_v24 = vmul.f32 1.442695, %v2213_v56  ;;  %v14282_v29 = vld [vmem:[#allocation50_spill] sm:$0xff] }
 0x37d   : > { %8974 = vpow2.f32 %v2231_v24 }
 0x37f   : > { %1713 = vrot.lane.b32.xlu1 %v14254_v26, %s14188_s19  ;;  %s14591_s19 = smov 64  }
 0x383   : > { %2370 = vrot.lane.b32.xlu1 %v10655_v38, %s14176_s21 }
 0x385   : > { %2261 = vadd.xlane.f32.xlu0 %v10659_v12 }
 0x387   : > { %2368 = vrot.lane.b32.xlu1 %v10663_v52, %s14176_s21 }
 0x388   : > { %v10773_v40 = vpop.eup %8972 }
 0x389   : > { %2259 = vadd.xlane.f32.xlu0 %v10667_v13 }
 0x38b   : > { %2366 = vrot.lane.b32.xlu1 %v10671_v39, %s14176_s21 }
 0x38d   : > { %2265 = vadd.xlane.f32.xlu0 %v10675_v60 }
 0x38f   : > { %2364 = vrot.lane.b32.xlu1 %v10679_v45, %s14176_s21 }
 0x393   : > { %2360 = vrot.lane.b32.xlu1 %v10684_v21, %s14176_s21 }
 0x397   : > { %2358 = vrot.lane.b32.xlu1 %v10691_v63, %s14176_s21 }
 0x399   : > { %v10697_v14 = vpop.f32.mrf.mxu1 }
 0x39a   : > { %14266 = vst [vmem:[#allocation46_spill] sm:$0xff] %v10697_v14 }
 0x39b   : > { %2356 = vrot.lane.b32.xlu1 %v10700_v7, %s14176_s21  ;;  %v10704_v10 = vpop.f32.mrf.mxu1 }
 0x39c   : > { %14268 = vst [vmem:[#allocation44_spill] sm:$0xff] %v10704_v10 }
 0x39d   : > { %v10706_v28 = vpop.f32.mrf.mxu1 }
 0x39e   : > { %14269 = vst [vmem:[#allocation47_spill] sm:$0xff] %v10706_v28 }
 0x39f   : > { %2354 = vrot.lane.b32.xlu1 %v10709_v61, %s14176_s21  ;;  %v10713_v0 = vpop.f32.mrf.mxu1 }
 0x3a0   : > { %14270 = vst [vmem:[#allocation28_spill] sm:$0xff] %v10713_v0 }
 0x3a1   : > { %v10715_v18 = vpop.f32.mrf.mxu1 }
 0x3a2   : > { %14271 = vst [vmem:[#allocation29_spill] sm:$0xff] %v10715_v18 }
 0x3a3   : > { %2591 = vrot.lane.b32.xlu0 %v9423_v20, %s14186_s13  ;;  %2352 = vrot.lane.b32.xlu1 %v10720_v6, %s14176_s21  ;;  %v10724_v30 = vpop.f32.mrf.mxu1  ;;  %v2215_v20 = vsub.f32 %v10352_v27, %v10515_v55  ;;  %v2219_v6 = vsub.f32 %v10393_v43, %v10532_v33 }
 0x3a4   : > { %14273 = vst [vmem:[#allocation30_spill] sm:$0xff] %v10724_v30  ;;  %v9430_v30 = vld [vmem:[%s9848_s18 + $0x58] sm:$0xff] }
 0x3a5   : > { %v10726_v8 = vpop.f32.mrf.mxu1 }
 0x3a6   : > { %14274 = vst [vmem:[#allocation37_spill] sm:$0xff] %v10726_v8 }
 0x3a7   : > { %2350 = vrot.lane.b32.xlu1 %v10729_v35, %s14176_s21  ;;  %v10733_v41 = vpop.f32.mrf.mxu1 }
 0x3a8   : > { %14275 = vst [vmem:[#allocation31_spill] sm:$0xff] %v10733_v41  ;;  %v9429_v41 = vld [vmem:[%s9848_s18 + $0x60] sm:$0xff] }
 0x3a9   : > { %v10735_v16 = vpop.f32.mrf.mxu1 }
 0x3aa   : > { %14276 = vst [vmem:[#allocation39_spill] sm:$0xff] %v10735_v16 }
 0x3ab   : > { %2346 = vrot.lane.b32.xlu1 %v10738_v62, %s14176_s21  ;;  %v10744_v22 = vpop.f32.mrf.mxu1 }
 0x3ac   : > { %14277 = vst [vmem:[#allocation32_spill] sm:$0xff] %v10744_v22 }
 0x3ad   : > { %v10746_v26 = vpop.f32.mrf.mxu1 }
 0x3ae   : > { %14278 = vst [vmem:[#allocation33_spill] sm:$0xff] %v10746_v26 }
 0x3af   : > { %2342 = vrot.lane.b32.xlu1 %v10749_v19, %s14176_s21  ;;  %v10753_v25 = vpop.f32.mrf.mxu1 }
 0x3b0   : > { %14279 = vst [vmem:[#allocation34_spill] sm:$0xff] %v10753_v25 }
 0x3b1   : > { %v10755_v36 = vpop.f32.mrf.mxu1 }
 0x3b2   : > { %14280 = vst [vmem:[#allocation48_spill] sm:$0xff] %v10755_v36  ;;  %v2235_v36 = vmul.f32 1.442695, %v2215_v20  ;;  %v10800_v20 = vpop.eup %8974 }
 0x3b3   : > { %2595 = vrot.lane.b32.xlu1 %v9428_v4, %s14186_s13  ;;  %v10759_v42 = vpop.f32.mrf.mxu1  ;;  %v2216_v4 = vsub.f32 %v14282_v29, %v10442_v57 }
 0x3b4   : > { %14281 = vst [vmem:[#allocation36_spill] sm:$0xff] %v10759_v42  ;;  %8976 = vpow2.f32 %v2235_v36 }
 0x3b5   : > { %v10761_v11 = vpop.f32.mrf.mxu1  ;;  %v2237_v58 = vmul.f32 1.442695, %v2216_v4 }
 0x3b7   : > { %v10763_v59 = vpop.f32.mrf.mxu1  ;;  %8978 = vpow2.f32 %v2237_v58 }
 0x3b9   : > { %v10765_v23 = vpop.f32.mrf.mxu1 }
 0x3bb   : > { %v10767_v49 = vpop.f32.mrf.mxu1 }
 0x3bd   : > { %v10769_v48 = vpop.f32.mrf.mxu1 }
 0x3bf   : > { %v10771_v31 = vpop.f32.mrf.mxu1 }
 0x3c1   : > { %v10777_v2 = vpop.f32.mrf.mxu1  ;;  %v10806_v4 = vpop.eup %8976 }
 0x3c2   : > { %2271 = vadd.xlane.f32.xlu0 %v10773_v40 }
 0x3c3   : > { %v10782_v54 = vpop.f32.mrf.mxu1 }
 0x3c5   : > { %v10787_v42 = vpop.f32.mrf.mxu1 }
 0x3c6   : > { %1538 = vmax.xlane.f32.xlu0 %v10761_v11 }
 0x3c7   : > { %v10792_v56 = vpop.f32.mrf.mxu1 }
 0x3c9   : > { %v10795_v55 = vpop.f32.mrf.mxu1  ;;  %v10816_v22 = vpop.xlane.xlu0 %2209 }
 0x3ca   : > { %1540 = vmax.xlane.f32.xlu0 %v10767_v49 }
 0x3cb   : > { %v10790_v47 = vpop.xlane.xlu1 %2207  ;;  %v10798_v24 = vpop.f32.mrf.mxu1 }
 0x3cd   : > { %v10804_v29 = vpop.f32.mrf.mxu1  ;;  %v10820_v18 = vpop.permute.xlu0 %2362 }
 0x3ce   : > { %1544 = vmax.xlane.f32.xlu0 %v10771_v31 }
 0x3cf   : > { %v1736_v27 = vpop.permute.xlu1 %1735 }
 0x3d0   : > { %7841 = vmatprep.subr.mxu1 %v1736_v27 }
 0x3d1   : > { %7842 = vmatpush3.msra.mxu1 %v1736_v27  ;;  %v10810_v27 = vpop.f32.mrf.mxu1 }
 0x3d2   : > { %1548 = vmax.xlane.f32.xlu0 %v10782_v54 }
 0x3d3   : > { %v1734_v57 = vpop.permute.xlu1 %1733  ;;  %v10839_v10 = vpop.f32.mrf.mxu1 }
 0x3d4   : > { %7843 = vmatprep.subr.mxu1 %v1734_v57 }
 0x3d5   : > { %7844 = vmatpush3.msra.mxu1 %v1734_v57  ;;  %v10812_v57 = vpop.eup %8978 }
 0x3d6   : > { %1552 = vmax.xlane.f32.xlu0 %v10792_v56 }
 0x3d7   : > { %2263 = vadd.xlane.f32.xlu1 %v10800_v20  ;;  %v1732_v36 = vpop.permute.xlu1 %1731 }
 0x3d8   : > { %7845 = vmatprep.subr.mxu1 %v1732_v36 }
 0x3d9   : > { %7846 = vmatpush3.msra.mxu1 %v1732_v36 }
 0x3da   : > { %1556 = vmax.xlane.f32.xlu0 %v10798_v24 }
 0x3db   : > { %2267 = vadd.xlane.f32.xlu1 %v10806_v4  ;;  %v1730_v58 = vpop.permute.xlu1 %1729 }
 0x3dc   : > { %7847 = vmatprep.subr.mxu1 %v1730_v58 }
 0x3dd   : > { %7848 = vmatpush3.msra.mxu1 %v1730_v58 }
 0x3de   : > { %1560 = vmax.xlane.f32.xlu0 %v10810_v27 }
 0x3df   : > { %2269 = vadd.xlane.f32.xlu1 %v10812_v57  ;;  %v1728_v26 = vpop.permute.xlu1 %1727 }
 0x3e0   : > { %7849 = vmatprep.subr.mxu1 %v1728_v26 }
 0x3e1   : > { %7850 = vmatpush3.msra.mxu1 %v1728_v26 }
 0x3e3   : > { %v1726_v36 = vpop.permute.xlu1 %1725 }
 0x3e4   : > { %7851 = vmatprep.subr.mxu1 %v1726_v36 }
 0x3e5   : > { %7852 = vmatpush3.msra.mxu1 %v1726_v36 }
 0x3e7   : > { %v1724_v25 = vpop.permute.xlu1 %1723 }
 0x3e8   : > { %7853 = vmatprep.subr.mxu1 %v1724_v25 }
 0x3e9   : > { %7854 = vmatpush3.msra.mxu1 %v1724_v25  ;;  %v10824_v25 = vpop.permute.xlu0 %2348 }
 0x3ea   : > { %14283 = vst [vmem:[#allocation49_spill] sm:$0xff] %v10824_v25 }
 0x3eb   : > { %v1722_v16 = vpop.permute.xlu1 %1721 }
 0x3ec   : > { %7855 = vmatprep.subr.mxu1 %v1722_v16 }
 0x3ed   : > { %7856 = vmatpush3.msra.mxu1 %v1722_v16  ;;  %v10826_v28 = vpop.permute.xlu0 %2344 }
 0x3ee   : > { %14284 = vst [vmem:[#allocation38_spill] sm:$0xff] %v10826_v28 }
 0x3ef   : > { %v1720_v58 = vpop.permute.xlu1 %1719 }
 0x3f0   : > { %2589 = vrot.lane.b32.xlu1 %v9429_v41, %s14186_s13  ;;  %7857 = vmatprep.subr.mxu1 %v1720_v58  ;;  %v2221_v41 = vsub.f32 %v10407_v17, %v10539_v9  ;;  %v10843_v17 = vpop.f32.mrf.mxu1 }
 0x3f1   : > { %7858 = vmatpush3.msra.mxu1 %v1720_v58  ;;  %v10833_v0 = vpop.permute.xlu0 %2340 }
 0x3f2   : > { %14285 = vst [vmem:[#allocation50_spill] sm:$0xff] %v10833_v0 }
 0x3f3   : > { %v1718_v26 = vpop.permute.xlu1 %1717 }
 0x3f4   : > { %2587 = vrot.lane.b32.xlu0 %v9430_v30, %s14186_s13  ;;  %7859 = vmatprep.subr.mxu1 %v1718_v26  ;;  %v2247_v30 = vmul.f32 1.442695, %v2221_v41  ;;  %v14288_v41 = vld [vmem:[#allocation51_spill] sm:$0xff] }
 0x3f5   : > { %7860 = vmatpush3.msra.mxu1 %v1718_v26  ;;  %v10835_v26 = vpop.permute.xlu0 %2593 }
 0x3f6   : > { %8980 = vpow2.f32 %v2247_v30  ;;  %14286 = vst [vmem:[#allocation53_spill] sm:$0xff] %v10835_v26  ;;  %v2218_v30 = vsub.f32 %v14288_v41, %v10445_v1 }
 0x3f7   : > { %v1716_v36 = vpop.permute.xlu1 %1715 }
 0x3f8   : > { %7861 = vmatprep.subr.mxu1 %v1716_v36  ;;  %v2241_v26 = vmul.f32 1.442695, %v2218_v30 }
 0x3f9   : > { %7862 = vmatpush3.msra.mxu1 %v1716_v36 }
 0x3fb   : > { %v1714_v16 = vpop.permute.xlu1 %1713 }
 0x3fc   : > { %7863 = vmatprep.subr.mxu1 %v1714_v16 }
 0x3fd   : > { %7864 = vmatpush3.msra.mxu1 %v1714_v16 }
 0x3ff   : > { %v10830_v58 = vpop.permute.xlu1 %2370 }
 0x400   : > { %7945 = vmatprep.subr.mxu1 %v10830_v58 }
 0x403   : > { %v10837_v36 = vpop.eup %8980 }
 0x40e   : > { %v2262_v14 = vpop.xlane.xlu0 %2261 }
 0x40f   : > { %8982 = vrcp.f32 %v2262_v14  ;;  %v10847_v14 = vpop.permute.xlu1 %2368 }
 0x412   : > { %v2260_v46 = vpop.xlane.xlu0 %2259 }
 0x413   : > { %8984 = vrcp.f32 %v2260_v46  ;;  %2279 = vadd.xlane.f32.xlu0 %v10837_v36 }
 0x414   : > { %1536 = vmax.xlane.f32.xlu1 %v10763_v59 }
 0x416   : > { %v2266_v9 = vpop.xlane.xlu0 %2265 }
 0x417   : > { %8986 = vrcp.f32 %v2266_v9  ;;  %1564 = vmax.xlane.f32.xlu0 %v10843_v17  ;;  %v10857_v9 = vpop.permute.xlu1 %2366 }
 0x418   : > { %1542 = vmax.xlane.f32.xlu1 %v10765_v23  ;;  %8988 = vpow2.f32 %v2241_v26 }
 0x41a   : > { %v10899_v30 = vpop.permute.xlu0 %2591 }
 0x41b   : > { %v10873_v7 = vpop.permute.xlu1 %2364 }
 0x41c   : > { %v8983_v16 = vpop.eup %8982  ;;  %1546 = vmax.xlane.f32.xlu1 %v10769_v48 }
 0x41d   : > { %v10851_v46 = vmul.f32 %v8983_v16, %v10659_v12  ;;  %v14291_v16 = vld [vmem:[#allocation52_spill] sm:$0xff] }
 0x41e   : > { %v2220_v41 = vsub.f32 %v14291_v16, %v10451_v5  ;;  %14292 = vst [vmem:[#allocation52_spill] sm:$0xff] %v10899_v30 }
 0x41f   : > { %14287 = vst [vmem:[#allocation54_spill] sm:$0xff] %v10851_v46  ;;  %6884 = vst [vmem:[%s10447_s10 + $0x108] sm:$0xff] %v10851_v46  ;;  %v2243_v46 = vmul.f32 1.442695, %v2219_v6  ;;  %v10878_v33 = vpop.permute.xlu1 %2360 }
 0x420   : > { %v8985_v3 = vpop.eup %8984  ;;  %1550 = vmax.xlane.f32.xlu1 %v10777_v2  ;;  %v2245_v43 = vmul.f32 1.442695, %v2220_v41  ;;  %v10904_v41 = vld [vmem:[%s9848_s18 + $0x50] sm:$0xff] }
 0x421   : > { %v10861_v8 = vmul.f32 %v8985_v3, %v10667_v13  ;;  %8990 = vpow2.f32 %v2243_v46  ;;  %14293 = vst [vmem:[#allocation56_spill] sm:$0xff] %v10904_v41 }
 0x422   : > { %8992 = vpow2.f32 %v2245_v43 }
 0x423   : > { %14289 = vst [vmem:[#allocation51_spill] sm:$0xff] %v10861_v8  ;;  %6883 = vst [vmem:[%s10447_s10 + $0x100] sm:$0xff] %v10861_v8  ;;  %v10882_v13 = vpop.permute.xlu1 %2358 }
 0x424   : > { %v8987_v12 = vpop.eup %8986  ;;  %1554 = vmax.xlane.f32.xlu1 %v10787_v42 }
 0x425   : > { %v10869_v1 = vmul.f32 %v8987_v12, %v10675_v60  ;;  %v10884_v5 = vpop.eup %8988 }
 0x427   : > { %14290 = vst [vmem:[#allocation55_spill] sm:$0xff] %v10869_v1  ;;  %6886 = vst [vmem:[%s10447_s10 + $0x118] sm:$0xff] %v10869_v1  ;;  %v10889_v3 = vpop.permute.xlu1 %2356 }
 0x428   : > { %1558 = vmax.xlane.f32.xlu1 %v10795_v55 }
 0x42b   : > { %v10895_v26 = vpop.permute.xlu1 %2354 }
 0x42c   : > { %1562 = vmax.xlane.f32.xlu1 %v10804_v29 }
 0x42e   : > { %v10887_v60 = vpop.eup %8990 }
 0x42f   : > { %v10892_v6 = vpop.eup %8992  ;;  %v10897_v46 = vpop.permute.xlu1 %2352 }
 0x430   : > { %1566 = vmax.xlane.f32.xlu1 %v10839_v10 }
 0x433   : > { %v10901_v12 = vpop.permute.xlu1 %2350 }
 0x434   : > { %2273 = vadd.xlane.f32.xlu1 %v10884_v5 }
 0x437   : > { %v10908_v1 = vpop.permute.xlu1 %2346 }
 0x438   : > { %2275 = vadd.xlane.f32.xlu1 %v10887_v60  ;;  %14294 = vst [vmem:[#allocation57_spill] sm:$0xff] %v10908_v1  ;;  %v2223_v1 = vsub.f32 %v10490_v53, %v10604_v15 }
 0x43b   : > { %v10911_v38 = vpop.permute.xlu1 %2342 }
 0x43c   : > { %2277 = vadd.xlane.f32.xlu1 %v10892_v6  ;;  %14295 = vst [vmem:[#allocation58_spill] sm:$0xff] %v10911_v38 }
 0x43f   : > { %v10918_v28 = vpop.permute.xlu1 %2595 }
 0x440   : > { %14297 = vst [vmem:[#allocation60_spill] sm:$0xff] %v10918_v28 }
 0x44b   : > { %v2272_v16 = vpop.xlane.xlu0 %2271 }
 0x44c   : > { %8994 = vrcp.f32 %v2272_v16  ;;  %v2222_v16 = vsub.f32 %v10400_v44, %v10570_v37 }
 0x44d   : > { %2585 = vrot.lane.b32.xlu1 %v10904_v41, %s14186_s13 }
 0x44e   : > { %v2249_v41 = vmul.f32 1.442695, %v2222_v16 }
 0x44f   : > { %v1539_v43 = vpop.xlane.xlu0 %1538 }
 0x450   : > { %v1569_v8 = vsub.f32 %v10761_v11, %v1539_v43  ;;  %v2251_v11 = vmul.f32 1.442695, %v2223_v1 }
 0x452   : > { %v1586_v39 = vmul.f32 1.442695, %v1569_v8 }
 0x453   : > { %v1541_v43 = vpop.xlane.xlu0 %1540 }
 0x454   : > { %8996 = vpow2.f32 %v1586_v39  ;;  %v1570_v38 = vsub.f32 %v10767_v49, %v1541_v43 }
 0x459   : > { %v8995_v30 = vpop.eup %8994 }
 0x45a   : > { %v10914_v0 = vmul.f32 %v8995_v30, %v10773_v40 }
 0x45c   : > { %14296 = vst [vmem:[#allocation59_spill] sm:$0xff] %v10914_v0  ;;  %6889 = vst [vmem:[%s10447_s10 + $0x130] sm:$0xff] %v10914_v0 }
 0x460   : > { %v2264_v8 = vpop.xlane.xlu1 %2263 }
 0x461   : > { %v10924_v39 = vpop.eup %8996  ;;  %8998 = vrcp.f32 %v2264_v8  ;;  %v1545_v8 = vpop.xlane.xlu0 %1544 }
 0x462   : > { %1618 = vadd.xlane.f32.xlu0 %v10924_v39  ;;  %9000 = vpow2.f32 %v2249_v41 }
 0x464   : > { %v2268_v40 = vpop.xlane.xlu1 %2267 }
 0x465   : > { %9002 = vrcp.f32 %v2268_v40 }
 0x466   : > { %9004 = vpow2.f32 %v2251_v11  ;;  %v1549_v11 = vpop.xlane.xlu0 %1548 }
 0x468   : > { %v2270_v44 = vpop.xlane.xlu1 %2269 }
 0x469   : > { %9006 = vrcp.f32 %v2270_v44  ;;  %v10949_v44 = vld [vmem:[%s9848_s18 + $0x40] sm:$0xff] }
 0x46a   : > { %v1553_v40 = vpop.xlane.xlu0 %1552  ;;  %14301 = vst [vmem:[#allocation64_spill] sm:$0xff] %v10949_v44 }
 0x46e   : > { %v8999_v37 = vpop.eup %8998 }
 0x46f   : > { %v10928_v30 = vmul.f32 %v8999_v37, %v10800_v20  ;;  %v10930_v53 = vpop.eup %9000 }
 0x471   : > { %14298 = vst [vmem:[#allocation61_spill] sm:$0xff] %v10928_v30  ;;  %2281 = vadd.xlane.f32.xlu1 %v10930_v53  ;;  %6885 = vst [vmem:[%s10447_s10 + $0x110] sm:$0xff] %v10928_v30 }
 0x472   : > { %v9003_v15 = vpop.eup %9002 }
 0x473   : > { %v10936_v1 = vmul.f32 %v9003_v15, %v10806_v4  ;;  %v10938_v41 = vpop.eup %9004  ;;  %v10953_v4 = vpop.xlane.xlu0 %1556  ;;  %v2225_v15 = vsub.f32 %v10609_v32, %v10790_v47 }
 0x475   : > { %14299 = vst [vmem:[#allocation62_spill] sm:$0xff] %v10936_v1  ;;  %2283 = vadd.xlane.f32.xlu1 %v10938_v41  ;;  %6887 = vst [vmem:[%s10447_s10 + $0x120] sm:$0xff] %v10936_v1 }
 0x476   : > { %v9007_v20 = vpop.eup %9006 }
 0x477   : > { %v10944_v16 = vmul.f32 %v9007_v20, %v10812_v57  ;;  %v10955_v37 = vpop.xlane.xlu0 %1560  ;;  %v2255_v57 = vmul.f32 1.442695, %v2225_v15  ;;  %v10961_v20 = vpop.permute.xlu1 %2589 }
 0x478   : > { %14303 = vst [vmem:[#allocation66_spill] sm:$0xff] %v10961_v20 }
 0x479   : > { %14300 = vst [vmem:[#allocation63_spill] sm:$0xff] %v10944_v16  ;;  %6888 = vst [vmem:[%s10447_s10 + $0x128] sm:$0xff] %v10944_v16  ;;  %9008 = vpow2.f32 %v2255_v57 }
 0x47b   : > { %v10959_v0 = vpop.permute.xlu0 %2587 }
 0x47c   : > { %14302 = vst [vmem:[#allocation65_spill] sm:$0xff] %v10959_v0  ;;  %v1588_v0 = vmul.f32 1.442695, %v1570_v38 }
 0x486   : > { %2581 = vrot.lane.b32.xlu1 %v10949_v44, %s14186_s13  ;;  %v10967_v57 = vpop.eup %9008 }
 0x49c   : > { %v2280_v16 = vpop.xlane.xlu0 %2279 }
 0x49d   : > { %9010 = vrcp.f32 %v2280_v16  ;;  %v1537_v1 = vpop.xlane.xlu1 %1536 }
 0x49e   : > { %v1568_v30 = vsub.f32 %v10763_v59, %v1537_v1  ;;  %v1572_v59 = vsub.f32 %v10771_v31, %v1545_v8  ;;  %v1574_v31 = vsub.f32 %v10782_v54, %v1549_v11 }
 0x4a0   : > { %v1584_v28 = vmul.f32 1.442695, %v1568_v30  ;;  %v1592_v38 = vmul.f32 1.442695, %v1572_v59  ;;  %v1596_v43 = vmul.f32 1.442695, %v1574_v31 }
 0x4a1   : > { %v1543_v44 = vpop.xlane.xlu1 %1542 }
 0x4a2   : > { %9012 = vpow2.f32 %v1584_v28  ;;  %v1571_v25 = vsub.f32 %v10765_v23, %v1543_v44  ;;  %v1576_v44 = vsub.f32 %v10792_v56, %v1553_v40  ;;  %v9434_v56 = vld [vmem:[%s9848_s18 + $0x8] sm:$0xff] }
 0x4a4   : > { %v1590_v32 = vmul.f32 1.442695, %v1571_v25 }
 0x4a5   : > { %v1547_v47 = vpop.xlane.xlu1 %1546 }
 0x4a6   : > { %9014 = vpow2.f32 %v1590_v32  ;;  %v1573_v15 = vsub.f32 %v10769_v48, %v1547_v47  ;;  %v10992_v32 = vld [vmem:[%s9848_s18 + $0x30] sm:$0xff] }
 0x4a7   : > { %9016 = vpow2.f32 %v1588_v0 }
 0x4a8   : > { %v1594_v30 = vmul.f32 1.442695, %v1573_v15 }
 0x4a9   : > { %v1551_v16 = vpop.xlane.xlu1 %1550 }
 0x4aa   : > { %v9011_v20 = vpop.eup %9010  ;;  %2287 = vadd.xlane.f32.xlu1 %v10967_v57  ;;  %9018 = vpow2.f32 %v1594_v30  ;;  %v1575_v49 = vsub.f32 %v10777_v2, %v1551_v16  ;;  %v1578_v30 = vsub.f32 %v10798_v24, %v10953_v4  ;;  %v1580_v24 = vsub.f32 %v10810_v27, %v10955_v37  ;;  %v1565_v37 = vpop.xlane.xlu0 %1564 }
 0x4ab   : > { %v10972_v28 = vmul.f32 %v9011_v20, %v10837_v36  ;;  %9020 = vpow2.f32 %v1592_v38 }
 0x4ac   : > { %v1598_v25 = vmul.f32 1.442695, %v1575_v49  ;;  %v1604_v49 = vmul.f32 1.442695, %v1578_v30 }
 0x4ad   : > { %v1555_v23 = vpop.xlane.xlu1 %1554  ;;  %6893 = vst [vmem:[%s10447_s10 + $0x150] sm:$0xff] %v10972_v28 }
 0x4ae   : > { %9022 = vpow2.f32 %v1598_v25  ;;  %v1577_v8 = vsub.f32 %v10787_v42, %v1555_v23  ;;  %v1600_v42 = vmul.f32 1.442695, %v1576_v44  ;;  %v14305_v25 = vld [vmem:[#allocation14_spill] sm:$0xff] }
 0x4af   : > { %v10977_v48 = vpop.eup %9012  ;;  %9024 = vpow2.f32 %v1596_v43 }
 0x4b0   : > { %1616 = vadd.xlane.f32.xlu0 %v10977_v48  ;;  %v1602_v54 = vmul.f32 1.442695, %v1577_v8  ;;  %v14306_v8 = vld [vmem:[#allocation20_spill] sm:$0xff] }
 0x4b1   : > { %v1559_v0 = vpop.xlane.xlu1 %1558 }
 0x4b2   : > { %v1579_v47 = vsub.f32 %v10795_v55, %v1559_v0  ;;  %9026 = vpow2.f32 %v1602_v54  ;;  %v14304_v55 = vld [vmem:[#allocation12_spill] sm:$0xff]  ;;  %v1608_v54 = vmul.f32 1.442695, %v1580_v24 }
 0x4b3   : > { %v10981_v1 = vpop.eup %9014 }
 0x4b4   : > { %1622 = vadd.xlane.f32.xlu0 %v10981_v1  ;;  %v10985_v2 = vpop.eup %9016  ;;  %v1606_v40 = vmul.f32 1.442695, %v1579_v47  ;;  %v14307_v47 = vld [vmem:[#allocation16_spill] sm:$0xff] }
 0x4b5   : > { %v1563_v36 = vpop.xlane.xlu1 %1562 }
 0x4b6   : > { %v1581_v0 = vsub.f32 %v10804_v29, %v1563_v36 }
 0x4b7   : > { %v10989_v11 = vpop.eup %9018 }
 0x4b8   : > { %1620 = vadd.xlane.f32.xlu0 %v10985_v2  ;;  %v10998_v16 = vpop.eup %9020  ;;  %v1610_v4 = vmul.f32 1.442695, %v1581_v0  ;;  %v14311_v0 = vld [vmem:[#allocation24_spill] sm:$0xff] }
 0x4b9   : > { %v1567_v20 = vpop.xlane.xlu1 %1566 }
 0x4bb   : > { %2577 = vrot.lane.b32.xlu1 %v10992_v32, %s14186_s13  ;;  %v11005_v23 = vpop.eup %9022 }
 0x4bc   : > { %1626 = vadd.xlane.f32.xlu0 %v10989_v11  ;;  %v11011_v31 = vpop.eup %9024 }
 0x4bd   : > { %v2274_v15 = vpop.xlane.xlu1 %2273 }
 0x4be   : > { %9028 = vrcp.f32 %v2274_v15 }
 0x4bf   : > { %2567 = vrot.lane.b32.xlu1 %v9434_v56, %s14186_s13  ;;  %9030 = vpow2.f32 %v1600_v42  ;;  %v11018_v43 = vpop.eup %9026  ;;  %v1583_v42 = vsub.f32 %v10839_v10, %v1567_v20  ;;  %v1582_v56 = vsub.f32 %v10843_v17, %v1565_v37  ;;  %v14308_v20 = vld [vmem:[#allocation23_spill] sm:$0xff]  ;;  %v14309_v17 = vld [vmem:[#allocation18_spill] sm:$0xff] }
 0x4c0   : > { %1624 = vadd.xlane.f32.xlu0 %v10998_v16 }
 0x4c1   : > { %v2276_v59 = vpop.xlane.xlu1 %2275  ;;  %v1612_v30 = vmul.f32 1.442695, %v1582_v56 }
 0x4c2   : > { %9032 = vrcp.f32 %v2276_v59 }
 0x4c3   : > { %2533 = vrot.lane.b32.xlu1 %v14304_v55, %s14186_s13  ;;  %9034 = vpow2.f32 %v1606_v40  ;;  %v1614_v40 = vmul.f32 1.442695, %v1583_v42 }
 0x4c4   : > { %1630 = vadd.xlane.f32.xlu0 %v11005_v23 }
 0x4c5   : > { %v2278_v38 = vpop.xlane.xlu1 %2277 }
 0x4c6   : > { %9036 = vrcp.f32 %v2278_v38 }
 0x4c7   : > { %2537 = vrot.lane.b32.xlu1 %v14305_v25, %s14186_s13  ;;  %9038 = vpow2.f32 %v1604_v49  ;;  %v14310_v49 = vld [vmem:[#allocation26_spill] sm:$0xff] }
 0x4c8   : > { %1628 = vadd.xlane.f32.xlu0 %v11011_v31  ;;  %9040 = vpow2.f32 %v1610_v4 }
 0x4c9   : > { %9042 = vpow2.f32 %v1608_v54 }
 0x4ca   : > { %9044 = vpow2.f32 %v1614_v40  ;;  %v11124_v40 = vld [vmem:[%s9848_s18 + $0x28] sm:$0xff] }
 0x4cb   : > { %2541 = vrot.lane.b32.xlu1 %v14306_v8, %s14186_s13  ;;  %v9029_v29 = vpop.eup %9028  ;;  %9046 = vpow2.f32 %v1612_v30  ;;  %v11129_v30 = vld [vmem:[%s9848_s18 + $0x20] sm:$0xff] }
 0x4cc   : > { %1634 = vadd.xlane.f32.xlu0 %v11018_v43  ;;  %v11024_v36 = vmul.f32 %v9029_v29, %v10884_v5  ;;  %v11026_v44 = vpop.eup %9030 }
 0x4ce   : > { %6890 = vst [vmem:[%s10447_s10 + $0x138] sm:$0xff] %v11024_v36 }
 0x4cf   : > { %v9033_v27 = vpop.eup %9032  ;;  %2545 = vrot.lane.b32.xlu1 %v14307_v47, %s14186_s13 }
 0x4d0   : > { %1632 = vadd.xlane.f32.xlu0 %v11026_v44  ;;  %v11035_v15 = vmul.f32 %v9033_v27, %v10887_v60  ;;  %v11037_v5 = vpop.eup %9034  ;;  %v2226_v27 = vsub.f32 %v10606_v50, %v10816_v22 }
 0x4d2   : > { %6891 = vst [vmem:[%s10447_s10 + $0x140] sm:$0xff] %v11035_v15 }
 0x4d3   : > { %v9037_v10 = vpop.eup %9036  ;;  %2549 = vrot.lane.b32.xlu1 %v14308_v20, %s14186_s13 }
 0x4d4   : > { %1638 = vadd.xlane.f32.xlu0 %v11037_v5  ;;  %v11046_v59 = vmul.f32 %v9037_v10, %v10892_v6  ;;  %v11050_v60 = vpop.eup %9038 }
 0x4d5   : > { %v11055_v38 = vpop.eup %9040 }
 0x4d6   : > { %6892 = vst [vmem:[%s10447_s10 + $0x148] sm:$0xff] %v11046_v59  ;;  %v11060_v6 = vpop.eup %9042 }
 0x4d7   : > { %2553 = vrot.lane.b32.xlu1 %v14309_v17, %s14186_s13  ;;  %v11065_v24 = vpop.eup %9044 }
 0x4d8   : > { %1636 = vadd.xlane.f32.xlu0 %v11050_v60  ;;  %v11070_v4 = vpop.eup %9046 }
 0x4db   : > { %2557 = vrot.lane.b32.xlu1 %v14310_v49, %s14186_s13 }
 0x4dc   : > { %1642 = vadd.xlane.f32.xlu0 %v11055_v38 }
 0x4df   : > { %2561 = vrot.lane.b32.xlu1 %v14311_v0, %s14186_s13 }
 0x4e0   : > { %1640 = vadd.xlane.f32.xlu0 %v11060_v6 }
 0x4e3   : > { %2995 = vrot.lane.b32.xlu1 %v10663_v52, %s14186_s13  ;;  %v11081_v52 = vpop.permute.xlu1 %2585 }
 0x4e4   : > { %1646 = vadd.xlane.f32.xlu0 %v11065_v24 }
 0x4e7   : > { %2991 = vrot.lane.b32.xlu1 %v10679_v45, %s14186_s13 }
 0x4e8   : > { %1644 = vadd.xlane.f32.xlu0 %v11070_v4 }
 0x4eb   : > { %v1619_v29 = vpop.xlane.xlu0 %1618  ;;  %2987 = vrot.lane.b32.xlu1 %v10684_v21, %s14186_s13  ;;  %v11090_v21 = vld [vmem:[%s9848_s18 + $0x48] sm:$0xff] }
 0x4ec   : > { %9048 = vrcp.f32 %v1619_v29 }
 0x4ef   : > { %2985 = vrot.lane.b32.xlu1 %v10691_v63, %s14186_s13 }
 0x4f3   : > { %2981 = vrot.lane.b32.xlu1 %v10709_v61, %s14186_s13  ;;  %v2224_v61 = vsub.f32 %v10483_v51, %v10611_v34 }
 0x4f7   : > { %2977 = vrot.lane.b32.xlu1 %v10729_v35, %s14186_s13 }
 0x4f9   : > { %v9049_v54 = vpop.eup %9048 }
 0x4fa   : > { %v2282_v45 = vpop.xlane.xlu1 %2281  ;;  %v1665_v42 = vmul.f32 %v9049_v54, %v10924_v39 }
 0x4fb   : > { %9050 = vrcp.f32 %v2282_v45  ;;  %2973 = vrot.lane.b32.xlu1 %v10738_v62, %s14186_s13  ;;  %v2253_v62 = vmul.f32 1.442695, %v2224_v61 }
 0x4fc   : > { %6836 = vst [vmem:[%s10447_s10 + $0x88] sm:$0xff] %v1665_v42 }
 0x4fe   : > { %2583 = vrot.lane.b32.xlu0 %v11090_v21, %s14186_s13  ;;  %v2284_v63 = vpop.xlane.xlu1 %2283 }
 0x4ff   : > { %9052 = vrcp.f32 %v2284_v63  ;;  %2969 = vrot.lane.b32.xlu1 %v10749_v19, %s14186_s13  ;;  %v2257_v19 = vmul.f32 1.442695, %v2226_v27  ;;  %v11137_v63 = vld [vmem:[%s9848_s18 + $0x18] sm:$0xff] }
 0x500   : > { %9054 = vpow2.f32 %v2253_v62  ;;  %v11144_v62 = vld [vmem:[%s9848_s18 + $0x10] sm:$0xff] }
 0x501   : > { %9056 = vpow2.f32 %v2257_v19  ;;  %v11151_v19 = vld [vmem:[%s9848_s18] sm:$0xff] }
 0x502   : > { %v11116_v50 = vpop.permute.xlu1 %2581 }
 0x508   : > { %v9051_v35 = vpop.eup %9050 }
 0x509   : > { %v11099_v39 = vmul.f32 %v9051_v35, %v10930_v53  ;;  %v11119_v53 = vld [vmem:[%s9848_s18 + $0x38] sm:$0xff] }
 0x50b   : > { %6894 = vst [vmem:[%s10447_s10 + $0x158] sm:$0xff] %v11099_v39 }
 0x50c   : > { %v9053_v37 = vpop.eup %9052 }
 0x50d   : > { %v11106_v56 = vmul.f32 %v9053_v37, %v10938_v41  ;;  %v11110_v51 = vpop.eup %9054 }
 0x50e   : > { %v11113_v34 = vpop.eup %9056 }
 0x50f   : > { %6895 = vst [vmem:[%s10447_s10 + $0x160] sm:$0xff] %v11106_v56 }
 0x51d   : > { %2285 = vadd.xlane.f32.xlu0 %v11110_v51 }
 0x521   : > { %2289 = vadd.xlane.f32.xlu0 %v11113_v34 }
 0x533   : > { %v2288_v22 = vpop.xlane.xlu1 %2287 }
 0x534   : > { %9058 = vrcp.f32 %v2288_v22 }
 0x537   : > { %2579 = vrot.lane.b32.xlu0 %v11119_v53, %s14186_s13 }
 0x539   : > { %v1617_v41 = vpop.xlane.xlu0 %1616 }
 0x53a   : > { %9060 = vrcp.f32 %v1617_v41 }
 0x53b   : > { %2575 = vrot.lane.b32.xlu0 %v11124_v40, %s14186_s13 }
 0x53d   : > { %v1623_v10 = vpop.xlane.xlu0 %1622 }
 0x53e   : > { %9062 = vrcp.f32 %v1623_v10 }
 0x53f   : > { %2573 = vrot.lane.b32.xlu0 %v11129_v30, %s14186_s13 }
 0x541   : > { %v9059_v29 = vpop.eup %9058  ;;  %v1621_v54 = vpop.xlane.xlu0 %1620 }
 0x542   : > { %9064 = vrcp.f32 %v1621_v54  ;;  %v11134_v45 = vmul.f32 %v9059_v29, %v10967_v57 }
 0x543   : > { %2571 = vrot.lane.b32.xlu0 %v11137_v63, %s14186_s13 }
 0x544   : > { %6897 = vst [vmem:[%s10447_s10 + $0x170] sm:$0xff] %v11134_v45 }
 0x545   : > { %v1627_v61 = vpop.xlane.xlu0 %1626 }
 0x546   : > { %9066 = vrcp.f32 %v1627_v61  ;;  %v14317_v61 = vld [vmem:[#allocation49_spill] sm:$0xff] }
 0x547   : > { %v9061_v35 = vpop.eup %9060  ;;  %2569 = vrot.lane.b32.xlu0 %v11144_v62, %s14186_s13 }
 0x548   : > { %v1664_v57 = vmul.f32 %v9061_v35, %v10977_v48 }
 0x549   : > { %v1625_v27 = vpop.xlane.xlu0 %1624 }
 0x54a   : > { %9068 = vrcp.f32 %v1625_v27  ;;  %6835 = vst [vmem:[%s10447_s10 + $0x80] sm:$0xff] %v1664_v57  ;;  %7865 = vmatprep.mubr.f32.mxu1 %v1664_v57  ;;  %v14318_v57 = vld [vmem:[#allocation57_spill] sm:$0xff]  ;;  %v14320_v27 = vld [vmem:[#allocation38_spill] sm:$0xff] }
 0x54b   : > { %v9063_v37 = vpop.eup %9062  ;;  %7866 = vmatmul.mubr.f32.vlgmr.msra.gmra.mxu1 %v1665_v42  ;;  %2565 = vrot.lane.b32.xlu0 %v11151_v19, %s14186_s13  ;;  %v14312_v42 = vld [vmem:[#allocation13_spill] sm:$0xff] }
 0x54c   : > { %7946 = vmatpush3.msra.mxu1 %v10830_v58  ;;  %v1667_v22 = vmul.f32 %v9063_v37, %v10981_v1 }
 0x54d   : > { %7947 = vmatprep.subr.mxu1 %v10847_v14  ;;  %v1631_v41 = vpop.xlane.xlu0 %1630 }
 0x54e   : > { %7948 = vmatpush3.msra.mxu1 %v10847_v14  ;;  %9070 = vrcp.f32 %v1631_v41  ;;  %6838 = vst [vmem:[%s10447_s10 + $0x98] sm:$0xff] %v1667_v22  ;;  %v14321_v41 = vld [vmem:[#allocation58_spill] sm:$0xff] }
 0x54f   : > { %v9065_v48 = vpop.eup %9064  ;;  %7949 = vmatprep.subr.mxu1 %v10857_v9  ;;  %2535 = vrot.lane.b32.xlu0 %v14312_v42, %s14186_s13 }
 0x550   : > { %7950 = vmatpush3.msra.mxu1 %v10857_v9  ;;  %v1666_v58 = vmul.f32 %v9065_v48, %v10985_v2  ;;  %v14313_v9 = vld [vmem:[#allocation19_spill] sm:$0xff] }
 0x551   : > { %7951 = vmatprep.subr.mxu1 %v10873_v7  ;;  %v1629_v1 = vpop.xlane.xlu0 %1628 }
 0x552   : > { %7952 = vmatpush3.msra.mxu1 %v10873_v7  ;;  %9072 = vrcp.f32 %v1629_v1  ;;  %6837 = vst [vmem:[%s10447_s10 + $0x90] sm:$0xff] %v1666_v58  ;;  %7868 = vmatprep.mubr.f32.mxu1 %v1666_v58  ;;  %v14323_v58 = vld [vmem:[#allocation50_spill] sm:$0xff] }
 0x553   : > { %v9067_v14 = vpop.eup %9066  ;;  %7953 = vmatprep.subr.mxu1 %v10820_v18  ;;  %7869 = vmatmul.mubr.f32.gmra.mxu1 %v1667_v22 }
 0x554   : > { %7954 = vmatpush3.msra.mxu1 %v10820_v18  ;;  %v1669_v10 = vmul.f32 %v9067_v14, %v10989_v11  ;;  %2539 = vrot.lane.b32.xlu0 %v14313_v9, %s14186_s13  ;;  %v14314_v11 = vld [vmem:[#allocation15_spill] sm:$0xff] }
 0x555   : > { %7955 = vmatprep.subr.mxu1 %v10878_v33  ;;  %v1635_v2 = vpop.xlane.xlu0 %1634 }
 0x556   : > { %7956 = vmatpush3.msra.mxu1 %v10878_v33  ;;  %9074 = vrcp.f32 %v1635_v2  ;;  %6840 = vst [vmem:[%s10447_s10 + $0xa8] sm:$0xff] %v1669_v10 }
 0x557   : > { %v9069_v7 = vpop.eup %9068  ;;  %7957 = vmatprep.subr.mxu1 %v10882_v13 }
 0x558   : > { %7958 = vmatpush3.msra.mxu1 %v10882_v13  ;;  %v1668_v18 = vmul.f32 %v9069_v7, %v10998_v16  ;;  %2543 = vrot.lane.b32.xlu0 %v14314_v11, %s14186_s13  ;;  %v14315_v16 = vld [vmem:[#allocation22_spill] sm:$0xff] }
 0x559   : > { %7959 = vmatprep.subr.mxu1 %v10889_v3  ;;  %v1633_v29 = vpop.xlane.xlu0 %1632 }
 0x55a   : > { %7960 = vmatpush3.msra.mxu1 %v10889_v3  ;;  %9076 = vrcp.f32 %v1633_v29  ;;  %6839 = vst [vmem:[%s10447_s10 + $0xa0] sm:$0xff] %v1668_v18  ;;  %7871 = vmatprep.mubr.f32.mxu1 %v1668_v18 }
 0x55b   : > { %v9071_v33 = vpop.eup %9070  ;;  %7961 = vmatprep.subr.mxu1 %v10895_v26  ;;  %7872 = vmatmul.mubr.f32.gmra.mxu1 %v1669_v10  ;;  %v14324_v10 = vld [vmem:[#allocation60_spill] sm:$0xff] }
 0x55c   : > { %7962 = vmatpush3.msra.mxu1 %v10895_v26  ;;  %v1671_v13 = vmul.f32 %v9071_v33, %v11005_v23  ;;  %2547 = vrot.lane.b32.xlu0 %v14315_v16, %s14186_s13  ;;  %v14316_v23 = vld [vmem:[#allocation17_spill] sm:$0xff]  ;;  %v14326_v33 = vld [vmem:[#allocation43_spill] sm:$0xff] }
 0x55d   : > { %7963 = vmatprep.subr.mxu1 %v10897_v46  ;;  %v1639_v54 = vpop.xlane.xlu0 %1638 }
 0x55e   : > { %7964 = vmatpush3.msra.mxu1 %v10897_v46  ;;  %9078 = vrcp.f32 %v1639_v54  ;;  %6842 = vst [vmem:[%s10447_s10 + $0xb8] sm:$0xff] %v1671_v13 }
 0x55f   : > { %v9073_v3 = vpop.eup %9072  ;;  %7965 = vmatprep.subr.mxu1 %v10901_v12 }
 0x560   : > { %7966 = vmatpush3.msra.mxu1 %v10901_v12  ;;  %v1670_v26 = vmul.f32 %v9073_v3, %v11011_v31  ;;  %2551 = vrot.lane.b32.xlu0 %v14316_v23, %s14186_s13  ;;  %v14319_v31 = vld [vmem:[#allocation25_spill] sm:$0xff]  ;;  %v14327_v3 = vld [vmem:[#allocation40_spill] sm:$0xff] }
 0x561   : > { %7967 = vmatprep.subr.mxu1 %v14317_v61  ;;  %v1637_v35 = vpop.xlane.xlu0 %1636 }
 0x562   : > { %7968 = vmatpush3.msra.mxu1 %v14317_v61  ;;  %9080 = vrcp.f32 %v1637_v35  ;;  %6841 = vst [vmem:[%s10447_s10 + $0xb0] sm:$0xff] %v1670_v26  ;;  %7874 = vmatprep.mubr.f32.mxu1 %v1670_v26  ;;  %v11232_v61 = vld [vmem:[%s10024_s22 + $0x58] sm:$0xff] }
 0x563   : > { %v9075_v46 = vpop.eup %9074  ;;  %7969 = vmatprep.subr.mxu1 %v14318_v57  ;;  %7875 = vmatmul.mubr.f32.gmra.mxu1 %v1671_v13 }
 0x564   : > { %7970 = vmatpush3.msra.mxu1 %v14318_v57  ;;  %v1673_v12 = vmul.f32 %v9075_v46, %v11018_v43  ;;  %2555 = vrot.lane.b32.xlu0 %v14319_v31, %s14186_s13  ;;  %v14322_v43 = vld [vmem:[#allocation21_spill] sm:$0xff]  ;;  %v14328_v46 = vld [vmem:[#allocation42_spill] sm:$0xff] }
 0x565   : > { %7971 = vmatprep.subr.mxu1 %v14320_v27  ;;  %v1643_v37 = vpop.xlane.xlu0 %1642 }
 0x566   : > { %7972 = vmatpush3.msra.mxu1 %v14320_v27  ;;  %9082 = vrcp.f32 %v1643_v37  ;;  %6844 = vst [vmem:[%s10447_s10 + $0xc8] sm:$0xff] %v1673_v12  ;;  %v14330_v27 = vld [vmem:[#allocation51_spill] sm:$0xff]  ;;  %v11247_v37 = vld [vmem:[%s10024_s22 + $0x20] sm:$0xff] }
 0x567   : > { %v9077_v22 = vpop.eup %9076  ;;  %7973 = vmatprep.subr.mxu1 %v14321_v41 }
 0x568   : > { %7974 = vmatpush3.msra.mxu1 %v14321_v41  ;;  %v1672_v48 = vmul.f32 %v9077_v22, %v11026_v44  ;;  %2559 = vrot.lane.b32.xlu0 %v14322_v43, %s14186_s13  ;;  %v14325_v44 = vld [vmem:[#allocation27_spill] sm:$0xff]  ;;  %v14333_v22 = vld [vmem:[#allocation53_spill] sm:$0xff]  ;;  %v11258_v41 = vld [vmem:[%s10024_s22 + $0x10] sm:$0xff] }
 0x569   : > { %7975 = vmatprep.subr.mxu1 %v14323_v58  ;;  %v1641_v1 = vpop.xlane.xlu0 %1640 }
 0x56a   : > { %7976 = vmatpush3.msra.mxu1 %v14323_v58  ;;  %9084 = vrcp.f32 %v1641_v1  ;;  %6843 = vst [vmem:[%s10447_s10 + $0xc0] sm:$0xff] %v1672_v48  ;;  %7877 = vmatprep.mubr.f32.mxu1 %v1672_v48  ;;  %v14334_v48 = vld [vmem:[#allocation55_spill] sm:$0xff]  ;;  %v14335_v58 = vld [vmem:[#allocation62_spill] sm:$0xff]  ;;  %v14336_v1 = vld [vmem:[#allocation52_spill] sm:$0xff] }
 0x56b   : > { %v9079_v14 = vpop.eup %9078  ;;  %8001 = vmatprep.subr.msk.mxu1 %vm716_vm0, %v14324_v10  ;;  %7878 = vmatmul.mubr.f32.gmra.mxu1 %v1673_v12  ;;  %v14329_v12 = vld [vmem:[#allocation35_spill] sm:$0xff] }
 0x56c   : > { %v1675_v2 = vmul.f32 %v9079_v14, %v11037_v5  ;;  %2563 = vrot.lane.b32.xlu0 %v14325_v44, %s14186_s13  ;;  %v11269_v14 = vld [vmem:[%s10024_s22] sm:$0xff] }
 0x56d   : > { %v1647_v7 = vpop.xlane.xlu0 %1646  ;;  %14337 = vst [vmem:[#allocation12_spill] sm:$0xff] %v11269_v14 }
 0x56e   : > { %9086 = vrcp.f32 %v1647_v7  ;;  %6846 = vst [vmem:[%s10447_s10 + $0xd8] sm:$0xff] %v1675_v2  ;;  %v14340_v7 = vld [vmem:[#allocation66_spill] sm:$0xff] }
 0x56f   : > { %v9081_v18 = vpop.eup %9080 }
 0x570   : > { %v1674_v29 = vmul.f32 %v9081_v18, %v11050_v60  ;;  %2997 = vrot.lane.b32.xlu0 %v14326_v33, %s14186_s13  ;;  %v14341_v18 = vld [vmem:[#allocation65_spill] sm:$0xff] }
 0x571   : > { %v1645_v13 = vpop.xlane.xlu0 %1644 }
 0x572   : > { %9088 = vrcp.f32 %v1645_v13  ;;  %6845 = vst [vmem:[%s10447_s10 + $0xd0] sm:$0xff] %v1674_v29  ;;  %7880 = vmatprep.mubr.f32.mxu1 %v1674_v29 }
 0x573   : > { %v9083_v5 = vpop.eup %9082  ;;  %7881 = vmatmul.mubr.f32.gmra.mxu1 %v1675_v2  ;;  %v14339_v2 = vld [vmem:[#allocation59_spill] sm:$0xff] }
 0x574   : > { %v1677_v54 = vmul.f32 %v9083_v5, %v11055_v38  ;;  %2993 = vrot.lane.b32.xlu0 %v14327_v3, %s14186_s13 }
 0x576   : > { %6848 = vst [vmem:[%s10447_s10 + $0xe8] sm:$0xff] %v1677_v54 }
 0x577   : > { %v9085_v26 = vpop.eup %9084 }
 0x578   : > { %v1676_v60 = vmul.f32 %v9085_v26, %v11060_v6  ;;  %2989 = vrot.lane.b32.xlu0 %v11232_v61, %s14186_s13 }
 0x57a   : > { %6847 = vst [vmem:[%s10447_s10 + $0xe0] sm:$0xff] %v1676_v60  ;;  %7883 = vmatprep.mubr.f32.mxu1 %v1676_v60 }
 0x57b   : > { %v9087_v35 = vpop.eup %9086  ;;  %7884 = vmatmul.mubr.f32.gmra.mxu1 %v1677_v54 }
 0x57c   : > { %v1679_v38 = vmul.f32 %v9087_v35, %v11065_v24  ;;  %2983 = vrot.lane.b32.xlu0 %v14328_v46, %s14186_s13  ;;  %v14331_v24 = vld [vmem:[#allocation54_spill] sm:$0xff] }
 0x57e   : > { %6850 = vst [vmem:[%s10447_s10 + $0xf8] sm:$0xff] %v1679_v38 }
 0x57f   : > { %v9089_v57 = vpop.eup %9088 }
 0x580   : > { %v1678_v6 = vmul.f32 %v9089_v57, %v11070_v4  ;;  %2979 = vrot.lane.b32.xlu0 %v14329_v12, %s14186_s13  ;;  %v14332_v4 = vld [vmem:[#allocation61_spill] sm:$0xff] }
 0x582   : > { %6849 = vst [vmem:[%s10447_s10 + $0xf0] sm:$0xff] %v1678_v6  ;;  %7886 = vmatprep.mubr.f32.mxu1 %v1678_v6 }
 0x583   : > { %7887 = vmatmul.mubr.f32.gmra.mxu1 %v1679_v38 }
 0x584   : > { %7977 = vmatprep.mubr.f32.mxu1 %v14330_v27  ;;  %2975 = vrot.lane.b32.xlu0 %v11247_v37, %s14186_s13 }
 0x587   : > { %7978 = vmatmul.mubr.f32.vlgmr.msra.gmra.mxu1 %v14331_v24 }
 0x588   : > { %8002 = vmatpush3.xpose.msk.msra.mxu1 %vm716_vm0, %v14324_v10  ;;  %7980 = vmatprep.mubr.f32.mxu1 %v14332_v4  ;;  %v14338_v10 = vld [vmem:[#allocation63_spill] sm:$0xff] }
 0x589   : > { %8003 = vmatprep.subr.msk.mxu1 %vm716_vm0, %v14333_v22  ;;  %2971 = vrot.lane.b32.xlu0 %v11258_v41, %s14186_s13 }
 0x58b   : > { %7981 = vmatmul.mubr.f32.gmra.mxu1 %v14334_v48  ;;  %v11339_v48 = vld [vmem:[%s9848_s18 + $0x78] sm:$0xff] }
 0x58c   : > { %8004 = vmatpush3.xpose.msk.msra.mxu1 %vm716_vm0, %v14333_v22  ;;  %7983 = vmatprep.mubr.f32.mxu1 %v14335_v58  ;;  %v11333_v22 = vld [vmem:[%s9848_s18 + $0x70] sm:$0xff]  ;;  %14343 = vst [vmem:[#allocation20_spill] sm:$0xff] %v11339_v48 }
 0x58d   : > { %8005 = vmatprep.subr.msk.mxu1 %vm716_vm0, %v14336_v1  ;;  %2967 = vrot.lane.b32.xlu0 %v11269_v14, %s14186_s13  ;;  %14342 = vst [vmem:[#allocation14_spill] sm:$0xff] %v11333_v22 }
 0x58e   : > { %3222 = vrot.lane.b32.xlu1 %v11339_v48, %s14180_s11 }
 0x58f   : > { %7984 = vmatmul.mubr.f32.gmra.mxu1 %v14338_v10  ;;  %v11351_v10 = vld [vmem:[%s9848_s18 + $0x60] sm:$0xff] }
 0x590   : > { %8006 = vmatpush3.xpose.msk.msra.mxu1 %vm716_vm0, %v14336_v1  ;;  %7986 = vmatprep.mubr.f32.mxu1 %v14339_v2  ;;  %v11345_v1 = vld [vmem:[%s9848_s18 + $0x68] sm:$0xff]  ;;  %14345 = vst [vmem:[#allocation23_spill] sm:$0xff] %v11351_v10 }
 0x591   : > { %8007 = vmatprep.subr.msk.mxu1 %vm716_vm0, %v14340_v7  ;;  %3220 = vrot.lane.b32.xlu0 %v11333_v22, %s14180_s11  ;;  %14344 = vst [vmem:[#allocation16_spill] sm:$0xff] %v11345_v1 }
 0x592   : > { %3216 = vrot.lane.b32.xlu1 %v11351_v10, %s14180_s11 }
 0x593   : > { %7987 = vmatmul.mubr.f32.gmra.mxu1 %v11024_v36  ;;  %v2584_v36 = vpop.permute.xlu0 %2583 }
 0x594   : > { %8008 = vmatpush3.xpose.msk.msra.mxu1 %vm716_vm0, %v14340_v7  ;;  %7989 = vmatprep.mubr.f32.mxu1 %v11035_v15  ;;  %v11357_v7 = vld [vmem:[%s9848_s18 + $0x58] sm:$0xff] }
 0x595   : > { %8009 = vmatprep.subr.msk.mxu1 %vm716_vm0, %v14341_v18  ;;  %3218 = vrot.lane.b32.xlu0 %v11345_v1, %s14180_s11  ;;  %14346 = vst [vmem:[#allocation18_spill] sm:$0xff] %v11357_v7 }
 0x597   : > { %7990 = vmatmul.mubr.f32.gmra.mxu1 %v11046_v59 }
 0x598   : > { %8010 = vmatpush3.xpose.msk.msra.mxu1 %vm716_vm0, %v14341_v18  ;;  %7992 = vmatprep.mubr.f32.mxu1 %v10972_v28 }
 0x599   : > { %8011 = vmatprep.subr.msk.mxu1 %vm716_vm0, %v11081_v52  ;;  %3214 = vrot.lane.b32.xlu0 %v11357_v7, %s14180_s11 }
 0x59b   : > { %7993 = vmatmul.mubr.f32.gmra.mxu1 %v11099_v39  ;;  %v2578_v39 = vpop.permute.xlu1 %2577 }
 0x59c   : > { %8012 = vmatpush3.xpose.msk.msra.mxu1 %vm716_vm0, %v11081_v52  ;;  %7995 = vmatprep.mubr.f32.mxu1 %v11106_v56 }
 0x59d   : > { %8013 = vmatprep.subr.msk.mxu1 %vm716_vm0, %v2584_v36  ;;  %3210 = vrot.lane.b32.xlu0 %v11090_v21, %s14180_s11 }
 0x59f   : > { %v2568_v29 = vpop.permute.xlu1 %2567 }
 0x5a0   : > { %8014 = vmatpush3.xpose.msk.msra.mxu1 %vm716_vm0, %v2584_v36  ;;  %v14347_v36 = vld [vmem:[#allocation56_spill] sm:$0xff] }
 0x5a1   : > { %8015 = vmatprep.subr.msk.mxu1 %vm716_vm0, %v11116_v50  ;;  %3212 = vrot.lane.b32.xlu1 %v14347_v36, %s14180_s11 }
 0x5a2   : > { %3206 = vrot.lane.b32.xlu0 %v11119_v53, %s14180_s11 }
 0x5a3   : > { %v2534_v54 = vpop.permute.xlu1 %2533 }
 0x5a4   : > { %8016 = vmatpush3.xpose.msk.msra.mxu1 %vm716_vm0, %v11116_v50 }
 0x5a6   : > { %v2286_v28 = vpop.xlane.xlu0 %2285 }
 0x5a7   : > { %9090 = vrcp.f32 %v2286_v28  ;;  %v2538_v26 = vpop.permute.xlu1 %2537  ;;  %v14348_v28 = vld [vmem:[#allocation64_spill] sm:$0xff] }
 0x5a8   : > { %3208 = vrot.lane.b32.xlu1 %v14348_v28, %s14180_s11 }
 0x5aa   : > { %v2290_v15 = vpop.xlane.xlu0 %2289 }
 0x5ab   : > { %9092 = vrcp.f32 %v2290_v15  ;;  %v2542_v60 = vpop.permute.xlu1 %2541 }
 0x5ae   : > { %v2580_v59 = vpop.permute.xlu0 %2579 }
 0x5af   : > { %8017 = vmatprep.subr.msk.mxu1 %vm716_vm0, %v2580_v59  ;;  %v2546_v38 = vpop.permute.xlu1 %2545 }
 0x5b0   : > { %8018 = vmatpush3.xpose.msk.msra.mxu1 %vm716_vm0, %v2580_v59 }
 0x5b1   : > { %8019 = vmatprep.subr.msk.mxu1 %vm716_vm0, %v2578_v39 }
 0x5b2   : > { %v2576_v52 = vpop.permute.xlu0 %2575 }
 0x5b3   : > { %v2550_v6 = vpop.permute.xlu1 %2549 }
 0x5b4   : > { %v9091_v56 = vpop.eup %9090  ;;  %8020 = vmatpush3.xpose.msk.msra.mxu1 %vm716_vm0, %v2578_v39 }
 0x5b5   : > { %v2320_v50 = vmul.f32 %v9091_v56, %v11110_v51  ;;  %8021 = vmatprep.subr.msk.mxu1 %vm716_vm0, %v2576_v52 }
 0x5b6   : > { %v2574_v33 = vpop.permute.xlu0 %2573 }
 0x5b7   : > { %6896 = vst [vmem:[%s10447_s10 + $0x168] sm:$0xff] %v2320_v50  ;;  %7996 = vmatmul.mubr.f32.gmra.mxu1 %v2320_v50  ;;  %v2554_v27 = vpop.permute.xlu1 %2553 }
 0x5b8   : > { %v9093_v13 = vpop.eup %9092  ;;  %7998 = vmatprep.mubr.f32.mxu1 %v11134_v45  ;;  %8022 = vmatpush3.xpose.msk.msra.mxu1 %vm716_vm0, %v2576_v52 }
 0x5b9   : > { %v2322_v5 = vmul.f32 %v9093_v13, %v11113_v34  ;;  %8023 = vmatprep.subr.msk.mxu1 %vm716_vm0, %v2574_v33 }
 0x5ba   : > { %v2572_v3 = vpop.permute.xlu0 %2571 }
 0x5bb   : > { %6898 = vst [vmem:[%s10447_s10 + $0x178] sm:$0xff] %v2322_v5  ;;  %7999 = vmatmul.mubr.f32.gmra.mxu1 %v2322_v5  ;;  %v2558_v4 = vpop.permute.xlu1 %2557 }
 0x5bc   : > { %8024 = vmatpush3.xpose.msk.msra.mxu1 %vm716_vm0, %v2574_v33  ;;  %8033 = vmatprep.mubr.msk.f32.mxu1 %vm716_vm0, %v2534_v54 }
 0x5bd   : > { %8025 = vmatprep.subr.msk.mxu1 %vm716_vm0, %v2572_v3 }
 0x5be   : > { %v2570_v51 = vpop.permute.xlu0 %2569 }
 0x5bf   : > { %v2562_v2 = vpop.permute.xlu1 %2561 }
 0x5c0   : > { %8026 = vmatpush3.xpose.msk.msra.mxu1 %vm716_vm0, %v2572_v3 }
 0x5c1   : > { %8027 = vmatprep.subr.msk.mxu1 %vm716_vm0, %v2570_v51 }
 0x5c2   : > { %v2566_v45 = vpop.permute.xlu0 %2565 }
 0x5c3   : > { %v2996_v3 = vpop.permute.xlu1 %2995 }
 0x5c4   : > { %8028 = vmatpush3.xpose.msk.msra.mxu1 %vm716_vm0, %v2570_v51 }
 0x5c5   : > { %8029 = vmatprep.subr.msk.mxu1 %vm716_vm0, %v2568_v29 }
 0x5c6   : > { %v2536_v34 = vpop.permute.xlu0 %2535 }
 0x5c8   : > { %8030 = vmatpush3.xpose.msk.msra.mxu1 %vm716_vm0, %v2568_v29 }
 0x5c9   : > { %8031 = vmatprep.subr.msk.mxu1 %vm716_vm0, %v2566_v45 }
 0x5ca   : > { %v2540_v35 = vpop.permute.xlu0 %2539 }
 0x5cc   : > { %8032 = vmatpush3.xpose.msk.msra.mxu1 %vm716_vm0, %v2566_v45 }
 0x5ce   : > { %v2544_v46 = vpop.permute.xlu0 %2543 }
 0x5cf   : > { %8034 = vmatmul.mubr.msk.f32.vlgmr.msra.gmra.mxu1 %vm716_vm0, %v2536_v34 }
 0x5d0   : > { %8036 = vmatprep.mubr.msk.f32.mxu1 %vm716_vm0, %v2538_v26 }
 0x5d2   : > { %v2548_v57 = vpop.permute.xlu0 %2547 }
 0x5d3   : > { %8037 = vmatmul.mubr.msk.f32.gmra.mxu1 %vm716_vm0, %v2540_v35 }
 0x5d4   : > { %8039 = vmatprep.mubr.msk.f32.mxu1 %vm716_vm0, %v2542_v60  ;;  %v2992_v60 = vpop.permute.xlu1 %2991 }
 0x5d6   : > { %v2552_v12 = vpop.permute.xlu0 %2551 }
 0x5d7   : > { %8040 = vmatmul.mubr.msk.f32.gmra.mxu1 %vm716_vm0, %v2544_v46 }
 0x5d8   : > { %8042 = vmatprep.mubr.msk.f32.mxu1 %vm716_vm0, %v2546_v38  ;;  %v2988_v38 = vpop.permute.xlu1 %2987 }
 0x5da   : > { %v2556_v24 = vpop.permute.xlu0 %2555 }
 0x5db   : > { %8043 = vmatmul.mubr.msk.f32.gmra.mxu1 %vm716_vm0, %v2548_v57 }
 0x5dc   : > { %8045 = vmatprep.mubr.msk.f32.mxu1 %vm716_vm0, %v2550_v6 }
 0x5de   : > { %v2560_v58 = vpop.permute.xlu0 %2559 }
 0x5df   : > { %8046 = vmatmul.mubr.msk.f32.gmra.mxu1 %vm716_vm0, %v2552_v12  ;;  %v2986_v12 = vpop.permute.xlu1 %2985 }
 0x5e0   : > { %8048 = vmatprep.mubr.msk.f32.mxu1 %vm716_vm0, %v2554_v27 }
 0x5e2   : > { %v2564_v18 = vpop.permute.xlu0 %2563 }
 0x5e3   : > { %8049 = vmatmul.mubr.msk.f32.gmra.mxu1 %vm716_vm0, %v2556_v24  ;;  %v2982_v24 = vpop.permute.xlu1 %2981 }
 0x5e4   : > { %8051 = vmatprep.mubr.msk.f32.mxu1 %vm716_vm0, %v2558_v4 }
 0x5e6   : > { %v2998_v54 = vpop.permute.xlu0 %2997 }
 0x5e7   : > { %8052 = vmatmul.mubr.msk.f32.gmra.mxu1 %vm716_vm0, %v2560_v58  ;;  %8057 = vmatprep.subr.mxu0 %v2998_v54  ;;  %v2978_v36 = vpop.permute.xlu1 %2977 }
 0x5e8   : > { %8054 = vmatprep.mubr.msk.f32.mxu1 %vm716_vm0, %v2562_v2  ;;  %8058 = vmatpush3.msra.mxu0 %v2998_v54 }
 0x5e9   : > { %8059 = vmatprep.subr.mxu0 %v2996_v3 }
 0x5ea   : > { %v2994_v34 = vpop.permute.xlu0 %2993  ;;  %8060 = vmatpush3.msra.mxu0 %v2996_v3 }
 0x5eb   : > { %8055 = vmatmul.mubr.msk.f32.gmra.mxu1 %vm716_vm0, %v2564_v18  ;;  %8061 = vmatprep.subr.mxu0 %v2994_v34 }
 0x5ec   : > { %8062 = vmatpush3.msra.mxu0 %v2994_v34 }
 0x5ed   : > { %8063 = vmatprep.subr.mxu0 %v2992_v60 }
 0x5ee   : > { %v2990_v35 = vpop.permute.xlu0 %2989  ;;  %8064 = vmatpush3.msra.mxu0 %v2992_v60 }
 0x5ef   : > { %8065 = vmatprep.subr.mxu0 %v2990_v35 }
 0x5f0   : > { %8066 = vmatpush3.msra.mxu0 %v2990_v35  ;;  %v2974_v35 = vpop.permute.xlu1 %2973 }
 0x5f1   : > { %8067 = vmatprep.subr.mxu0 %v2988_v38 }
 0x5f2   : > { %8068 = vmatpush3.msra.mxu0 %v2988_v38  ;;  %v2984_v27 = vpop.permute.xlu0 %2983 }
 0x5f3   : > { %8069 = vmatprep.subr.mxu0 %v2986_v12 }
 0x5f4   : > { %8070 = vmatpush3.msra.mxu0 %v2986_v12 }
 0x5f5   : > { %8071 = vmatprep.subr.mxu0 %v2984_v27 }
 0x5f6   : > { %8072 = vmatpush3.msra.mxu0 %v2984_v27  ;;  %v2980_v4 = vpop.permute.xlu0 %2979 }
 0x5f7   : > { %8073 = vmatprep.subr.mxu0 %v2982_v24 }
 0x5f8   : > { %8074 = vmatpush3.msra.mxu0 %v2982_v24 }
 0x5f9   : > { %8075 = vmatprep.subr.mxu0 %v2980_v4 }
 0x5fa   : > { %8076 = vmatpush3.msra.mxu0 %v2980_v4  ;;  %v2976_v28 = vpop.permute.xlu0 %2975  ;;  %v2970_v4 = vpop.permute.xlu1 %2969 }
 0x5fb   : > { %8077 = vmatprep.subr.mxu0 %v2978_v36 }
 0x5fc   : > { %8078 = vmatpush3.msra.mxu0 %v2978_v36 }
 0x5fd   : > { %8079 = vmatprep.subr.mxu0 %v2976_v28 }
 0x5fe   : > { %8080 = vmatpush3.msra.mxu0 %v2976_v28  ;;  %v2972_v12 = vpop.permute.xlu0 %2971 }
 0x5ff   : > { %8081 = vmatprep.subr.mxu0 %v2974_v35 }
 0x600   : > { %8082 = vmatpush3.msra.mxu0 %v2974_v35  ;;  %v11441_v5 = vpop.permute.xlu1 %3222 }
 0x601   : > { %8083 = vmatprep.subr.mxu0 %v2972_v12 }
 0x602   : > { %8084 = vmatpush3.msra.mxu0 %v2972_v12  ;;  %v2968_v28 = vpop.permute.xlu0 %2967 }
 0x603   : > { %8085 = vmatprep.subr.mxu0 %v2970_v4 }
 0x604   : > { %8086 = vmatpush3.msra.mxu0 %v2970_v4 }
 0x605   : > { %8087 = vmatprep.subr.mxu0 %v2968_v28 }
 0x606   : > { %8088 = vmatpush3.msra.mxu0 %v2968_v28 }
 0x607   : > { %8113 = vmatprep.subr.msk.mxu0 %vm716_vm0, %v11441_v5 }
 0x60b   : > { %v11371_v15 = vpop.f32.mrf.mxu1 }
 0x60c   : > { %14349 = vst [vmem:[#allocation26_spill] sm:$0xff] %v11371_v15 }
 0x60d   : > { %v11373_v59 = vpop.f32.mrf.mxu1 }
 0x60e   : > { %14350 = vst [vmem:[#allocation24_spill] sm:$0xff] %v11373_v59 }
 0x613   : > { %v11377_v52 = vpop.f32.mrf.mxu1 }
 0x614   : > { %14351 = vst [vmem:[#allocation13_spill] sm:$0xff] %v11377_v52 }
 0x615   : > { %v11379_v56 = vpop.f32.mrf.mxu1 }
 0x616   : > { %14352 = vst [vmem:[#allocation19_spill] sm:$0xff] %v11379_v56 }
 0x61b   : > { %v11383_v50 = vpop.f32.mrf.mxu1 }
 0x61c   : > { %14353 = vst [vmem:[#allocation15_spill] sm:$0xff] %v11383_v50 }
 0x61d   : > { %v11385_v29 = vpop.f32.mrf.mxu1 }
 0x61e   : > { %14354 = vst [vmem:[#allocation22_spill] sm:$0xff] %v11385_v29 }
 0x623   : > { %v11389_v33 = vpop.f32.mrf.mxu1 }
 0x624   : > { %14355 = vst [vmem:[#allocation17_spill] sm:$0xff] %v11389_v33 }
 0x625   : > { %v11391_v13 = vpop.f32.mrf.mxu1 }
 0x626   : > { %14356 = vst [vmem:[#allocation49_spill] sm:$0xff] %v11391_v13  ;;  %v11518_v13 = vpop.permute.xlu1 %3216 }
 0x62b   : > { %v11395_v51 = vpop.f32.mrf.mxu1 }
 0x62c   : > { %14357 = vst [vmem:[#allocation57_spill] sm:$0xff] %v11395_v51 }
 0x62d   : > { %v11397_v45 = vpop.f32.mrf.mxu1 }
 0x62e   : > { %14358 = vst [vmem:[#allocation25_spill] sm:$0xff] %v11397_v45 }
 0x633   : > { %v11401_v46 = vpop.f32.mrf.mxu1 }
 0x634   : > { %14359 = vst [vmem:[#allocation38_spill] sm:$0xff] %v11401_v46 }
 0x635   : > { %v11403_v57 = vpop.f32.mrf.mxu1 }
 0x636   : > { %14360 = vst [vmem:[#allocation58_spill] sm:$0xff] %v11403_v57 }
 0x63b   : > { %v11407_v58 = vpop.f32.mrf.mxu1 }
 0x63c   : > { %14361 = vst [vmem:[#allocation21_spill] sm:$0xff] %v11407_v58 }
 0x63d   : > { %v11409_v2 = vpop.f32.mrf.mxu1 }
 0x63e   : > { %14362 = vst [vmem:[#allocation50_spill] sm:$0xff] %v11409_v2 }
 0x643   : > { %v11413_v54 = vpop.f32.mrf.mxu1 }
 0x644   : > { %14363 = vst [vmem:[#allocation60_spill] sm:$0xff] %v11413_v54 }
 0x645   : > { %v11415_v3 = vpop.f32.mrf.mxu1 }
 0x646   : > { %14364 = vst [vmem:[#allocation27_spill] sm:$0xff] %v11415_v3 }
 0x647   : > { %v11419_v60 = vpop.f32.mrf.mxu1 }
 0x648   : > { %14365 = vst [vmem:[#allocation43_spill] sm:$0xff] %v11419_v60 }
 0x649   : > { %v11421_v38 = vpop.f32.mrf.mxu1 }
 0x64a   : > { %14366 = vst [vmem:[#allocation40_spill] sm:$0xff] %v11421_v38 }
 0x64b   : > { %v11425_v24 = vpop.f32.mrf.mxu1 }
 0x64c   : > { %14367 = vst [vmem:[#allocation42_spill] sm:$0xff] %v11425_v24 }
 0x64d   : > { %v11427_v36 = vpop.f32.mrf.mxu1 }
 0x64e   : > { %14368 = vst [vmem:[#allocation35_spill] sm:$0xff] %v11427_v36 }
 0x64f   : > { %v11431_v18 = vpop.f32.mrf.mxu1 }
 0x650   : > { %14369 = vst [vmem:[#allocation51_spill] sm:$0xff] %v11431_v18 }
 0x651   : > { %v11433_v35 = vpop.f32.mrf.mxu1 }
 0x652   : > { %14370 = vst [vmem:[#allocation54_spill] sm:$0xff] %v11433_v35 }
 0x653   : > { %v11437_v26 = vpop.f32.mrf.mxu1 }
 0x654   : > { %14371 = vst [vmem:[#allocation61_spill] sm:$0xff] %v11437_v26 }
 0x655   : > { %v11439_v12 = vpop.f32.mrf.mxu1 }
 0x656   : > { %14372 = vst [vmem:[#allocation53_spill] sm:$0xff] %v11439_v12  ;;  %v11522_v12 = vpop.permute.xlu1 %3212 }
 0x657   : > { %v11447_v53 = vpop.f32.mrf.mxu1 }
 0x658   : > { %14373 = vst [vmem:[#allocation55_spill] sm:$0xff] %v11447_v53  ;;  %v11512_v53 = vpop.permute.xlu0 %3220 }
 0x659   : > { %v11449_v28 = vpop.f32.mrf.mxu1 }
 0x65a   : > { %14374 = vst [vmem:[#allocation62_spill] sm:$0xff] %v11449_v28  ;;  %v11526_v35 = vpop.permute.xlu1 %3208 }
 0x65b   : > { %v11453_v6 = vpop.f32.mrf.mxu1 }
 0x65c   : > { %14375 = vst [vmem:[#allocation52_spill] sm:$0xff] %v11453_v6  ;;  %v11514_v45 = vpop.permute.xlu0 %3218 }
 0x65d   : > { %v11455_v34 = vpop.f32.mrf.mxu1 }
 0x65e   : > { %14376 = vst [vmem:[#allocation63_spill] sm:$0xff] %v11455_v34 }
 0x660   : > { %v11516_v51 = vpop.permute.xlu0 %3214 }
 0x664   : > { %v11520_v33 = vpop.permute.xlu0 %3210 }
 0x668   : > { %v11524_v26 = vpop.permute.xlu0 %3206 }
 0x677   : > { %v11459_v27 = vpop.f32.mrf.mxu1 }
 0x678   : > { %14377 = vst [vmem:[#allocation59_spill] sm:$0xff] %v11459_v27 }
 0x679   : > { %v11461_v4 = vpop.f32.mrf.mxu1 }
 0x67a   : > { %14378 = vst [vmem:[#allocation66_spill] sm:$0xff] %v11461_v4 }
 0x67b   : > { %v11465_v54 = vpop.f32.mrf.mxu1 }
 0x67c   : > { %14379 = vst [vmem:[#allocation65_spill] sm:$0xff] %v11465_v54 }
 0x67d   : > { %v11467_v2 = vpop.f32.mrf.mxu1 }
 0x67e   : > { %14380 = vst [vmem:[#allocation56_spill] sm:$0xff] %v11467_v2 }
 0x68f   : > { %v8035_v58 = vpop.f32.mrf.mxu1 }
 0x690   : > { %2808 = vmax.xlane.f32.xlu0 %v8035_v58 }
 0x691   : > { %v2727_v57 = vpop.f32.mrf.mxu1 }
 0x692   : > { %2806 = vmax.xlane.f32.xlu1 %v2727_v57 }
 0x693   : > { %v8038_v3 = vpop.f32.mrf.mxu1 }
 0x695   : > { %v2737_v39 = vpop.f32.mrf.mxu1 }
 0x697   : > { %v8041_v4 = vpop.f32.mrf.mxu1 }
 0x699   : > { %v11477_v27 = vpop.f32.mrf.mxu1 }
 0x69b   : > { %v11479_v46 = vpop.f32.mrf.mxu1 }
 0x69d   : > { %v11481_v21 = vpop.f32.mrf.mxu1 }
 0x69f   : > { %v11483_v2 = vpop.f32.mrf.mxu1 }
 0x6a1   : > { %v11485_v54 = vpop.f32.mrf.mxu1 }
 0x6a3   : > { %3204 = vrot.lane.b32.xlu1 %v10992_v32, %s14180_s11  ;;  %v11487_v32 = vpop.f32.mrf.mxu1 }
 0x6a6   : > { %3202 = vrot.lane.b32.xlu0 %v11124_v40, %s14180_s11  ;;  %v11490_v40 = vpop.f32.mrf.mxu1 }
 0x6aa   : > { %3200 = vrot.lane.b32.xlu0 %v11129_v30, %s14180_s11  ;;  %v11494_v30 = vpop.f32.mrf.mxu1 }
 0x6ac   : > { %v11498_v34 = vpop.f32.mrf.mxu1 }
 0x6ae   : > { %v11502_v6 = vpop.f32.mrf.mxu1 }
 0x6b0   : > { %v11506_v28 = vpop.f32.mrf.mxu1 }
 0x6c7   : > { %2812 = vmax.xlane.f32.xlu1 %v8038_v3 }
 0x6c9   : > { %2810 = vmax.xlane.f32.xlu0 %v2737_v39 }
 0x6cb   : > { %2816 = vmax.xlane.f32.xlu1 %v8041_v4 }
 0x6cd   : > { %2814 = vmax.xlane.f32.xlu0 %v11477_v27 }
 0x6cf   : > { %2820 = vmax.xlane.f32.xlu1 %v11479_v46 }
 0x6d1   : > { %2818 = vmax.xlane.f32.xlu0 %v11481_v21 }
 0x6d3   : > { %2824 = vmax.xlane.f32.xlu1 %v11483_v2 }
 0x6d5   : > { %2822 = vmax.xlane.f32.xlu0 %v11485_v54 }
 0x6d7   : > { %2828 = vmax.xlane.f32.xlu1 %v11487_v32 }
 0x6d9   : > { %2826 = vmax.xlane.f32.xlu0 %v11490_v40 }
 0x6db   : > { %2832 = vmax.xlane.f32.xlu1 %v11494_v30 }
 0x6dd   : > { %2830 = vmax.xlane.f32.xlu0 %v11498_v34 }
 0x6df   : > { %2836 = vmax.xlane.f32.xlu1 %v11502_v6 }
 0x6e1   : > { %2834 = vmax.xlane.f32.xlu0 %v11506_v28 }
 0x6f7   : > { %3198 = vrot.lane.b32.xlu0 %v11137_v63, %s14180_s11 }
 0x719   : > { %v2809_v18 = vpop.xlane.xlu0 %2808 }
 0x71a   : > { %v2839_v29 = vsub.f32 %v8035_v58, %v2809_v18 }
 0x71b   : > { %v2807_v50 = vpop.xlane.xlu1 %2806 }
 0x71c   : > { %v2856_v63 = vmul.f32 1.442695, %v2839_v29  ;;  %v2838_v56 = vsub.f32 %v2727_v57, %v2807_v50 }
 0x71d   : > { %v11534_v59 = vpop.permute.xlu0 %3202 }
 0x71e   : > { %9094 = vpow2.f32 %v2856_v63  ;;  %v2854_v52 = vmul.f32 1.442695, %v2838_v56 }
 0x71f   : > { %v11536_v15 = vpop.permute.xlu1 %3204 }
 0x720   : > { %9096 = vpow2.f32 %v2854_v52 }
 0x721   : > { %v11538_v38 = vpop.permute.xlu0 %3200 }
 0x72b   : > { %v11528_v36 = vpop.eup %9094 }
 0x72c   : > { %2888 = vadd.xlane.f32.xlu0 %v11528_v36 }
 0x72d   : > { %v11531_v24 = vpop.eup %9096 }
 0x72e   : > { %2886 = vadd.xlane.f32.xlu1 %v11531_v24 }
 0x750   : > { %v2813_v58 = vpop.xlane.xlu1 %2812 }
 0x751   : > { %v2841_v29 = vsub.f32 %v8038_v3, %v2813_v58 }
 0x752   : > { %v2811_v50 = vpop.xlane.xlu0 %2810 }
 0x753   : > { %v2860_v57 = vmul.f32 1.442695, %v2841_v29  ;;  %v2840_v56 = vsub.f32 %v2737_v39, %v2811_v50 }
 0x754   : > { %v2817_v52 = vpop.xlane.xlu1 %2816 }
 0x755   : > { %9098 = vpow2.f32 %v2860_v57  ;;  %v2858_v18 = vmul.f32 1.442695, %v2840_v56  ;;  %v2843_v63 = vsub.f32 %v8041_v4, %v2817_v52 }
 0x756   : > { %v2815_v60 = vpop.xlane.xlu0 %2814 }
 0x757   : > { %9100 = vpow2.f32 %v2858_v18  ;;  %v2864_v7 = vmul.f32 1.442695, %v2843_v63  ;;  %v2842_v10 = vsub.f32 %v11477_v27, %v2815_v60 }
 0x758   : > { %v2821_v1 = vpop.xlane.xlu1 %2820 }
 0x759   : > { %v2862_v48 = vmul.f32 1.442695, %v2842_v10  ;;  %9102 = vpow2.f32 %v2864_v7  ;;  %v2845_v14 = vsub.f32 %v11479_v46, %v2821_v1  ;;  %v11562_v7 = vld [vmem:[%s9848_s18 + $0x8] sm:$0xff] }
 0x75a   : > { %v2819_v22 = vpop.xlane.xlu0 %2818  ;;  %14382 = vst [vmem:[#allocation67_spill] sm:$0xff] %v11562_v7 }
 0x75b   : > { %v2844_v3 = vsub.f32 %v11481_v21, %v2819_v22  ;;  %9104 = vpow2.f32 %v2862_v48  ;;  %v2868_v39 = vmul.f32 1.442695, %v2845_v14 }
 0x75c   : > { %v2825_v48 = vpop.xlane.xlu1 %2824 }
 0x75d   : > { %v2866_v58 = vmul.f32 1.442695, %v2844_v3  ;;  %v2847_v57 = vsub.f32 %v11483_v2, %v2825_v48 }
 0x75e   : > { %v2823_v21 = vpop.xlane.xlu0 %2822 }
 0x75f   : > { %9106 = vpow2.f32 %v2866_v58  ;;  %v2872_v63 = vmul.f32 1.442695, %v2847_v57  ;;  %v2846_v3 = vsub.f32 %v11485_v54, %v2823_v21 }
 0x760   : > { %9108 = vpow2.f32 %v2868_v39  ;;  %v2829_v46 = vpop.xlane.xlu1 %2828 }
 0x762   : > { %v11543_v29 = vpop.eup %9098  ;;  %v2827_v60 = vpop.xlane.xlu0 %2826 }
 0x763   : > { %2892 = vadd.xlane.f32.xlu0 %v11543_v29  ;;  %v2848_v50 = vsub.f32 %v11490_v40, %v2827_v60 }
 0x764   : > { %v11546_v4 = vpop.eup %9100  ;;  %v2833_v27 = vpop.xlane.xlu1 %2832 }
 0x765   : > { %2890 = vadd.xlane.f32.xlu1 %v11546_v4  ;;  %v2874_v56 = vmul.f32 1.442695, %v2848_v50  ;;  %v2851_v52 = vsub.f32 %v11494_v30, %v2833_v27 }
 0x766   : > { %v11549_v10 = vpop.eup %9102 }
 0x767   : > { %9110 = vpow2.f32 %v2874_v56  ;;  %v2880_v58 = vmul.f32 1.442695, %v2851_v52 }
 0x768   : > { %v11552_v1 = vpop.eup %9104  ;;  %v2837_v18 = vpop.xlane.xlu1 %2836  ;;  %9112 = vpow2.f32 %v2872_v63 }
 0x769   : > { %2896 = vadd.xlane.f32.xlu1 %v11549_v10  ;;  %v2853_v39 = vsub.f32 %v11502_v6, %v2837_v18  ;;  %9114 = vpow2.f32 %v2880_v58 }
 0x76b   : > { %v2884_v40 = vmul.f32 1.442695, %v2853_v39 }
 0x76c   : > { %v11554_v22 = vpop.eup %9106 }
 0x76d   : > { %2898 = vadd.xlane.f32.xlu0 %v11554_v22  ;;  %2894 = vadd.xlane.f32.xlu1 %v11552_v1  ;;  %v11558_v14 = vpop.eup %9108 }
 0x76e   : > { %14381 = vst [vmem:[#allocation64_spill] sm:$0xff] %v11558_v14 }
 0x771   : > { %2900 = vadd.xlane.f32.xlu1 %v11558_v14  ;;  %v2849_v14 = vsub.f32 %v11487_v32, %v2829_v46 }
 0x773   : > { %v2876_v2 = vmul.f32 1.442695, %v2849_v14 }
 0x774   : > { %v11576_v21 = vpop.eup %9110 }
 0x775   : > { %v11579_v6 = vpop.eup %9112 }
 0x776   : > { %v11581_v46 = vpop.eup %9114 }
 0x782   : > { %3194 = vrot.lane.b32.xlu1 %v11562_v7, %s14180_s11  ;;  %v2831_v7 = vpop.xlane.xlu0 %2830 }
 0x783   : > { %3196 = vrot.lane.b32.xlu0 %v11144_v62, %s14180_s11  ;;  %v2870_v62 = vmul.f32 1.442695, %v2846_v3  ;;  %v2850_v48 = vsub.f32 %v11498_v34, %v2831_v7 }
 0x785   : > { %9116 = vpow2.f32 %v2870_v62  ;;  %v2878_v60 = vmul.f32 1.442695, %v2850_v48  ;;  %v11742_v62 = vld [vmem:[%s10024_s22 + $0x28] sm:$0xff]  ;;  %v11754_v48 = vld [vmem:[%s10024_s22 + $0x18] sm:$0xff] }
 0x786   : > { %9118 = vpow2.f32 %v2884_v40  ;;  %v2835_v30 = vpop.xlane.xlu0 %2834  ;;  %14386 = vst [vmem:[#allocation71_spill] sm:$0xff] %v11742_v62  ;;  %14387 = vst [vmem:[#allocation72_spill] sm:$0xff] %v11754_v48 }
 0x787   : > { %9120 = vpow2.f32 %v2876_v2  ;;  %v2852_v54 = vsub.f32 %v11506_v28, %v2835_v30 }
 0x788   : > { %9122 = vpow2.f32 %v2878_v60  ;;  %v11764_v60 = vld [vmem:[%s10024_s22 + $0x8] sm:$0xff] }
 0x789   : > { %v2882_v32 = vmul.f32 1.442695, %v2852_v54 }
 0x78a   : > { %v11594_v7 = vpop.permute.xlu0 %3198 }
 0x78b   : > { %9124 = vpow2.f32 %v2882_v32 }
 0x792   : > { %v11585_v34 = vpop.eup %9116 }
 0x793   : > { %v11587_v14 = vpop.eup %9118 }
 0x794   : > { %v11591_v28 = vpop.eup %9120 }
 0x795   : > { %v11596_v27 = vpop.eup %9122 }
 0x798   : > { %v11599_v50 = vpop.eup %9124 }
 0x7a2   : > { %2906 = vadd.xlane.f32.xlu0 %v11576_v21 }
 0x7a6   : > { %2904 = vadd.xlane.f32.xlu1 %v11579_v6  ;;  %2912 = vadd.xlane.f32.xlu0 %v11581_v46 }
 0x7aa   : > { %2902 = vadd.xlane.f32.xlu1 %v11585_v34  ;;  %2916 = vadd.xlane.f32.xlu0 %v11587_v14 }
 0x7ae   : > { %2908 = vadd.xlane.f32.xlu1 %v11591_v28 }
 0x7b2   : > { %2910 = vadd.xlane.f32.xlu1 %v11596_v27 }
 0x7b5   : > { %v2889_v57 = vpop.xlane.xlu0 %2888 }
 0x7b6   : > { %9126 = vrcp.f32 %v2889_v57  ;;  %2914 = vadd.xlane.f32.xlu1 %v11599_v50  ;;  %v14390_v57 = vld [vmem:[#allocation64_spill] sm:$0xff] }
 0x7b7   : > { %v2887_v56 = vpop.xlane.xlu1 %2886 }
 0x7b8   : > { %9128 = vrcp.f32 %v2887_v56 }
 0x7c0   : > { %3192 = vrot.lane.b32.xlu0 %v11151_v19, %s14180_s11  ;;  %v11669_v19 = vld [vmem:[%s10024_s22 + $0x78] sm:$0xff] }
 0x7c3   : > { %v9127_v52 = vpop.eup %9126 }
 0x7c4   : > { %v2935_v18 = vmul.f32 %v9127_v52, %v11528_v36  ;;  %3162 = vrot.lane.b32.xlu0 %v14312_v42, %s14180_s11 }
 0x7c5   : > { %v9129_v63 = vpop.eup %9128 }
 0x7c6   : > { %v2934_v3 = vmul.f32 %v9129_v63, %v11531_v24  ;;  %6932 = vst [vmem:[%s10447_s10 + $0x188] sm:$0xff] %v2935_v18  ;;  %v11722_v24 = vld [vmem:[%s10024_s22 + $0x30] sm:$0xff] }
 0x7c7   : > { %3160 = vrot.lane.b32.xlu1 %v14304_v55, %s14180_s11  ;;  %14384 = vst [vmem:[#allocation69_spill] sm:$0xff] %v11722_v24 }
 0x7c8   : > { %6931 = vst [vmem:[%s10447_s10 + $0x180] sm:$0xff] %v2934_v3  ;;  %8089 = vmatprep.mubr.f32.mxu0 %v2934_v3  ;;  %3166 = vrot.lane.b32.xlu0 %v14313_v9, %s14180_s11 }
 0x7c9   : > { %8090 = vmatmul.mubr.f32.vlgmr.msra.gmra.mxu0 %v2935_v18 }
 0x7ca   : > { %8114 = vmatpush3.xpose.msk.msra.mxu0 %vm716_vm0, %v11441_v5 }
 0x7cb   : > { %8115 = vmatprep.subr.msk.mxu0 %vm716_vm0, %v11512_v53  ;;  %3164 = vrot.lane.b32.xlu1 %v14305_v25, %s14180_s11 }
 0x7cc   : > { %3170 = vrot.lane.b32.xlu0 %v14314_v11, %s14180_s11 }
 0x7ce   : > { %8116 = vmatpush3.xpose.msk.msra.mxu0 %vm716_vm0, %v11512_v53  ;;  %v11678_v53 = vld [vmem:[%s10024_s22 + $0x70] sm:$0xff] }
 0x7cf   : > { %8117 = vmatprep.subr.msk.mxu0 %vm716_vm0, %v11514_v45  ;;  %3168 = vrot.lane.b32.xlu1 %v14306_v8, %s14180_s11 }
 0x7d0   : > { %3174 = vrot.lane.b32.xlu0 %v14315_v16, %s14180_s11 }
 0x7d2   : > { %8118 = vmatpush3.xpose.msk.msra.mxu0 %vm716_vm0, %v11514_v45  ;;  %v11703_v45 = vld [vmem:[%s10024_s22 + $0x50] sm:$0xff] }
 0x7d3   : > { %8119 = vmatprep.subr.msk.mxu0 %vm716_vm0, %v11518_v13  ;;  %3172 = vrot.lane.b32.xlu1 %v14307_v47, %s14180_s11 }
 0x7d4   : > { %3178 = vrot.lane.b32.xlu0 %v14316_v23, %s14180_s11 }
 0x7d6   : > { %8120 = vmatpush3.xpose.msk.msra.mxu0 %vm716_vm0, %v11518_v13  ;;  %v11692_v13 = vld [vmem:[%s10024_s22 + $0x60] sm:$0xff] }
 0x7d7   : > { %8121 = vmatprep.subr.msk.mxu0 %vm716_vm0, %v11516_v51  ;;  %3176 = vrot.lane.b32.xlu1 %v14308_v20, %s14180_s11 }
 0x7d8   : > { %3182 = vrot.lane.b32.xlu0 %v14319_v31, %s14180_s11 }
 0x7da   : > { %8122 = vmatpush3.xpose.msk.msra.mxu0 %vm716_vm0, %v11516_v51 }
 0x7db   : > { %8123 = vmatprep.subr.msk.mxu0 %vm716_vm0, %v11522_v12  ;;  %3180 = vrot.lane.b32.xlu1 %v14309_v17, %s14180_s11 }
 0x7dc   : > { %3186 = vrot.lane.b32.xlu0 %v14322_v43, %s14180_s11 }
 0x7de   : > { %8124 = vmatpush3.xpose.msk.msra.mxu0 %vm716_vm0, %v11522_v12 }
 0x7df   : > { %8125 = vmatprep.subr.msk.mxu0 %vm716_vm0, %v11520_v33  ;;  %3184 = vrot.lane.b32.xlu1 %v14310_v49, %s14180_s11 }
 0x7e0   : > { %3190 = vrot.lane.b32.xlu0 %v14325_v44, %s14180_s11 }
 0x7e2   : > { %8126 = vmatpush3.xpose.msk.msra.mxu0 %vm716_vm0, %v11520_v33  ;;  %v11683_v33 = vld [vmem:[%s10024_s22 + $0x68] sm:$0xff] }
 0x7e3   : > { %8127 = vmatprep.subr.msk.mxu0 %vm716_vm0, %v11526_v35  ;;  %3188 = vrot.lane.b32.xlu1 %v14311_v0, %s14180_s11 }
 0x7e4   : > { %3624 = vrot.lane.b32.xlu0 %v11669_v19, %s14180_s11 }
 0x7e6   : > { %8128 = vmatpush3.xpose.msk.msra.mxu0 %vm716_vm0, %v11526_v35  ;;  %v11731_v35 = vld [vmem:[%s10024_s22 + $0x38] sm:$0xff] }
 0x7e7   : > { %8129 = vmatprep.subr.msk.mxu0 %vm716_vm0, %v11524_v26  ;;  %3622 = vrot.lane.b32.xlu1 %v11678_v53, %s14180_s11  ;;  %14385 = vst [vmem:[#allocation70_spill] sm:$0xff] %v11731_v35 }
 0x7e8   : > { %3620 = vrot.lane.b32.xlu0 %v11683_v33, %s14180_s11 }
 0x7ea   : > { %8130 = vmatpush3.xpose.msk.msra.mxu0 %vm716_vm0, %v11524_v26  ;;  %v11708_v26 = vld [vmem:[%s10024_s22 + $0x40] sm:$0xff] }
 0x7eb   : > { %8131 = vmatprep.subr.msk.mxu0 %vm716_vm0, %v11536_v15  ;;  %3618 = vrot.lane.b32.xlu1 %v11692_v13, %s14180_s11 }
 0x7ec   : > { %v2893_v5 = vpop.xlane.xlu0 %2892  ;;  %3616 = vrot.lane.b32.xlu0 %v11232_v61, %s14180_s11 }
 0x7ed   : > { %9130 = vrcp.f32 %v2893_v5 }
 0x7ee   : > { %8132 = vmatpush3.xpose.msk.msra.mxu0 %vm716_vm0, %v11536_v15  ;;  %v2891_v51 = vpop.xlane.xlu1 %2890  ;;  %v11717_v15 = vld [vmem:[%s10024_s22 + $0x48] sm:$0xff] }
 0x7ef   : > { %8133 = vmatprep.subr.msk.mxu0 %vm716_vm0, %v11534_v59  ;;  %9132 = vrcp.f32 %v2891_v51  ;;  %3614 = vrot.lane.b32.xlu1 %v11703_v45, %s14180_s11  ;;  %14383 = vst [vmem:[#allocation68_spill] sm:$0xff] %v11717_v15 }
 0x7f0   : > { %3610 = vrot.lane.b32.xlu0 %v11708_v26, %s14180_s11 }
 0x7f2   : > { %8134 = vmatpush3.xpose.msk.msra.mxu0 %vm716_vm0, %v11534_v59  ;;  %v2897_v61 = vpop.xlane.xlu1 %2896 }
 0x7f3   : > { %8135 = vmatprep.subr.msk.mxu0 %vm716_vm0, %v11538_v38  ;;  %9134 = vrcp.f32 %v2897_v61  ;;  %3612 = vrot.lane.b32.xlu1 %v11717_v15, %s14180_s11 }
 0x7f4   : > { %3606 = vrot.lane.b32.xlu0 %v11722_v24, %s14180_s11 }
 0x7f6   : > { %8136 = vmatpush3.xpose.msk.msra.mxu0 %vm716_vm0, %v11538_v38  ;;  %v2899_v59 = vpop.xlane.xlu0 %2898  ;;  %v2895_v36 = vpop.xlane.xlu1 %2894 }
 0x7f7   : > { %9136 = vrcp.f32 %v2899_v59  ;;  %8137 = vmatprep.subr.msk.mxu0 %vm716_vm0, %v11594_v7  ;;  %3608 = vrot.lane.b32.xlu1 %v11731_v35, %s14180_s11 }
 0x7f8   : > { %9138 = vrcp.f32 %v2895_v36  ;;  %3602 = vrot.lane.b32.xlu0 %v11247_v37, %s14180_s11 }
 0x7fa   : > { %v9131_v12 = vpop.eup %9130  ;;  %8138 = vmatpush3.xpose.msk.msra.mxu0 %vm716_vm0, %v11594_v7  ;;  %v2901_v38 = vpop.xlane.xlu1 %2900 }
 0x7fb   : > { %v3197_v58 = vpop.permute.xlu0 %3196  ;;  %9140 = vrcp.f32 %v2901_v38  ;;  %v2937_v39 = vmul.f32 %v9131_v12, %v11543_v29  ;;  %3604 = vrot.lane.b32.xlu1 %v11742_v62, %s14180_s11 }
 0x7fc   : > { %8139 = vmatprep.subr.msk.mxu0 %vm716_vm0, %v3197_v58  ;;  %v9133_v40 = vpop.eup %9132  ;;  %3598 = vrot.lane.b32.xlu0 %v11258_v41, %s14180_s11 }
 0x7fd   : > { %v2936_v37 = vmul.f32 %v9133_v40, %v11546_v4  ;;  %6934 = vst [vmem:[%s10447_s10 + $0x198] sm:$0xff] %v2937_v39  ;;  %v14388_v4 = vld [vmem:[#allocation12_spill] sm:$0xff] }
 0x7fe   : > { %8140 = vmatpush3.xpose.msk.msra.mxu0 %vm716_vm0, %v3197_v58  ;;  %v3195_v2 = vpop.permute.xlu1 %3194  ;;  %14389 = vst [vmem:[#allocation12_spill] sm:$0xff] %v11764_v60 }
 0x7ff   : > { %6933 = vst [vmem:[%s10447_s10 + $0x190] sm:$0xff] %v2936_v37  ;;  %8092 = vmatprep.mubr.f32.mxu0 %v2936_v37  ;;  %8141 = vmatprep.subr.msk.mxu0 %vm716_vm0, %v3195_v2 }
 0x800   : > { %v9135_v29 = vpop.eup %9134  ;;  %8093 = vmatmul.mubr.f32.gmra.mxu0 %v2937_v39  ;;  %3600 = vrot.lane.b32.xlu1 %v11754_v48, %s14180_s11 }
 0x801   : > { %v2939_v41 = vmul.f32 %v9135_v29, %v11549_v10  ;;  %3594 = vrot.lane.b32.xlu0 %v14388_v4, %s14180_s11 }
 0x802   : > { %8142 = vmatpush3.xpose.msk.msra.mxu0 %vm716_vm0, %v3195_v2 }
 0x803   : > { %6936 = vst [vmem:[%s10447_s10 + $0x1a8] sm:$0xff] %v2939_v41 }
 0x804   : > { %v9137_v30 = vpop.eup %9136  ;;  %3596 = vrot.lane.b32.xlu1 %v11764_v60, %s14180_s11 }
 0x805   : > { %v9139_v54 = vpop.eup %9138  ;;  %v2940_v32 = vmul.f32 %v9137_v30, %v11554_v22 }
 0x806   : > { %v2938_v7 = vmul.f32 %v9139_v54, %v11552_v1 }
 0x807   : > { %6937 = vst [vmem:[%s10447_s10 + $0x1b0] sm:$0xff] %v2940_v32 }
 0x808   : > { %v9141_v10 = vpop.eup %9140  ;;  %6935 = vst [vmem:[%s10447_s10 + $0x1a0] sm:$0xff] %v2938_v7  ;;  %8095 = vmatprep.mubr.f32.mxu0 %v2938_v7 }
 0x809   : > { %8096 = vmatmul.mubr.f32.gmra.mxu0 %v2939_v41  ;;  %v2941_v56 = vmul.f32 %v9141_v10, %v14390_v57  ;;  %v14391_v10 = vld [vmem:[#allocation14_spill] sm:$0xff]  ;;  %v14392_v57 = vld [vmem:[#allocation20_spill] sm:$0xff] }
 0x80a   : > { %8098 = vmatprep.mubr.f32.mxu0 %v2940_v32  ;;  %3847 = vrot.lane.b32.xlu0 %v14391_v10, %s14178_s20 }
 0x80b   : > { %6938 = vst [vmem:[%s10447_s10 + $0x1b8] sm:$0xff] %v2941_v56  ;;  %3849 = vrot.lane.b32.xlu1 %v14392_v57, %s14178_s20 }
 0x80d   : > { %8099 = vmatmul.mubr.f32.gmra.mxu0 %v2941_v56  ;;  %v14394_v56 = vld [vmem:[#allocation23_spill] sm:$0xff] }
 0x80f   : > { %3843 = vrot.lane.b32.xlu1 %v14394_v56, %s14178_s20 }
 0x82b   : > { %v2907_v52 = vpop.xlane.xlu0 %2906 }
 0x82c   : > { %9142 = vrcp.f32 %v2907_v52 }
 0x82f   : > { %v2913_v18 = vpop.xlane.xlu0 %2912  ;;  %v2905_v63 = vpop.xlane.xlu1 %2904 }
 0x830   : > { %9144 = vrcp.f32 %v2913_v18  ;;  %v14395_v18 = vld [vmem:[#allocation18_spill] sm:$0xff] }
 0x831   : > { %9146 = vrcp.f32 %v2905_v63  ;;  %v11806_v63 = vld [vmem:[%s9848_s18 + $0x50] sm:$0xff] }
 0x832   : > { %14396 = vst [vmem:[#allocation64_spill] sm:$0xff] %v11806_v63  ;;  %3839 = vrot.lane.b32.xlu1 %v11806_v63, %s14178_s20 }
 0x833   : > { %v2917_v22 = vpop.xlane.xlu0 %2916  ;;  %v2903_v3 = vpop.xlane.xlu1 %2902 }
 0x834   : > { %9148 = vrcp.f32 %v2917_v22 }
 0x835   : > { %9150 = vrcp.f32 %v2903_v3 }
 0x837   : > { %v2909_v1 = vpop.xlane.xlu1 %2908  ;;  %v3193_v5 = vpop.permute.xlu0 %3192 }
 0x838   : > { %9152 = vrcp.f32 %v2909_v1  ;;  %8143 = vmatprep.subr.msk.mxu0 %vm716_vm0, %v3193_v5  ;;  %v11813_v1 = vld [vmem:[%s9848_s18 + $0x48] sm:$0xff] }
 0x839   : > { %v9143_v51 = vpop.eup %9142  ;;  %8144 = vmatpush3.xpose.msk.msra.mxu0 %vm716_vm0, %v3193_v5  ;;  %14397 = vst [vmem:[#allocation14_spill] sm:$0xff] %v11813_v1  ;;  %v11818_v5 = vld [vmem:[%s9848_s18 + $0x40] sm:$0xff] }
 0x83a   : > { %v2944_v61 = vmul.f32 %v9143_v51, %v11576_v21  ;;  %14398 = vst [vmem:[#allocation20_spill] sm:$0xff] %v11818_v5  ;;  %3835 = vrot.lane.b32.xlu1 %v11818_v5, %s14178_s20 }
 0x83b   : > { %v2911_v59 = vpop.xlane.xlu1 %2910  ;;  %v3163_v4 = vpop.permute.xlu0 %3162 }
 0x83c   : > { %9154 = vrcp.f32 %v2911_v59  ;;  %6941 = vst [vmem:[%s10447_s10 + $0x1d0] sm:$0xff] %v2944_v61 }
 0x83d   : > { %v9145_v36 = vpop.eup %9144 }
 0x83e   : > { %v9147_v12 = vpop.eup %9146  ;;  %v2947_v38 = vmul.f32 %v9145_v36, %v11581_v46 }
 0x83f   : > { %v2915_v58 = vpop.xlane.xlu1 %2914  ;;  %v2943_v39 = vmul.f32 %v9147_v12, %v11579_v6  ;;  %v3167_v54 = vpop.permute.xlu0 %3166 }
 0x840   : > { %9156 = vrcp.f32 %v2915_v58  ;;  %6944 = vst [vmem:[%s10447_s10 + $0x1e8] sm:$0xff] %v2947_v38 }
 0x841   : > { %v9149_v40 = vpop.eup %9148  ;;  %6940 = vst [vmem:[%s10447_s10 + $0x1c8] sm:$0xff] %v2943_v39 }
 0x842   : > { %v9151_v37 = vpop.eup %9150  ;;  %v2949_v21 = vmul.f32 %v9149_v40, %v11587_v14 }
 0x843   : > { %v2942_v2 = vmul.f32 %v9151_v37, %v11585_v34  ;;  %v3161_v6 = vpop.permute.xlu1 %3160 }
 0x844   : > { %6946 = vst [vmem:[%s10447_s10 + $0x1f8] sm:$0xff] %v2949_v21 }
 0x845   : > { %v9153_v29 = vpop.eup %9152  ;;  %6939 = vst [vmem:[%s10447_s10 + $0x1c0] sm:$0xff] %v2942_v2  ;;  %8101 = vmatprep.mubr.f32.mxu0 %v2942_v2 }
 0x846   : > { %8102 = vmatmul.mubr.f32.gmra.mxu0 %v2943_v39  ;;  %v2945_v46 = vmul.f32 %v9153_v29, %v11591_v28  ;;  %v3171_v28 = vpop.permute.xlu0 %3170 }
 0x847   : > { %8104 = vmatprep.mubr.f32.mxu0 %v2944_v61  ;;  %v3165_v14 = vpop.permute.xlu1 %3164  ;;  %v11825_v61 = vld [vmem:[%s9848_s18 + $0x38] sm:$0xff] }
 0x848   : > { %6942 = vst [vmem:[%s10447_s10 + $0x1d8] sm:$0xff] %v2945_v46 }
 0x849   : > { %v9155_v41 = vpop.eup %9154 }
 0x84a   : > { %8105 = vmatmul.mubr.f32.gmra.mxu0 %v2945_v46  ;;  %v2946_v30 = vmul.f32 %v9155_v41, %v11596_v27  ;;  %v3175_v52 = vpop.permute.xlu0 %3174 }
 0x84b   : > { %v3169_v7 = vpop.permute.xlu1 %3168 }
 0x84c   : > { %6943 = vst [vmem:[%s10447_s10 + $0x1e0] sm:$0xff] %v2946_v30  ;;  %8107 = vmatprep.mubr.f32.mxu0 %v2946_v30 }
 0x84d   : > { %v9157_v34 = vpop.eup %9156 }
 0x84e   : > { %8108 = vmatmul.mubr.f32.gmra.mxu0 %v2947_v38  ;;  %v2948_v32 = vmul.f32 %v9157_v34, %v11599_v50  ;;  %v14393_v50 = vld [vmem:[#allocation16_spill] sm:$0xff]  ;;  %v3179_v3 = vpop.permute.xlu0 %3178 }
 0x84f   : > { %v3173_v27 = vpop.permute.xlu1 %3172  ;;  %3845 = vrot.lane.b32.xlu0 %v14393_v50, %s14178_s20  ;;  %14399 = vst [vmem:[#allocation16_spill] sm:$0xff] %v11825_v61 }
 0x850   : > { %6945 = vst [vmem:[%s10447_s10 + $0x1f0] sm:$0xff] %v2948_v32  ;;  %8110 = vmatprep.mubr.f32.mxu0 %v2948_v32 }
 0x852   : > { %8111 = vmatmul.mubr.f32.gmra.mxu0 %v2949_v21  ;;  %v3183_v59 = vpop.permute.xlu0 %3182 }
 0x853   : > { %8145 = vmatprep.mubr.msk.f32.mxu0 %vm716_vm0, %v3161_v6  ;;  %3841 = vrot.lane.b32.xlu0 %v14395_v18, %s14178_s20  ;;  %v3177_v22 = vpop.permute.xlu1 %3176 }
 0x856   : > { %8146 = vmatmul.mubr.msk.f32.vlgmr.msra.gmra.mxu0 %vm716_vm0, %v3163_v4  ;;  %v3187_v12 = vpop.permute.xlu0 %3186 }
 0x857   : > { %8148 = vmatprep.mubr.msk.f32.mxu0 %vm716_vm0, %v3165_v14  ;;  %3837 = vrot.lane.b32.xlu0 %v11813_v1, %s14178_s20  ;;  %v3181_v51 = vpop.permute.xlu1 %3180 }
 0x85a   : > { %8149 = vmatmul.mubr.msk.f32.gmra.mxu0 %vm716_vm0, %v3167_v54  ;;  %v3191_v58 = vpop.permute.xlu0 %3190 }
 0x85b   : > { %8151 = vmatprep.mubr.msk.f32.mxu0 %vm716_vm0, %v3169_v7  ;;  %3833 = vrot.lane.b32.xlu0 %v11825_v61, %s14178_s20  ;;  %v3185_v36 = vpop.permute.xlu1 %3184 }
 0x85e   : > { %8152 = vmatmul.mubr.msk.f32.gmra.mxu0 %vm716_vm0, %v3171_v28  ;;  %v3625_v21 = vpop.permute.xlu0 %3624 }
 0x85f   : > { %8154 = vmatprep.mubr.msk.f32.mxu0 %vm716_vm0, %v3173_v27  ;;  %v3189_v38 = vpop.permute.xlu1 %3188  ;;  %8169 = vmatprep.subr.mxu1 %v3625_v21 }
 0x860   : > { %8170 = vmatpush3.msra.mxu1 %v3625_v21 }
 0x862   : > { %8155 = vmatmul.mubr.msk.f32.gmra.mxu0 %vm716_vm0, %v3175_v52  ;;  %v3621_v29 = vpop.permute.xlu0 %3620 }
 0x863   : > { %8157 = vmatprep.mubr.msk.f32.mxu0 %vm716_vm0, %v3177_v22  ;;  %v3623_v2 = vpop.permute.xlu1 %3622 }
 0x864   : > { %8171 = vmatprep.subr.mxu1 %v3623_v2 }
 0x865   : > { %8172 = vmatpush3.msra.mxu1 %v3623_v2 }
 0x866   : > { %8158 = vmatmul.mubr.msk.f32.gmra.mxu0 %vm716_vm0, %v3179_v3  ;;  %8173 = vmatprep.subr.mxu1 %v3621_v29  ;;  %v3617_v6 = vpop.permute.xlu0 %3616 }
 0x867   : > { %8160 = vmatprep.mubr.msk.f32.mxu0 %vm716_vm0, %v3181_v51  ;;  %v3619_v46 = vpop.permute.xlu1 %3618  ;;  %8174 = vmatpush3.msra.mxu1 %v3621_v29 }
 0x868   : > { %8175 = vmatprep.subr.mxu1 %v3619_v46 }
 0x869   : > { %8176 = vmatpush3.msra.mxu1 %v3619_v46 }
 0x86a   : > { %8161 = vmatmul.mubr.msk.f32.gmra.mxu0 %vm716_vm0, %v3183_v59  ;;  %8177 = vmatprep.subr.mxu1 %v3617_v6  ;;  %v3611_v30 = vpop.permute.xlu0 %3610 }
 0x86b   : > { %8163 = vmatprep.mubr.msk.f32.mxu0 %vm716_vm0, %v3185_v36  ;;  %v3615_v41 = vpop.permute.xlu1 %3614  ;;  %8178 = vmatpush3.msra.mxu1 %v3617_v6 }
 0x86c   : > { %8179 = vmatprep.subr.mxu1 %v3615_v41 }
 0x86d   : > { %8180 = vmatpush3.msra.mxu1 %v3615_v41 }
 0x86e   : > { %8164 = vmatmul.mubr.msk.f32.gmra.mxu0 %vm716_vm0, %v3187_v12  ;;  %v3607_v54 = vpop.permute.xlu0 %3606 }
 0x86f   : > { %8166 = vmatprep.mubr.msk.f32.mxu0 %vm716_vm0, %v3189_v38  ;;  %v3613_v4 = vpop.permute.xlu1 %3612 }
 0x870   : > { %8181 = vmatprep.subr.mxu1 %v3613_v4 }
 0x871   : > { %8182 = vmatpush3.msra.mxu1 %v3613_v4 }
 0x872   : > { %8167 = vmatmul.mubr.msk.f32.gmra.mxu0 %vm716_vm0, %v3191_v58  ;;  %8183 = vmatprep.subr.mxu1 %v3611_v30  ;;  %v3603_v10 = vpop.permute.xlu0 %3602 }
 0x873   : > { %8184 = vmatpush3.msra.mxu1 %v3611_v30  ;;  %v3609_v34 = vpop.permute.xlu1 %3608 }
 0x874   : > { %8185 = vmatprep.subr.mxu1 %v3609_v34 }
 0x875   : > { %8186 = vmatpush3.msra.mxu1 %v3609_v34 }
 0x876   : > { %8187 = vmatprep.subr.mxu1 %v3607_v54  ;;  %v3599_v3 = vpop.permute.xlu0 %3598 }
 0x877   : > { %8188 = vmatpush3.msra.mxu1 %v3607_v54  ;;  %v3605_v28 = vpop.permute.xlu1 %3604 }
 0x878   : > { %8189 = vmatprep.subr.mxu1 %v3605_v28 }
 0x879   : > { %8190 = vmatpush3.msra.mxu1 %v3605_v28 }
 0x87a   : > { %8191 = vmatprep.subr.mxu1 %v3603_v10  ;;  %v3595_v59 = vpop.permute.xlu0 %3594 }
 0x87b   : > { %8192 = vmatpush3.msra.mxu1 %v3603_v10  ;;  %v3601_v52 = vpop.permute.xlu1 %3600  ;;  %v11891_v10 = vld [vmem:[%s9848_s18 + $0x30] sm:$0xff] }
 0x87c   : > { %8193 = vmatprep.subr.mxu1 %v3601_v52  ;;  %14416 = vst [vmem:[#allocation87_spill] sm:$0xff] %v11891_v10 }
 0x87d   : > { %8194 = vmatpush3.msra.mxu1 %v3601_v52  ;;  %v11896_v52 = vld [vmem:[%s9848_s18 + $0x28] sm:$0xff] }
 0x87e   : > { %8195 = vmatprep.subr.mxu1 %v3599_v3  ;;  %14417 = vst [vmem:[#allocation88_spill] sm:$0xff] %v11896_v52 }
 0x87f   : > { %8196 = vmatpush3.msra.mxu1 %v3599_v3  ;;  %v3597_v51 = vpop.permute.xlu1 %3596  ;;  %v11901_v3 = vld [vmem:[%s9848_s18 + $0x20] sm:$0xff] }
 0x880   : > { %8197 = vmatprep.subr.mxu1 %v3597_v51  ;;  %14418 = vst [vmem:[#allocation89_spill] sm:$0xff] %v11901_v3 }
 0x881   : > { %8198 = vmatpush3.msra.mxu1 %v3597_v51 }
 0x882   : > { %8199 = vmatprep.subr.mxu1 %v3595_v59 }
 0x883   : > { %8200 = vmatpush3.msra.mxu1 %v3595_v59  ;;  %v11862_v36 = vpop.permute.xlu1 %3849 }
 0x884   : > { %8225 = vmatprep.subr.msk.mxu1 %vm716_vm0, %v11862_v36 }
 0x889   : > { %v11838_v39 = vpop.f32.mrf.mxu0 }
 0x88a   : > { %14400 = vst [vmem:[#allocation23_spill] sm:$0xff] %v11838_v39 }
 0x88b   : > { %v11840_v40 = vpop.f32.mrf.mxu0 }
 0x88c   : > { %14401 = vst [vmem:[#allocation18_spill] sm:$0xff] %v11840_v40 }
 0x8c0   : > { %v11844_v14 = vpop.f32.mrf.mxu0 }
 0x8c1   : > { %14402 = vst [vmem:[#allocation73_spill] sm:$0xff] %v11844_v14 }
 0x8c2   : > { %v11846_v32 = vpop.f32.mrf.mxu0 }
 0x8c3   : > { %14403 = vst [vmem:[#allocation74_spill] sm:$0xff] %v11846_v32 }
 0x8c9   : > { %v11850_v57 = vpop.f32.mrf.mxu0 }
 0x8ca   : > { %14404 = vst [vmem:[#allocation75_spill] sm:$0xff] %v11850_v57 }
 0x8cb   : > { %v11852_v27 = vpop.f32.mrf.mxu0 }
 0x8cc   : > { %14405 = vst [vmem:[#allocation76_spill] sm:$0xff] %v11852_v27 }
 0x8cd   : > { %v11856_v56 = vpop.f32.mrf.mxu0 }
 0x8ce   : > { %14406 = vst [vmem:[#allocation77_spill] sm:$0xff] %v11856_v56 }
 0x8cf   : > { %v11858_v18 = vpop.f32.mrf.mxu0 }
 0x8d0   : > { %14407 = vst [vmem:[#allocation78_spill] sm:$0xff] %v11858_v18  ;;  %v11949_v18 = vpop.permute.xlu1 %3843 }
 0x8d4   : > { %v11953_v27 = vpop.permute.xlu1 %3839 }
 0x8d8   : > { %v11957_v32 = vpop.permute.xlu1 %3835 }
 0x906   : > { %v11866_v12 = vpop.f32.mrf.mxu0 }
 0x907   : > { %14408 = vst [vmem:[#allocation79_spill] sm:$0xff] %v11866_v12 }
 0x908   : > { %v11868_v38 = vpop.f32.mrf.mxu0 }
 0x909   : > { %14409 = vst [vmem:[#allocation80_spill] sm:$0xff] %v11868_v38 }
 0x90a   : > { %v11872_v21 = vpop.f32.mrf.mxu0 }
 0x90b   : > { %14410 = vst [vmem:[#allocation81_spill] sm:$0xff] %v11872_v21  ;;  %v11943_v21 = vpop.permute.xlu0 %3847 }
 0x90c   : > { %v11874_v2 = vpop.f32.mrf.mxu0 }
 0x90d   : > { %14411 = vst [vmem:[#allocation82_spill] sm:$0xff] %v11874_v2  ;;  %v11939_v2 = vld [vmem:[%s9848_s18 + $0x18] sm:$0xff] }
 0x90e   : > { %v11878_v46 = vpop.f32.mrf.mxu0  ;;  %14419 = vst [vmem:[#allocation90_spill] sm:$0xff] %v11939_v2 }
 0x90f   : > { %14412 = vst [vmem:[#allocation83_spill] sm:$0xff] %v11878_v46  ;;  %v11945_v38 = vpop.permute.xlu0 %3845 }
 0x910   : > { %v11880_v6 = vpop.f32.mrf.mxu0 }
 0x911   : > { %14413 = vst [vmem:[#allocation84_spill] sm:$0xff] %v11880_v6 }
 0x912   : > { %v11884_v4 = vpop.f32.mrf.mxu0 }
 0x913   : > { %14414 = vst [vmem:[#allocation85_spill] sm:$0xff] %v11884_v4  ;;  %v11947_v12 = vpop.permute.xlu0 %3841 }
 0x914   : > { %v11886_v30 = vpop.f32.mrf.mxu0 }
 0x915   : > { %14415 = vst [vmem:[#allocation86_spill] sm:$0xff] %v11886_v30 }
 0x916   : > { %v8147_v54 = vpop.f32.mrf.mxu0 }
 0x917   : > { %3435 = vmax.xlane.f32.xlu0 %v8147_v54  ;;  %v11951_v56 = vpop.permute.xlu0 %3837 }
 0x918   : > { %v3354_v28 = vpop.f32.mrf.mxu0 }
 0x919   : > { %3433 = vmax.xlane.f32.xlu1 %v3354_v28 }
 0x91a   : > { %v8150_v51 = vpop.f32.mrf.mxu0 }
 0x91b   : > { %v11955_v57 = vpop.permute.xlu0 %3833 }
 0x91c   : > { %v3364_v59 = vpop.f32.mrf.mxu0 }
 0x91e   : > { %v8153_v34 = vpop.f32.mrf.mxu0 }
 0x920   : > { %v11905_v41 = vpop.f32.mrf.mxu0 }
 0x922   : > { %v11907_v29 = vpop.f32.mrf.mxu0 }
 0x924   : > { %v11909_v58 = vpop.f32.mrf.mxu0 }
 0x926   : > { %v11911_v22 = vpop.f32.mrf.mxu0 }
 0x928   : > { %v11913_v50 = vpop.f32.mrf.mxu0 }
 0x92a   : > { %3831 = vrot.lane.b32.xlu1 %v11891_v10, %s14178_s20  ;;  %v11915_v7 = vpop.f32.mrf.mxu0 }
 0x92c   : > { %v11918_v37 = vpop.f32.mrf.mxu0 }
 0x92d   : > { %3829 = vrot.lane.b32.xlu0 %v11896_v52, %s14178_s20 }
 0x92e   : > { %v11922_v30 = vpop.f32.mrf.mxu0 }
 0x930   : > { %v11926_v4 = vpop.f32.mrf.mxu0 }
 0x931   : > { %3827 = vrot.lane.b32.xlu0 %v11901_v3, %s14178_s20 }
 0x932   : > { %v11930_v6 = vpop.f32.mrf.mxu0 }
 0x934   : > { %v11934_v46 = vpop.f32.mrf.mxu0 }
 0x94e   : > { %3439 = vmax.xlane.f32.xlu1 %v8150_v51 }
 0x950   : > { %3437 = vmax.xlane.f32.xlu0 %v3364_v59 }
 0x952   : > { %3443 = vmax.xlane.f32.xlu1 %v8153_v34 }
 0x954   : > { %3441 = vmax.xlane.f32.xlu0 %v11905_v41 }
 0x956   : > { %3447 = vmax.xlane.f32.xlu1 %v11907_v29 }
 0x958   : > { %3445 = vmax.xlane.f32.xlu0 %v11909_v58 }
 0x95a   : > { %3451 = vmax.xlane.f32.xlu1 %v11911_v22 }
 0x95c   : > { %3449 = vmax.xlane.f32.xlu0 %v11913_v50 }
 0x95e   : > { %3455 = vmax.xlane.f32.xlu1 %v11915_v7 }
 0x960   : > { %3453 = vmax.xlane.f32.xlu0 %v11918_v37 }
 0x962   : > { %3459 = vmax.xlane.f32.xlu1 %v11922_v30 }
 0x964   : > { %3457 = vmax.xlane.f32.xlu0 %v11926_v4 }
 0x966   : > { %3463 = vmax.xlane.f32.xlu1 %v11930_v6 }
 0x968   : > { %3461 = vmax.xlane.f32.xlu0 %v11934_v46 }
 0x97e   : > { %3825 = vrot.lane.b32.xlu0 %v11939_v2, %s14178_s20 }
 0x9a0   : > { %v3436_v14 = vpop.xlane.xlu0 %3435 }
 0x9a1   : > { %v3466_v40 = vsub.f32 %v8147_v54, %v3436_v14 }
 0x9a2   : > { %v3434_v39 = vpop.xlane.xlu1 %3433 }
 0x9a3   : > { %v3483_v2 = vmul.f32 1.442695, %v3466_v40  ;;  %v3465_v3 = vsub.f32 %v3354_v28, %v3434_v39 }
 0x9a4   : > { %v11965_v5 = vpop.permute.xlu0 %3829 }
 0x9a5   : > { %9158 = vpow2.f32 %v3483_v2  ;;  %v3481_v52 = vmul.f32 1.442695, %v3465_v3 }
 0x9a6   : > { %v11967_v1 = vpop.permute.xlu1 %3831 }
 0x9a7   : > { %9160 = vpow2.f32 %v3481_v52 }
 0x9a8   : > { %v11969_v63 = vpop.permute.xlu0 %3827 }
 0x9a9   : > { %14420 = vst [vmem:[#allocation91_spill] sm:$0xff] %v11969_v63 }
 0x9b2   : > { %v11959_v10 = vpop.eup %9158 }
 0x9b3   : > { %3515 = vadd.xlane.f32.xlu0 %v11959_v10 }
 0x9b4   : > { %v11962_v61 = vpop.eup %9160 }
 0x9b5   : > { %3513 = vadd.xlane.f32.xlu1 %v11962_v61 }
 0x9d7   : > { %v3440_v14 = vpop.xlane.xlu1 %3439 }
 0x9d8   : > { %v3468_v40 = vsub.f32 %v8150_v51, %v3440_v14 }
 0x9d9   : > { %v3438_v39 = vpop.xlane.xlu0 %3437 }
 0x9da   : > { %v3487_v2 = vmul.f32 1.442695, %v3468_v40  ;;  %v3467_v54 = vsub.f32 %v3364_v59, %v3438_v39 }
 0x9db   : > { %v3444_v28 = vpop.xlane.xlu1 %3443 }
 0x9dc   : > { %9162 = vpow2.f32 %v3487_v2  ;;  %v3485_v52 = vmul.f32 1.442695, %v3467_v54  ;;  %v3470_v3 = vsub.f32 %v8153_v34, %v3444_v28 }
 0x9dd   : > { %v3442_v60 = vpop.xlane.xlu0 %3441 }
 0x9de   : > { %9164 = vpow2.f32 %v3485_v52  ;;  %v3491_v48 = vmul.f32 1.442695, %v3470_v3  ;;  %v3469_v62 = vsub.f32 %v11905_v41, %v3442_v60  ;;  %v14423_v60 = vld [vmem:[#allocation67_spill] sm:$0xff] }
 0x9df   : > { %v3448_v35 = vpop.xlane.xlu1 %3447 }
 0x9e0   : > { %v3489_v24 = vmul.f32 1.442695, %v3469_v62  ;;  %9166 = vpow2.f32 %v3491_v48  ;;  %v3472_v63 = vsub.f32 %v11907_v29, %v3448_v35 }
 0x9e1   : > { %v3446_v15 = vpop.xlane.xlu0 %3445 }
 0x9e2   : > { %v3471_v51 = vsub.f32 %v11909_v58, %v3446_v15  ;;  %9168 = vpow2.f32 %v3489_v24  ;;  %v3495_v59 = vmul.f32 1.442695, %v3472_v63  ;;  %v11995_v58 = vld [vmem:[%s9848_s18 + $0x10] sm:$0xff] }
 0x9e3   : > { %v3452_v48 = vpop.xlane.xlu1 %3451  ;;  %14424 = vst [vmem:[#allocation67_spill] sm:$0xff] %v11995_v58 }
 0x9e4   : > { %v3493_v14 = vmul.f32 1.442695, %v3471_v51  ;;  %v3474_v54 = vsub.f32 %v11911_v22, %v3452_v48 }
 0x9e5   : > { %v3450_v63 = vpop.xlane.xlu0 %3449 }
 0x9e6   : > { %9170 = vpow2.f32 %v3493_v14  ;;  %v3499_v51 = vmul.f32 1.442695, %v3474_v54  ;;  %v3473_v14 = vsub.f32 %v11913_v50, %v3450_v63 }
 0x9e7   : > { %9172 = vpow2.f32 %v3495_v59  ;;  %v3456_v29 = vpop.xlane.xlu1 %3455 }
 0x9e9   : > { %v11974_v40 = vpop.eup %9162  ;;  %v3454_v41 = vpop.xlane.xlu0 %3453 }
 0x9ea   : > { %3519 = vadd.xlane.f32.xlu0 %v11974_v40  ;;  %v3475_v2 = vsub.f32 %v11918_v37, %v3454_v41 }
 0x9eb   : > { %v11977_v34 = vpop.eup %9164  ;;  %v3460_v39 = vpop.xlane.xlu1 %3459 }
 0x9ec   : > { %3517 = vadd.xlane.f32.xlu1 %v11977_v34  ;;  %v3501_v28 = vmul.f32 1.442695, %v3475_v2  ;;  %v3478_v52 = vsub.f32 %v11922_v30, %v3460_v39 }
 0x9ed   : > { %v11980_v62 = vpop.eup %9166 }
 0x9ee   : > { %9174 = vpow2.f32 %v3501_v28  ;;  %v3507_v59 = vmul.f32 1.442695, %v3478_v52  ;;  %v12034_v28 = vld [vmem:[%s9848_s18] sm:$0xff] }
 0x9ef   : > { %v11983_v35 = vpop.eup %9168  ;;  %v3464_v3 = vpop.xlane.xlu1 %3463  ;;  %9176 = vpow2.f32 %v3499_v51 }
 0x9f0   : > { %3523 = vadd.xlane.f32.xlu1 %v11980_v62  ;;  %14421 = vst [vmem:[#allocation92_spill] sm:$0xff] %v11983_v35  ;;  %9178 = vpow2.f32 %v3507_v59 }
 0x9f3   : > { %v11985_v15 = vpop.eup %9170 }
 0x9f4   : > { %3525 = vadd.xlane.f32.xlu0 %v11985_v15  ;;  %3521 = vadd.xlane.f32.xlu1 %v11983_v35  ;;  %v11989_v24 = vpop.eup %9172  ;;  %v3476_v35 = vsub.f32 %v11915_v7, %v3456_v29 }
 0x9f5   : > { %14422 = vst [vmem:[#allocation93_spill] sm:$0xff] %v11989_v24 }
 0x9f6   : > { %v3503_v22 = vmul.f32 1.442695, %v3476_v35 }
 0x9f8   : > { %3527 = vadd.xlane.f32.xlu1 %v11989_v24  ;;  %v3458_v24 = vpop.xlane.xlu0 %3457 }
 0x9f9   : > { %v3477_v48 = vsub.f32 %v11926_v4, %v3458_v24 }
 0x9fb   : > { %v3505_v41 = vmul.f32 1.442695, %v3477_v48  ;;  %v12007_v63 = vpop.eup %9174  ;;  %v14431_v48 = vld [vmem:[#allocation12_spill] sm:$0xff] }
 0x9fc   : > { %v3462_v30 = vpop.xlane.xlu0 %3461 }
 0x9fd   : > { %v3479_v50 = vsub.f32 %v11934_v46, %v3462_v30 }
 0x9ff   : > { %v3509_v7 = vmul.f32 1.442695, %v3479_v50  ;;  %v14432_v50 = vld [vmem:[#allocation92_spill] sm:$0xff] }
 0xa00   : > { %v12025_v24 = vpop.permute.xlu0 %3825 }
 0xa09   : > { %3821 = vrot.lane.b32.xlu1 %v14423_v60, %s14178_s20  ;;  %v3480_v60 = vsub.f32 %v11930_v6, %v3464_v3  ;;  %v12010_v6 = vpop.eup %9176 }
 0xa0a   : > { %3823 = vrot.lane.b32.xlu0 %v11995_v58, %s14178_s20  ;;  %v3497_v58 = vmul.f32 1.442695, %v3473_v14  ;;  %v12012_v29 = vpop.eup %9178 }
 0xa0b   : > { %v3511_v37 = vmul.f32 1.442695, %v3480_v60  ;;  %v14430_v60 = vld [vmem:[#allocation72_spill] sm:$0xff] }
 0xa0c   : > { %9180 = vpow2.f32 %v3497_v58 }
 0xa0d   : > { %9182 = vpow2.f32 %v3511_v37 }
 0xa0e   : > { %9184 = vpow2.f32 %v3503_v22  ;;  %v12170_v22 = vld [vmem:[%s10024_s22] sm:$0xff] }
 0xa0f   : > { %9186 = vpow2.f32 %v3505_v41 }
 0xa10   : > { %9188 = vpow2.f32 %v3509_v7 }
 0xa19   : > { %v12016_v4 = vpop.eup %9180 }
 0xa1a   : > { %v12018_v35 = vpop.eup %9182 }
 0xa1b   : > { %v12022_v46 = vpop.eup %9184 }
 0xa1c   : > { %v12027_v58 = vpop.eup %9186 }
 0xa1d   : > { %v12030_v39 = vpop.eup %9188 }
 0xa29   : > { %3533 = vadd.xlane.f32.xlu0 %v12007_v63 }
 0xa2d   : > { %3531 = vadd.xlane.f32.xlu1 %v12010_v6  ;;  %3539 = vadd.xlane.f32.xlu0 %v12012_v29 }
 0xa31   : > { %3529 = vadd.xlane.f32.xlu1 %v12016_v4  ;;  %3543 = vadd.xlane.f32.xlu0 %v12018_v35 }
 0xa35   : > { %3535 = vadd.xlane.f32.xlu1 %v12022_v46 }
 0xa39   : > { %3537 = vadd.xlane.f32.xlu1 %v12027_v58 }
 0xa3c   : > { %v3516_v2 = vpop.xlane.xlu0 %3515 }
 0xa3d   : > { %9190 = vrcp.f32 %v3516_v2  ;;  %3541 = vadd.xlane.f32.xlu1 %v12030_v39 }
 0xa3e   : > { %v3514_v54 = vpop.xlane.xlu1 %3513 }
 0xa3f   : > { %9192 = vrcp.f32 %v3514_v54 }
 0xa47   : > { %3819 = vrot.lane.b32.xlu0 %v12034_v28, %s14178_s20 }
 0xa4a   : > { %v9191_v52 = vpop.eup %9190 }
 0xa4b   : > { %v3562_v3 = vmul.f32 %v9191_v52, %v11959_v10  ;;  %3789 = vrot.lane.b32.xlu0 %v14312_v42, %s14178_s20 }
 0xa4c   : > { %v9193_v51 = vpop.eup %9192 }
 0xa4d   : > { %v3561_v14 = vmul.f32 %v9193_v51, %v11962_v61  ;;  %6980 = vst [vmem:[%s10447_s10 + $0x208] sm:$0xff] %v3562_v3  ;;  %v12119_v61 = vld [vmem:[%s10024_s22 + $0x58] sm:$0xff] }
 0xa4e   : > { %3787 = vrot.lane.b32.xlu1 %v14304_v55, %s14178_s20 }
 0xa4f   : > { %6979 = vst [vmem:[%s10447_s10 + $0x200] sm:$0xff] %v3561_v14  ;;  %8201 = vmatprep.mubr.f32.mxu1 %v3561_v14  ;;  %3793 = vrot.lane.b32.xlu0 %v14313_v9, %s14178_s20 }
 0xa50   : > { %8202 = vmatmul.mubr.f32.vlgmr.msra.gmra.mxu1 %v3562_v3 }
 0xa51   : > { %8226 = vmatpush3.xpose.msk.msra.mxu1 %vm716_vm0, %v11862_v36 }
 0xa52   : > { %8227 = vmatprep.subr.msk.mxu1 %vm716_vm0, %v11943_v21  ;;  %3791 = vrot.lane.b32.xlu1 %v14305_v25, %s14178_s20 }
 0xa53   : > { %3797 = vrot.lane.b32.xlu0 %v14314_v11, %s14178_s20 }
 0xa55   : > { %8228 = vmatpush3.xpose.msk.msra.mxu1 %vm716_vm0, %v11943_v21  ;;  %v12157_v21 = vld [vmem:[%s10024_s22 + $0x10] sm:$0xff] }
 0xa56   : > { %8229 = vmatprep.subr.msk.mxu1 %vm716_vm0, %v11945_v38  ;;  %3795 = vrot.lane.b32.xlu1 %v14306_v8, %s14178_s20 }
 0xa57   : > { %3801 = vrot.lane.b32.xlu0 %v14315_v16, %s14178_s20 }
 0xa59   : > { %8230 = vmatpush3.xpose.msk.msra.mxu1 %vm716_vm0, %v11945_v38 }
 0xa5a   : > { %8231 = vmatprep.subr.msk.mxu1 %vm716_vm0, %v11949_v18  ;;  %3799 = vrot.lane.b32.xlu1 %v14307_v47, %s14178_s20 }
 0xa5b   : > { %3805 = vrot.lane.b32.xlu0 %v14316_v23, %s14178_s20 }
 0xa5d   : > { %8232 = vmatpush3.xpose.msk.msra.mxu1 %vm716_vm0, %v11949_v18 }
 0xa5e   : > { %8233 = vmatprep.subr.msk.mxu1 %vm716_vm0, %v11947_v12  ;;  %3803 = vrot.lane.b32.xlu1 %v14308_v20, %s14178_s20 }
 0xa5f   : > { %3809 = vrot.lane.b32.xlu0 %v14319_v31, %s14178_s20 }
 0xa61   : > { %8234 = vmatpush3.xpose.msk.msra.mxu1 %vm716_vm0, %v11947_v12  ;;  %v14429_v12 = vld [vmem:[#allocation71_spill] sm:$0xff] }
 0xa62   : > { %8235 = vmatprep.subr.msk.mxu1 %vm716_vm0, %v11953_v27  ;;  %3807 = vrot.lane.b32.xlu1 %v14309_v17, %s14178_s20 }
 0xa63   : > { %3813 = vrot.lane.b32.xlu0 %v14322_v43, %s14178_s20 }
 0xa65   : > { %8236 = vmatpush3.xpose.msk.msra.mxu1 %vm716_vm0, %v11953_v27 }
 0xa66   : > { %8237 = vmatprep.subr.msk.mxu1 %vm716_vm0, %v11951_v56  ;;  %3811 = vrot.lane.b32.xlu1 %v14310_v49, %s14178_s20 }
 0xa67   : > { %3817 = vrot.lane.b32.xlu0 %v14325_v44, %s14178_s20 }
 0xa69   : > { %8238 = vmatpush3.xpose.msk.msra.mxu1 %vm716_vm0, %v11951_v56 }
 0xa6a   : > { %8239 = vmatprep.subr.msk.mxu1 %vm716_vm0, %v11957_v32  ;;  %3815 = vrot.lane.b32.xlu1 %v14311_v0, %s14178_s20 }
 0xa6b   : > { %4251 = vrot.lane.b32.xlu0 %v11669_v19, %s14178_s20 }
 0xa6d   : > { %8240 = vmatpush3.xpose.msk.msra.mxu1 %vm716_vm0, %v11957_v32  ;;  %v14427_v32 = vld [vmem:[#allocation69_spill] sm:$0xff] }
 0xa6e   : > { %8241 = vmatprep.subr.msk.mxu1 %vm716_vm0, %v11955_v57  ;;  %4249 = vrot.lane.b32.xlu1 %v11678_v53, %s14178_s20 }
 0xa6f   : > { %4247 = vrot.lane.b32.xlu0 %v11683_v33, %s14178_s20 }
 0xa71   : > { %8242 = vmatpush3.xpose.msk.msra.mxu1 %vm716_vm0, %v11955_v57 }
 0xa72   : > { %8243 = vmatprep.subr.msk.mxu1 %vm716_vm0, %v11967_v1  ;;  %4245 = vrot.lane.b32.xlu1 %v11692_v13, %s14178_s20  ;;  %v14425_v13 = vld [vmem:[#allocation91_spill] sm:$0xff] }
 0xa73   : > { %v3520_v19 = vpop.xlane.xlu0 %3519  ;;  %4243 = vrot.lane.b32.xlu0 %v12119_v61, %s14178_s20 }
 0xa74   : > { %9194 = vrcp.f32 %v3520_v19 }
 0xa75   : > { %8244 = vmatpush3.xpose.msk.msra.mxu1 %vm716_vm0, %v11967_v1  ;;  %v3518_v53 = vpop.xlane.xlu1 %3517  ;;  %v14426_v1 = vld [vmem:[#allocation68_spill] sm:$0xff] }
 0xa76   : > { %8245 = vmatprep.subr.msk.mxu1 %vm716_vm0, %v11965_v5  ;;  %9196 = vrcp.f32 %v3518_v53  ;;  %4241 = vrot.lane.b32.xlu1 %v11703_v45, %s14178_s20 }
 0xa77   : > { %4237 = vrot.lane.b32.xlu0 %v11708_v26, %s14178_s20  ;;  %v14428_v26 = vld [vmem:[#allocation70_spill] sm:$0xff] }
 0xa79   : > { %8246 = vmatpush3.xpose.msk.msra.mxu1 %vm716_vm0, %v11965_v5  ;;  %v3524_v33 = vpop.xlane.xlu1 %3523  ;;  %v12146_v5 = vld [vmem:[%s10024_s22 + $0x20] sm:$0xff] }
 0xa7a   : > { %8247 = vmatprep.subr.msk.mxu1 %vm716_vm0, %v14425_v13  ;;  %9198 = vrcp.f32 %v3524_v33  ;;  %4239 = vrot.lane.b32.xlu1 %v14426_v1, %s14178_s20 }
 0xa7b   : > { %4233 = vrot.lane.b32.xlu0 %v14427_v32, %s14178_s20 }
 0xa7d   : > { %8248 = vmatpush3.xpose.msk.msra.mxu1 %vm716_vm0, %v14425_v13  ;;  %v3526_v45 = vpop.xlane.xlu0 %3525  ;;  %v3522_v57 = vpop.xlane.xlu1 %3521 }
 0xa7e   : > { %9200 = vrcp.f32 %v3526_v45  ;;  %8249 = vmatprep.subr.msk.mxu1 %vm716_vm0, %v12025_v24  ;;  %4235 = vrot.lane.b32.xlu1 %v14428_v26, %s14178_s20 }
 0xa7f   : > { %9202 = vrcp.f32 %v3522_v57  ;;  %4229 = vrot.lane.b32.xlu0 %v12146_v5, %s14178_s20 }
 0xa81   : > { %v9195_v27 = vpop.eup %9194  ;;  %8250 = vmatpush3.xpose.msk.msra.mxu1 %vm716_vm0, %v12025_v24  ;;  %v3528_v56 = vpop.xlane.xlu1 %3527  ;;  %v14433_v24 = vld [vmem:[#allocation93_spill] sm:$0xff] }
 0xa82   : > { %v3824_v18 = vpop.permute.xlu0 %3823  ;;  %9204 = vrcp.f32 %v3528_v56  ;;  %v3564_v36 = vmul.f32 %v9195_v27, %v11974_v40  ;;  %4231 = vrot.lane.b32.xlu1 %v14429_v12, %s14178_s20 }
 0xa83   : > { %8251 = vmatprep.subr.msk.mxu1 %vm716_vm0, %v3824_v18  ;;  %v9197_v38 = vpop.eup %9196  ;;  %4225 = vrot.lane.b32.xlu0 %v12157_v21, %s14178_s20 }
 0xa84   : > { %v3563_v10 = vmul.f32 %v9197_v38, %v11977_v34  ;;  %6982 = vst [vmem:[%s10447_s10 + $0x218] sm:$0xff] %v3564_v36 }
 0xa85   : > { %8252 = vmatpush3.xpose.msk.msra.mxu1 %vm716_vm0, %v3824_v18  ;;  %v3822_v59 = vpop.permute.xlu1 %3821 }
 0xa86   : > { %6981 = vst [vmem:[%s10447_s10 + $0x210] sm:$0xff] %v3563_v10  ;;  %8204 = vmatprep.mubr.f32.mxu1 %v3563_v10  ;;  %8253 = vmatprep.subr.msk.mxu1 %vm716_vm0, %v3822_v59 }
 0xa87   : > { %v9199_v40 = vpop.eup %9198  ;;  %8205 = vmatmul.mubr.f32.gmra.mxu1 %v3564_v36  ;;  %4227 = vrot.lane.b32.xlu1 %v14430_v60, %s14178_s20 }
 0xa88   : > { %v3566_v37 = vmul.f32 %v9199_v40, %v11980_v62  ;;  %4221 = vrot.lane.b32.xlu0 %v12170_v22, %s14178_s20 }
 0xa89   : > { %8254 = vmatpush3.xpose.msk.msra.mxu1 %vm716_vm0, %v3822_v59 }
 0xa8a   : > { %6984 = vst [vmem:[%s10447_s10 + $0x228] sm:$0xff] %v3566_v37 }
 0xa8b   : > { %v9201_v34 = vpop.eup %9200  ;;  %4223 = vrot.lane.b32.xlu1 %v14431_v48, %s14178_s20  ;;  %v12219_v48 = vld [vmem:[%s9848_s18 + $0x60] sm:$0xff] }
 0xa8c   : > { %v9203_v30 = vpop.eup %9202  ;;  %v3567_v41 = vmul.f32 %v9201_v34, %v11985_v15  ;;  %v12214_v34 = vld [vmem:[%s9848_s18 + $0x68] sm:$0xff]  ;;  %14437 = vst [vmem:[#allocation70_spill] sm:$0xff] %v12219_v48 }
 0xa8d   : > { %v3565_v7 = vmul.f32 %v9203_v30, %v14432_v50  ;;  %14436 = vst [vmem:[#allocation69_spill] sm:$0xff] %v12214_v34  ;;  %v14439_v50 = vld [vmem:[#allocation64_spill] sm:$0xff] }
 0xa8e   : > { %6985 = vst [vmem:[%s10447_s10 + $0x230] sm:$0xff] %v3567_v41 }
 0xa8f   : > { %v9205_v62 = vpop.eup %9204  ;;  %6983 = vst [vmem:[%s10447_s10 + $0x220] sm:$0xff] %v3565_v7  ;;  %8207 = vmatprep.mubr.f32.mxu1 %v3565_v7 }
 0xa90   : > { %8208 = vmatmul.mubr.f32.gmra.mxu1 %v3566_v37  ;;  %v3568_v2 = vmul.f32 %v9205_v62, %v14433_v24  ;;  %v12203_v37 = vld [vmem:[%s9848_s18 + $0x70] sm:$0xff] }
 0xa91   : > { %8210 = vmatprep.mubr.f32.mxu1 %v3567_v41  ;;  %14434 = vst [vmem:[#allocation91_spill] sm:$0xff] %v12203_v37  ;;  %4474 = vrot.lane.b32.xlu0 %v12203_v37, %s14184_s23  ;;  %v12226_v41 = vld [vmem:[%s9848_s18 + $0x58] sm:$0xff]  ;;  %v14440_v24 = vld [vmem:[#allocation14_spill] sm:$0xff] }
 0xa92   : > { %6986 = vst [vmem:[%s10447_s10 + $0x238] sm:$0xff] %v3568_v2  ;;  %14438 = vst [vmem:[#allocation71_spill] sm:$0xff] %v12226_v41 }
 0xa94   : > { %8211 = vmatmul.mubr.f32.gmra.mxu1 %v3568_v2  ;;  %v14441_v2 = vld [vmem:[#allocation20_spill] sm:$0xff] }
 0xa95   : > { %4472 = vrot.lane.b32.xlu0 %v12214_v34, %s14184_s23 }
 0xa99   : > { %4468 = vrot.lane.b32.xlu0 %v12226_v41, %s14184_s23 }
 0xa9d   : > { %4464 = vrot.lane.b32.xlu0 %v14440_v24, %s14184_s23 }
 0xab2   : > { %v3534_v54 = vpop.xlane.xlu0 %3533 }
 0xab3   : > { %9206 = vrcp.f32 %v3534_v54 }
 0xab6   : > { %v3540_v52 = vpop.xlane.xlu0 %3539  ;;  %v3532_v3 = vpop.xlane.xlu1 %3531 }
 0xab7   : > { %9208 = vrcp.f32 %v3540_v52  ;;  %v14442_v52 = vld [vmem:[#allocation16_spill] sm:$0xff] }
 0xab8   : > { %9210 = vrcp.f32 %v3532_v3  ;;  %4460 = vrot.lane.b32.xlu0 %v14442_v52, %s14184_s23 }
 0xaba   : > { %v3544_v15 = vpop.xlane.xlu0 %3543  ;;  %v3530_v51 = vpop.xlane.xlu1 %3529 }
 0xabb   : > { %9212 = vrcp.f32 %v3544_v15 }
 0xabc   : > { %9214 = vrcp.f32 %v3530_v51 }
 0xabe   : > { %v3536_v14 = vpop.xlane.xlu1 %3535  ;;  %v3820_v19 = vpop.permute.xlu0 %3819 }
 0xabf   : > { %9216 = vrcp.f32 %v3536_v14  ;;  %8255 = vmatprep.subr.msk.mxu1 %vm716_vm0, %v3820_v19 }
 0xac0   : > { %v9207_v53 = vpop.eup %9206  ;;  %8256 = vmatpush3.xpose.msk.msra.mxu1 %vm716_vm0, %v3820_v19 }
 0xac1   : > { %v3571_v33 = vmul.f32 %v9207_v53, %v12007_v63 }
 0xac2   : > { %v3538_v13 = vpop.xlane.xlu1 %3537  ;;  %v3790_v38 = vpop.permute.xlu0 %3789 }
 0xac3   : > { %9218 = vrcp.f32 %v3538_v13  ;;  %6989 = vst [vmem:[%s10447_s10 + $0x250] sm:$0xff] %v3571_v33 }
 0xac4   : > { %v9209_v1 = vpop.eup %9208 }
 0xac5   : > { %v9211_v32 = vpop.eup %9210  ;;  %v3574_v45 = vmul.f32 %v9209_v1, %v12012_v29 }
 0xac6   : > { %v3542_v57 = vpop.xlane.xlu1 %3541  ;;  %v3570_v26 = vmul.f32 %v9211_v32, %v12010_v6  ;;  %v3794_v59 = vpop.permute.xlu0 %3793 }
 0xac7   : > { %9220 = vrcp.f32 %v3542_v57  ;;  %6992 = vst [vmem:[%s10447_s10 + $0x268] sm:$0xff] %v3574_v45 }
 0xac8   : > { %v9213_v27 = vpop.eup %9212  ;;  %6988 = vst [vmem:[%s10447_s10 + $0x248] sm:$0xff] %v3570_v26 }
 0xac9   : > { %v9215_v56 = vpop.eup %9214  ;;  %v3576_v63 = vmul.f32 %v9213_v27, %v12018_v35 }
 0xaca   : > { %v3569_v18 = vmul.f32 %v9215_v56, %v12016_v4  ;;  %v3788_v6 = vpop.permute.xlu1 %3787  ;;  %v3798_v60 = vpop.permute.xlu0 %3797 }
 0xacb   : > { %6994 = vst [vmem:[%s10447_s10 + $0x278] sm:$0xff] %v3576_v63 }
 0xacc   : > { %v9217_v36 = vpop.eup %9216  ;;  %6987 = vst [vmem:[%s10447_s10 + $0x240] sm:$0xff] %v3569_v18  ;;  %8213 = vmatprep.mubr.f32.mxu1 %v3569_v18 }
 0xacd   : > { %8214 = vmatmul.mubr.f32.gmra.mxu1 %v3570_v26  ;;  %v3572_v29 = vmul.f32 %v9217_v36, %v12022_v46 }
 0xace   : > { %8216 = vmatprep.mubr.f32.mxu1 %v3571_v33  ;;  %v3792_v10 = vpop.permute.xlu1 %3791  ;;  %v3802_v30 = vpop.permute.xlu0 %3801 }
 0xacf   : > { %6990 = vst [vmem:[%s10447_s10 + $0x258] sm:$0xff] %v3572_v29 }
 0xad0   : > { %v9219_v12 = vpop.eup %9218 }
 0xad1   : > { %8217 = vmatmul.mubr.f32.gmra.mxu1 %v3572_v29  ;;  %v3573_v35 = vmul.f32 %v9219_v12, %v12027_v58  ;;  %v12208_v58 = vld [vmem:[%s9848_s18 + $0x78] sm:$0xff] }
 0xad2   : > { %v3796_v40 = vpop.permute.xlu1 %3795  ;;  %14435 = vst [vmem:[#allocation68_spill] sm:$0xff] %v12208_v58  ;;  %4476 = vrot.lane.b32.xlu1 %v12208_v58, %s14184_s23  ;;  %v3806_v62 = vpop.permute.xlu0 %3805 }
 0xad3   : > { %6991 = vst [vmem:[%s10447_s10 + $0x260] sm:$0xff] %v3573_v35  ;;  %8219 = vmatprep.mubr.f32.mxu1 %v3573_v35 }
 0xad4   : > { %v9221_v4 = vpop.eup %9220 }
 0xad5   : > { %8220 = vmatmul.mubr.f32.gmra.mxu1 %v3574_v45  ;;  %v3575_v46 = vmul.f32 %v9221_v4, %v12030_v39 }
 0xad6   : > { %v3800_v39 = vpop.permute.xlu1 %3799  ;;  %4470 = vrot.lane.b32.xlu1 %v12219_v48, %s14184_s23  ;;  %v3810_v3 = vpop.permute.xlu0 %3809 }
 0xad7   : > { %6993 = vst [vmem:[%s10447_s10 + $0x270] sm:$0xff] %v3575_v46  ;;  %8222 = vmatprep.mubr.f32.mxu1 %v3575_v46 }
 0xad9   : > { %8223 = vmatmul.mubr.f32.gmra.mxu1 %v3576_v63 }
 0xada   : > { %8257 = vmatprep.mubr.msk.f32.mxu1 %vm716_vm0, %v3788_v6  ;;  %4466 = vrot.lane.b32.xlu1 %v14439_v50, %s14184_s23  ;;  %v3804_v7 = vpop.permute.xlu1 %3803  ;;  %v3814_v51 = vpop.permute.xlu0 %3813 }
 0xadd   : > { %8258 = vmatmul.mubr.msk.f32.vlgmr.msra.gmra.mxu1 %vm716_vm0, %v3790_v38 }
 0xade   : > { %8260 = vmatprep.mubr.msk.f32.mxu1 %vm716_vm0, %v3792_v10  ;;  %4462 = vrot.lane.b32.xlu1 %v14441_v2, %s14184_s23  ;;  %v3808_v54 = vpop.permute.xlu1 %3807  ;;  %v3818_v19 = vpop.permute.xlu0 %3817 }
 0xae1   : > { %8261 = vmatmul.mubr.msk.f32.gmra.mxu1 %vm716_vm0, %v3794_v59 }
 0xae2   : > { %8263 = vmatprep.mubr.msk.f32.mxu1 %vm716_vm0, %v3796_v40  ;;  %v3812_v15 = vpop.permute.xlu1 %3811  ;;  %v4252_v1 = vpop.permute.xlu0 %4251 }
 0xae3   : > { %8281 = vmatprep.subr.mxu0 %v4252_v1 }
 0xae4   : > { %8282 = vmatpush3.msra.mxu0 %v4252_v1 }
 0xae5   : > { %8264 = vmatmul.mubr.msk.f32.gmra.mxu1 %vm716_vm0, %v3798_v60 }
 0xae6   : > { %8266 = vmatprep.mubr.msk.f32.mxu1 %vm716_vm0, %v3800_v39  ;;  %v3816_v14 = vpop.permute.xlu1 %3815  ;;  %v4248_v45 = vpop.permute.xlu0 %4247 }
 0xae9   : > { %8267 = vmatmul.mubr.msk.f32.gmra.mxu1 %vm716_vm0, %v3802_v30 }
 0xaea   : > { %8269 = vmatprep.mubr.msk.f32.mxu1 %vm716_vm0, %v3804_v7  ;;  %v4250_v32 = vpop.permute.xlu1 %4249  ;;  %v4244_v26 = vpop.permute.xlu0 %4243 }
 0xaeb   : > { %8283 = vmatprep.subr.mxu0 %v4250_v32 }
 0xaec   : > { %8284 = vmatpush3.msra.mxu0 %v4250_v32 }
 0xaed   : > { %8270 = vmatmul.mubr.msk.f32.gmra.mxu1 %vm716_vm0, %v3806_v62  ;;  %8285 = vmatprep.subr.mxu0 %v4248_v45 }
 0xaee   : > { %8272 = vmatprep.mubr.msk.f32.mxu1 %vm716_vm0, %v3808_v54  ;;  %v4246_v57 = vpop.permute.xlu1 %4245  ;;  %8286 = vmatpush3.msra.mxu0 %v4248_v45  ;;  %v4238_v63 = vpop.permute.xlu0 %4237  ;;  %v14462_v54 = vld [vmem:[#allocation90_spill] sm:$0xff] }
 0xaef   : > { %8287 = vmatprep.subr.mxu0 %v4246_v57 }
 0xaf0   : > { %8288 = vmatpush3.msra.mxu0 %v4246_v57 }
 0xaf1   : > { %8273 = vmatmul.mubr.msk.f32.gmra.mxu1 %vm716_vm0, %v3810_v3  ;;  %8289 = vmatprep.subr.mxu0 %v4244_v26 }
 0xaf2   : > { %8275 = vmatprep.mubr.msk.f32.mxu1 %vm716_vm0, %v3812_v15  ;;  %v4242_v27 = vpop.permute.xlu1 %4241  ;;  %8290 = vmatpush3.msra.mxu0 %v4244_v26  ;;  %v4234_v29 = vpop.permute.xlu0 %4233 }
 0xaf3   : > { %8291 = vmatprep.subr.mxu0 %v4242_v27 }
 0xaf4   : > { %8292 = vmatpush3.msra.mxu0 %v4242_v27  ;;  %v14459_v27 = vld [vmem:[#allocation87_spill] sm:$0xff] }
 0xaf5   : > { %8276 = vmatmul.mubr.msk.f32.gmra.mxu1 %vm716_vm0, %v3814_v51 }
 0xaf6   : > { %8278 = vmatprep.mubr.msk.f32.mxu1 %vm716_vm0, %v3816_v14  ;;  %v4240_v56 = vpop.permute.xlu1 %4239  ;;  %v4230_v35 = vpop.permute.xlu0 %4229 }
 0xaf7   : > { %8293 = vmatprep.subr.mxu0 %v4240_v56 }
 0xaf8   : > { %8294 = vmatpush3.msra.mxu0 %v4240_v56  ;;  %v14460_v56 = vld [vmem:[#allocation88_spill] sm:$0xff] }
 0xaf9   : > { %8279 = vmatmul.mubr.msk.f32.gmra.mxu1 %vm716_vm0, %v3818_v19  ;;  %8295 = vmatprep.subr.mxu0 %v4238_v63 }
 0xafa   : > { %8296 = vmatpush3.msra.mxu0 %v4238_v63  ;;  %v4236_v36 = vpop.permute.xlu1 %4235  ;;  %v4226_v30 = vpop.permute.xlu0 %4225  ;;  %v14461_v63 = vld [vmem:[#allocation89_spill] sm:$0xff] }
 0xafb   : > { %8297 = vmatprep.subr.mxu0 %v4236_v36 }
 0xafc   : > { %8298 = vmatpush3.msra.mxu0 %v4236_v36 }
 0xafd   : > { %8299 = vmatprep.subr.mxu0 %v4234_v29 }
 0xafe   : > { %8300 = vmatpush3.msra.mxu0 %v4234_v29  ;;  %v4232_v38 = vpop.permute.xlu1 %4231  ;;  %v4222_v7 = vpop.permute.xlu0 %4221 }
 0xaff   : > { %8301 = vmatprep.subr.mxu0 %v4232_v38 }
 0xb00   : > { %8302 = vmatpush3.msra.mxu0 %v4232_v38 }
 0xb01   : > { %8303 = vmatprep.subr.mxu0 %v4230_v35 }
 0xb02   : > { %8304 = vmatpush3.msra.mxu0 %v4230_v35  ;;  %v4228_v40 = vpop.permute.xlu1 %4227 }
 0xb03   : > { %8305 = vmatprep.subr.mxu0 %v4228_v40  ;;  %v12344_v39 = vpop.permute.xlu0 %4474 }
 0xb04   : > { %8306 = vmatpush3.msra.mxu0 %v4228_v40 }
 0xb05   : > { %8307 = vmatprep.subr.mxu0 %v4226_v30 }
 0xb06   : > { %8308 = vmatpush3.msra.mxu0 %v4226_v30  ;;  %v4224_v50 = vpop.permute.xlu1 %4223 }
 0xb07   : > { %8309 = vmatprep.subr.mxu0 %v4224_v50  ;;  %v12346_v59 = vpop.permute.xlu0 %4472 }
 0xb08   : > { %8310 = vmatpush3.msra.mxu0 %v4224_v50 }
 0xb09   : > { %8311 = vmatprep.subr.mxu0 %v4222_v7 }
 0xb0a   : > { %8312 = vmatpush3.msra.mxu0 %v4222_v7 }
 0xb0b   : > { %v12348_v12 = vpop.permute.xlu0 %4468 }
 0xb10   : > { %v12251_v53 = vpop.f32.mrf.mxu1 }
 0xb11   : > { %14443 = vst [vmem:[#allocation72_spill] sm:$0xff] %v12251_v53 }
 0xb12   : > { %v12253_v33 = vpop.f32.mrf.mxu1 }
 0xb13   : > { %14444 = vst [vmem:[#allocation12_spill] sm:$0xff] %v12253_v33 }
 0xb44   : > { %v12275_v62 = vpop.permute.xlu1 %4476 }
 0xb45   : > { %8337 = vmatprep.subr.msk.mxu0 %vm716_vm0, %v12275_v62 }
 0xb47   : > { %v12257_v18 = vpop.f32.mrf.mxu1 }
 0xb48   : > { %14445 = vst [vmem:[#allocation92_spill] sm:$0xff] %v12257_v18  ;;  %v12350_v13 = vpop.permute.xlu1 %4470 }
 0xb49   : > { %v12259_v6 = vpop.f32.mrf.mxu1 }
 0xb4a   : > { %14446 = vst [vmem:[#allocation93_spill] sm:$0xff] %v12259_v6 }
 0xb50   : > { %v12263_v10 = vpop.f32.mrf.mxu1 }
 0xb51   : > { %14447 = vst [vmem:[#allocation64_spill] sm:$0xff] %v12263_v10 }
 0xb52   : > { %v12265_v4 = vpop.f32.mrf.mxu1 }
 0xb53   : > { %14448 = vst [vmem:[#allocation14_spill] sm:$0xff] %v12265_v4 }
 0xb54   : > { %v12269_v46 = vpop.f32.mrf.mxu1 }
 0xb55   : > { %14449 = vst [vmem:[#allocation20_spill] sm:$0xff] %v12269_v46 }
 0xb56   : > { %v12271_v60 = vpop.f32.mrf.mxu1 }
 0xb57   : > { %14450 = vst [vmem:[#allocation16_spill] sm:$0xff] %v12271_v60 }
 0xb8d   : > { %v12279_v24 = vpop.f32.mrf.mxu1 }
 0xb8e   : > { %14451 = vst [vmem:[#allocation94_spill] sm:$0xff] %v12279_v24 }
 0xb8f   : > { %v12281_v2 = vpop.f32.mrf.mxu1 }
 0xb90   : > { %14452 = vst [vmem:[#allocation95_spill] sm:$0xff] %v12281_v2 }
 0xb91   : > { %v12285_v52 = vpop.f32.mrf.mxu1 }
 0xb92   : > { %14453 = vst [vmem:[#allocation96_spill] sm:$0xff] %v12285_v52 }
 0xb93   : > { %v12287_v3 = vpop.f32.mrf.mxu1 }
 0xb94   : > { %14454 = vst [vmem:[#allocation97_spill] sm:$0xff] %v12287_v3 }
 0xb95   : > { %v12291_v51 = vpop.f32.mrf.mxu1 }
 0xb96   : > { %14455 = vst [vmem:[#allocation98_spill] sm:$0xff] %v12291_v51 }
 0xb97   : > { %v12293_v14 = vpop.f32.mrf.mxu1 }
 0xb98   : > { %14456 = vst [vmem:[#allocation99_spill] sm:$0xff] %v12293_v14 }
 0xb99   : > { %v12297_v1 = vpop.f32.mrf.mxu1 }
 0xb9a   : > { %14457 = vst [vmem:[#allocation100_spill] sm:$0xff] %v12297_v1  ;;  %v12354_v1 = vpop.permute.xlu1 %4466 }
 0xb9b   : > { %v12299_v32 = vpop.f32.mrf.mxu1 }
 0xb9c   : > { %14458 = vst [vmem:[#allocation101_spill] sm:$0xff] %v12299_v32  ;;  %v12352_v32 = vpop.permute.xlu0 %4464 }
 0xb9d   : > { %v8259_v57 = vpop.f32.mrf.mxu1 }
 0xb9e   : > { %4062 = vmax.xlane.f32.xlu0 %v8259_v57  ;;  %v12358_v51 = vpop.permute.xlu1 %4462 }
 0xb9f   : > { %v3981_v26 = vpop.f32.mrf.mxu1 }
 0xba0   : > { %4060 = vmax.xlane.f32.xlu1 %v3981_v26  ;;  %v12356_v14 = vpop.permute.xlu0 %4460 }
 0xba1   : > { %v8262_v36 = vpop.f32.mrf.mxu1 }
 0xba3   : > { %v3991_v29 = vpop.f32.mrf.mxu1 }
 0xba5   : > { %v8265_v38 = vpop.f32.mrf.mxu1 }
 0xba7   : > { %v12309_v35 = vpop.f32.mrf.mxu1 }
 0xba9   : > { %v12311_v40 = vpop.f32.mrf.mxu1 }
 0xbab   : > { %v12313_v30 = vpop.f32.mrf.mxu1 }
 0xbad   : > { %v12315_v50 = vpop.f32.mrf.mxu1 }
 0xbaf   : > { %v12317_v7 = vpop.f32.mrf.mxu1 }
 0xbb1   : > { %4458 = vrot.lane.b32.xlu1 %v14459_v27, %s14184_s23  ;;  %v12319_v27 = vpop.f32.mrf.mxu1 }
 0xbb4   : > { %4456 = vrot.lane.b32.xlu0 %v14460_v56, %s14184_s23  ;;  %v12322_v56 = vpop.f32.mrf.mxu1 }
 0xbb8   : > { %4454 = vrot.lane.b32.xlu0 %v14461_v63, %s14184_s23  ;;  %v12326_v63 = vpop.f32.mrf.mxu1 }
 0xbba   : > { %v12330_v45 = vpop.f32.mrf.mxu1 }
 0xbbc   : > { %v12334_v19 = vpop.f32.mrf.mxu1 }
 0xbbe   : > { %v12338_v15 = vpop.f32.mrf.mxu1 }
 0xbd5   : > { %4066 = vmax.xlane.f32.xlu1 %v8262_v36 }
 0xbd7   : > { %4064 = vmax.xlane.f32.xlu0 %v3991_v29 }
 0xbd9   : > { %4070 = vmax.xlane.f32.xlu1 %v8265_v38 }
 0xbdb   : > { %4068 = vmax.xlane.f32.xlu0 %v12309_v35 }
 0xbdd   : > { %4074 = vmax.xlane.f32.xlu1 %v12311_v40 }
 0xbdf   : > { %4072 = vmax.xlane.f32.xlu0 %v12313_v30 }
 0xbe1   : > { %4078 = vmax.xlane.f32.xlu1 %v12315_v50 }
 0xbe3   : > { %4076 = vmax.xlane.f32.xlu0 %v12317_v7 }
 0xbe5   : > { %4082 = vmax.xlane.f32.xlu1 %v12319_v27 }
 0xbe7   : > { %4080 = vmax.xlane.f32.xlu0 %v12322_v56 }
 0xbe9   : > { %4086 = vmax.xlane.f32.xlu1 %v12326_v63 }
 0xbeb   : > { %4084 = vmax.xlane.f32.xlu0 %v12330_v45 }
 0xbed   : > { %4090 = vmax.xlane.f32.xlu1 %v12334_v19 }
 0xbef   : > { %4088 = vmax.xlane.f32.xlu0 %v12338_v15 }
 0xc05   : > { %4452 = vrot.lane.b32.xlu0 %v14462_v54, %s14184_s23 }
 0xc27   : > { %v4063_v3 = vpop.xlane.xlu0 %4062 }
 0xc28   : > { %v4093_v52 = vsub.f32 %v8259_v57, %v4063_v3 }
 0xc29   : > { %v4061_v2 = vpop.xlane.xlu1 %4060 }
 0xc2a   : > { %v4110_v54 = vmul.f32 1.442695, %v4093_v52  ;;  %v4092_v24 = vsub.f32 %v3981_v26, %v4061_v2 }
 0xc2b   : > { %v12366_v10 = vpop.permute.xlu0 %4456 }
 0xc2c   : > { %9222 = vpow2.f32 %v4110_v54  ;;  %v4108_v60 = vmul.f32 1.442695, %v4092_v24 }
 0xc2d   : > { %v12368_v6 = vpop.permute.xlu1 %4458 }
 0xc2e   : > { %9224 = vpow2.f32 %v4108_v60 }
 0xc2f   : > { %v12370_v18 = vpop.permute.xlu0 %4454 }
 0xc39   : > { %v12360_v46 = vpop.eup %9222 }
 0xc3a   : > { %4142 = vadd.xlane.f32.xlu0 %v12360_v46 }
 0xc3b   : > { %v12363_v4 = vpop.eup %9224 }
 0xc3c   : > { %4140 = vadd.xlane.f32.xlu1 %v12363_v4 }
 0xc5e   : > { %v4067_v3 = vpop.xlane.xlu1 %4066 }
 0xc5f   : > { %v4095_v52 = vsub.f32 %v8262_v36, %v4067_v3 }
 0xc60   : > { %v4065_v2 = vpop.xlane.xlu0 %4064 }
 0xc61   : > { %v4114_v57 = vmul.f32 1.442695, %v4095_v52  ;;  %v4094_v24 = vsub.f32 %v3991_v29, %v4065_v2 }
 0xc62   : > { %v4071_v60 = vpop.xlane.xlu1 %4070 }
 0xc63   : > { %9226 = vpow2.f32 %v4114_v57  ;;  %v4112_v26 = vmul.f32 1.442695, %v4094_v24  ;;  %v4097_v54 = vsub.f32 %v8265_v38, %v4071_v60 }
 0xc64   : > { %v4069_v33 = vpop.xlane.xlu0 %4068 }
 0xc65   : > { %9228 = vpow2.f32 %v4112_v26  ;;  %v4118_v53 = vmul.f32 1.442695, %v4097_v54  ;;  %v4096_v41 = vsub.f32 %v12309_v35, %v4069_v33  ;;  %v14466_v35 = vld [vmem:[#allocation67_spill] sm:$0xff] }
 0xc66   : > { %v4075_v48 = vpop.xlane.xlu1 %4074 }
 0xc67   : > { %v4116_v34 = vmul.f32 1.442695, %v4096_v41  ;;  %9230 = vpow2.f32 %v4118_v53  ;;  %v4099_v37 = vsub.f32 %v12311_v40, %v4075_v48  ;;  %v12394_v53 = vld [vmem:[%s9848_s18 + $0x8] sm:$0xff] }
 0xc68   : > { %v4073_v58 = vpop.xlane.xlu0 %4072  ;;  %14465 = vst [vmem:[#allocation89_spill] sm:$0xff] %v12394_v53 }
 0xc69   : > { %v4098_v36 = vsub.f32 %v12313_v30, %v4073_v58  ;;  %9232 = vpow2.f32 %v4116_v34  ;;  %v4122_v29 = vmul.f32 1.442695, %v4099_v37 }
 0xc6a   : > { %v4079_v34 = vpop.xlane.xlu1 %4078 }
 0xc6b   : > { %v4120_v3 = vmul.f32 1.442695, %v4098_v36  ;;  %v4101_v24 = vsub.f32 %v12315_v50, %v4079_v34 }
 0xc6c   : > { %v4077_v33 = vpop.xlane.xlu0 %4076 }
 0xc6d   : > { %9234 = vpow2.f32 %v4120_v3  ;;  %v4126_v36 = vmul.f32 1.442695, %v4101_v24  ;;  %v4100_v3 = vsub.f32 %v12317_v7, %v4077_v33 }
 0xc6e   : > { %9236 = vpow2.f32 %v4122_v29  ;;  %v4083_v40 = vpop.xlane.xlu1 %4082 }
 0xc70   : > { %v12375_v52 = vpop.eup %9226  ;;  %v4081_v30 = vpop.xlane.xlu0 %4080 }
 0xc71   : > { %4146 = vadd.xlane.f32.xlu0 %v12375_v52  ;;  %v4102_v57 = vsub.f32 %v12322_v56, %v4081_v30 }
 0xc72   : > { %v12378_v38 = vpop.eup %9228  ;;  %v4087_v2 = vpop.xlane.xlu1 %4086 }
 0xc73   : > { %4144 = vadd.xlane.f32.xlu1 %v12378_v38  ;;  %v4128_v60 = vmul.f32 1.442695, %v4102_v57  ;;  %v4105_v26 = vsub.f32 %v12326_v63, %v4087_v2 }
 0xc74   : > { %v12381_v41 = vpop.eup %9230 }
 0xc75   : > { %9238 = vpow2.f32 %v4128_v60  ;;  %v4134_v29 = vmul.f32 1.442695, %v4105_v26 }
 0xc76   : > { %v12384_v48 = vpop.eup %9232  ;;  %v4091_v54 = vpop.xlane.xlu1 %4090  ;;  %9240 = vpow2.f32 %v4126_v36 }
 0xc77   : > { %4150 = vadd.xlane.f32.xlu1 %v12381_v41  ;;  %14463 = vst [vmem:[#allocation87_spill] sm:$0xff] %v12384_v48  ;;  %9242 = vpow2.f32 %v4134_v29 }
 0xc7a   : > { %v12386_v58 = vpop.eup %9234 }
 0xc7b   : > { %4152 = vadd.xlane.f32.xlu0 %v12386_v58  ;;  %4148 = vadd.xlane.f32.xlu1 %v12384_v48  ;;  %v12390_v37 = vpop.eup %9236  ;;  %v4103_v48 = vsub.f32 %v12319_v27, %v4083_v40 }
 0xc7c   : > { %14464 = vst [vmem:[#allocation88_spill] sm:$0xff] %v12390_v37 }
 0xc7d   : > { %v4130_v50 = vmul.f32 1.442695, %v4103_v48 }
 0xc7f   : > { %4154 = vadd.xlane.f32.xlu1 %v12390_v37  ;;  %v4085_v37 = vpop.xlane.xlu0 %4084 }
 0xc80   : > { %v4104_v34 = vsub.f32 %v12330_v45, %v4085_v37 }
 0xc82   : > { %v4132_v30 = vmul.f32 1.442695, %v4104_v34  ;;  %v12408_v33 = vpop.eup %9238  ;;  %v9494_v34 = vld [vmem:[%s10024_s22 + $0x18] sm:$0xff] }
 0xc83   : > { %v4089_v63 = vpop.xlane.xlu0 %4088 }
 0xc84   : > { %v4106_v7 = vsub.f32 %v12338_v15, %v4089_v63  ;;  %v9495_v63 = vld [vmem:[%s10024_s22 + $0x8] sm:$0xff] }
 0xc86   : > { %v4136_v27 = vmul.f32 1.442695, %v4106_v7 }
 0xc87   : > { %v12426_v37 = vpop.permute.xlu0 %4452 }
 0xc90   : > { %4448 = vrot.lane.b32.xlu1 %v12394_v53, %s14184_s23  ;;  %v4107_v53 = vsub.f32 %v12334_v19, %v4091_v54  ;;  %v12411_v19 = vpop.eup %9240 }
 0xc91   : > { %4450 = vrot.lane.b32.xlu0 %v14466_v35, %s14184_s23  ;;  %v4124_v35 = vmul.f32 1.442695, %v4100_v3  ;;  %v12413_v40 = vpop.eup %9242 }
 0xc92   : > { %v4138_v56 = vmul.f32 1.442695, %v4107_v53 }
 0xc93   : > { %9244 = vpow2.f32 %v4124_v35  ;;  %v12574_v35 = vld [vmem:[%s10024_s22 + $0x28] sm:$0xff] }
 0xc94   : > { %9246 = vpow2.f32 %v4138_v56  ;;  %14470 = vst [vmem:[#allocation103_spill] sm:$0xff] %v12574_v35 }
 0xc95   : > { %9248 = vpow2.f32 %v4130_v50 }
 0xc96   : > { %9250 = vpow2.f32 %v4132_v30 }
 0xc97   : > { %9252 = vpow2.f32 %v4136_v27  ;;  %v14471_v27 = vld [vmem:[#allocation87_spill] sm:$0xff] }
 0xca0   : > { %v12417_v45 = vpop.eup %9244 }
 0xca1   : > { %v12419_v48 = vpop.eup %9246 }
 0xca2   : > { %v12423_v15 = vpop.eup %9248 }
 0xca3   : > { %v12428_v53 = vpop.eup %9250 }
 0xca4   : > { %v12431_v2 = vpop.eup %9252 }
 0xcb0   : > { %4160 = vadd.xlane.f32.xlu0 %v12408_v33 }
 0xcb4   : > { %4158 = vadd.xlane.f32.xlu1 %v12411_v19  ;;  %4166 = vadd.xlane.f32.xlu0 %v12413_v40 }
 0xcb8   : > { %4156 = vadd.xlane.f32.xlu1 %v12417_v45  ;;  %4170 = vadd.xlane.f32.xlu0 %v12419_v48 }
 0xcbc   : > { %4162 = vadd.xlane.f32.xlu1 %v12423_v15 }
 0xcc0   : > { %4164 = vadd.xlane.f32.xlu1 %v12428_v53 }
 0xcc3   : > { %v4143_v57 = vpop.xlane.xlu0 %4142 }
 0xcc4   : > { %9254 = vrcp.f32 %v4143_v57  ;;  %4168 = vadd.xlane.f32.xlu1 %v12431_v2 }
 0xcc5   : > { %v4141_v24 = vpop.xlane.xlu1 %4140 }
 0xcc6   : > { %9256 = vrcp.f32 %v4141_v24 }
 0xcce   : > { %4446 = vrot.lane.b32.xlu0 %v12034_v28, %s14184_s23  ;;  %v12501_v28 = vld [vmem:[%s10024_s22 + $0x78] sm:$0xff] }
 0xcd1   : > { %v9255_v60 = vpop.eup %9254 }
 0xcd2   : > { %v4189_v26 = vmul.f32 %v9255_v60, %v12360_v46  ;;  %4416 = vrot.lane.b32.xlu0 %v14312_v42, %s14184_s23 }
 0xcd3   : > { %v9257_v54 = vpop.eup %9256 }
 0xcd4   : > { %v4188_v36 = vmul.f32 %v9257_v54, %v12363_v4  ;;  %7028 = vst [vmem:[%s10447_s10 + $0x288] sm:$0xff] %v4189_v26  ;;  %v12524_v4 = vld [vmem:[%s10024_s22 + $0x60] sm:$0xff] }
 0xcd5   : > { %4414 = vrot.lane.b32.xlu1 %v14304_v55, %s14184_s23 }
 0xcd6   : > { %7027 = vst [vmem:[%s10447_s10 + $0x280] sm:$0xff] %v4188_v36  ;;  %8313 = vmatprep.mubr.f32.mxu0 %v4188_v36  ;;  %4420 = vrot.lane.b32.xlu0 %v14313_v9, %s14184_s23 }
 0xcd7   : > { %8314 = vmatmul.mubr.f32.vlgmr.msra.gmra.mxu0 %v4189_v26 }
 0xcd8   : > { %8338 = vmatpush3.xpose.msk.msra.mxu0 %vm716_vm0, %v12275_v62  ;;  %v12540_v62 = vld [vmem:[%s10024_s22 + $0x40] sm:$0xff] }
 0xcd9   : > { %8339 = vmatprep.subr.msk.mxu0 %vm716_vm0, %v12344_v39  ;;  %4418 = vrot.lane.b32.xlu1 %v14305_v25, %s14184_s23  ;;  %14467 = vst [vmem:[#allocation90_spill] sm:$0xff] %v12540_v62 }
 0xcda   : > { %4424 = vrot.lane.b32.xlu0 %v14314_v11, %s14184_s23 }
 0xcdc   : > { %8340 = vmatpush3.xpose.msk.msra.mxu0 %vm716_vm0, %v12344_v39  ;;  %v12535_v39 = vld [vmem:[%s10024_s22 + $0x50] sm:$0xff] }
 0xcdd   : > { %8341 = vmatprep.subr.msk.mxu0 %vm716_vm0, %v12346_v59  ;;  %4422 = vrot.lane.b32.xlu1 %v14306_v8, %s14184_s23 }
 0xcde   : > { %4428 = vrot.lane.b32.xlu0 %v14315_v16, %s14184_s23 }
 0xce0   : > { %8342 = vmatpush3.xpose.msk.msra.mxu0 %vm716_vm0, %v12346_v59 }
 0xce1   : > { %8343 = vmatprep.subr.msk.mxu0 %vm716_vm0, %v12350_v13  ;;  %4426 = vrot.lane.b32.xlu1 %v14307_v47, %s14184_s23 }
 0xce2   : > { %4432 = vrot.lane.b32.xlu0 %v14316_v23, %s14184_s23 }
 0xce4   : > { %8344 = vmatpush3.xpose.msk.msra.mxu0 %vm716_vm0, %v12350_v13  ;;  %v12510_v13 = vld [vmem:[%s10024_s22 + $0x70] sm:$0xff] }
 0xce5   : > { %8345 = vmatprep.subr.msk.mxu0 %vm716_vm0, %v12348_v12  ;;  %4430 = vrot.lane.b32.xlu1 %v14308_v20, %s14184_s23 }
 0xce6   : > { %4436 = vrot.lane.b32.xlu0 %v14319_v31, %s14184_s23 }
 0xce8   : > { %8346 = vmatpush3.xpose.msk.msra.mxu0 %vm716_vm0, %v12348_v12  ;;  %v12515_v12 = vld [vmem:[%s10024_s22 + $0x68] sm:$0xff] }
 0xce9   : > { %8347 = vmatprep.subr.msk.mxu0 %vm716_vm0, %v12354_v1  ;;  %4434 = vrot.lane.b32.xlu1 %v14309_v17, %s14184_s23 }
 0xcea   : > { %4440 = vrot.lane.b32.xlu0 %v14322_v43, %s14184_s23 }
 0xcec   : > { %8348 = vmatpush3.xpose.msk.msra.mxu0 %vm716_vm0, %v12354_v1  ;;  %v12563_v1 = vld [vmem:[%s10024_s22 + $0x38] sm:$0xff] }
 0xced   : > { %8349 = vmatprep.subr.msk.mxu0 %vm716_vm0, %v12352_v32  ;;  %4438 = vrot.lane.b32.xlu1 %v14310_v49, %s14184_s23  ;;  %14469 = vst [vmem:[#allocation102_spill] sm:$0xff] %v12563_v1 }
 0xcee   : > { %4444 = vrot.lane.b32.xlu0 %v14325_v44, %s14184_s23 }
 0xcf0   : > { %8350 = vmatpush3.xpose.msk.msra.mxu0 %vm716_vm0, %v12352_v32 }
 0xcf1   : > { %8351 = vmatprep.subr.msk.mxu0 %vm716_vm0, %v12358_v51  ;;  %4442 = vrot.lane.b32.xlu1 %v14311_v0, %s14184_s23 }
 0xcf2   : > { %4878 = vrot.lane.b32.xlu0 %v12501_v28, %s14184_s23 }
 0xcf4   : > { %8352 = vmatpush3.xpose.msk.msra.mxu0 %vm716_vm0, %v12358_v51  ;;  %v12554_v51 = vld [vmem:[%s10024_s22 + $0x30] sm:$0xff] }
 0xcf5   : > { %8353 = vmatprep.subr.msk.mxu0 %vm716_vm0, %v12356_v14  ;;  %4876 = vrot.lane.b32.xlu1 %v12510_v13, %s14184_s23  ;;  %14468 = vst [vmem:[#allocation67_spill] sm:$0xff] %v12554_v51 }
 0xcf6   : > { %4874 = vrot.lane.b32.xlu0 %v12515_v12, %s14184_s23 }
 0xcf8   : > { %8354 = vmatpush3.xpose.msk.msra.mxu0 %vm716_vm0, %v12356_v14 }
 0xcf9   : > { %8355 = vmatprep.subr.msk.mxu0 %vm716_vm0, %v12368_v6  ;;  %4872 = vrot.lane.b32.xlu1 %v12524_v4, %s14184_s23 }
 0xcfa   : > { %v4147_v59 = vpop.xlane.xlu0 %4146  ;;  %4870 = vrot.lane.b32.xlu0 %v12119_v61, %s14184_s23 }
 0xcfb   : > { %9258 = vrcp.f32 %v4147_v59 }
 0xcfc   : > { %8356 = vmatpush3.xpose.msk.msra.mxu0 %vm716_vm0, %v12368_v6  ;;  %v4145_v46 = vpop.xlane.xlu1 %4144  ;;  %v12549_v6 = vld [vmem:[%s10024_s22 + $0x48] sm:$0xff] }
 0xcfd   : > { %8357 = vmatprep.subr.msk.mxu0 %vm716_vm0, %v12366_v10  ;;  %9260 = vrcp.f32 %v4145_v46  ;;  %4868 = vrot.lane.b32.xlu1 %v12535_v39, %s14184_s23 }
 0xcfe   : > { %4864 = vrot.lane.b32.xlu0 %v12540_v62, %s14184_s23 }
 0xd00   : > { %8358 = vmatpush3.xpose.msk.msra.mxu0 %vm716_vm0, %v12366_v10  ;;  %v4151_v61 = vpop.xlane.xlu1 %4150 }
 0xd01   : > { %8359 = vmatprep.subr.msk.mxu0 %vm716_vm0, %v12370_v18  ;;  %9262 = vrcp.f32 %v4151_v61  ;;  %4866 = vrot.lane.b32.xlu1 %v12549_v6, %s14184_s23 }
 0xd02   : > { %4860 = vrot.lane.b32.xlu0 %v12554_v51, %s14184_s23 }
 0xd04   : > { %8360 = vmatpush3.xpose.msk.msra.mxu0 %vm716_vm0, %v12370_v18  ;;  %v4153_v10 = vpop.xlane.xlu0 %4152  ;;  %v4149_v14 = vpop.xlane.xlu1 %4148 }
 0xd05   : > { %9264 = vrcp.f32 %v4153_v10  ;;  %8361 = vmatprep.subr.msk.mxu0 %vm716_vm0, %v12426_v37  ;;  %4862 = vrot.lane.b32.xlu1 %v12563_v1, %s14184_s23 }
 0xd06   : > { %9266 = vrcp.f32 %v4149_v14  ;;  %4856 = vrot.lane.b32.xlu0 %v12146_v5, %s14184_s23 }
 0xd08   : > { %v9259_v32 = vpop.eup %9258  ;;  %8362 = vmatpush3.xpose.msk.msra.mxu0 %vm716_vm0, %v12426_v37  ;;  %v4155_v18 = vpop.xlane.xlu1 %4154 }
 0xd09   : > { %v4451_v3 = vpop.permute.xlu0 %4450  ;;  %9268 = vrcp.f32 %v4155_v18  ;;  %v4191_v29 = vmul.f32 %v9259_v32, %v12375_v52  ;;  %4858 = vrot.lane.b32.xlu1 %v12574_v35, %s14184_s23 }
 0xd0a   : > { %8363 = vmatprep.subr.msk.mxu0 %vm716_vm0, %v4451_v3  ;;  %v9261_v56 = vpop.eup %9260  ;;  %4852 = vrot.lane.b32.xlu0 %v12157_v21, %s14184_s23 }
 0xd0b   : > { %v4190_v5 = vmul.f32 %v9261_v56, %v12378_v38  ;;  %7030 = vst [vmem:[%s10447_s10 + $0x298] sm:$0xff] %v4191_v29 }
 0xd0c   : > { %8364 = vmatpush3.xpose.msk.msra.mxu0 %vm716_vm0, %v4451_v3  ;;  %v4449_v50 = vpop.permute.xlu1 %4448 }
 0xd0d   : > { %7029 = vst [vmem:[%s10447_s10 + $0x290] sm:$0xff] %v4190_v5  ;;  %8316 = vmatprep.mubr.f32.mxu0 %v4190_v5  ;;  %8365 = vmatprep.subr.msk.mxu0 %vm716_vm0, %v4449_v50 }
 0xd0e   : > { %v9263_v52 = vpop.eup %9262  ;;  %8317 = vmatmul.mubr.f32.gmra.mxu0 %v4191_v29  ;;  %4854 = vrot.lane.b32.xlu1 %v9494_v34, %s14184_s23 }
 0xd0f   : > { %v4193_v21 = vmul.f32 %v9263_v52, %v12381_v41  ;;  %4848 = vrot.lane.b32.xlu0 %v12170_v22, %s14184_s23  ;;  %v14472_v41 = vld [vmem:[#allocation88_spill] sm:$0xff] }
 0xd10   : > { %8366 = vmatpush3.xpose.msk.msra.mxu0 %vm716_vm0, %v4449_v50 }
 0xd11   : > { %7032 = vst [vmem:[%s10447_s10 + $0x2a8] sm:$0xff] %v4193_v21 }
 0xd12   : > { %v9265_v38 = vpop.eup %9264  ;;  %4850 = vrot.lane.b32.xlu1 %v9495_v63, %s14184_s23 }
 0xd13   : > { %v9267_v30 = vpop.eup %9266  ;;  %v4194_v7 = vmul.f32 %v9265_v38, %v12386_v58 }
 0xd14   : > { %v4192_v37 = vmul.f32 %v9267_v30, %v14471_v27  ;;  %v14473_v27 = vld [vmem:[#allocation91_spill] sm:$0xff] }
 0xd15   : > { %7033 = vst [vmem:[%s10447_s10 + $0x2b0] sm:$0xff] %v4194_v7  ;;  %5101 = vrot.lane.b32.xlu0 %v14473_v27, %s14182_s8 }
 0xd16   : > { %v9269_v57 = vpop.eup %9268  ;;  %7031 = vst [vmem:[%s10447_s10 + $0x2a0] sm:$0xff] %v4192_v37  ;;  %8319 = vmatprep.mubr.f32.mxu0 %v4192_v37  ;;  %v14474_v37 = vld [vmem:[#allocation68_spill] sm:$0xff] }
 0xd17   : > { %8320 = vmatmul.mubr.f32.gmra.mxu0 %v4193_v21  ;;  %v4195_v22 = vmul.f32 %v9269_v57, %v14472_v41  ;;  %5103 = vrot.lane.b32.xlu1 %v14474_v37, %s14182_s8  ;;  %v14476_v57 = vld [vmem:[#allocation70_spill] sm:$0xff] }
 0xd18   : > { %8322 = vmatprep.mubr.f32.mxu0 %v4194_v7 }
 0xd19   : > { %7034 = vst [vmem:[%s10447_s10 + $0x2b8] sm:$0xff] %v4195_v22 }
 0xd1b   : > { %8323 = vmatmul.mubr.f32.gmra.mxu0 %v4195_v22  ;;  %5097 = vrot.lane.b32.xlu1 %v14476_v57, %s14182_s8  ;;  %v14477_v22 = vld [vmem:[#allocation71_spill] sm:$0xff] }
 0xd39   : > { %v4161_v24 = vpop.xlane.xlu0 %4160 }
 0xd3a   : > { %9270 = vrcp.f32 %v4161_v24  ;;  %v9496_v24 = vld [vmem:[%s9848_s18 + $0x50] sm:$0xff] }
 0xd3b   : > { %5093 = vrot.lane.b32.xlu1 %v9496_v24, %s14182_s8 }
 0xd3d   : > { %v4167_v60 = vpop.xlane.xlu0 %4166  ;;  %v4159_v26 = vpop.xlane.xlu1 %4158 }
 0xd3e   : > { %9272 = vrcp.f32 %v4167_v60 }
 0xd3f   : > { %9274 = vrcp.f32 %v4159_v26 }
 0xd41   : > { %v4171_v58 = vpop.xlane.xlu0 %4170  ;;  %v4157_v54 = vpop.xlane.xlu1 %4156 }
 0xd42   : > { %9276 = vrcp.f32 %v4171_v58  ;;  %v9497_v58 = vld [vmem:[%s9848_s18 + $0x48] sm:$0xff] }
 0xd43   : > { %9278 = vrcp.f32 %v4157_v54  ;;  %v9498_v54 = vld [vmem:[%s9848_s18 + $0x40] sm:$0xff] }
 0xd44   : > { %5089 = vrot.lane.b32.xlu1 %v9498_v54, %s14182_s8 }
 0xd45   : > { %v4163_v36 = vpop.xlane.xlu1 %4162  ;;  %v4447_v59 = vpop.permute.xlu0 %4446 }
 0xd46   : > { %9280 = vrcp.f32 %v4163_v36  ;;  %8367 = vmatprep.subr.msk.mxu0 %vm716_vm0, %v4447_v59 }
 0xd47   : > { %v9271_v46 = vpop.eup %9270  ;;  %8368 = vmatpush3.xpose.msk.msra.mxu0 %vm716_vm0, %v4447_v59  ;;  %v9499_v59 = vld [vmem:[%s9848_s18 + $0x38] sm:$0xff] }
 0xd48   : > { %v4198_v61 = vmul.f32 %v9271_v46, %v12408_v33 }
 0xd49   : > { %v4165_v10 = vpop.xlane.xlu1 %4164  ;;  %v4417_v21 = vpop.permute.xlu0 %4416 }
 0xd4a   : > { %9282 = vrcp.f32 %v4165_v10  ;;  %7037 = vst [vmem:[%s10447_s10 + $0x2d0] sm:$0xff] %v4198_v61 }
 0xd4b   : > { %v9273_v14 = vpop.eup %9272 }
 0xd4c   : > { %v9275_v32 = vpop.eup %9274  ;;  %v4201_v18 = vmul.f32 %v9273_v14, %v12413_v40 }
 0xd4d   : > { %v4169_v3 = vpop.xlane.xlu1 %4168  ;;  %v4197_v29 = vmul.f32 %v9275_v32, %v12411_v19  ;;  %v4421_v63 = vpop.permute.xlu0 %4420 }
 0xd4e   : > { %9284 = vrcp.f32 %v4169_v3  ;;  %7040 = vst [vmem:[%s10447_s10 + $0x2e8] sm:$0xff] %v4201_v18 }
 0xd4f   : > { %v9277_v56 = vpop.eup %9276  ;;  %7036 = vst [vmem:[%s10447_s10 + $0x2c8] sm:$0xff] %v4197_v29 }
 0xd50   : > { %v9279_v5 = vpop.eup %9278  ;;  %v4203_v33 = vmul.f32 %v9277_v56, %v12419_v48 }
 0xd51   : > { %v4196_v50 = vmul.f32 %v9279_v5, %v12417_v45  ;;  %v4415_v19 = vpop.permute.xlu1 %4414 }
 0xd52   : > { %7042 = vst [vmem:[%s10447_s10 + $0x2f8] sm:$0xff] %v4203_v33 }
 0xd53   : > { %v9281_v52 = vpop.eup %9280  ;;  %7035 = vst [vmem:[%s10447_s10 + $0x2c0] sm:$0xff] %v4196_v50  ;;  %8325 = vmatprep.mubr.f32.mxu0 %v4196_v50 }
 0xd54   : > { %8326 = vmatmul.mubr.f32.gmra.mxu0 %v4197_v29  ;;  %v4199_v40 = vmul.f32 %v9281_v52, %v12423_v15  ;;  %v4425_v15 = vpop.permute.xlu0 %4424 }
 0xd55   : > { %8328 = vmatprep.mubr.f32.mxu0 %v4198_v61  ;;  %v4419_v48 = vpop.permute.xlu1 %4418 }
 0xd56   : > { %7038 = vst [vmem:[%s10447_s10 + $0x2d8] sm:$0xff] %v4199_v40 }
 0xd57   : > { %v9283_v34 = vpop.eup %9282 }
 0xd58   : > { %8329 = vmatmul.mubr.f32.gmra.mxu0 %v4199_v40  ;;  %v4200_v38 = vmul.f32 %v9283_v34, %v12428_v53  ;;  %v4429_v41 = vpop.permute.xlu0 %4428 }
 0xd59   : > { %v4423_v7 = vpop.permute.xlu1 %4422 }
 0xd5a   : > { %7039 = vst [vmem:[%s10447_s10 + $0x2e0] sm:$0xff] %v4200_v38  ;;  %8331 = vmatprep.mubr.f32.mxu0 %v4200_v38 }
 0xd5b   : > { %v9285_v45 = vpop.eup %9284 }
 0xd5c   : > { %8332 = vmatmul.mubr.f32.gmra.mxu0 %v4201_v18  ;;  %v4202_v30 = vmul.f32 %v9285_v45, %v12431_v2  ;;  %v14475_v2 = vld [vmem:[#allocation69_spill] sm:$0xff]  ;;  %v4433_v26 = vpop.permute.xlu0 %4432 }
 0xd5d   : > { %v4427_v53 = vpop.permute.xlu1 %4426  ;;  %5099 = vrot.lane.b32.xlu0 %v14475_v2, %s14182_s8 }
 0xd5e   : > { %7041 = vst [vmem:[%s10447_s10 + $0x2f0] sm:$0xff] %v4202_v30  ;;  %8334 = vmatprep.mubr.f32.mxu0 %v4202_v30 }
 0xd60   : > { %8335 = vmatmul.mubr.f32.gmra.mxu0 %v4203_v33  ;;  %v4437_v46 = vpop.permute.xlu0 %4436 }
 0xd61   : > { %8369 = vmatprep.mubr.msk.f32.mxu0 %vm716_vm0, %v4415_v19  ;;  %5095 = vrot.lane.b32.xlu0 %v14477_v22, %s14182_s8  ;;  %v4431_v60 = vpop.permute.xlu1 %4430 }
 0xd64   : > { %8370 = vmatmul.mubr.msk.f32.vlgmr.msra.gmra.mxu0 %vm716_vm0, %v4417_v21  ;;  %v4441_v10 = vpop.permute.xlu0 %4440 }
 0xd65   : > { %8372 = vmatprep.mubr.msk.f32.mxu0 %vm716_vm0, %v4419_v48  ;;  %5091 = vrot.lane.b32.xlu0 %v9497_v58, %s14182_s8  ;;  %v4435_v36 = vpop.permute.xlu1 %4434 }
 0xd68   : > { %8373 = vmatmul.mubr.msk.f32.gmra.mxu0 %vm716_vm0, %v4421_v63  ;;  %v4445_v32 = vpop.permute.xlu0 %4444 }
 0xd69   : > { %8375 = vmatprep.mubr.msk.f32.mxu0 %vm716_vm0, %v4423_v7  ;;  %5087 = vrot.lane.b32.xlu0 %v9499_v59, %s14182_s8  ;;  %v4439_v61 = vpop.permute.xlu1 %4438 }
 0xd6c   : > { %8376 = vmatmul.mubr.msk.f32.gmra.mxu0 %vm716_vm0, %v4425_v15  ;;  %v4879_v56 = vpop.permute.xlu0 %4878 }
 0xd6d   : > { %8378 = vmatprep.mubr.msk.f32.mxu0 %vm716_vm0, %v4427_v53  ;;  %v4443_v14 = vpop.permute.xlu1 %4442  ;;  %8393 = vmatprep.subr.mxu1 %v4879_v56 }
 0xd6e   : > { %8394 = vmatpush3.msra.mxu1 %v4879_v56 }
 0xd70   : > { %8379 = vmatmul.mubr.msk.f32.gmra.mxu0 %vm716_vm0, %v4429_v41  ;;  %v4875_v33 = vpop.permute.xlu0 %4874 }
 0xd71   : > { %8381 = vmatprep.mubr.msk.f32.mxu0 %vm716_vm0, %v4431_v60  ;;  %v4877_v5 = vpop.permute.xlu1 %4876 }
 0xd72   : > { %8395 = vmatprep.subr.mxu1 %v4877_v5 }
 0xd73   : > { %8396 = vmatpush3.msra.mxu1 %v4877_v5 }
 0xd74   : > { %8382 = vmatmul.mubr.msk.f32.gmra.mxu0 %vm716_vm0, %v4433_v26  ;;  %8397 = vmatprep.subr.mxu1 %v4875_v33  ;;  %v4871_v52 = vpop.permute.xlu0 %4870 }
 0xd75   : > { %8384 = vmatprep.mubr.msk.f32.mxu0 %vm716_vm0, %v4435_v36  ;;  %v4873_v50 = vpop.permute.xlu1 %4872  ;;  %8398 = vmatpush3.msra.mxu1 %v4875_v33  ;;  %v9503_v36 = vld [vmem:[%s9848_s18 + $0x18] sm:$0xff] }
 0xd76   : > { %8399 = vmatprep.subr.mxu1 %v4873_v50 }
 0xd77   : > { %8400 = vmatpush3.msra.mxu1 %v4873_v50 }
 0xd78   : > { %8385 = vmatmul.mubr.msk.f32.gmra.mxu0 %vm716_vm0, %v4437_v46  ;;  %8401 = vmatprep.subr.mxu1 %v4871_v52  ;;  %v4865_v34 = vpop.permute.xlu0 %4864 }
 0xd79   : > { %8387 = vmatprep.mubr.msk.f32.mxu0 %vm716_vm0, %v4439_v61  ;;  %v4869_v40 = vpop.permute.xlu1 %4868  ;;  %8402 = vmatpush3.msra.mxu1 %v4871_v52  ;;  %v9500_v52 = vld [vmem:[%s9848_s18 + $0x30] sm:$0xff] }
 0xd7a   : > { %8403 = vmatprep.subr.mxu1 %v4869_v40 }
 0xd7b   : > { %8404 = vmatpush3.msra.mxu1 %v4869_v40  ;;  %v9501_v40 = vld [vmem:[%s9848_s18 + $0x28] sm:$0xff] }
 0xd7c   : > { %8388 = vmatmul.mubr.msk.f32.gmra.mxu0 %vm716_vm0, %v4441_v10  ;;  %v4861_v48 = vpop.permute.xlu0 %4860 }
 0xd7d   : > { %8390 = vmatprep.mubr.msk.f32.mxu0 %vm716_vm0, %v4443_v14  ;;  %v4867_v19 = vpop.permute.xlu1 %4866 }
 0xd7e   : > { %8405 = vmatprep.subr.mxu1 %v4867_v19 }
 0xd7f   : > { %8406 = vmatpush3.msra.mxu1 %v4867_v19  ;;  %v9502_v19 = vld [vmem:[%s9848_s18 + $0x20] sm:$0xff] }
 0xd80   : > { %8391 = vmatmul.mubr.msk.f32.gmra.mxu0 %vm716_vm0, %v4445_v32  ;;  %8407 = vmatprep.subr.mxu1 %v4865_v34  ;;  %v4857_v7 = vpop.permute.xlu0 %4856 }
 0xd81   : > { %8408 = vmatpush3.msra.mxu1 %v4865_v34  ;;  %v4863_v38 = vpop.permute.xlu1 %4862 }
 0xd82   : > { %8409 = vmatprep.subr.mxu1 %v4863_v38 }
 0xd83   : > { %8410 = vmatpush3.msra.mxu1 %v4863_v38 }
 0xd84   : > { %8411 = vmatprep.subr.mxu1 %v4861_v48  ;;  %v4853_v22 = vpop.permute.xlu0 %4852 }
 0xd85   : > { %8412 = vmatpush3.msra.mxu1 %v4861_v48  ;;  %v4859_v30 = vpop.permute.xlu1 %4858 }
 0xd86   : > { %8413 = vmatprep.subr.mxu1 %v4859_v30 }
 0xd87   : > { %8414 = vmatpush3.msra.mxu1 %v4859_v30 }
 0xd88   : > { %8415 = vmatprep.subr.mxu1 %v4857_v7  ;;  %v4849_v60 = vpop.permute.xlu0 %4848 }
 0xd89   : > { %8416 = vmatpush3.msra.mxu1 %v4857_v7  ;;  %v4855_v2 = vpop.permute.xlu1 %4854 }
 0xd8a   : > { %8417 = vmatprep.subr.mxu1 %v4855_v2 }
 0xd8b   : > { %8418 = vmatpush3.msra.mxu1 %v4855_v2 }
 0xd8c   : > { %8419 = vmatprep.subr.mxu1 %v4853_v22  ;;  %v12743_v41 = vpop.permute.xlu0 %5101 }
 0xd8d   : > { %8420 = vmatpush3.msra.mxu1 %v4853_v22  ;;  %v4851_v24 = vpop.permute.xlu1 %4850 }
 0xd8e   : > { %8421 = vmatprep.subr.mxu1 %v4851_v24 }
 0xd8f   : > { %8422 = vmatpush3.msra.mxu1 %v4851_v24 }
 0xd90   : > { %8423 = vmatprep.subr.mxu1 %v4849_v60 }
 0xd91   : > { %8424 = vmatpush3.msra.mxu1 %v4849_v60  ;;  %v12676_v26 = vpop.permute.xlu1 %5103 }
 0xd92   : > { %8449 = vmatprep.subr.msk.mxu1 %vm716_vm0, %v12676_v26 }
 0xd95   : > { %v12749_v29 = vpop.permute.xlu1 %5097 }
 0xd97   : > { %v12652_v18 = vpop.f32.mrf.mxu0 }
 0xd98   : > { %14478 = vst [vmem:[#allocation87_spill] sm:$0xff] %v12652_v18 }
 0xd99   : > { %v12654_v3 = vpop.f32.mrf.mxu0 }
 0xd9a   : > { %14479 = vst [vmem:[#allocation88_spill] sm:$0xff] %v12654_v3 }
 0xdce   : > { %v12658_v21 = vpop.f32.mrf.mxu0 }
 0xdcf   : > { %14480 = vst [vmem:[#allocation91_spill] sm:$0xff] %v12658_v21  ;;  %v12745_v37 = vpop.permute.xlu0 %5099 }
 0xdd0   : > { %v12660_v45 = vpop.f32.mrf.mxu0 }
 0xdd1   : > { %14481 = vst [vmem:[#allocation68_spill] sm:$0xff] %v12660_v45 }
 0xdd3   : > { %v12747_v63 = vpop.permute.xlu0 %5095 }
 0xdd7   : > { %v12664_v15 = vpop.f32.mrf.mxu0 }
 0xdd8   : > { %14482 = vst [vmem:[#allocation69_spill] sm:$0xff] %v12664_v15 }
 0xdd9   : > { %v12666_v27 = vpop.f32.mrf.mxu0 }
 0xdda   : > { %14483 = vst [vmem:[#allocation70_spill] sm:$0xff] %v12666_v27 }
 0xddb   : > { %v12670_v53 = vpop.f32.mrf.mxu0 }
 0xddc   : > { %14484 = vst [vmem:[#allocation71_spill] sm:$0xff] %v12670_v53 }
 0xddd   : > { %v12672_v57 = vpop.f32.mrf.mxu0 }
 0xdde   : > { %14485 = vst [vmem:[#allocation104_spill] sm:$0xff] %v12672_v57 }
 0xe14   : > { %v12680_v58 = vpop.f32.mrf.mxu0 }
 0xe15   : > { %14486 = vst [vmem:[#allocation105_spill] sm:$0xff] %v12680_v58 }
 0xe16   : > { %v12682_v54 = vpop.f32.mrf.mxu0 }
 0xe17   : > { %14487 = vst [vmem:[#allocation106_spill] sm:$0xff] %v12682_v54 }
 0xe18   : > { %v12686_v59 = vpop.f32.mrf.mxu0 }
 0xe19   : > { %14488 = vst [vmem:[#allocation107_spill] sm:$0xff] %v12686_v59 }
 0xe1a   : > { %v12688_v46 = vpop.f32.mrf.mxu0 }
 0xe1b   : > { %14489 = vst [vmem:[#allocation108_spill] sm:$0xff] %v12688_v46 }
 0xe1c   : > { %v12692_v10 = vpop.f32.mrf.mxu0 }
 0xe1d   : > { %14490 = vst [vmem:[#allocation109_spill] sm:$0xff] %v12692_v10 }
 0xe1e   : > { %v12694_v14 = vpop.f32.mrf.mxu0 }
 0xe1f   : > { %14491 = vst [vmem:[#allocation110_spill] sm:$0xff] %v12694_v14 }
 0xe20   : > { %v12698_v56 = vpop.f32.mrf.mxu0 }
 0xe21   : > { %14492 = vst [vmem:[#allocation111_spill] sm:$0xff] %v12698_v56  ;;  %v12751_v56 = vpop.permute.xlu0 %5091 }
 0xe22   : > { %v12700_v5 = vpop.f32.mrf.mxu0 }
 0xe23   : > { %14493 = vst [vmem:[#allocation112_spill] sm:$0xff] %v12700_v5  ;;  %v12753_v5 = vpop.permute.xlu1 %5093 }
 0xe24   : > { %v8371_v33 = vpop.f32.mrf.mxu0 }
 0xe25   : > { %4689 = vmax.xlane.f32.xlu0 %v8371_v33  ;;  %v12755_v14 = vpop.permute.xlu0 %5087 }
 0xe26   : > { %v4608_v50 = vpop.f32.mrf.mxu0 }
 0xe27   : > { %4687 = vmax.xlane.f32.xlu1 %v4608_v50  ;;  %v12757_v10 = vpop.permute.xlu1 %5089 }
 0xe28   : > { %v8374_v34 = vpop.f32.mrf.mxu0 }
 0xe2a   : > { %v4618_v38 = vpop.f32.mrf.mxu0 }
 0xe2c   : > { %v8377_v48 = vpop.f32.mrf.mxu0 }
 0xe2e   : > { %v12708_v30 = vpop.f32.mrf.mxu0 }
 0xe30   : > { %v12710_v7 = vpop.f32.mrf.mxu0 }
 0xe32   : > { %v12712_v2 = vpop.f32.mrf.mxu0 }
 0xe34   : > { %v12714_v22 = vpop.f32.mrf.mxu0 }
 0xe36   : > { %v12716_v24 = vpop.f32.mrf.mxu0 }
 0xe38   : > { %5085 = vrot.lane.b32.xlu1 %v9500_v52, %s14182_s8  ;;  %v12718_v60 = vpop.f32.mrf.mxu0 }
 0xe3a   : > { %v12721_v52 = vpop.f32.mrf.mxu0 }
 0xe3b   : > { %5083 = vrot.lane.b32.xlu0 %v9501_v40, %s14182_s8 }
 0xe3c   : > { %v12725_v40 = vpop.f32.mrf.mxu0 }
 0xe3f   : > { %5081 = vrot.lane.b32.xlu0 %v9502_v19, %s14182_s8  ;;  %v12729_v19 = vpop.f32.mrf.mxu0 }
 0xe41   : > { %v12733_v32 = vpop.f32.mrf.mxu0 }
 0xe43   : > { %v12737_v61 = vpop.f32.mrf.mxu0 }
 0xe5c   : > { %4693 = vmax.xlane.f32.xlu1 %v8374_v34 }
 0xe5e   : > { %4691 = vmax.xlane.f32.xlu0 %v4618_v38 }
 0xe60   : > { %4697 = vmax.xlane.f32.xlu1 %v8377_v48 }
 0xe62   : > { %4695 = vmax.xlane.f32.xlu0 %v12708_v30 }
 0xe64   : > { %4701 = vmax.xlane.f32.xlu1 %v12710_v7 }
 0xe66   : > { %4699 = vmax.xlane.f32.xlu0 %v12712_v2 }
 0xe68   : > { %4705 = vmax.xlane.f32.xlu1 %v12714_v22 }
 0xe6a   : > { %4703 = vmax.xlane.f32.xlu0 %v12716_v24 }
 0xe6c   : > { %4709 = vmax.xlane.f32.xlu1 %v12718_v60 }
 0xe6e   : > { %4707 = vmax.xlane.f32.xlu0 %v12721_v52 }
 0xe70   : > { %4713 = vmax.xlane.f32.xlu1 %v12725_v40 }
 0xe72   : > { %4711 = vmax.xlane.f32.xlu0 %v12729_v19 }
 0xe74   : > { %4717 = vmax.xlane.f32.xlu1 %v12733_v32 }
 0xe76   : > { %4715 = vmax.xlane.f32.xlu0 %v12737_v61 }
 0xe8c   : > { %5079 = vrot.lane.b32.xlu0 %v9503_v36, %s14182_s8 }
 0xeae   : > { %v4690_v46 = vpop.xlane.xlu0 %4689 }
 0xeaf   : > { %v4720_v59 = vsub.f32 %v8371_v33, %v4690_v46 }
 0xeb0   : > { %v4688_v54 = vpop.xlane.xlu1 %4687 }
 0xeb1   : > { %v4737_v36 = vmul.f32 1.442695, %v4720_v59  ;;  %v4719_v58 = vsub.f32 %v4608_v50, %v4688_v54 }
 0xeb2   : > { %v12765_v15 = vpop.permute.xlu0 %5083 }
 0xeb3   : > { %9286 = vpow2.f32 %v4737_v36  ;;  %v4735_v57 = vmul.f32 1.442695, %v4719_v58 }
 0xeb4   : > { %v12767_v45 = vpop.permute.xlu1 %5085 }
 0xeb5   : > { %9288 = vpow2.f32 %v4735_v57 }
 0xeb6   : > { %v12769_v21 = vpop.permute.xlu0 %5081 }
 0xeb7   : > { %14494 = vst [vmem:[#allocation113_spill] sm:$0xff] %v12769_v21 }
 0xec0   : > { %v12759_v53 = vpop.eup %9286 }
 0xec1   : > { %4769 = vadd.xlane.f32.xlu0 %v12759_v53 }
 0xec2   : > { %v12762_v27 = vpop.eup %9288 }
 0xec3   : > { %4767 = vadd.xlane.f32.xlu1 %v12762_v27 }
 0xee5   : > { %v4694_v46 = vpop.xlane.xlu1 %4693 }
 0xee6   : > { %v4722_v59 = vsub.f32 %v8374_v34, %v4694_v46 }
 0xee7   : > { %v4692_v54 = vpop.xlane.xlu0 %4691 }
 0xee8   : > { %v4741_v33 = vmul.f32 1.442695, %v4722_v59  ;;  %v4721_v58 = vsub.f32 %v4618_v38, %v4692_v54 }
 0xee9   : > { %v4698_v57 = vpop.xlane.xlu1 %4697 }
 0xeea   : > { %9290 = vpow2.f32 %v4741_v33  ;;  %v4739_v50 = vmul.f32 1.442695, %v4721_v58  ;;  %v4724_v36 = vsub.f32 %v8377_v48, %v4698_v57 }
 0xeeb   : > { %v4696_v3 = vpop.xlane.xlu0 %4695 }
 0xeec   : > { %9292 = vpow2.f32 %v4739_v50  ;;  %v4745_v18 = vmul.f32 1.442695, %v4724_v36  ;;  %v4723_v35 = vsub.f32 %v12708_v30, %v4696_v3  ;;  %v14497_v3 = vld [vmem:[#allocation89_spill] sm:$0xff]  ;;  %v9504_v30 = vld [vmem:[%s9848_s18 + $0x10] sm:$0xff] }
 0xeed   : > { %v4702_v1 = vpop.xlane.xlu1 %4701 }
 0xeee   : > { %v4743_v51 = vmul.f32 1.442695, %v4723_v35  ;;  %9294 = vpow2.f32 %v4745_v18  ;;  %v4726_v21 = vsub.f32 %v12710_v7, %v4702_v1 }
 0xeef   : > { %v4700_v62 = vpop.xlane.xlu0 %4699 }
 0xef0   : > { %v4725_v34 = vsub.f32 %v12712_v2, %v4700_v62  ;;  %9296 = vpow2.f32 %v4743_v51  ;;  %v4749_v38 = vmul.f32 1.442695, %v4726_v21 }
 0xef1   : > { %v4706_v18 = vpop.xlane.xlu1 %4705 }
 0xef2   : > { %v4747_v46 = vmul.f32 1.442695, %v4725_v34  ;;  %v4728_v58 = vsub.f32 %v12714_v22, %v4706_v18 }
 0xef3   : > { %v4704_v21 = vpop.xlane.xlu0 %4703 }
 0xef4   : > { %9298 = vpow2.f32 %v4747_v46  ;;  %v4753_v34 = vmul.f32 1.442695, %v4728_v58  ;;  %v4727_v46 = vsub.f32 %v12716_v24, %v4704_v21 }
 0xef5   : > { %9300 = vpow2.f32 %v4749_v38  ;;  %v4710_v7 = vpop.xlane.xlu1 %4709 }
 0xef7   : > { %v12774_v59 = vpop.eup %9290  ;;  %v4708_v2 = vpop.xlane.xlu0 %4707 }
 0xef8   : > { %4773 = vadd.xlane.f32.xlu0 %v12774_v59  ;;  %v4729_v33 = vsub.f32 %v12721_v52, %v4708_v2 }
 0xef9   : > { %v12777_v48 = vpop.eup %9292  ;;  %v4714_v54 = vpop.xlane.xlu1 %4713 }
 0xefa   : > { %4771 = vadd.xlane.f32.xlu1 %v12777_v48  ;;  %v4755_v57 = vmul.f32 1.442695, %v4729_v33  ;;  %v4732_v50 = vsub.f32 %v12725_v40, %v4714_v54 }
 0xefb   : > { %v12780_v35 = vpop.eup %9294 }
 0xefc   : > { %9302 = vpow2.f32 %v4755_v57  ;;  %v4761_v38 = vmul.f32 1.442695, %v4732_v50  ;;  %v9505_v50 = vld [vmem:[%s9848_s18] sm:$0xff]  ;;  %s14602_s18 = smov 96  }
 0xefd   : > { %v12783_v1 = vpop.eup %9296  ;;  %v4718_v36 = vpop.xlane.xlu1 %4717  ;;  %9304 = vpow2.f32 %v4753_v34 }
 0xefe   : > { %4777 = vadd.xlane.f32.xlu1 %v12780_v35  ;;  %14495 = vst [vmem:[#allocation114_spill] sm:$0xff] %v12783_v1  ;;  %9306 = vpow2.f32 %v4761_v38 }
 0xf01   : > { %v12785_v62 = vpop.eup %9298 }
 0xf02   : > { %4779 = vadd.xlane.f32.xlu0 %v12785_v62  ;;  %4775 = vadd.xlane.f32.xlu1 %v12783_v1  ;;  %v12789_v51 = vpop.eup %9300  ;;  %v4730_v1 = vsub.f32 %v12718_v60, %v4710_v7 }
 0xf03   : > { %14496 = vst [vmem:[#allocation115_spill] sm:$0xff] %v12789_v51 }
 0xf04   : > { %v4757_v22 = vmul.f32 1.442695, %v4730_v1 }
 0xf06   : > { %4781 = vadd.xlane.f32.xlu1 %v12789_v51  ;;  %v4712_v51 = vpop.xlane.xlu0 %4711 }
 0xf07   : > { %v4731_v18 = vsub.f32 %v12729_v19, %v4712_v51 }
 0xf09   : > { %v4759_v2 = vmul.f32 1.442695, %v4731_v18  ;;  %v12804_v21 = vpop.eup %9302 }
 0xf0a   : > { %v4716_v40 = vpop.xlane.xlu0 %4715 }
 0xf0b   : > { %v4733_v24 = vsub.f32 %v12737_v61, %v4716_v40 }
 0xf0d   : > { %v4763_v60 = vmul.f32 1.442695, %v4733_v24 }
 0xf0e   : > { %v12822_v51 = vpop.permute.xlu0 %5079 }
 0xf17   : > { %5075 = vrot.lane.b32.xlu1 %v14497_v3, %s14182_s8  ;;  %v4734_v3 = vsub.f32 %v12733_v32, %v4718_v36  ;;  %v12807_v32 = vpop.eup %9304 }
 0xf18   : > { %5077 = vrot.lane.b32.xlu0 %v9504_v30, %s14182_s8  ;;  %v4751_v30 = vmul.f32 1.442695, %v4727_v46  ;;  %v12809_v7 = vpop.eup %9306 }
 0xf19   : > { %v4765_v52 = vmul.f32 1.442695, %v4734_v3 }
 0xf1a   : > { %9308 = vpow2.f32 %v4751_v30 }
 0xf1b   : > { %9310 = vpow2.f32 %v4765_v52 }
 0xf1c   : > { %9312 = vpow2.f32 %v4757_v22 }
 0xf1d   : > { %9314 = vpow2.f32 %v4759_v2 }
 0xf1e   : > { %9316 = vpow2.f32 %v4763_v60 }
 0xf27   : > { %v12813_v19 = vpop.eup %9308 }
 0xf28   : > { %v12815_v1 = vpop.eup %9310 }
 0xf29   : > { %v12819_v61 = vpop.eup %9312 }
 0xf2a   : > { %v12824_v54 = vpop.eup %9314 }
 0xf2b   : > { %v12827_v33 = vpop.eup %9316 }
 0xf37   : > { %4787 = vadd.xlane.f32.xlu0 %v12804_v21 }
 0xf3b   : > { %4785 = vadd.xlane.f32.xlu1 %v12807_v32  ;;  %4793 = vadd.xlane.f32.xlu0 %v12809_v7 }
 0xf3f   : > { %4783 = vadd.xlane.f32.xlu1 %v12813_v19  ;;  %4797 = vadd.xlane.f32.xlu0 %v12815_v1 }
 0xf43   : > { %4789 = vadd.xlane.f32.xlu1 %v12819_v61 }
 0xf47   : > { %4791 = vadd.xlane.f32.xlu1 %v12824_v54 }
 0xf4a   : > { %v4770_v58 = vpop.xlane.xlu0 %4769 }
 0xf4b   : > { %9318 = vrcp.f32 %v4770_v58  ;;  %4795 = vadd.xlane.f32.xlu1 %v12827_v33 }
 0xf4c   : > { %v4768_v57 = vpop.xlane.xlu1 %4767 }
 0xf4d   : > { %9320 = vrcp.f32 %v4768_v57 }
 0xf55   : > { %5073 = vrot.lane.b32.xlu0 %v9505_v50, %s14182_s8 }
 0xf58   : > { %v9319_v36 = vpop.eup %9318 }
 0xf59   : > { %v4816_v34 = vmul.f32 %v9319_v36, %v12759_v53  ;;  %5043 = vrot.lane.b32.xlu0 %v14312_v42, %s14182_s8 }
 0xf5a   : > { %v9321_v46 = vpop.eup %9320 }
 0xf5b   : > { %7076 = vst [vmem:[%s10447_s10 + $0x308] sm:$0xff] %v4816_v34  ;;  %v4815_v38 = vmul.f32 %v9321_v46, %v12762_v27 }
 0xf5c   : > { %5041 = vrot.lane.b32.xlu1 %v14304_v55, %s14182_s8 }
 0xf5d   : > { %7075 = vst [vmem:[%s10447_s10 + $0x300] sm:$0xff] %v4815_v38  ;;  %8425 = vmatprep.mubr.f32.mxu1 %v4815_v38  ;;  %5047 = vrot.lane.b32.xlu0 %v14313_v9, %s14182_s8  ;;  %v14501_v9 = vld [vmem:[#allocation102_spill] sm:$0xff] }
 0xf5e   : > { %8426 = vmatmul.mubr.f32.vlgmr.msra.gmra.mxu1 %v4816_v34 }
 0xf5f   : > { %8450 = vmatpush3.xpose.msk.msra.mxu1 %vm716_vm0, %v12676_v26 }
 0xf60   : > { %8451 = vmatprep.subr.msk.mxu1 %vm716_vm0, %v12743_v41  ;;  %5045 = vrot.lane.b32.xlu1 %v14305_v25, %s14182_s8 }
 0xf61   : > { %5051 = vrot.lane.b32.xlu0 %v14314_v11, %s14182_s8  ;;  %v14502_v11 = vld [vmem:[#allocation103_spill] sm:$0xff] }
 0xf63   : > { %8452 = vmatpush3.xpose.msk.msra.mxu1 %vm716_vm0, %v12743_v41 }
 0xf64   : > { %8453 = vmatprep.subr.msk.mxu1 %vm716_vm0, %v12745_v37  ;;  %5049 = vrot.lane.b32.xlu1 %v14306_v8, %s14182_s8  ;;  %v9506_v8 = vld [vmem:[%s10024_s22 + $0x58] sm:$0xff] }
 0xf65   : > { %5055 = vrot.lane.b32.xlu0 %v14315_v16, %s14182_s8 }
 0xf67   : > { %8454 = vmatpush3.xpose.msk.msra.mxu1 %vm716_vm0, %v12745_v37  ;;  %v14504_v37 = vld [vmem:[#allocation115_spill] sm:$0xff] }
 0xf68   : > { %8455 = vmatprep.subr.msk.mxu1 %vm716_vm0, %v12749_v29  ;;  %5053 = vrot.lane.b32.xlu1 %v14307_v47, %s14182_s8 }
 0xf69   : > { %5059 = vrot.lane.b32.xlu0 %v14316_v23, %s14182_s8 }
 0xf6b   : > { %8456 = vmatpush3.xpose.msk.msra.mxu1 %vm716_vm0, %v12749_v29 }
 0xf6c   : > { %8457 = vmatprep.subr.msk.mxu1 %vm716_vm0, %v12747_v63  ;;  %5057 = vrot.lane.b32.xlu1 %v14308_v20, %s14182_s8  ;;  %v14498_v20 = vld [vmem:[#allocation113_spill] sm:$0xff] }
 0xf6d   : > { %5063 = vrot.lane.b32.xlu0 %v14319_v31, %s14182_s8 }
 0xf6f   : > { %8458 = vmatpush3.xpose.msk.msra.mxu1 %vm716_vm0, %v12747_v63  ;;  %v14503_v63 = vld [vmem:[#allocation114_spill] sm:$0xff] }
 0xf70   : > { %8459 = vmatprep.subr.msk.mxu1 %vm716_vm0, %v12753_v5  ;;  %5061 = vrot.lane.b32.xlu1 %v14309_v17, %s14182_s8  ;;  %v14499_v17 = vld [vmem:[#allocation90_spill] sm:$0xff] }
 0xf71   : > { %5067 = vrot.lane.b32.xlu0 %v14322_v43, %s14182_s8 }
 0xf73   : > { %8460 = vmatpush3.xpose.msk.msra.mxu1 %vm716_vm0, %v12753_v5 }
 0xf74   : > { %8461 = vmatprep.subr.msk.mxu1 %vm716_vm0, %v12751_v56  ;;  %5065 = vrot.lane.b32.xlu1 %v14310_v49, %s14182_s8  ;;  %v14500_v49 = vld [vmem:[#allocation67_spill] sm:$0xff] }
 0xf75   : > { %5071 = vrot.lane.b32.xlu0 %v14325_v44, %s14182_s8  ;;  %v9507_v44 = vld [vmem:[%s10024_s22 + $0x20] sm:$0xff] }
 0xf77   : > { %8462 = vmatpush3.xpose.msk.msra.mxu1 %vm716_vm0, %v12751_v56 }
 0xf78   : > { %8463 = vmatprep.subr.msk.mxu1 %vm716_vm0, %v12757_v10  ;;  %5069 = vrot.lane.b32.xlu1 %v14311_v0, %s14182_s8 }
 0xf79   : > { %5505 = vrot.lane.b32.xlu0 %v12501_v28, %s14182_s8 }
 0xf7b   : > { %8464 = vmatpush3.xpose.msk.msra.mxu1 %vm716_vm0, %v12757_v10 }
 0xf7c   : > { %8465 = vmatprep.subr.msk.mxu1 %vm716_vm0, %v12755_v14  ;;  %5503 = vrot.lane.b32.xlu1 %v12510_v13, %s14182_s8 }
 0xf7d   : > { %5501 = vrot.lane.b32.xlu0 %v12515_v12, %s14182_s8 }
 0xf7f   : > { %8466 = vmatpush3.xpose.msk.msra.mxu1 %vm716_vm0, %v12755_v14 }
 0xf80   : > { %8467 = vmatprep.subr.msk.mxu1 %vm716_vm0, %v12767_v45  ;;  %5499 = vrot.lane.b32.xlu1 %v12524_v4, %s14182_s8 }
 0xf81   : > { %v4774_v55 = vpop.xlane.xlu0 %4773  ;;  %5495 = vrot.lane.b32.xlu0 %v12535_v39, %s14182_s8 }
 0xf82   : > { %9322 = vrcp.f32 %v4774_v55 }
 0xf83   : > { %8468 = vmatpush3.xpose.msk.msra.mxu1 %vm716_vm0, %v12767_v45  ;;  %v4772_v25 = vpop.xlane.xlu1 %4771 }
 0xf84   : > { %8469 = vmatprep.subr.msk.mxu1 %vm716_vm0, %v12765_v15  ;;  %9324 = vrcp.f32 %v4772_v25  ;;  %5497 = vrot.lane.b32.xlu1 %v9506_v8, %s14182_s8 }
 0xf85   : > { %5493 = vrot.lane.b32.xlu0 %v12549_v6, %s14182_s8 }
 0xf87   : > { %8470 = vmatpush3.xpose.msk.msra.mxu1 %vm716_vm0, %v12765_v15  ;;  %v4778_v47 = vpop.xlane.xlu1 %4777 }
 0xf88   : > { %8471 = vmatprep.subr.msk.mxu1 %vm716_vm0, %v14498_v20  ;;  %9326 = vrcp.f32 %v4778_v47  ;;  %5491 = vrot.lane.b32.xlu1 %v14499_v17, %s14182_s8 }
 0xf89   : > { %5487 = vrot.lane.b32.xlu0 %v14500_v49, %s14182_s8 }
 0xf8b   : > { %8472 = vmatpush3.xpose.msk.msra.mxu1 %vm716_vm0, %v14498_v20  ;;  %v4780_v0 = vpop.xlane.xlu0 %4779  ;;  %v4776_v42 = vpop.xlane.xlu1 %4775 }
 0xf8c   : > { %9328 = vrcp.f32 %v4780_v0  ;;  %8473 = vmatprep.subr.msk.mxu1 %vm716_vm0, %v12822_v51  ;;  %5489 = vrot.lane.b32.xlu1 %v14501_v9, %s14182_s8 }
 0xf8d   : > { %9330 = vrcp.f32 %v4776_v42  ;;  %5485 = vrot.lane.b32.xlu0 %v14502_v11, %s14182_s8 }
 0xf8f   : > { %v9323_v16 = vpop.eup %9322  ;;  %8474 = vmatpush3.xpose.msk.msra.mxu1 %vm716_vm0, %v12822_v51  ;;  %v4782_v23 = vpop.xlane.xlu1 %4781 }
 0xf90   : > { %v5078_v31 = vpop.permute.xlu0 %5077  ;;  %9332 = vrcp.f32 %v4782_v23  ;;  %v4818_v43 = vmul.f32 %v9323_v16, %v12774_v59  ;;  %5483 = vrot.lane.b32.xlu1 %v9507_v44, %s14182_s8 }
 0xf91   : > { %8475 = vmatprep.subr.msk.mxu1 %vm716_vm0, %v5078_v31  ;;  %v9325_v28 = vpop.eup %9324 }
 0xf92   : > { %v4817_v13 = vmul.f32 %v9325_v28, %v12777_v48  ;;  %7078 = vst [vmem:[%s10447_s10 + $0x318] sm:$0xff] %v4818_v43 }
 0xf93   : > { %8476 = vmatpush3.xpose.msk.msra.mxu1 %vm716_vm0, %v5078_v31  ;;  %v5076_v12 = vpop.permute.xlu1 %5075 }
 0xf94   : > { %7077 = vst [vmem:[%s10447_s10 + $0x310] sm:$0xff] %v4817_v13  ;;  %8428 = vmatprep.mubr.f32.mxu1 %v4817_v13  ;;  %8477 = vmatprep.subr.msk.mxu1 %vm716_vm0, %v5076_v12 }
 0xf95   : > { %v9327_v4 = vpop.eup %9326  ;;  %8429 = vmatmul.mubr.f32.gmra.mxu1 %v4818_v43 }
 0xf96   : > { %v4820_v39 = vmul.f32 %v9327_v4, %v12780_v35 }
 0xf97   : > { %8478 = vmatpush3.xpose.msk.msra.mxu1 %vm716_vm0, %v5076_v12 }
 0xf98   : > { %7080 = vst [vmem:[%s10447_s10 + $0x328] sm:$0xff] %v4820_v39 }
 0xf99   : > { %v9329_v6 = vpop.eup %9328 }
 0xf9a   : > { %v9331_v29 = vpop.eup %9330  ;;  %v4821_v45 = vmul.f32 %v9329_v6, %v12785_v62 }
 0xf9b   : > { %v4819_v15 = vmul.f32 %v9331_v29, %v14503_v63 }
 0xf9c   : > { %7081 = vst [vmem:[%s10447_s10 + $0x330] sm:$0xff] %v4821_v45 }
 0xf9d   : > { %v9333_v27 = vpop.eup %9332  ;;  %7079 = vst [vmem:[%s10447_s10 + $0x320] sm:$0xff] %v4819_v15  ;;  %8431 = vmatprep.mubr.f32.mxu1 %v4819_v15 }
 0xf9e   : > { %8432 = vmatmul.mubr.f32.gmra.mxu1 %v4820_v39  ;;  %v4822_v53 = vmul.f32 %v9333_v27, %v14504_v37 }
 0xf9f   : > { %8434 = vmatprep.mubr.f32.mxu1 %v4821_v45 }
 0xfa0   : > { %7082 = vst [vmem:[%s10447_s10 + $0x338] sm:$0xff] %v4822_v53 }
 0xfa2   : > { %8435 = vmatmul.mubr.f32.gmra.mxu1 %v4822_v53 }
 0xfc0   : > { %v4788_v41 = vpop.xlane.xlu0 %4787 }
 0xfc1   : > { %9334 = vrcp.f32 %v4788_v41 }
 0xfc4   : > { %v4794_v26 = vpop.xlane.xlu0 %4793  ;;  %v4786_v10 = vpop.xlane.xlu1 %4785 }
 0xfc5   : > { %9336 = vrcp.f32 %v4794_v26 }
 0xfc6   : > { %9338 = vrcp.f32 %v4786_v10 }
 0xfc8   : > { %v4798_v14 = vpop.xlane.xlu0 %4797  ;;  %v4784_v56 = vpop.xlane.xlu1 %4783 }
 0xfc9   : > { %9340 = vrcp.f32 %v4798_v14 }
 0xfca   : > { %9342 = vrcp.f32 %v4784_v56 }
 0xfcc   : > { %v4790_v5 = vpop.xlane.xlu1 %4789  ;;  %v5074_v59 = vpop.permute.xlu0 %5073 }
 0xfcd   : > { %9344 = vrcp.f32 %v4790_v5  ;;  %8479 = vmatprep.subr.msk.mxu1 %vm716_vm0, %v5074_v59 }
 0xfce   : > { %v9335_v48 = vpop.eup %9334  ;;  %8480 = vmatpush3.xpose.msk.msra.mxu1 %vm716_vm0, %v5074_v59 }
 0xfcf   : > { %v4825_v35 = vmul.f32 %v9335_v48, %v12804_v21 }
 0xfd0   : > { %v4792_v62 = vpop.xlane.xlu1 %4791 }
 0xfd1   : > { %9346 = vrcp.f32 %v4792_v62  ;;  %7085 = vst [vmem:[%s10447_s10 + $0x350] sm:$0xff] %v4825_v35 }
 0xfd2   : > { %v9337_v3 = vpop.eup %9336 }
 0xfd3   : > { %v9339_v30 = vpop.eup %9338  ;;  %v4828_v52 = vmul.f32 %v9337_v3, %v12809_v7  ;;  %v5044_v7 = vpop.permute.xlu0 %5043 }
 0xfd4   : > { %v4796_v22 = vpop.xlane.xlu1 %4795  ;;  %v4824_v18 = vmul.f32 %v9339_v30, %v12807_v32 }
 0xfd5   : > { %9348 = vrcp.f32 %v4796_v22  ;;  %7088 = vst [vmem:[%s10447_s10 + $0x368] sm:$0xff] %v4828_v52 }
 0xfd6   : > { %v9341_v40 = vpop.eup %9340  ;;  %7084 = vst [vmem:[%s10447_s10 + $0x348] sm:$0xff] %v4824_v18 }
 0xfd7   : > { %v9343_v2 = vpop.eup %9342  ;;  %v4830_v24 = vmul.f32 %v9341_v40, %v12815_v1  ;;  %v5048_v50 = vpop.permute.xlu0 %5047 }
 0xfd8   : > { %v4823_v21 = vmul.f32 %v9343_v2, %v12813_v19  ;;  %v5042_v60 = vpop.permute.xlu1 %5041 }
 0xfd9   : > { %7090 = vst [vmem:[%s10447_s10 + $0x378] sm:$0xff] %v4830_v24 }
 0xfda   : > { %v9345_v51 = vpop.eup %9344  ;;  %7083 = vst [vmem:[%s10447_s10 + $0x340] sm:$0xff] %v4823_v21  ;;  %8437 = vmatprep.mubr.f32.mxu1 %v4823_v21 }
 0xfdb   : > { %8438 = vmatmul.mubr.f32.gmra.mxu1 %v4824_v18  ;;  %v4826_v32 = vmul.f32 %v9345_v51, %v12819_v61  ;;  %v5052_v61 = vpop.permute.xlu0 %5051 }
 0xfdc   : > { %8440 = vmatprep.mubr.f32.mxu1 %v4825_v35  ;;  %v5046_v1 = vpop.permute.xlu1 %5045 }
 0xfdd   : > { %7086 = vst [vmem:[%s10447_s10 + $0x358] sm:$0xff] %v4826_v32 }
 0xfde   : > { %v9347_v58 = vpop.eup %9346 }
 0xfdf   : > { %8441 = vmatmul.mubr.f32.gmra.mxu1 %v4826_v32  ;;  %v4827_v57 = vmul.f32 %v9347_v58, %v12824_v54  ;;  %v5056_v54 = vpop.permute.xlu0 %5055 }
 0xfe0   : > { %v5050_v34 = vpop.permute.xlu1 %5049 }
 0xfe1   : > { %7087 = vst [vmem:[%s10447_s10 + $0x360] sm:$0xff] %v4827_v57  ;;  %8443 = vmatprep.mubr.f32.mxu1 %v4827_v57  ;;  %v9508_v57 = vld [vmem:[%s10024_s22 + $0x18] sm:$0xff] }
 0xfe2   : > { %v9349_v19 = vpop.eup %9348 }
 0xfe3   : > { %8444 = vmatmul.mubr.f32.gmra.mxu1 %v4828_v52  ;;  %v4829_v36 = vmul.f32 %v9349_v19, %v12827_v33  ;;  %v5060_v33 = vpop.permute.xlu0 %5059 }
 0xfe4   : > { %v5054_v46 = vpop.permute.xlu1 %5053 }
 0xfe5   : > { %7089 = vst [vmem:[%s10447_s10 + $0x370] sm:$0xff] %v4829_v36  ;;  %8446 = vmatprep.mubr.f32.mxu1 %v4829_v36 }
 0xfe7   : > { %8447 = vmatmul.mubr.f32.gmra.mxu1 %v4830_v24  ;;  %v5064_v25 = vpop.permute.xlu0 %5063 }
 0xfe8   : > { %8481 = vmatprep.mubr.msk.f32.mxu1 %vm716_vm0, %v5042_v60  ;;  %v5058_v38 = vpop.permute.xlu1 %5057 }
 0xfeb   : > { %8482 = vmatmul.mubr.msk.f32.vlgmr.msra.gmra.mxu1 %vm716_vm0, %v5044_v7  ;;  %v5068_v47 = vpop.permute.xlu0 %5067 }
 0xfec   : > { %8484 = vmatprep.mubr.msk.f32.mxu1 %vm716_vm0, %v5046_v1  ;;  %v5062_v55 = vpop.permute.xlu1 %5061  ;;  %v9509_v1 = vld [vmem:[%s10024_s22 + $0x10] sm:$0xff] }
 0xfef   : > { %8485 = vmatmul.mubr.msk.f32.gmra.mxu1 %vm716_vm0, %v5048_v50  ;;  %v5072_v17 = vpop.permute.xlu0 %5071 }
 0xff0   : > { %8487 = vmatprep.mubr.msk.f32.mxu1 %vm716_vm0, %v5050_v34  ;;  %v5066_v8 = vpop.permute.xlu1 %5065 }
 0xff3   : > { %8488 = vmatmul.mubr.msk.f32.gmra.mxu1 %vm716_vm0, %v5052_v61  ;;  %v5506_v23 = vpop.permute.xlu0 %5505 }
 0xff4   : > { %8490 = vmatprep.mubr.msk.f32.mxu1 %vm716_vm0, %v5054_v46  ;;  %v5070_v20 = vpop.permute.xlu1 %5069  ;;  %8505 = vmatprep.subr.mxu0 %v5506_v23 }
 0xff5   : > { %8506 = vmatpush3.msra.mxu0 %v5506_v23 }
 0xff7   : > { %8491 = vmatmul.mubr.msk.f32.gmra.mxu1 %vm716_vm0, %v5056_v54  ;;  %v5502_v43 = vpop.permute.xlu0 %5501 }
 0xff8   : > { %8493 = vmatprep.mubr.msk.f32.mxu1 %vm716_vm0, %v5058_v38  ;;  %v5504_v31 = vpop.permute.xlu1 %5503 }
 0xff9   : > { %8507 = vmatprep.subr.mxu0 %v5504_v31 }
 0xffa   : > { %8508 = vmatpush3.msra.mxu0 %v5504_v31 }
 0xffb   : > { %8494 = vmatmul.mubr.msk.f32.gmra.mxu1 %vm716_vm0, %v5060_v33  ;;  %8509 = vmatprep.subr.mxu0 %v5502_v43  ;;  %v5496_v12 = vpop.permute.xlu0 %5495 }
 0xffc   : > { %8496 = vmatprep.mubr.msk.f32.mxu1 %vm716_vm0, %v5062_v55  ;;  %v5500_v44 = vpop.permute.xlu1 %5499  ;;  %8510 = vmatpush3.msra.mxu0 %v5502_v43 }
 0xffd   : > { %8511 = vmatprep.subr.mxu0 %v5500_v44 }
 0xffe   : > { %8512 = vmatpush3.msra.mxu0 %v5500_v44 }
 0xfff   : > { %8497 = vmatmul.mubr.msk.f32.gmra.mxu1 %vm716_vm0, %v5064_v25  ;;  %v5494_v45 = vpop.permute.xlu0 %5493 }
0x1000   : > { %8499 = vmatprep.mubr.msk.f32.mxu1 %vm716_vm0, %v5066_v8  ;;  %v5498_v39 = vpop.permute.xlu1 %5497 }
0x1001   : > { %8513 = vmatprep.subr.mxu0 %v5498_v39 }
0x1002   : > { %8514 = vmatpush3.msra.mxu0 %v5498_v39 }
0x1003   : > { %8500 = vmatmul.mubr.msk.f32.gmra.mxu1 %vm716_vm0, %v5068_v47  ;;  %8515 = vmatprep.subr.mxu0 %v5496_v12  ;;  %v5488_v37 = vpop.permute.xlu0 %5487 }
0x1004   : > { %8502 = vmatprep.mubr.msk.f32.mxu1 %vm716_vm0, %v5070_v20  ;;  %8516 = vmatpush3.msra.mxu0 %v5496_v12  ;;  %v5492_v15 = vpop.permute.xlu1 %5491 }
0x1005   : > { %8517 = vmatprep.subr.mxu0 %v5494_v45 }
0x1006   : > { %8518 = vmatpush3.msra.mxu0 %v5494_v45 }
0x1007   : > { %8503 = vmatmul.mubr.msk.f32.gmra.mxu1 %vm716_vm0, %v5072_v17  ;;  %8519 = vmatprep.subr.mxu0 %v5492_v15  ;;  %v5486_v53 = vpop.permute.xlu0 %5485 }
0x1008   : > { %8520 = vmatpush3.msra.mxu0 %v5492_v15  ;;  %v5490_v27 = vpop.permute.xlu1 %5489 }
0x1009   : > { %8521 = vmatprep.subr.mxu0 %v5490_v27 }
0x100a   : > { %8522 = vmatpush3.msra.mxu0 %v5490_v27 }
0x100b   : > { %8523 = vmatprep.subr.mxu0 %v5488_v37 }
0x100c   : > { %8524 = vmatpush3.msra.mxu0 %v5488_v37  ;;  %v5484_v41 = vpop.permute.xlu1 %5483 }
0x100d   : > { %8525 = vmatprep.subr.mxu0 %v5486_v53 }
0x100e   : > { %8526 = vmatpush3.msra.mxu0 %v5486_v53 }
0x100f   : > { %8527 = vmatprep.subr.mxu0 %v5484_v41 }
0x1010   : > { %8528 = vmatpush3.msra.mxu0 %v5484_v41 }
0x101e   : > { %v12992_v49 = vpop.f32.mrf.mxu1 }
0x1020   : > { %v12994_v0 = vpop.f32.mrf.mxu1 }
0x1021   : > { %v8662_v42 = vpack.i.bf16 %v12992_v49, %v12994_v0  ;;  %v14532_v0 = vld [vmem:[#allocation15_spill] sm:$0xff] }
0x1055   : > { %v12998_v9 = vpop.f32.mrf.mxu1 }
0x1057   : > { %v13000_v11 = vpop.f32.mrf.mxu1 }
0x1058   : > { %v8692_v16 = vpack.i.bf16 %v12998_v9, %v13000_v11  ;;  %v14541_v11 = vld [vmem:[#allocation51_spill] sm:$0xff] }
0x105e   : > { %v13004_v28 = vpop.f32.mrf.mxu1 }
0x1060   : > { %v13006_v13 = vpop.f32.mrf.mxu1 }
0x1061   : > { %v8722_v4 = vpack.i.bf16 %v13004_v28, %v13006_v13  ;;  %v14559_v28 = vld [vmem:[#allocation77_spill] sm:$0xff]  ;;  %v14560_v13 = vld [vmem:[#allocation78_spill] sm:$0xff] }
0x1062   : > { %v13010_v6 = vpop.f32.mrf.mxu1 }
0x1064   : > { %v13012_v29 = vpop.f32.mrf.mxu1 }
0x1065   : > { %v8752_v63 = vpack.i.bf16 %v13010_v6, %v13012_v29 }
0x109b   : > { %v13016_v26 = vpop.f32.mrf.mxu1 }
0x109d   : > { %v13018_v10 = vpop.f32.mrf.mxu1 }
0x109e   : > { %v8787_v14 = vpack.i.bf16 %v13016_v26, %v13018_v10 }
0x109f   : > { %v13022_v56 = vpop.f32.mrf.mxu1 }
0x10a1   : > { %v13024_v5 = vpop.f32.mrf.mxu1 }
0x10a2   : > { %v8827_v59 = vpack.i.bf16 %v13022_v56, %v13024_v5  ;;  %v14612_v56 = vld [vmem:[#allocation98_spill] sm:$0xff]  ;;  %v14613_v5 = vld [vmem:[#allocation99_spill] sm:$0xff] }
0x10a3   : > { %v13028_v48 = vpop.f32.mrf.mxu1 }
0x10a5   : > { %v13030_v35 = vpop.f32.mrf.mxu1 }
0x10a6   : > { %v8867_v62 = vpack.i.bf16 %v13028_v48, %v13030_v35  ;;  %v14619_v48 = vld [vmem:[#allocation56_spill] sm:$0xff] }
0x10a7   : > { %v13034_v3 = vpop.f32.mrf.mxu1 }
0x10a9   : > { %v13036_v30 = vpop.f32.mrf.mxu1 }
0x10ab   : > { %v8483_v52 = vpop.f32.mrf.mxu1 }
0x10ac   : > { %5316 = vmax.xlane.f32.xlu0 %v8483_v52 }
0x10ad   : > { %v5235_v22 = vpop.f32.mrf.mxu1 }
0x10ae   : > { %5314 = vmax.xlane.f32.xlu1 %v5235_v22 }
0x10af   : > { %v8486_v18 = vpop.f32.mrf.mxu1 }
0x10b1   : > { %v5245_v40 = vpop.f32.mrf.mxu1 }
0x10b2   : > { %5320 = vmax.xlane.f32.xlu1 %v8486_v18  ;;  %5318 = vmax.xlane.f32.xlu0 %v5245_v40 }
0x10b3   : > { %v8489_v2 = vpop.f32.mrf.mxu1 }
0x10b5   : > { %v5255_v24 = vpop.f32.mrf.mxu1 }
0x10b6   : > { %5324 = vmax.xlane.f32.xlu1 %v8489_v2  ;;  %5322 = vmax.xlane.f32.xlu0 %v5255_v24 }
0x10b7   : > { %v8492_v21 = vpop.f32.mrf.mxu1 }
0x10b9   : > { %v5265_v60 = vpop.f32.mrf.mxu1 }
0x10ba   : > { %5328 = vmax.xlane.f32.xlu1 %v8492_v21  ;;  %5326 = vmax.xlane.f32.xlu0 %v5265_v60 }
0x10bb   : > { %v13038_v51 = vpop.f32.mrf.mxu1 }
0x10bd   : > { %v13040_v32 = vpop.f32.mrf.mxu1 }
0x10be   : > { %5332 = vmax.xlane.f32.xlu1 %v13038_v51  ;;  %5330 = vmax.xlane.f32.xlu0 %v13040_v32 }
0x10bf   : > { %v13044_v7 = vpop.f32.mrf.mxu1 }
0x10c1   : > { %v13046_v58 = vpop.f32.mrf.mxu1 }
0x10c2   : > { %5336 = vmax.xlane.f32.xlu1 %v13044_v7  ;;  %5334 = vmax.xlane.f32.xlu0 %v13046_v58 }
0x10c3   : > { %v13054_v19 = vpop.f32.mrf.mxu1 }
0x10c5   : > { %v13056_v50 = vpop.f32.mrf.mxu1 }
0x10c7   : > { %v13058_v36 = vpop.f32.mrf.mxu1 }
0x10c9   : > { %v13062_v34 = vpop.f32.mrf.mxu1 }
0x10d3   : > { %5481 = vrot.lane.b32.xlu1 %v9508_v57, %s14182_s8 }
0x10d8   : > { %5479 = vrot.lane.b32.xlu0 %v9509_v1, %s14182_s8 }
0x10f7   : > { %5340 = vmax.xlane.f32.xlu1 %v13054_v19  ;;  %5338 = vmax.xlane.f32.xlu0 %v13056_v50 }
0x10fb   : > { %5344 = vmax.xlane.f32.xlu1 %v13058_v36  ;;  %5342 = vmax.xlane.f32.xlu0 %v13062_v34 }
0x1135   : > { %v5317_v61 = vpop.xlane.xlu0 %5316 }
0x1136   : > { %v5347_v46 = vsub.f32 %v8483_v52, %v5317_v61 }
0x1137   : > { %v5315_v54 = vpop.xlane.xlu1 %5314 }
0x1138   : > { %v5364_v38 = vmul.f32 1.442695, %v5347_v46  ;;  %v5346_v33 = vsub.f32 %v5235_v22, %v5315_v54 }
0x113a   : > { %9350 = vpow2.f32 %v5364_v38  ;;  %v5362_v55 = vmul.f32 1.442695, %v5346_v33 }
0x113b   : > { %v5319_v25 = vpop.xlane.xlu0 %5318  ;;  %v5321_v8 = vpop.xlane.xlu1 %5320 }
0x113c   : > { %9352 = vpow2.f32 %v5362_v55  ;;  %v5348_v47 = vsub.f32 %v5245_v40, %v5319_v25  ;;  %v5349_v20 = vsub.f32 %v8486_v18, %v5321_v8  ;;  %v9510_v55 = vld [vmem:[%s10024_s22] sm:$0xff]  ;;  %v9511_v25 = vld [vmem:[%s10024_s22 + $0x8] sm:$0xff]  ;;  %s7150_s22 = sshll.u32 %s9636_s27, 14 }
0x113e   : > { %v5366_v17 = vmul.f32 1.442695, %v5348_v47  ;;  %v5368_v23 = vmul.f32 1.442695, %v5349_v20 }
0x113f   : > { %v5323_v31 = vpop.xlane.xlu0 %5322  ;;  %v5325_v43 = vpop.xlane.xlu1 %5324 }
0x1140   : > { %9354 = vpow2.f32 %v5366_v17  ;;  %v5350_v44 = vsub.f32 %v5255_v24, %v5323_v31  ;;  %v5351_v12 = vsub.f32 %v8489_v2, %v5325_v43 }
0x1141   : > { %9356 = vpow2.f32 %v5368_v23 }
0x1142   : > { %v5370_v39 = vmul.f32 1.442695, %v5350_v44  ;;  %v5372_v45 = vmul.f32 1.442695, %v5351_v12 }
0x1143   : > { %v5327_v15 = vpop.xlane.xlu0 %5326  ;;  %v5329_v27 = vpop.xlane.xlu1 %5328 }
0x1144   : > { %9358 = vpow2.f32 %v5370_v39  ;;  %v5352_v37 = vsub.f32 %v5265_v60, %v5327_v15  ;;  %v5353_v53 = vsub.f32 %v8492_v21, %v5329_v27 }
0x1145   : > { %9360 = vpow2.f32 %v5372_v45 }
0x1146   : > { %v5374_v41 = vmul.f32 1.442695, %v5352_v37  ;;  %v5376_v52 = vmul.f32 1.442695, %v5353_v53 }
0x1147   : > { %v13066_v22 = vpop.eup %9350  ;;  %v5331_v18 = vpop.xlane.xlu0 %5330 }
0x1148   : > { %v5333_v40 = vpop.xlane.xlu1 %5332  ;;  %9362 = vpow2.f32 %v5374_v41  ;;  %5396 = vadd.xlane.f32.xlu0 %v13066_v22  ;;  %v5354_v8 = vsub.f32 %v13040_v32, %v5331_v18 }
0x1149   : > { %v13069_v24 = vpop.eup %9352  ;;  %9364 = vpow2.f32 %v5376_v52  ;;  %v5355_v47 = vsub.f32 %v13038_v51, %v5333_v40 }
0x114a   : > { %5394 = vadd.xlane.f32.xlu1 %v13069_v24  ;;  %v5378_v20 = vmul.f32 1.442695, %v5354_v8 }
0x114b   : > { %v5335_v2 = vpop.xlane.xlu0 %5334  ;;  %v5380_v23 = vmul.f32 1.442695, %v5355_v47  ;;  %v14511_v47 = vld [vmem:[#allocation26_spill] sm:$0xff] }
0x114c   : > { %v5337_v57 = vpop.xlane.xlu1 %5336  ;;  %v5356_v31 = vsub.f32 %v13046_v58, %v5335_v2  ;;  %9366 = vpow2.f32 %v5378_v20  ;;  %v14512_v20 = vld [vmem:[#allocation24_spill] sm:$0xff] }
0x114d   : > { %v13072_v1 = vpop.eup %9354  ;;  %v5357_v17 = vsub.f32 %v13044_v7, %v5337_v57  ;;  %9368 = vpow2.f32 %v5380_v23  ;;  %v14505_v57 = vld [vmem:[#allocation43_spill] sm:$0xff] }
0x114e   : > { %v13074_v21 = vpop.eup %9356  ;;  %5398 = vadd.xlane.f32.xlu1 %v13072_v1  ;;  %v5382_v44 = vmul.f32 1.442695, %v5356_v31  ;;  %v14514_v23 = vld [vmem:[#allocation87_spill] sm:$0xff]  ;;  %v14515_v31 = vld [vmem:[#allocation88_spill] sm:$0xff] }
0x114f   : > { %5400 = vadd.xlane.f32.xlu0 %v13074_v21  ;;  %v5480_v61 = vpop.permute.xlu0 %5479  ;;  %v5384_v43 = vmul.f32 1.442695, %v5357_v17  ;;  %v14513_v17 = vpack.i.bf16 %v14511_v47, %v14512_v20  ;;  %v14539_v47 = vld [vmem:[#allocation76_spill] sm:$0xff] }
0x1150   : > { %v5482_v60 = vpop.permute.xlu1 %5481 }
0x1151   : > { %8529 = vmatprep.subr.mxu0 %v5482_v60  ;;  %v13078_v46 = vpop.eup %9358  ;;  %9370 = vpow2.f32 %v5384_v43  ;;  %v14516_v43 = vpack.i.bf16 %v14514_v23, %v14515_v31  ;;  %v14545_v23 = vld [vmem:[#allocation70_spill] sm:$0xff] }
0x1152   : > { %8530 = vmatpush3.msra.mxu0 %v5482_v60  ;;  %v13080_v54 = vpop.eup %9360  ;;  %5402 = vadd.xlane.f32.xlu1 %v13078_v46  ;;  %9372 = vpow2.f32 %v5382_v44  ;;  %v14506_v60 = vld [vmem:[#allocation40_spill] sm:$0xff] }
0x1153   : > { %8531 = vmatprep.subr.mxu0 %v5480_v61  ;;  %5404 = vadd.xlane.f32.xlu0 %v13080_v54  ;;  %v14517_v44 = vld [vmem:[#allocation72_spill] sm:$0xff] }
0x1154   : > { %8532 = vmatpush3.msra.mxu0 %v5480_v61  ;;  %v14507_v61 = vpack.i.bf16 %v14505_v57, %v14506_v60  ;;  %v14530_v57 = vld [vmem:[#allocation74_spill] sm:$0xff] }
0x1155   : > { %v13084_v38 = vpop.eup %9362 }
0x1156   : > { %v13086_v33 = vpop.eup %9364  ;;  %5406 = vadd.xlane.f32.xlu1 %v13084_v38 }
0x1157   : > { %5408 = vadd.xlane.f32.xlu0 %v13086_v33 }
0x1159   : > { %v13102_v52 = vpop.eup %9366 }
0x1167   : > { %5475 = vrot.lane.b32.xlu1 %v9510_v55, %s14182_s8  ;;  %v14508_v55 = vld [vmem:[#allocation23_spill] sm:$0xff] }
0x116d   : > { %5477 = vrot.lane.b32.xlu0 %v9511_v25, %s14182_s8  ;;  %v14509_v25 = vld [vmem:[#allocation18_spill] sm:$0xff] }
0x116e   : > { %v14510_v8 = vpack.i.bf16 %v14508_v55, %v14509_v25  ;;  %v14536_v55 = vld [vmem:[#allocation68_spill] sm:$0xff] }
0x1180   : > { %v5339_v12 = vpop.xlane.xlu0 %5338  ;;  %v5341_v39 = vpop.xlane.xlu1 %5340 }
0x1181   : > { %v5358_v45 = vsub.f32 %v13056_v50, %v5339_v12  ;;  %v5359_v15 = vsub.f32 %v13054_v19, %v5341_v39  ;;  %v13104_v50 = vpop.eup %9368  ;;  %v14518_v12 = vld [vmem:[#allocation12_spill] sm:$0xff] }
0x1182   : > { %v13108_v19 = vpop.eup %9370  ;;  %v14519_v39 = vpack.i.bf16 %v14517_v44, %v14518_v12  ;;  %v14548_v44 = vld [vmem:[#allocation14_spill] sm:$0xff] }
0x1183   : > { %v5386_v32 = vmul.f32 1.442695, %v5358_v45  ;;  %v5388_v51 = vmul.f32 1.442695, %v5359_v15  ;;  %v13110_v18 = vpop.eup %9372  ;;  %v14520_v45 = vld [vmem:[#allocation42_spill] sm:$0xff]  ;;  %v14521_v15 = vld [vmem:[#allocation35_spill] sm:$0xff] }
0x1184   : > { %v5343_v27 = vpop.xlane.xlu0 %5342  ;;  %v5345_v37 = vpop.xlane.xlu1 %5344 }
0x1185   : > { %9374 = vpow2.f32 %v5386_v32  ;;  %v5360_v7 = vsub.f32 %v13062_v34, %v5343_v27  ;;  %v5361_v58 = vsub.f32 %v13058_v36, %v5345_v37  ;;  %v14522_v32 = vpack.i.bf16 %v14520_v45, %v14521_v15  ;;  %v14524_v27 = vld [vmem:[#allocation93_spill] sm:$0xff] }
0x1186   : > { %9376 = vpow2.f32 %v5388_v51  ;;  %v14523_v51 = vld [vmem:[#allocation92_spill] sm:$0xff]  ;;  %v14551_v45 = vld [vmem:[#allocation53_spill] sm:$0xff] }
0x1187   : > { %v5390_v53 = vmul.f32 1.442695, %v5360_v7  ;;  %v5392_v41 = vmul.f32 1.442695, %v5361_v58  ;;  %v14525_v37 = vpack.i.bf16 %v14523_v51, %v14524_v27  ;;  %v14526_v7 = vld [vmem:[#allocation13_spill] sm:$0xff]  ;;  %v14527_v58 = vld [vmem:[#allocation19_spill] sm:$0xff] }
0x1188   : > { %v14554_v51 = vld [vmem:[#allocation16_spill] sm:$0xff] }
0x1189   : > { %9378 = vpow2.f32 %v5390_v53  ;;  %v14528_v53 = vpack.i.bf16 %v14526_v7, %v14527_v58  ;;  %v14556_v7 = vld [vmem:[#allocation17_spill] sm:$0xff] }
0x118a   : > { %9380 = vpow2.f32 %v5392_v41  ;;  %v14529_v41 = vld [vmem:[#allocation73_spill] sm:$0xff] }
0x118b   : > { %5410 = vadd.xlane.f32.xlu1 %v13102_v52  ;;  %v14531_v49 = vpack.i.bf16 %v14529_v41, %v14530_v57  ;;  %v14557_v58 = vld [vmem:[#allocation49_spill] sm:$0xff] }
0x118c   : > { %5412 = vadd.xlane.f32.xlu0 %v13104_v50 }
0x118f   : > { %5416 = vadd.xlane.f32.xlu1 %v13108_v19 }
0x1190   : > { %5414 = vadd.xlane.f32.xlu0 %v13110_v18 }
0x1192   : > { %v13114_v36 = vpop.eup %9374 }
0x1193   : > { %v13116_v34 = vpop.eup %9376 }
0x1194   : > { %5418 = vadd.xlane.f32.xlu0 %v13114_v36  ;;  %5420 = vadd.xlane.f32.xlu1 %v13116_v34 }
0x1196   : > { %v13120_v40 = vpop.eup %9378 }
0x1197   : > { %v13122_v2 = vpop.eup %9380 }
0x1198   : > { %5422 = vadd.xlane.f32.xlu0 %v13120_v40  ;;  %5424 = vadd.xlane.f32.xlu1 %v13122_v2 }
0x11a9   : > { %8643 = vrot.lane.b32.xlu1 %v14507_v61, %s14184_s23  ;;  %v14535_v61 = vld [vmem:[#allocation91_spill] sm:$0xff] }
0x11aa   : > { %v14537_v25 = vpack.i.bf16 %v14535_v61, %v14536_v55  ;;  %v14565_v61 = vld [vmem:[#allocation71_spill] sm:$0xff]  ;;  %v14566_v55 = vld [vmem:[#allocation104_spill] sm:$0xff] }
0x11ad   : > { %8648 = vrot.lane.b32.xlu1 %v14510_v8, %s14178_s20  ;;  %v14538_v8 = vld [vmem:[#allocation75_spill] sm:$0xff] }
0x11ae   : > { %8638 = vrot.lane.b32.xlu0 %v14513_v17, %s14182_s8  ;;  %v14540_v9 = vpack.i.bf16 %v14538_v8, %v14539_v47  ;;  %v14544_v17 = vld [vmem:[#allocation69_spill] sm:$0xff]  ;;  %v14569_v8 = vld [vmem:[#allocation80_spill] sm:$0xff] }
0x11af   : > { %v14546_v31 = vpack.i.bf16 %v14544_v17, %v14545_v23 }
0x11b1   : > { %8658 = vrot.lane.b32.xlu1 %v14516_v43, %s14186_s13  ;;  %v14547_v43 = vld [vmem:[#allocation64_spill] sm:$0xff] }
0x11b2   : > { %8653 = vrot.lane.b32.xlu0 %v14519_v39, %s14180_s11  ;;  %v14549_v12 = vpack.i.bf16 %v14547_v43, %v14548_v44  ;;  %v14550_v39 = vld [vmem:[#allocation61_spill] sm:$0xff]  ;;  %v14574_v44 = vld [vmem:[#allocation94_spill] sm:$0xff] }
0x11b3   : > { %v14552_v15 = vpack.i.bf16 %v14550_v39, %v14551_v45 }
0x11b5   : > { %8673 = vrot.lane.b32.xlu1 %v14522_v32, %s14184_s23  ;;  %v14553_v32 = vld [vmem:[#allocation20_spill] sm:$0xff] }
0x11b6   : > { %8663 = vrot.lane.b32.xlu0 %v8662_v42, %s14176_s21  ;;  %v14533_v42 = vld [vmem:[#allocation22_spill] sm:$0xff]  ;;  %v14555_v27 = vpack.i.bf16 %v14553_v32, %v14554_v51 }
0x11b7   : > { %v14534_v60 = vpack.i.bf16 %v14532_v0, %v14533_v42  ;;  %v14562_v0 = vld [vmem:[#allocation57_spill] sm:$0xff] }
0x11b8   : > { %v14563_v42 = vld [vmem:[#allocation25_spill] sm:$0xff] }
0x11b9   : > { %8683 = vrot.lane.b32.xlu1 %v14525_v37, %s14180_s11 }
0x11ba   : > { %8668 = vrot.lane.b32.xlu0 %v14528_v53, %s14182_s8  ;;  %v14558_v53 = vpack.i.bf16 %v14556_v7, %v14557_v58 }
0x11bd   : > { %8693 = vrot.lane.b32.xlu1 %v8692_v16, %s14176_s21  ;;  %v14542_v16 = vld [vmem:[#allocation54_spill] sm:$0xff] }
0x11be   : > { %8678 = vrot.lane.b32.xlu0 %v14531_v49, %s14178_s20  ;;  %v14543_v20 = vpack.i.bf16 %v14541_v11, %v14542_v16  ;;  %v14572_v11 = vld [vmem:[#allocation62_spill] sm:$0xff] }
0x11c1   : > { %8698 = vrot.lane.b32.xlu1 %v14534_v60, %s14182_s8  ;;  %v14564_v60 = vpack.i.bf16 %v14562_v0, %v14563_v42 }
0x11c2   : > { %8688 = vrot.lane.b32.xlu0 %v14537_v25, %s14186_s13  ;;  %v14567_v25 = vpack.i.bf16 %v14565_v61, %v14566_v55 }
0x11c5   : > { %8708 = vrot.lane.b32.xlu1 %v14540_v9, %s14178_s20  ;;  %v14571_v9 = vld [vmem:[#allocation55_spill] sm:$0xff] }
0x11c6   : > { %8703 = vrot.lane.b32.xlu0 %v14543_v20, %s14184_s23  ;;  %v14573_v16 = vpack.i.bf16 %v14571_v9, %v14572_v11 }
0x11c9   : > { %8718 = vrot.lane.b32.xlu1 %v14546_v31, %s14186_s13 }
0x11ca   : > { %8713 = vrot.lane.b32.xlu0 %v14549_v12, %s14180_s11  ;;  %v14575_v12 = vld [vmem:[#allocation95_spill] sm:$0xff] }
0x11cb   : > { %v14576_v39 = vpack.i.bf16 %v14574_v44, %v14575_v12 }
0x11cd   : > { %8733 = vrot.lane.b32.xlu1 %v14552_v15, %s14184_s23 }
0x11ce   : > { %8723 = vrot.lane.b32.xlu0 %v8722_v4, %s14176_s21  ;;  %v14561_v4 = vpack.i.bf16 %v14559_v28, %v14560_v13 }
0x11d1   : > { %8743 = vrot.lane.b32.xlu1 %v14555_v27, %s14180_s11  ;;  %v5397_v37 = vpop.xlane.xlu0 %5396 }
0x11d2   : > { %9382 = vrcp.f32 %v5397_v37  ;;  %8728 = vrot.lane.b32.xlu0 %v14558_v53, %s14182_s8 }
0x11d3   : > { %v5395_v41 = vpop.xlane.xlu1 %5394 }
0x11d4   : > { %9384 = vrcp.f32 %v5395_v41 }
0x11d5   : > { %8753 = vrot.lane.b32.xlu1 %v8752_v63, %s14176_s21  ;;  %v14568_v63 = vld [vmem:[#allocation79_spill] sm:$0xff] }
0x11d6   : > { %8738 = vrot.lane.b32.xlu0 %v14561_v4, %s14178_s20  ;;  %v14570_v47 = vpack.i.bf16 %v14568_v63, %v14569_v8 }
0x11d7   : > { %v5399_v57 = vpop.xlane.xlu1 %5398 }
0x11d8   : > { %v5401_v49 = vpop.xlane.xlu0 %5400  ;;  %9386 = vrcp.f32 %v5399_v57 }
0x11d9   : > { %9388 = vrcp.f32 %v5401_v49  ;;  %8758 = vrot.lane.b32.xlu1 %v14564_v60, %s14182_s8  ;;  %s14583_s8 = smov 32  }
0x11da   : > { %8748 = vrot.lane.b32.xlu0 %v14567_v25, %s14186_s13  ;;  %s14595_s13 = smov 48  }
0x11db   : > { %v5403_v6 = vpop.xlane.xlu1 %5402 }
0x11dc   : > { %v5405_v29 = vpop.xlane.xlu0 %5404  ;;  %9390 = vrcp.f32 %v5403_v6 }
0x11dd   : > { %9392 = vrcp.f32 %v5405_v29  ;;  %8768 = vrot.lane.b32.xlu1 %v14570_v47, %s14178_s20  ;;  %s14579_s20 = smov 80  }
0x11de   : > { %8763 = vrot.lane.b32.xlu0 %v14573_v16, %s14184_s23  ;;  %s14587_s23 = smov 16  }
0x11df   : > { %v9383_v20 = vpop.eup %9382  ;;  %v5407_v17 = vpop.xlane.xlu1 %5406 }
0x11e0   : > { %v5409_v23 = vpop.xlane.xlu0 %5408  ;;  %9394 = vrcp.f32 %v5407_v17  ;;  %v5443_v31 = vmul.f32 %v9383_v20, %v13066_v22 }
0x11e1   : > { %v9385_v43 = vpop.eup %9384  ;;  %9396 = vrcp.f32 %v5409_v23 }
0x11e2   : > { %8773 = vrot.lane.b32.xlu0 %v14576_v39, %s14180_s11  ;;  %v5442_v45 = vmul.f32 %v9385_v43, %v13069_v24  ;;  %7124 = vst [vmem:[%s10447_s10 + $0x388] sm:$0xff] %v5443_v31  ;;  %s14578_s11 = smov 112  }
0x11e3   : > { %v5476_v22 = vpop.permute.xlu1 %5475 }
0x11e4   : > { %v5478_v15 = vpop.permute.xlu0 %5477  ;;  %7123 = vst [vmem:[%s10447_s10 + $0x380] sm:$0xff] %v5442_v45  ;;  %8537 = vmatprep.mubr.f32.mxu0 %v5442_v45 }
0x11e5   : > { %v9387_v32 = vpop.eup %9386  ;;  %8533 = vmatprep.subr.mxu0 %v5478_v15 }
0x11e6   : > { %v9389_v51 = vpop.eup %9388  ;;  %8788 = vrot.lane.b32.xlu0 %v8787_v14, %s14176_s21  ;;  %8534 = vmatpush3.msra.mxu0 %v5478_v15  ;;  %v5444_v27 = vmul.f32 %v9387_v32, %v13072_v1 }
0x11e7   : > { %8535 = vmatprep.subr.mxu0 %v5476_v22  ;;  %v5445_v24 = vmul.f32 %v9389_v51, %v13074_v21 }
0x11e8   : > { %8536 = vmatpush3.msra.mxu0 %v5476_v22  ;;  %7125 = vst [vmem:[%s10447_s10 + $0x390] sm:$0xff] %v5444_v27 }
0x11e9   : > { %v9391_v37 = vpop.eup %9390  ;;  %8538 = vmatmul.mubr.f32.vlgmr.msra.gmra.mxu0 %v5443_v31  ;;  %7126 = vst [vmem:[%s10447_s10 + $0x398] sm:$0xff] %v5445_v24 }
0x11ea   : > { %v9393_v7 = vpop.eup %9392  ;;  %8540 = vmatprep.mubr.f32.mxu0 %v5444_v27  ;;  %v5446_v58 = vmul.f32 %v9391_v37, %v13078_v46 }
0x11eb   : > { %v5447_v26 = vmul.f32 %v9393_v7, %v13080_v54 }
0x11ec   : > { %7127 = vst [vmem:[%s10447_s10 + $0x3a0] sm:$0xff] %v5446_v58 }
0x11ed   : > { %v9395_v10 = vpop.eup %9394  ;;  %8541 = vmatmul.mubr.f32.gmra.mxu0 %v5445_v24  ;;  %7128 = vst [vmem:[%s10447_s10 + $0x3a8] sm:$0xff] %v5447_v26 }
0x11ee   : > { %v9397_v14 = vpop.eup %9396  ;;  %8543 = vmatprep.mubr.f32.mxu0 %v5446_v58  ;;  %v5448_v1 = vmul.f32 %v9395_v10, %v13084_v38  ;;  %v14577_v10 = vld [vmem:[#allocation37_spill] sm:$0xff] }
0x11ef   : > { %v5449_v21 = vmul.f32 %v9397_v14, %v13086_v33 }
0x11f0   : > { %7129 = vst [vmem:[%s10447_s10 + $0x3b0] sm:$0xff] %v5448_v1 }
0x11f1   : > { %8544 = vmatmul.mubr.f32.gmra.mxu0 %v5447_v26  ;;  %7130 = vst [vmem:[%s10447_s10 + $0x3b8] sm:$0xff] %v5449_v21 }
0x11f2   : > { %8546 = vmatprep.mubr.f32.mxu0 %v5448_v1 }
0x11f5   : > { %8547 = vmatmul.mubr.f32.gmra.mxu0 %v5449_v21 }
0x1214   : > { %v5411_v53 = vpop.xlane.xlu1 %5410 }
0x1215   : > { %v5413_v41 = vpop.xlane.xlu0 %5412  ;;  %9398 = vrcp.f32 %v5411_v53 }
0x1216   : > { %9400 = vrcp.f32 %v5413_v41 }
0x1218   : > { %v5417_v46 = vpop.xlane.xlu1 %5416 }
0x1219   : > { %v5415_v54 = vpop.xlane.xlu0 %5414  ;;  %9402 = vrcp.f32 %v5417_v46  ;;  %v6265_v46 = vld [vmem:[%s13974_s3 + $0xf8] sm:$0xff] }
0x121a   : > { %9404 = vrcp.f32 %v5415_v54  ;;  %6278 = vmatprep.subr.mxu0 %v6265_v46  ;;  %v6264_v54 = vld [vmem:[%s13974_s3 + $0xf0] sm:$0xff]  ;;  %v6237_v46 = vld [vmem:[%s13974_s3 + $0x18] sm:$0xff] }
0x121b   : > { %6279 = vmatpush1.msra.mxu0 %v6264_v54  ;;  %v6236_v54 = vld [vmem:[%s13974_s3 + $0x10] sm:$0xff] }
0x121d   : > { %v5419_v28 = vpop.xlane.xlu0 %5418  ;;  %v5421_v13 = vpop.xlane.xlu1 %5420 }
0x121e   : > { %9406 = vrcp.f32 %v5419_v28  ;;  %v6263_v28 = vld [vmem:[%s13974_s3 + $0xe8] sm:$0xff] }
0x121f   : > { %9408 = vrcp.f32 %v5421_v13  ;;  %v6262_v13 = vld [vmem:[%s13974_s3 + $0xe0] sm:$0xff]  ;;  %6280 = vmatprep.subr.mxu0 %v6263_v28  ;;  %v6235_v28 = vld [vmem:[%s13974_s3 + $0x8] sm:$0xff] }
0x1220   : > { %6281 = vmatpush1.msra.mxu0 %v6262_v13  ;;  %v6234_v13 = vld [vmem:[%s13974_s3] sm:$0xff] }
0x1221   : > { %v5423_v38 = vpop.xlane.xlu0 %5422  ;;  %v5425_v33 = vpop.xlane.xlu1 %5424 }
0x1222   : > { %v9399_v4 = vpop.eup %9398  ;;  %9410 = vrcp.f32 %v5423_v38  ;;  %v6261_v38 = vld [vmem:[%s13974_s3 + $0xd8] sm:$0xff] }
0x1223   : > { %v9401_v57 = vpop.eup %9400  ;;  %9412 = vrcp.f32 %v5425_v33  ;;  %v5450_v49 = vmul.f32 %v9399_v4, %v13102_v52  ;;  %v6260_v33 = vld [vmem:[%s13974_s3 + $0xd0] sm:$0xff]  ;;  %v6259_v4 = vld [vmem:[%s13974_s3 + $0xc8] sm:$0xff]  ;;  %6282 = vmatprep.subr.mxu0 %v6261_v38  ;;  %v9653_v38 = vmov 0.0  }
0x1224   : > { %v5451_v0 = vmul.f32 %v9401_v57, %v13104_v50  ;;  %v6258_v57 = vld [vmem:[%s13974_s3 + $0xc0] sm:$0xff]  ;;  %6283 = vmatpush1.msra.mxu0 %v6260_v33 }
0x1225   : > { %v13260_v42 = vpop.permute.xlu0 %8638  ;;  %v13262_v60 = vpop.permute.xlu1 %8643  ;;  %7131 = vst [vmem:[%s10447_s10 + $0x3c0] sm:$0xff] %v5450_v49  ;;  %8549 = vmatprep.mubr.f32.mxu0 %v5450_v49  ;;  %v6257_v49 = vld [vmem:[%s13974_s3 + $0xb8] sm:$0xff]  ;;  %6284 = vmatprep.subr.mxu0 %v6259_v4 }
0x1226   : > { %v9403_v61 = vpop.eup %9402  ;;  %7132 = vst [vmem:[%s10447_s10 + $0x3c8] sm:$0xff] %v5451_v0  ;;  %8550 = vmatmul.mubr.f32.gmra.mxu0 %v5451_v0  ;;  %v6256_v0 = vld [vmem:[%s13974_s3 + $0xb0] sm:$0xff] }
0x1227   : > { %v9405_v55 = vpop.eup %9404  ;;  %v5453_v25 = vmul.f32 %v9403_v61, %v13108_v19  ;;  %6285 = vmatpush1.msra.mxu0 %v6258_v57  ;;  %v6255_v61 = vld [vmem:[%s13974_s3 + $0xa8] sm:$0xff] }
0x1228   : > { %v5452_v6 = vmul.f32 %v9405_v55, %v13110_v18  ;;  %6286 = vmatprep.subr.mxu0 %v6257_v49  ;;  %v6254_v55 = vld [vmem:[%s13974_s3 + $0xa0] sm:$0xff] }
0x1229   : > { %v13268_v29 = vpop.permute.xlu0 %8653  ;;  %v13270_v52 = vpop.permute.xlu1 %8648  ;;  %7134 = vst [vmem:[%s10447_s10 + $0x3d8] sm:$0xff] %v5453_v25  ;;  %6287 = vmatpush1.msra.mxu0 %v6256_v0 }
0x122a   : > { %7133 = vst [vmem:[%s10447_s10 + $0x3d0] sm:$0xff] %v5452_v6  ;;  %8552 = vmatprep.mubr.f32.mxu0 %v5452_v6  ;;  %6288 = vmatprep.subr.mxu0 %v6255_v61  ;;  %v6252_v6 = vld [vmem:[%s13974_s3 + $0x90] sm:$0xff] }
0x122b   : > { %v9407_v50 = vpop.eup %9406  ;;  %8553 = vmatmul.mubr.f32.gmra.mxu0 %v5453_v25  ;;  %v6253_v25 = vld [vmem:[%s13974_s3 + $0x98] sm:$0xff] }
0x122c   : > { %v9409_v63 = vpop.eup %9408  ;;  %v5454_v8 = vmul.f32 %v9407_v50, %v13114_v36  ;;  %6289 = vmatpush1.msra.mxu0 %v6254_v55  ;;  %v6251_v50 = vld [vmem:[%s13974_s3 + $0x88] sm:$0xff] }
0x122d   : > { %v13275_v47 = vpop.permute.xlu0 %8663  ;;  %v13277_v19 = vpop.permute.xlu1 %8658  ;;  %v5455_v18 = vmul.f32 %v9409_v63, %v13116_v34  ;;  %6290 = vmatprep.subr.mxu0 %v6253_v25  ;;  %v6250_v63 = vld [vmem:[%s13974_s3 + $0x80] sm:$0xff]  ;;  %v14580_v25 = vld [vmem:[#allocation105_spill] sm:$0xff] }
0x122e   : > { %7135 = vst [vmem:[%s10447_s10 + $0x3e0] sm:$0xff] %v5454_v8  ;;  %8555 = vmatprep.mubr.f32.mxu0 %v5454_v8  ;;  %6291 = vmatpush1.msra.mxu0 %v6252_v6  ;;  %v6249_v8 = vld [vmem:[%s13974_s3 + $0x78] sm:$0xff]  ;;  %v14581_v6 = vld [vmem:[#allocation106_spill] sm:$0xff] }
0x122f   : > { %v9411_v9 = vpop.eup %9410  ;;  %7136 = vst [vmem:[%s10447_s10 + $0x3e8] sm:$0xff] %v5455_v18  ;;  %8556 = vmatmul.mubr.f32.gmra.mxu0 %v5455_v18  ;;  %6292 = vmatprep.subr.mxu0 %v6251_v50  ;;  %v6248_v18 = vld [vmem:[%s13974_s3 + $0x70] sm:$0xff]  ;;  %v14582_v50 = vpack.i.bf16 %v14580_v25, %v14581_v6 }
0x1230   : > { %v9413_v11 = vpop.eup %9412  ;;  %v5456_v16 = vmul.f32 %v9411_v9, %v13120_v40  ;;  %6293 = vmatpush1.msra.mxu0 %v6250_v63  ;;  %v6247_v9 = vld [vmem:[%s13974_s3 + $0x68] sm:$0xff]  ;;  %v14607_v25 = vld [vmem:[#allocation66_spill] sm:$0xff] }
0x1231   : > { %v13283_v20 = vpop.permute.xlu0 %8668  ;;  %v13285_v17 = vpop.permute.xlu1 %8673  ;;  %v5457_v36 = vmul.f32 %v9413_v11, %v13122_v2  ;;  %6294 = vmatprep.subr.mxu0 %v6249_v8  ;;  %v6246_v11 = vld [vmem:[%s13974_s3 + $0x60] sm:$0xff] }
0x1232   : > { %7137 = vst [vmem:[%s10447_s10 + $0x3f0] sm:$0xff] %v5456_v16  ;;  %8558 = vmatprep.mubr.f32.mxu0 %v5456_v16  ;;  %6295 = vmatpush1.msra.mxu0 %v6248_v18  ;;  %v6245_v16 = vld [vmem:[%s13974_s3 + $0x58] sm:$0xff]  ;;  %v14584_v8 = vld [vmem:[#allocation52_spill] sm:$0xff] }
0x1233   : > { %7138 = vst [vmem:[%s10447_s10 + $0x3f8] sm:$0xff] %v5457_v36  ;;  %8559 = vmatmul.mubr.f32.gmra.mxu0 %v5457_v36  ;;  %6296 = vmatprep.subr.mxu0 %v6247_v9  ;;  %v6244_v36 = vld [vmem:[%s13974_s3 + $0x50] sm:$0xff]  ;;  %v14585_v18 = vld [vmem:[#allocation63_spill] sm:$0xff] }
0x1234   : > { %6297 = vmatpush1.msra.mxu0 %v6246_v11  ;;  %6342 = vmatprep.mubr.f32.mxu0 %v9653_v38  ;;  %v14586_v9 = vpack.i.bf16 %v14584_v8, %v14585_v18  ;;  %v14588_v11 = vld [vmem:[#allocation38_spill] sm:$0xff] }
0x1235   : > { %v13290_v23 = vpop.permute.xlu0 %8678  ;;  %v13292_v34 = vpop.permute.xlu1 %8683  ;;  %6298 = vmatprep.subr.mxu0 %v6245_v16  ;;  %v14589_v16 = vld [vmem:[#allocation58_spill] sm:$0xff] }
0x1236   : > { %6299 = vmatpush1.msra.mxu0 %v6244_v36  ;;  %v14590_v36 = vpack.i.bf16 %v14588_v11, %v14589_v16 }
0x1239   : > { %v13294_v31 = vpop.permute.xlu0 %8688  ;;  %v13296_v43 = vpop.permute.xlu1 %8693 }
0x123d   : > { %v13298_v44 = vpop.permute.xlu0 %8703  ;;  %v13300_v40 = vpop.permute.xlu1 %8698 }
0x1241   : > { %v13302_v12 = vpop.permute.xlu0 %8713  ;;  %v13304_v39 = vpop.permute.xlu1 %8708 }
0x1245   : > { %v13306_v2 = vpop.permute.xlu0 %8723  ;;  %v13308_v45 = vpop.permute.xlu1 %8718 }
0x1249   : > { %v13310_v15 = vpop.permute.xlu0 %8728  ;;  %v13312_v32 = vpop.permute.xlu1 %8733 }
0x124d   : > { %v13314_v51 = vpop.permute.xlu0 %8738  ;;  %v13316_v22 = vpop.permute.xlu1 %8743 }
0x1251   : > { %v13318_v27 = vpop.permute.xlu0 %8748  ;;  %v13320_v24 = vpop.permute.xlu1 %8753 }
0x1255   : > { %v13322_v37 = vpop.permute.xlu0 %8763  ;;  %v13324_v7 = vpop.permute.xlu1 %8758 }
0x1256   : > { %v8766_v58 = vunpack.i.h.bf16 %v13322_v37  ;;  %v8761_v26 = vunpack.i.h.bf16 %v13324_v7 }
0x1258   : > { %v6125_v14 = vsel %vm716_vm0, %v14577_v10, %v8761_v26  ;;  %v6242_v26 = vld [vmem:[%s13974_s3 + $0x40] sm:$0xff]  ;;  %v6241_v10 = vld [vmem:[%s13974_s3 + $0x38] sm:$0xff] }
0x1259   : > { %v13330_v1 = vpop.permute.xlu1 %8768  ;;  %v6142_v21 = vsel %vm6132_vm1, %v6125_v14, %v8766_v58  ;;  %v6243_v58 = vld [vmem:[%s13974_s3 + $0x48] sm:$0xff]  ;;  %v6240_v14 = vld [vmem:[%s13974_s3 + $0x30] sm:$0xff] }
0x125a   : > { %v8771_v53 = vunpack.i.h.bf16 %v13330_v1  ;;  %6300 = vmatprep.subr.mxu0 %v6243_v58 }
0x125b   : > { %6301 = vmatpush1.msra.mxu0 %v6242_v26  ;;  %v14592_v26 = vld [vmem:[#allocation96_spill] sm:$0xff] }
0x125c   : > { %v13335_v41 = vsel %vm6149_vm2, %v6142_v21, %v8771_v53  ;;  %v6239_v21 = vld [vmem:[%s13974_s3 + $0x28] sm:$0xff]  ;;  %6302 = vmatprep.subr.mxu0 %v6241_v10  ;;  %v6238_v53 = vld [vmem:[%s13974_s3 + $0x20] sm:$0xff] }
0x125d   : > { %6303 = vmatpush1.msra.mxu0 %v6240_v14  ;;  %v14593_v10 = vld [vmem:[#allocation97_spill] sm:$0xff] }
0x125e   : > { %6304 = vmatprep.subr.mxu0 %v6239_v21  ;;  %v14594_v14 = vpack.i.bf16 %v14592_v26, %v14593_v10  ;;  %v14596_v21 = vld [vmem:[#allocation81_spill] sm:$0xff]  ;;  %v14616_v10 = vld [vmem:[#allocation110_spill] sm:$0xff] }
0x125f   : > { %6305 = vmatpush1.msra.mxu0 %v6238_v53  ;;  %v14597_v53 = vld [vmem:[#allocation82_spill] sm:$0xff]  ;;  %v14615_v26 = vld [vmem:[#allocation109_spill] sm:$0xff] }
0x1260   : > { %6306 = vmatprep.subr.mxu0 %v6237_v46  ;;  %v14598_v46 = vpack.i.bf16 %v14596_v21, %v14597_v53  ;;  %v14618_v53 = vld [vmem:[#allocation65_spill] sm:$0xff] }
0x1261   : > { %6307 = vmatpush1.msra.mxu0 %v6236_v54  ;;  %v14620_v35 = vpack.i.bf16 %v14618_v53, %v14619_v48  ;;  %v8671_v53 = vunpack.i.h.bf16 %v13283_v20  ;;  %v8665_v48 = vunpack.i.l.bf16 %v13275_v47 }
0x1262   : > { %6308 = vmatprep.subr.mxu0 %v6235_v28 }
0x1263   : > { %6309 = vmatpush1.msra.mxu0 %v6234_v13  ;;  %v14599_v13 = vld [vmem:[#allocation107_spill] sm:$0xff] }
0x12a9   : > { %v8539_v33 = vpop.f32.mrf.mxu0 }
0x12ab   : > { %v5589_v4 = vpop.f32.mrf.mxu0 }
0x12ac   : > { %v8777_v57 = vpack.i.bf16 %v8539_v33, %v5589_v4  ;;  %v14600_v33 = vld [vmem:[#allocation108_spill] sm:$0xff] }
0x12ad   : > { %v8542_v49 = vpop.f32.mrf.mxu0  ;;  %v14601_v4 = vpack.i.bf16 %v14599_v13, %v14600_v33  ;;  %v14624_v13 = vld [vmem:[#allocation100_spill] sm:$0xff]  ;;  %v14625_v33 = vld [vmem:[#allocation101_spill] sm:$0xff] }
0x12ae   : > { %8778 = vrot.lane.b32.xlu1 %v8777_v57, %s14578_s11 }
0x12af   : > { %v5599_v0 = vpop.f32.mrf.mxu0 }
0x12b0   : > { %v8792_v61 = vpack.i.bf16 %v8542_v49, %v5599_v0  ;;  %v14603_v49 = vld [vmem:[#allocation21_spill] sm:$0xff]  ;;  %v14604_v0 = vld [vmem:[#allocation50_spill] sm:$0xff] }
0x12b1   : > { %v8545_v55 = vpop.f32.mrf.mxu0 }
0x12b2   : > { %8783 = vrot.lane.b32.xlu1 %v14582_v50, %s14579_s20  ;;  %8793 = vrot.lane.b32.xlu0 %v8792_v61, %s14578_s11  ;;  %v14605_v61 = vpack.i.bf16 %v14603_v49, %v14604_v0  ;;  %v14609_v50 = vld [vmem:[#allocation83_spill] sm:$0xff]  ;;  %v14628_v49 = vld [vmem:[#allocation86_spill] sm:$0xff] }
0x12b3   : > { %v5609_v63 = vpop.f32.mrf.mxu0 }
0x12b4   : > { %v8822_v54 = vpack.i.bf16 %v8545_v55, %v5609_v63  ;;  %v14606_v55 = vld [vmem:[#allocation59_spill] sm:$0xff]  ;;  %v14610_v63 = vld [vmem:[#allocation84_spill] sm:$0xff] }
0x12b5   : > { %v8548_v58 = vpop.f32.mrf.mxu0  ;;  %v14608_v6 = vpack.i.bf16 %v14606_v55, %v14607_v25  ;;  %v14611_v8 = vpack.i.bf16 %v14609_v50, %v14610_v63  ;;  %v14630_v25 = vld [vmem:[#allocation112_spill] sm:$0xff]  ;;  %v14631_v50 = vld [vmem:[#allocation111_spill] sm:$0xff]  ;;  %v8640_v63 = vunpack.i.l.bf16 %v13260_v42 }
0x12b6   : > { %8803 = vrot.lane.b32.xlu1 %v14586_v9, %s14583_s8  ;;  %8798 = vrot.lane.b32.xlu0 %v14590_v36, %s14587_s23 }
0x12b7   : > { %v5619_v28 = vpop.f32.mrf.mxu0 }
0x12b8   : > { %v8837_v57 = vpack.i.bf16 %v8548_v58, %v5619_v28 }
0x12ba   : > { %8813 = vrot.lane.b32.xlu1 %v14594_v14, %s14591_s19  ;;  %8808 = vrot.lane.b32.xlu0 %v14598_v46, %s14595_s13  ;;  %v14617_v14 = vpack.i.bf16 %v14615_v26, %v14616_v10  ;;  %v14622_v46 = vld [vmem:[#allocation27_spill] sm:$0xff]  ;;  %v8660_v26 = vunpack.i.l.bf16 %v13277_v19  ;;  %v8670_v10 = vunpack.i.l.bf16 %v13283_v20  ;;  %v8676_v20 = vunpack.i.h.bf16 %v13285_v17 }
0x12be   : > { %8818 = vrot.lane.b32.xlu0 %v14601_v4, %s14579_s20  ;;  %8823 = vrot.lane.b32.xlu1 %v8822_v54, %s14578_s11  ;;  %v14626_v4 = vpack.i.bf16 %v14624_v13, %v14625_v33  ;;  %v8666_v13 = vunpack.i.h.bf16 %v13275_v47  ;;  %v8685_v47 = vunpack.i.l.bf16 %v13292_v34 }
0x12c2   : > { %8828 = vrot.lane.b32.xlu1 %v8827_v59, %s14602_s18  ;;  %8838 = vrot.lane.b32.xlu0 %v8837_v57, %s14578_s11  ;;  %v14614_v59 = vpack.i.bf16 %v14612_v56, %v14613_v5  ;;  %v14627_v57 = vld [vmem:[#allocation85_spill] sm:$0xff]  ;;  %v8645_v56 = vunpack.i.l.bf16 %v13262_v60 }
0x12c3   : > { %v14629_v0 = vpack.i.bf16 %v14627_v57, %v14628_v49  ;;  %v14632_v5 = vld [vmem:[#allocation45_spill] sm:$0xff]  ;;  %v14635_v49 = vld [vmem:[#allocation46_spill] sm:$0xff] }
0x12c6   : > { %8833 = vrot.lane.b32.xlu1 %v14605_v61, %s14587_s23  ;;  %8843 = vrot.lane.b32.xlu0 %v14608_v6, %s14583_s8 }
0x12ca   : > { %8848 = vrot.lane.b32.xlu1 %v14611_v8, %s14595_s13  ;;  %8853 = vrot.lane.b32.xlu0 %v14614_v59, %s14591_s19  ;;  %v8641_v8 = vunpack.i.h.bf16 %v13260_v42  ;;  %v6116_v59 = vsel %vm716_vm0, %v14632_v5, %v8640_v63  ;;  %v8690_v63 = vunpack.i.l.bf16 %v13294_v31 }
0x12ce   : > { %8868 = vrot.lane.b32.xlu0 %v8867_v62, %s14602_s18  ;;  %v14621_v62 = vld [vmem:[#allocation60_spill] sm:$0xff] }
0x12cf   : > { %v14623_v54 = vpack.i.bf16 %v14621_v62, %v14622_v46  ;;  %v8675_v62 = vunpack.i.l.bf16 %v13285_v17 }
0x12e6   : > { %v8551_v18 = vpop.f32.mrf.mxu0 }
0x12e8   : > { %v5629_v9 = vpop.f32.mrf.mxu0 }
0x12e9   : > { %v8857_v11 = vpack.i.bf16 %v8551_v18, %v5629_v9  ;;  %v8646_v18 = vunpack.i.h.bf16 %v13262_v60  ;;  %v14633_v9 = vld [vmem:[#allocation41_spill] sm:$0xff] }
0x12eb   : > { %v8554_v16 = vpop.f32.mrf.mxu0  ;;  %8858 = vrot.lane.b32.xlu1 %v8857_v11, %s14578_s11  ;;  %v6117_v11 = vsel %vm716_vm0, %v14633_v9, %v8641_v8  ;;  %v8705_v9 = vunpack.i.l.bf16 %v13298_v44 }
0x12ec   : > { %v6134_v60 = vsel %vm6132_vm1, %v6117_v11, %v8646_v18  ;;  %v8701_v11 = vunpack.i.h.bf16 %v13300_v40 }
0x12ed   : > { %v5639_v36 = vpop.f32.mrf.mxu0 }
0x12ee   : > { %v8872_v58 = vpack.i.bf16 %v8554_v16, %v5639_v36  ;;  %v6133_v16 = vsel %vm6132_vm1, %v6116_v59, %v8645_v56  ;;  %v8655_v36 = vunpack.i.l.bf16 %v13268_v29 }
0x12ef   : > { %8863 = vrot.lane.b32.xlu1 %v14617_v14, %s14579_s20  ;;  %v8557_v21 = vpop.f32.mrf.mxu0  ;;  %v8656_v14 = vunpack.i.h.bf16 %v13268_v29  ;;  %v8680_v29 = vunpack.i.l.bf16 %v13290_v23 }
0x12f0   : > { %8873 = vrot.lane.b32.xlu0 %v8872_v58, %s14578_s11  ;;  %v13531_v58 = vpop.permute.xlu0 %8773 }
0x12f1   : > { %v5649_v28 = vpop.f32.mrf.mxu0 }
0x12f2   : > { %v8897_v61 = vpack.i.bf16 %v8557_v21, %v5649_v28  ;;  %v8661_v21 = vunpack.i.h.bf16 %v13277_v19 }
0x12f3   : > { %8883 = vrot.lane.b32.xlu1 %v14620_v35, %s14583_s8  ;;  %v8560_v55 = vpop.f32.mrf.mxu0 }
0x12f4   : > { %8878 = vrot.lane.b32.xlu0 %v14623_v54, %s14587_s23  ;;  %v14634_v54 = vld [vmem:[#allocation44_spill] sm:$0xff]  ;;  %v13551_v33 = vpop.permute.xlu0 %8788 }
0x12f5   : > { %v5659_v6 = vpop.f32.mrf.mxu0  ;;  %v6118_v28 = vsel %vm716_vm0, %v14634_v54, %v8670_v10  ;;  %v8691_v10 = vunpack.i.h.bf16 %v13294_v31  ;;  %v8711_v31 = vunpack.i.h.bf16 %v13304_v39 }
0x12f7   : > { %8893 = vrot.lane.b32.xlu1 %v14626_v4, %s14591_s19  ;;  %s9654_s19 = smov [#allocation5]  }
0x12f8   : > { %8888 = vrot.lane.b32.xlu0 %v14629_v0, %s14595_s13  ;;  %v6119_v0 = vsel %vm716_vm0, %v14635_v49, %v8671_v53  ;;  %s9516_s13 = sshll.u32 %s9654_s19, 4  ;;  %s9517_s13 = int_to_ptr.vmem [resolvable:$false] %s9516_s13 }
0x12f9   : > { %v6136_v5 = vsel %vm6132_vm1, %v6119_v0, %v8676_v20  ;;  %v8730_v20 = vunpack.i.l.bf16 %v13310_v15 }
0x12fb   : > { %8898 = vrot.lane.b32.xlu1 %v8897_v61, %s14578_s11  ;;  %v8681_v61 = vunpack.i.h.bf16 %v13290_v23  ;;  %v8686_v23 = vunpack.i.h.bf16 %v13292_v34 }
0x12fc   : > { %5968 = vrot.lane.b32.xlu0 %v14630_v25, %s14579_s20  ;;  %v6135_v25 = vsel %vm6132_vm1, %v6118_v28, %v8675_v62  ;;  %v8696_v28 = vunpack.i.h.bf16 %v13296_v43 }
0x12fd   : > { %v6153_v18 = vsel %vm6149_vm2, %v6136_v5, %v8681_v61 }
0x12ff   : > { %6032 = vrot.lane.b32.xlu1 %v13036_v30, %s14602_s18  ;;  %v8650_v30 = vunpack.i.l.bf16 %v13270_v52 }
0x1300   : > { %6096 = vrot.lane.b32.xlu0 %v5659_v6, %s14578_s11  ;;  %v8700_v6 = vunpack.i.l.bf16 %v13300_v40 }
0x1301   : > { %v6150_v42 = vsel %vm6149_vm2, %v6133_v16, %v8650_v30 }
0x1302   : > { %v6167_v35 = vsel %vm6166_vm3, %v6150_v42, %v8655_v36  ;;  %v8695_v36 = vunpack.i.l.bf16 %v13296_v43  ;;  %v14636_v42 = vld [vmem:[#allocation28_spill] sm:$0xff] }
0x1303   : > { %5970 = vrot.lane.b32.xlu1 %v14631_v50, %s14579_s20  ;;  %v6184_v46 = vsel %vm6183_vm4, %v6167_v35, %v8660_v26  ;;  %v6152_v50 = vsel %vm6149_vm2, %v6135_v25, %v8680_v29  ;;  %v6120_v34 = vsel %vm716_vm0, %v14636_v42, %v8700_v6  ;;  %v8710_v26 = vunpack.i.l.bf16 %v13304_v39  ;;  %v14637_v35 = vld [vmem:[#allocation47_spill] sm:$0xff]  ;;  %s6497_s20 = sshll.u32 %s10447_s10, 4  ;;  %s13769_s20 = int_to_ptr.vmem [resolvable:$true] %s6497_s20 }
0x1304   : > { %6034 = vrot.lane.b32.xlu0 %v13034_v3, %s14602_s18  ;;  %v8651_v3 = vunpack.i.h.bf16 %v13270_v52  ;;  %v6201_v17 = vsel %vm6200_vm5, %v6184_v46, %v8665_v48  ;;  %v6169_v16 = vsel %vm6166_vm3, %v6152_v50, %v8685_v47  ;;  %v6121_v62 = vsel %vm716_vm0, %v14637_v35, %v8701_v11  ;;  %s9512_s23 = scalar_lea.vmem %s13769_s20, 16384  ;;  %s9518_s18 = scalar_lea.vmem %s9517_s13, 32768 }
0x1305   : > { %v8715_v46 = vunpack.i.l.bf16 %v13302_v12  ;;  %v6137_v54 = vsel %vm6132_vm1, %v6120_v34, %v8705_v9  ;;  %v8720_v29 = vunpack.i.l.bf16 %v13308_v45  ;;  %v8716_v39 = vunpack.i.h.bf16 %v13302_v12  ;;  %p9513_p0 = scmp.ne.s32.totalorder %s13769_s20, %s9512_s23  ;;  %p9519_p3 = scmp.lt.s32.totalorder %s13769_s20, %s9517_s13 }
0x1306   : > { %v6151_v52 = vsel %vm6149_vm2, %v6134_v60, %v8651_v3  ;;  %v6186_v60 = vsel %vm6183_vm4, %v6169_v16, %v8690_v63  ;;  %v8721_v25 = vunpack.i.h.bf16 %v13308_v45  ;;  %v8731_v12 = vunpack.i.h.bf16 %v13310_v15  ;;  %v14638_v63 = vld [vmem:[#allocation30_spill] sm:$0xff]  ;;  %v14639_v16 = vld [vmem:[#allocation29_spill] sm:$0xff]  ;;  %p9520_p4 = scmp.lt.s32.totalorder %s9518_s18, %s9512_s23 }
0x1307   : > { %6098 = vrot.lane.b32.xlu1 %v8560_v55, %s14578_s11  ;;  %v6168_v19 = vsel %vm6166_vm3, %v6151_v52, %v8656_v14  ;;  %v6170_v52 = vsel %vm6166_vm3, %v6153_v18, %v8686_v23  ;;  %v8726_v45 = vunpack.i.h.bf16 %v13306_v2  ;;  %v8736_v9 = vunpack.i.h.bf16 %v13312_v32  ;;  %s13766_s11 = scalar_lea.hbm %s13976_s5, %s7150_s22  ;;  %p9514_p1 = pnand %p9513_p0, %p9744_p5 }
0x1308   : > { %v6185_v57 = vsel %vm6183_vm4, %v6168_v19, %v8661_v21  ;;  %v8706_v21 = vunpack.i.h.bf16 %v13298_v44  ;;  %v6154_v44 = vsel %vm6149_vm2, %v6137_v54, %v8710_v26  ;;  %v6187_v19 = vsel %vm6183_vm4, %v6170_v52, %v8691_v10  ;;  %p9521_p6 = por %p9520_p4, %p9519_p3 }
0x1309   : > { %v6202_v3 = vsel %vm6200_vm5, %v6185_v57, %v8666_v13  ;;  %v6203_v13 = vsel %vm6200_vm5, %v6186_v60, %v8695_v36  ;;  %v6171_v47 = vsel %vm6166_vm3, %v6154_v44, %v8715_v46  ;;  %v6204_v50 = vsel %vm6200_vm5, %v6187_v19, %v8696_v28  ;;  %p9515_p2 = pneg %p9514_p1 }
0x130a   : > { %v6138_v49 = vsel %vm6132_vm1, %v6121_v62, %v8706_v21  ;;  %v6188_v6 = vsel %vm6183_vm4, %v6171_v47, %v8720_v29  ;;  %v6123_v36 = vsel %vm716_vm0, %v14639_v16, %v8731_v12  ;;  %v8741_v42 = vunpack.i.h.bf16 %v13314_v51 }
0x130b   : > { %v6155_v61 = vsel %vm6149_vm2, %v6138_v49, %v8711_v31  ;;  %v8745_v34 = vunpack.i.l.bf16 %v13316_v22  ;;  %v8750_v10 = vunpack.i.l.bf16 %v13318_v27  ;;  %v8755_v62 = vunpack.i.l.bf16 %v13320_v24  ;;  %p9522_p7 = pnand %p9521_p6, %p9515_p2 }
0x130c   : > { %v6172_v23 = vsel %vm6166_vm3, %v6155_v61, %v8716_v39  ;;  %v8751_v46 = vunpack.i.h.bf16 %v13318_v27  ;;  %v8756_v29 = vunpack.i.h.bf16 %v13320_v24  ;;  %v8760_v24 = vunpack.i.l.bf16 %v13324_v7 }
0x130d   : > { %v6189_v15 = vsel %vm6183_vm4, %v6172_v23, %v8721_v25  ;;  %v8765_v49 = vunpack.i.l.bf16 %v13322_v37  ;;  %v8770_v47 = vunpack.i.l.bf16 %v13330_v1  ;;  %v8776_v37 = vunpack.i.h.bf16 %v13531_v58 }
0x130e   : > { %v6206_v52 = vsel %vm6200_vm5, %v6189_v15, %v8726_v45 }
0x1320   : > { %v8779_v4 = vpop.permute.xlu1 %8778 }
0x1321   : > { %v8780_v55 = vunpack.i.l.bf16 %v8779_v4  ;;  %v8781_v8 = vunpack.i.h.bf16 %v8779_v4 }
0x1323   : > { %v6218_v56 = vsel %vm6217_vm6, %v6201_v17, %v8780_v55  ;;  %v6219_v40 = vsel %vm6217_vm6, %v6202_v3, %v8781_v8  ;;  %v8725_v55 = vunpack.i.l.bf16 %v13306_v2  ;;  %v8735_v17 = vunpack.i.l.bf16 %v13312_v32 }
0x1324   : > { %v8794_v59 = vpop.permute.xlu0 %8793  ;;  %v13566_v30 = vpop.permute.xlu1 %8783  ;;  %6343 = vmatmul.mubr.f32.vlgmr.msra.gmra.mxu0 %v6218_v56  ;;  %v6122_v8 = vsel %vm716_vm0, %v14638_v63, %v8730_v20  ;;  %v8740_v56 = vunpack.i.l.bf16 %v13314_v51  ;;  %v8746_v51 = vunpack.i.h.bf16 %v13316_v22 }
0x1325   : > { %6348 = vmatprep.mubr.f32.mxu0 %v9653_v38  ;;  %v8795_v14 = vunpack.i.l.bf16 %v8794_v59  ;;  %v8796_v4 = vunpack.i.h.bf16 %v8794_v59  ;;  %v6205_v3 = vsel %vm6200_vm5, %v6188_v6, %v8725_v55  ;;  %v6139_v2 = vsel %vm6132_vm1, %v6122_v8, %v8735_v17  ;;  %v14640_v55 = vld [vmem:[#allocation31_spill] sm:$0xff] }
0x1326   : > { %v6156_v26 = vsel %vm6149_vm2, %v6139_v2, %v8740_v56  ;;  %v6124_v25 = vsel %vm716_vm0, %v14640_v55, %v8760_v24  ;;  %v8775_v6 = vunpack.i.l.bf16 %v13531_v58  ;;  %v8786_v1 = vunpack.i.h.bf16 %v13566_v30 }
0x1327   : > { %v6220_v57 = vsel %vm6217_vm6, %v6203_v13, %v8795_v14  ;;  %v6221_v5 = vsel %vm6217_vm6, %v6204_v50, %v8796_v4  ;;  %v6173_v35 = vsel %vm6166_vm3, %v6156_v26, %v8745_v34  ;;  %v6141_v12 = vsel %vm6132_vm1, %v6124_v25, %v8765_v49 }
0x1328   : > { %v13583_v53 = vpop.permute.xlu0 %8798  ;;  %v13585_v48 = vpop.permute.xlu1 %8803  ;;  %6349 = vmatmul.mubr.f32.gmra.mxu0 %v6219_v40  ;;  %v6140_v40 = vsel %vm6132_vm1, %v6123_v36, %v8736_v9  ;;  %v6190_v31 = vsel %vm6183_vm4, %v6173_v35, %v8750_v10  ;;  %v6158_v17 = vsel %vm6149_vm2, %v6141_v12, %v8770_v47  ;;  %v8785_v50 = vunpack.i.l.bf16 %v13566_v30  ;;  %v14642_v30 = vld [vmem:[#allocation39_spill] sm:$0xff] }
0x1329   : > { %6354 = vmatprep.mubr.f32.mxu0 %v9653_v38  ;;  %v6157_v21 = vsel %vm6149_vm2, %v6140_v40, %v8741_v42  ;;  %v6207_v22 = vsel %vm6200_vm5, %v6190_v31, %v8755_v62  ;;  %v8800_v7 = vunpack.i.l.bf16 %v13583_v53  ;;  %v8801_v56 = vunpack.i.h.bf16 %v13583_v53 }
0x132a   : > { %v6174_v44 = vsel %vm6166_vm3, %v6157_v21, %v8746_v51  ;;  %v8805_v45 = vunpack.i.l.bf16 %v13585_v48  ;;  %v6176_v53 = vsel %vm6166_vm3, %v13335_v41, %v8776_v37  ;;  %v8791_v40 = vunpack.i.h.bf16 %v13551_v33 }
0x132b   : > { %v6191_v13 = vsel %vm6183_vm4, %v6174_v44, %v8751_v46  ;;  %v6127_v16 = vsel %vm716_vm0, %v14642_v30, %v8801_v56  ;;  %v6193_v34 = vsel %vm6183_vm4, %v6176_v53, %v8786_v1  ;;  %v14643_v44 = vld [vmem:[#allocation34_spill] sm:$0xff] }
0x132c   : > { %v13602_v0 = vpop.permute.xlu0 %8808  ;;  %v13604_v43 = vpop.permute.xlu1 %8813  ;;  %6355 = vmatmul.mubr.f32.gmra.mxu0 %v6220_v57  ;;  %v6208_v27 = vsel %vm6200_vm5, %v6191_v13, %v8756_v29 }
0x132d   : > { %6360 = vmatprep.mubr.f32.mxu0 %v9653_v38  ;;  %v8810_v9 = vunpack.i.l.bf16 %v13602_v0  ;;  %v8811_v36 = vunpack.i.h.bf16 %v13602_v0  ;;  %v8815_v10 = vunpack.i.l.bf16 %v13604_v43 }
0x1330   : > { %v13621_v59 = vpop.permute.xlu0 %8818  ;;  %v8824_v18 = vpop.permute.xlu1 %8823  ;;  %6361 = vmatmul.mubr.f32.gmra.mxu0 %v6221_v5  ;;  %v6175_v5 = vsel %vm6166_vm3, %v6158_v17, %v8775_v6 }
0x1331   : > { %v8825_v11 = vunpack.i.l.bf16 %v8824_v18  ;;  %6366 = vmatprep.mubr.f32.mxu0 %v9653_v38  ;;  %v8826_v60 = vunpack.i.h.bf16 %v8824_v18  ;;  %v6192_v23 = vsel %vm6183_vm4, %v6175_v5, %v8785_v50  ;;  %v14641_v18 = vld [vmem:[#allocation32_spill] sm:$0xff]  ;;  %v8820_v21 = vunpack.i.l.bf16 %v13621_v59 }
0x1332   : > { %v6126_v15 = vsel %vm716_vm0, %v14641_v18, %v8800_v7 }
0x1333   : > { %v6222_v32 = vsel %vm6217_vm6, %v6205_v3, %v8825_v11  ;;  %v6223_v28 = vsel %vm6217_vm6, %v6206_v52, %v8826_v60  ;;  %v8790_v11 = vunpack.i.l.bf16 %v13551_v33  ;;  %v8806_v3 = vunpack.i.h.bf16 %v13585_v48 }
0x1334   : > { %v8839_v14 = vpop.permute.xlu0 %8838  ;;  %6367 = vmatmul.mubr.f32.gmra.mxu0 %v6222_v32  ;;  %v13655_v57 = vpop.permute.xlu1 %8828  ;;  %v6143_v26 = vsel %vm6132_vm1, %v6126_v15, %v8805_v45  ;;  %v8816_v52 = vunpack.i.h.bf16 %v13604_v43 }
0x1335   : > { %6372 = vmatprep.mubr.f32.mxu0 %v9653_v38  ;;  %v8840_v54 = vunpack.i.l.bf16 %v8839_v14  ;;  %v8841_v19 = vunpack.i.h.bf16 %v8839_v14  ;;  %v6209_v48 = vsel %vm6200_vm5, %v6192_v23, %v8790_v11  ;;  %v6160_v60 = vsel %vm6149_vm2, %v6143_v26, %v8810_v9  ;;  %v14645_v23 = vld [vmem:[#allocation36_spill] sm:$0xff] }
0x1336   : > { %v6144_v0 = vsel %vm6132_vm1, %v6127_v16, %v8806_v3  ;;  %v8830_v62 = vunpack.i.l.bf16 %v13655_v57  ;;  %v8831_v24 = vunpack.i.h.bf16 %v13655_v57 }
0x1337   : > { %v6224_v20 = vsel %vm6217_vm6, %v6207_v22, %v8840_v54  ;;  %v6225_v4 = vsel %vm6217_vm6, %v6208_v27, %v8841_v19  ;;  %v6161_v35 = vsel %vm6149_vm2, %v6144_v0, %v8811_v36  ;;  %v6177_v54 = vsel %vm6166_vm3, %v6160_v60, %v8815_v10 }
0x1338   : > { %6373 = vmatmul.mubr.f32.gmra.mxu0 %v6223_v28  ;;  %v13658_v39 = vpop.permute.xlu0 %8843  ;;  %v8834_v61 = vpop.permute.xlu1 %8833  ;;  %v6210_v28 = vsel %vm6200_vm5, %v6193_v34, %v8791_v40  ;;  %v6178_v19 = vsel %vm6166_vm3, %v6161_v35, %v8816_v52  ;;  %v6194_v27 = vsel %vm6183_vm4, %v6177_v54, %v8820_v21  ;;  %v14646_v40 = vld [vmem:[#allocation48_spill] sm:$0xff] }
0x1339   : > { %6378 = vmatprep.mubr.f32.mxu0 %v9653_v38  ;;  %v8835_v32 = vunpack.i.l.bf16 %v8834_v61  ;;  %v8836_v46 = vunpack.i.h.bf16 %v8834_v61  ;;  %v8845_v33 = vunpack.i.l.bf16 %v13658_v39  ;;  %v8846_v49 = vunpack.i.h.bf16 %v13658_v39  ;;  %v14644_v61 = vld [vmem:[#allocation33_spill] sm:$0xff] }
0x133a   : > { %v6211_v47 = vsel %vm6200_vm5, %v6194_v27, %v8830_v62 }
0x133b   : > { %v6128_v43 = vsel %vm716_vm0, %v14643_v44, %v8835_v32  ;;  %v6129_v55 = vsel %vm716_vm0, %v14644_v61, %v8836_v46 }
0x133c   : > { %6379 = vmatmul.mubr.f32.gmra.mxu0 %v6224_v20  ;;  %v13669_v63 = vpop.permute.xlu0 %8853  ;;  %v13671_v8 = vpop.permute.xlu1 %8848  ;;  %v8821_v20 = vunpack.i.h.bf16 %v13621_v59  ;;  %v6145_v12 = vsel %vm6132_vm1, %v6128_v43, %v8845_v33  ;;  %v6146_v45 = vsel %vm6132_vm1, %v6129_v55, %v8846_v49 }
0x133d   : > { %6384 = vmatprep.mubr.f32.mxu0 %v9653_v38  ;;  %v8850_v29 = vunpack.i.l.bf16 %v13671_v8  ;;  %v8855_v6 = vunpack.i.l.bf16 %v13669_v63  ;;  %v8851_v59 = vunpack.i.h.bf16 %v13671_v8  ;;  %v8856_v5 = vunpack.i.h.bf16 %v13669_v63 }
0x133e   : > { %v6195_v37 = vsel %vm6183_vm4, %v6178_v19, %v8821_v20 }
0x133f   : > { %v6162_v50 = vsel %vm6149_vm2, %v6145_v12, %v8850_v29  ;;  %v6212_v15 = vsel %vm6200_vm5, %v6195_v37, %v8831_v24  ;;  %v6163_v9 = vsel %vm6149_vm2, %v6146_v45, %v8851_v59 }
0x1340   : > { %6385 = vmatmul.mubr.f32.gmra.mxu0 %v6225_v4  ;;  %v13689_v2 = vpop.permute.xlu0 %8868  ;;  %v6179_v3 = vsel %vm6166_vm3, %v6162_v50, %v8855_v6  ;;  %v6180_v26 = vsel %vm6166_vm3, %v6163_v9, %v8856_v5 }
0x1341   : > { %6390 = vmatprep.mubr.f32.mxu0 %v9653_v38  ;;  %v8870_v16 = vunpack.i.l.bf16 %v13689_v2  ;;  %v8871_v35 = vunpack.i.h.bf16 %v13689_v2 }
0x135d   : > { %v8859_v58 = vpop.permute.xlu1 %8858 }
0x135e   : > { %v8860_v42 = vunpack.i.l.bf16 %v8859_v58  ;;  %v8861_v41 = vunpack.i.h.bf16 %v8859_v58 }
0x1360   : > { %v6226_v14 = vsel %vm6217_vm6, %v6209_v48, %v8860_v42  ;;  %v6227_v13 = vsel %vm6217_vm6, %v6210_v28, %v8861_v41 }
0x1361   : > { %v8864_v51 = vpop.permute.xlu1 %8863  ;;  %6391 = vmatmul.mubr.f32.gmra.mxu0 %v6226_v14 }
0x1362   : > { %v8874_v31 = vpop.permute.xlu0 %8873  ;;  %6396 = vmatprep.mubr.f32.mxu0 %v9653_v38  ;;  %v8865_v7 = vunpack.i.l.bf16 %v8864_v51  ;;  %v8866_v11 = vunpack.i.h.bf16 %v8864_v51 }
0x1363   : > { %v8875_v22 = vunpack.i.l.bf16 %v8874_v31  ;;  %v8876_v57 = vunpack.i.h.bf16 %v8874_v31 }
0x1364   : > { %v6196_v53 = vsel %vm6183_vm4, %v6179_v3, %v8865_v7  ;;  %v6197_v32 = vsel %vm6183_vm4, %v6180_v26, %v8866_v11 }
0x1365   : > { %v8884_v4 = vpop.permute.xlu1 %8883  ;;  %6397 = vmatmul.mubr.f32.gmra.mxu0 %v6227_v13  ;;  %v6228_v39 = vsel %vm6217_vm6, %v6211_v47, %v8875_v22  ;;  %v6229_v63 = vsel %vm6217_vm6, %v6212_v15, %v8876_v57  ;;  %v6213_v14 = vsel %vm6200_vm5, %v6196_v53, %v8870_v16  ;;  %v6214_v28 = vsel %vm6200_vm5, %v6197_v32, %v8871_v35 }
0x1366   : > { %v8879_v25 = vpop.permute.xlu0 %8878  ;;  %6402 = vmatprep.mubr.f32.mxu0 %v9653_v38  ;;  %v8885_v56 = vunpack.i.l.bf16 %v8884_v4  ;;  %v8886_v41 = vunpack.i.h.bf16 %v8884_v4 }
0x1367   : > { %v8880_v17 = vunpack.i.l.bf16 %v8879_v25  ;;  %v8881_v30 = vunpack.i.h.bf16 %v8879_v25 }
0x1369   : > { %v8894_v1 = vpop.permute.xlu1 %8893  ;;  %6403 = vmatmul.mubr.f32.gmra.mxu0 %v6228_v39  ;;  %v6130_v8 = vsel %vm716_vm0, %v14645_v23, %v8880_v17  ;;  %v6131_v0 = vsel %vm716_vm0, %v14646_v40, %v8881_v30 }
0x136a   : > { %v8889_v18 = vpop.permute.xlu0 %8888  ;;  %6408 = vmatprep.mubr.f32.mxu0 %v9653_v38  ;;  %v6147_v36 = vsel %vm6132_vm1, %v6130_v8, %v8885_v56  ;;  %v8895_v42 = vunpack.i.l.bf16 %v8894_v1  ;;  %v6148_v54 = vsel %vm6132_vm1, %v6131_v0, %v8886_v41  ;;  %v8896_v33 = vunpack.i.h.bf16 %v8894_v1 }
0x136b   : > { %v8890_v58 = vunpack.i.l.bf16 %v8889_v18  ;;  %v8891_v52 = vunpack.i.h.bf16 %v8889_v18 }
0x136d   : > { %v8899_v34 = vpop.permute.xlu1 %8898  ;;  %6409 = vmatmul.mubr.f32.gmra.mxu0 %v6229_v63  ;;  %v6164_v48 = vsel %vm6149_vm2, %v6147_v36, %v8890_v58  ;;  %v6165_v43 = vsel %vm6149_vm2, %v6148_v54, %v8891_v52 }
0x136e   : > { %v5969_v10 = vpop.permute.xlu0 %5968  ;;  %v8900_v60 = vunpack.i.l.bf16 %v8899_v34  ;;  %6414 = vmatprep.mubr.f32.mxu0 %v9653_v38  ;;  %v8901_v21 = vunpack.i.h.bf16 %v8899_v34  ;;  %v6181_v62 = vsel %vm6166_vm3, %v6164_v48, %v8895_v42  ;;  %v6182_v13 = vsel %vm6166_vm3, %v6165_v43, %v8896_v33 }
0x136f   : > { %v6198_v44 = vsel %vm6183_vm4, %v6181_v62, %v5969_v10 }
0x1370   : > { %v6230_v51 = vsel %vm6217_vm6, %v6213_v14, %v8900_v60  ;;  %v6231_v29 = vsel %vm6217_vm6, %v6214_v28, %v8901_v21 }
0x1371   : > { %v6033_v46 = vpop.permute.xlu1 %6032  ;;  %6415 = vmatmul.mubr.f32.gmra.mxu0 %v6230_v51 }
0x1372   : > { %v6097_v31 = vpop.permute.xlu0 %6096  ;;  %6420 = vmatprep.mubr.f32.mxu0 %v9653_v38  ;;  %v6215_v2 = vsel %vm6200_vm5, %v6198_v44, %v6033_v46 }
0x1373   : > { %v6232_v27 = vsel %vm6217_vm6, %v6215_v2, %v6097_v31 }
0x1375   : > { %v5971_v22 = vpop.permute.xlu1 %5970  ;;  %6421 = vmatmul.mubr.f32.gmra.mxu0 %v6231_v29 }
0x1376   : > { %6426 = vmatprep.mubr.f32.mxu0 %v9653_v38  ;;  %v6035_v19 = vpop.permute.xlu0 %6034  ;;  %v6199_v20 = vsel %vm6183_vm4, %v6182_v13, %v5971_v22 }
0x1377   : > { %v6216_v24 = vsel %vm6200_vm5, %v6199_v20, %v6035_v19 }
0x1379   : > { %v6099_v4 = vpop.permute.xlu1 %6098  ;;  %6427 = vmatmul.mubr.f32.gmra.mxu0 %v6232_v27 }
0x137a   : > { %6432 = vmatprep.mubr.f32.mxu0 %v9653_v38  ;;  %v6233_v49 = vsel %vm6217_vm6, %v6216_v24, %v6099_v4 }
0x137d   : > { %6433 = vmatmul.mubr.f32.gmra.mxu0 %v6233_v49 }
0x137e   : > { %9525 = shalt.err (!%p9522_p7)
}
0x137f   : > { %s9526_s10 = scalar_lea.hbm %s13766_s11, 16384  ;;  %s9530_s21 = scalar_lea.hbm %s13976_s5, 32768 }
0x1380   : > { %p9527_p8 = scmp.ne.s32.totalorder %s13766_s11, %s9526_s10  ;;  %p9531_p13 = scmp.lt.s32.totalorder %s13766_s11, %s13976_s5 }
0x1381   : > { %p9532_p0 = scmp.lt.s32.totalorder %s9530_s21, %s9526_s10 }
0x1382   : > { %p9528_p11 = pnand %p9527_p8, %p9744_p5 }
0x1383   : > { %p9533_p1 = por %p9532_p0, %p9531_p13 }
0x1384   : > { %p9529_p12 = pneg %p9528_p11 }
0x1386   : > { %p9534_p2 = pnand %p9533_p1, %p9529_p12 }
0x1388   : > { %9537 = shalt.err (!%p9534_p2)
}
0x1389   : > { %s14190_s23 = smov 128   ;;  %s14192_s13 = smov 8   ;;  %v6268_v38 = vlaneseq  ;;  %v6266_v25 = vld [vmem:[%s13975_s4] sm:$0x3] }
0x138a   : > { %s14647_s18 = scalar_lea.sflag [#allocation6], %s9842_s16  ;;  %s13806_s22 = scalar_lea.vmem [#allocation7], %s9845_s17 }
0x138b   : > { %8562 = dma.vmem_to_hbm [thread:$0]  (%p9744_p5), %s13769_s20, 16384, %s13766_s11, %s14647_s18, %s14190_s23, %s14190_s23, %s14192_s13   ;;  %v6269_v61 = vshrl.u32 %v6268_v38, 7 }
0x138c   : > { %s13811_s16 = scalar_lea.vmem [#allocation9], %s9845_s17  ;;  %s14648_s17 = sadd.s32 4294967295, %s9644_s29  }
0x138d   : > { %v6270_v55 = vsub.s32 0, %v6269_v61  ;;  %v6274_v47 = vsub.s32 1, %v6269_v61  ;;  %s13869_s11 = sand.u32 1, %s14648_s17   ;;  %s7151_s20 = sshll.u32 %s9636_s27, 11 }
0x138e   : > { %s6515_s30 = sshll.u32 %s13806_s22, 4  ;;  %s6533_s21 = sshll.u32 %s13811_s16, 4  ;;  %s13883_s30 = int_to_ptr.vmem [resolvable:$true] %s6515_s30  ;;  %s13892_s21 = int_to_ptr.vmem [resolvable:$true] %s6533_s21 }
0x138f   : > { %v13800_v6 = vrot.slane %v6266_v25, %v6270_v55  ;;  %v13802_v59 = vrot.slane %v6266_v25, %v6274_v47  ;;  %s13881_s8 = scalar_lea.hbm %s13977_s6, %s7151_s20  ;;  %s13890_s17 = scalar_lea.hbm %s13978_s7, %s7151_s20 }
0x1390   : > { %s9538_s19 = scalar_lea.vmem %s13883_s30, 2048  ;;  %s9657_s18 = smov [#allocation7]  }
0x1391   : > { %p9539_p3 = scmp.ne.s32.totalorder %s13883_s30, %s9538_s19  ;;  %s9542_s13 = sshll.u32 %s9657_s18, 4  ;;  %s9543_s13 = int_to_ptr.vmem [resolvable:$false] %s9542_s13 }
0x1392   : > { %s9544_s0 = scalar_lea.vmem %s9543_s13, 4096  ;;  %p9545_p7 = scmp.lt.s32.totalorder %s13883_s30, %s9543_s13 }
0x1393   : > { %p9540_p4 = pnand %p9539_p3, %p9744_p5  ;;  %p9546_p8 = scmp.lt.s32.totalorder %s9544_s0, %s9538_s19 }
0x1395   : > { %p9541_p6 = pneg %p9540_p4  ;;  %p9547_p11 = por %p9546_p8, %p9545_p7 }
0x1397   : > { %p9548_p12 = pnand %p9547_p11, %p9541_p6 }
0x13e4   : > { %v6344_v12 = vpop.f32.mrf.mxu0 }
0x13e5   : > { %v6345_v17 = vadd.f32 %v6344_v12, %v13800_v6 }
0x13e6   : > { %v6346_v50 = vpop.f32.mrf.mxu0 }
0x13e7   : > { %6439 = vst [vmem:[%s13806_s22] sm:$0xff] %v6345_v17  ;;  %v6347_v57 = vadd.f32 %v6346_v50, %v13802_v59 }
0x13e8   : > { %v6350_v7 = vpop.f32.mrf.mxu0 }
0x13e9   : > { %6455 = vst [vmem:[%s13811_s16] sm:$0xff] %v6347_v57  ;;  %v6351_v39 = vadd.f32 %v6350_v7, %v13800_v6 }
0x13ea   : > { %v6352_v37 = vpop.f32.mrf.mxu0 }
0x13eb   : > { %6440 = vst [vmem:[%s13806_s22 + $0x8] sm:$0xff] %v6351_v39  ;;  %v6353_v56 = vadd.f32 %v6352_v37, %v13802_v59 }
0x13ec   : > { %v6356_v1 = vpop.f32.mrf.mxu0 }
0x13ed   : > { %6456 = vst [vmem:[%s13811_s16 + $0x8] sm:$0xff] %v6353_v56  ;;  %v6357_v5 = vadd.f32 %v6356_v1, %v13800_v6 }
0x13ee   : > { %v6358_v45 = vpop.f32.mrf.mxu0 }
0x13ef   : > { %6441 = vst [vmem:[%s13806_s22 + $0x10] sm:$0xff] %v6357_v5  ;;  %v6359_v23 = vadd.f32 %v6358_v45, %v13802_v59 }
0x13f0   : > { %v6362_v8 = vpop.f32.mrf.mxu0 }
0x13f1   : > { %6457 = vst [vmem:[%s13811_s16 + $0x10] sm:$0xff] %v6359_v23  ;;  %v6363_v18 = vadd.f32 %v6362_v8, %v13800_v6 }
0x13f2   : > { %v6364_v15 = vpop.f32.mrf.mxu0 }
0x13f3   : > { %6442 = vst [vmem:[%s13806_s22 + $0x18] sm:$0xff] %v6363_v18  ;;  %v6365_v9 = vadd.f32 %v6364_v15, %v13802_v59 }
0x13f4   : > { %v6368_v11 = vpop.f32.mrf.mxu0 }
0x13f5   : > { %6458 = vst [vmem:[%s13811_s16 + $0x18] sm:$0xff] %v6365_v9  ;;  %v6369_v3 = vadd.f32 %v6368_v11, %v13800_v6 }
0x13f6   : > { %v6370_v58 = vpop.f32.mrf.mxu0 }
0x13f7   : > { %6443 = vst [vmem:[%s13806_s22 + $0x20] sm:$0xff] %v6369_v3  ;;  %v6371_v53 = vadd.f32 %v6370_v58, %v13802_v59 }
0x13f8   : > { %v6374_v30 = vpop.f32.mrf.mxu0 }
0x13f9   : > { %6459 = vst [vmem:[%s13811_s16 + $0x20] sm:$0xff] %v6371_v53  ;;  %v6375_v63 = vadd.f32 %v6374_v30, %v13800_v6 }
0x13fa   : > { %v6376_v16 = vpop.f32.mrf.mxu0 }
0x13fb   : > { %6444 = vst [vmem:[%s13806_s22 + $0x28] sm:$0xff] %v6375_v63  ;;  %v6377_v36 = vadd.f32 %v6376_v16, %v13802_v59 }
0x13fc   : > { %v6380_v42 = vpop.f32.mrf.mxu0 }
0x13fd   : > { %6460 = vst [vmem:[%s13811_s16 + $0x28] sm:$0xff] %v6377_v36  ;;  %v6381_v34 = vadd.f32 %v6380_v42, %v13800_v6 }
0x13fe   : > { %v6382_v26 = vpop.f32.mrf.mxu0 }
0x13ff   : > { %6445 = vst [vmem:[%s13806_s22 + $0x30] sm:$0xff] %v6381_v34  ;;  %v6383_v10 = vadd.f32 %v6382_v26, %v13802_v59 }
0x1400   : > { %v6386_v48 = vpop.f32.mrf.mxu0 }
0x1401   : > { %6461 = vst [vmem:[%s13811_s16 + $0x30] sm:$0xff] %v6383_v10  ;;  %v6387_v60 = vadd.f32 %v6386_v48, %v13800_v6 }
0x1402   : > { %v6388_v32 = vpop.f32.mrf.mxu0 }
0x1403   : > { %6446 = vst [vmem:[%s13806_s22 + $0x38] sm:$0xff] %v6387_v60  ;;  %v6389_v41 = vadd.f32 %v6388_v32, %v13802_v59 }
0x1405   : > { %6462 = vst [vmem:[%s13811_s16 + $0x38] sm:$0xff] %v6389_v41 }
0x1421   : > { %v6392_v14 = vpop.f32.mrf.mxu0 }
0x1422   : > { %v6393_v40 = vadd.f32 %v6392_v14, %v13800_v6 }
0x1423   : > { %v6394_v0 = vpop.f32.mrf.mxu0 }
0x1424   : > { %6447 = vst [vmem:[%s13806_s22 + $0x40] sm:$0xff] %v6393_v40  ;;  %v6395_v52 = vadd.f32 %v6394_v0, %v13802_v59 }
0x1425   : > { %v6398_v21 = vpop.f32.mrf.mxu0 }
0x1426   : > { %6463 = vst [vmem:[%s13811_s16 + $0x40] sm:$0xff] %v6395_v52  ;;  %v6399_v51 = vadd.f32 %v6398_v21, %v13800_v6 }
0x1427   : > { %v6400_v35 = vpop.f32.mrf.mxu0 }
0x1428   : > { %6448 = vst [vmem:[%s13806_s22 + $0x48] sm:$0xff] %v6399_v51  ;;  %v6401_v62 = vadd.f32 %v6400_v35, %v13802_v59 }
0x1429   : > { %v6404_v46 = vpop.f32.mrf.mxu0 }
0x142a   : > { %6464 = vst [vmem:[%s13811_s16 + $0x48] sm:$0xff] %v6401_v62  ;;  %v6405_v31 = vadd.f32 %v6404_v46, %v13800_v6 }
0x142b   : > { %v6406_v54 = vpop.f32.mrf.mxu0 }
0x142c   : > { %6449 = vst [vmem:[%s13806_s22 + $0x50] sm:$0xff] %v6405_v31  ;;  %v6407_v33 = vadd.f32 %v6406_v54, %v13802_v59 }
0x142d   : > { %v6410_v28 = vpop.f32.mrf.mxu0 }
0x142e   : > { %6465 = vst [vmem:[%s13811_s16 + $0x50] sm:$0xff] %v6407_v33  ;;  %v6411_v44 = vadd.f32 %v6410_v28, %v13800_v6 }
0x142f   : > { %v6412_v43 = vpop.f32.mrf.mxu0 }
0x1430   : > { %6450 = vst [vmem:[%s13806_s22 + $0x58] sm:$0xff] %v6411_v44  ;;  %v6413_v29 = vadd.f32 %v6412_v43, %v13802_v59 }
0x1431   : > { %v6416_v2 = vpop.f32.mrf.mxu0 }
0x1432   : > { %6466 = vst [vmem:[%s13811_s16 + $0x58] sm:$0xff] %v6413_v29  ;;  %v6417_v22 = vadd.f32 %v6416_v2, %v13800_v6 }
0x1433   : > { %v6418_v13 = vpop.f32.mrf.mxu0 }
0x1434   : > { %6451 = vst [vmem:[%s13806_s22 + $0x60] sm:$0xff] %v6417_v22  ;;  %v6419_v19 = vadd.f32 %v6418_v13, %v13802_v59 }
0x1435   : > { %v6422_v20 = vpop.f32.mrf.mxu0 }
0x1436   : > { %6467 = vst [vmem:[%s13811_s16 + $0x60] sm:$0xff] %v6419_v19  ;;  %v6423_v27 = vadd.f32 %v6422_v20, %v13800_v6 }
0x1437   : > { %v6424_v4 = vpop.f32.mrf.mxu0 }
0x1438   : > { %6452 = vst [vmem:[%s13806_s22 + $0x68] sm:$0xff] %v6423_v27  ;;  %v6425_v24 = vadd.f32 %v6424_v4, %v13802_v59 }
0x1439   : > { %v6428_v49 = vpop.f32.mrf.mxu0 }
0x143a   : > { %6468 = vst [vmem:[%s13811_s16 + $0x68] sm:$0xff] %v6425_v24  ;;  %v6429_v38 = vadd.f32 %v6428_v49, %v13800_v6 }
0x143b   : > { %v6430_v61 = vpop.f32.mrf.mxu0 }
0x143c   : > { %6453 = vst [vmem:[%s13806_s22 + $0x70] sm:$0xff] %v6429_v38  ;;  %v6431_v55 = vadd.f32 %v6430_v61, %v13802_v59 }
0x143d   : > { %v6434_v25 = vpop.f32.mrf.mxu0 }
0x143e   : > { %6469 = vst [vmem:[%s13811_s16 + $0x70] sm:$0xff] %v6431_v55  ;;  %v6435_v47 = vadd.f32 %v6434_v25, %v13800_v6 }
0x143f   : > { %v6436_v12 = vpop.f32.mrf.mxu0 }
0x1440   : > { %6454 = vst [vmem:[%s13806_s22 + $0x78] sm:$0xff] %v6435_v47  ;;  %v6437_v17 = vadd.f32 %v6436_v12, %v13802_v59 }
0x1441   : > { %9551 = shalt.err (!%p9548_p12)
}
0x1442   : > { %s9552_s22 = scalar_lea.hbm %s13881_s8, 2048  ;;  %s9556_s10 = scalar_lea.hbm %s13977_s6, 4096 }
0x1443   : > { %p9553_p13 = scmp.ne.s32.totalorder %s13881_s8, %s9552_s22  ;;  %p9557_p2 = scmp.lt.s32.totalorder %s13881_s8, %s13977_s6 }
0x1444   : > { %p9558_p3 = scmp.lt.s32.totalorder %s9556_s10, %s9552_s22 }
0x1445   : > { %p9554_p0 = pnand %p9553_p13, %p9744_p5 }
0x1446   : > { %p9559_p4 = por %p9558_p3, %p9557_p2 }
0x1447   : > { %p9555_p1 = pneg %p9554_p0 }
0x1449   : > { %p9560_p6 = pnand %p9559_p4, %p9555_p1 }
0x144b   : > { %9563 = shalt.err (!%p9560_p6)
}
0x144c   : > { %s14649_s0 = smov 8   ;;  %s14650_s13 = smov 128   ;;  %6470 = vst [vmem:[%s13811_s16 + $0x78] sm:$0xff] %v6437_v17 }
0x144d   : > { %s14651_s19 = scalar_lea.sflag [#allocation8], %s13869_s11  ;;  %s9564_s23 = scalar_lea.vmem %s13892_s21, 2048 }
0x144e   : > { %8563 = dma.vmem_to_hbm [thread:$0]  (%p9744_p5), %s13883_s30, 2048, %s13881_s8, %s14651_s19, %s14650_s13, %s14650_s13, %s14649_s0  }
0x144f   : > { %p9565_p7 = scmp.ne.s32.totalorder %s13892_s21, %s9564_s23  ;;  %s9658_s22 = smov [#allocation9]  }
0x1450   : > { %s9568_s20 = sshll.u32 %s9658_s22, 4  ;;  %s9569_s20 = int_to_ptr.vmem [resolvable:$false] %s9568_s20 }
0x1451   : > { %p9566_p8 = pnand %p9565_p7, %p9744_p5  ;;  %s9570_s27 = scalar_lea.vmem %s9569_s20, 4096 }
0x1452   : > { %p9571_p12 = scmp.lt.s32.totalorder %s13892_s21, %s9569_s20  ;;  %p9572_p13 = scmp.lt.s32.totalorder %s9570_s27, %s9564_s23 }
0x1453   : > { %p9567_p11 = pneg %p9566_p8 }
0x1454   : > { %p9573_p0 = por %p9572_p13, %p9571_p12 }
0x1456   : > { %p9574_p1 = pnand %p9573_p0, %p9567_p11 }
0x1458   : > { %9577 = shalt.err (!%p9574_p1)
}
0x1459   : > { %s9578_s30 = scalar_lea.hbm %s13890_s17, 2048  ;;  %s9582_s10 = scalar_lea.hbm %s13978_s7, 4096 }
0x145a   : > { %p9579_p2 = scmp.ne.s32.totalorder %s13890_s17, %s9578_s30  ;;  %p9583_p6 = scmp.lt.s32.totalorder %s13890_s17, %s13978_s7 }
0x145b   : > { %p9584_p7 = scmp.lt.s32.totalorder %s9582_s10, %s9578_s30 }
0x145c   : > { %p9580_p3 = pnand %p9579_p2, %p9744_p5 }
0x145d   : > { %p9585_p8 = por %p9584_p7, %p9583_p6 }
0x145e   : > { %p9581_p4 = pneg %p9580_p3 }
0x1460   : > { %p9586_p11 = pnand %p9585_p8, %p9581_p4 }
0x1462   : > { %9589 = shalt.err (!%p9586_p11)
}
0x1463   : > { %s14652_s23 = scalar_lea.sflag [#allocation8], %s13869_s11 }
0x1464   : > { %8564 = dma.vmem_to_hbm [thread:$0]  (%p9744_p5), %s13892_s21, 2048, %s13890_s17, %s14652_s23, %s14650_s13, %s14650_s13, %s14649_s0  }
0x1465 PF: > { %s6548_s22 = sand.u32 1, %s9624_s24   ;;  %p8569_p12 = pnand %p6725_p10, %p9757_p9 }
0x1466   : > { %s6549_s20 = scalar_lea.sflag [#allocation6], %s6548_s22 }
0x1467   : > { %p8570_p13 = pneg %p8569_p12 }
0x1469   : > { %9615 = dma.done.wait (%p8570_p13), %s6549_s20, 16384  }
0x146a   : > { %9617 = vsyncadd (%p8570_p13), %s6549_s20, 4294950912  ;;  %s14653_s12 = sadd.s32 4294967294, %s9644_s29  }
0x146b   : > { %s6557_s27 = sand.u32 1, %s14653_s12  }
0x146c   : > { %s6558_s30 = scalar_lea.sflag [#allocation8], %s6557_s27 }
0x146d   : > { %9619 = dma.done.wait (%p8570_p13), %s6558_s30, 4096  }
0x146e   : > { %9621 = vsyncadd (%p8570_p13), %s6558_s30, 4294963200  ;;  %s24_s29 = sadd.s32 1, %s9644_s29   ;;  %s14654_s24 = smov %s9628_s25 }
0x146f   : > { %p21_p5 = scmp.ge.s32.totalorder %s24_s29, 4   ;;  %s14655_s25 = smov %s9632_s26 }
0x1470   : > { %s14656_s26 = smov %s9755_s14  ;;  %s14657_s27 = smov %s9640_s28 }
0x1471   : > { %s14658_s28 = smov %s14660_s9  ;;  %23 = sbr.rel (!%p21_p5) target bundleno = 8 (0x8), region = 249 }
0x1476   :  { %6572 = vsyncpa [#allocation6], 1 }
0x1477   :  { %6574 = vsyncpa [#allocation6 + $0x1], 1 }
0x1478   :  { %6575 = vsyncpa [#allocation8], 1 }
0x1479   :  { %6577 = vsyncpa [#allocation8 + $0x1], 1 }

</bundles_post_ra>
